<compile_context>
chip_gen: v5e
topology: v5e:2x2
jax: 0.10.0
libtpu: 0.0.40
codegen_flags: <defaults>
</compile_context>

<pallas_src>
import functools

import jax
import jax.numpy as jnp
from jax import lax
from jax.experimental import pallas as pl
from jax.experimental.pallas import tpu as pltpu


# ---------------------------------------------------------------------------
# Kernel 1: everything that reads x.
#   mid = [ relu(x @ [W1|W2a|W3a] + b) | relu(maxpool3x3(x) @ W4 + b4) ]
# ---------------------------------------------------------------------------
def _x_branches_kernel(x_ref, ws_ref, bs_ref, w4_ref, b4_ref, mid_ref,
                       xpad_ref, *, bb, H, W, Cin, S, C4):
    M = bb * H * W
    x = x_ref[...]                                   # (bb, H, W, Cin) f32
    x2d = x.reshape(M, Cin)                          # free: W % 8 == 0

    # Fused 1x1 convs: ONE MXU matmul with concatenated weights.
    stem = jnp.dot(x2d.astype(jnp.bfloat16), ws_ref[...],
                   preferred_element_type=jnp.float32)
    stem = jnp.maximum(stem + bs_ref[...], 0.0)
    mid_ref[:, :, :, 0:S] = stem.reshape(bb, H, W, S)

    # 3x3 stride-1 maxpool, padding=1: -inf border built in VMEM scratch
    # (never touches HBM), separable vertical-then-horizontal max (f32 VPU).
    xpad_ref[...] = jnp.full(xpad_ref.shape, -jnp.inf, jnp.float32)
    xpad_ref[:, 1:1 + H, 1:1 + W, :] = x
    xp = xpad_ref[...]
    v = jnp.maximum(jnp.maximum(xp[:, 0:H], xp[:, 1:1 + H]), xp[:, 2:2 + H])
    pooled = jnp.maximum(jnp.maximum(v[:, :, 0:W], v[:, :, 1:1 + W]),
                         v[:, :, 2:2 + W])

    p4 = jnp.dot(pooled.reshape(M, Cin).astype(jnp.bfloat16), w4_ref[...],
                 preferred_element_type=jnp.float32)
    p4 = jnp.maximum(p4 + b4_ref[...], 0.0)
    mid_ref[:, :, :, S:S + C4] = p4.reshape(bb, H, W, C4)


def _x_branches(x_nhwc, w_stem, b_stem, w4, b4, *, bb):
    n, h, w, cin = x_nhwc.shape
    s = w_stem.shape[-1]
    c4 = w4.shape[-1]
    assert n % bb == 0 and w % 8 == 0 and (h * w) % 8 == 0

    cost = pl.CostEstimate(
        flops=2 * n * h * w * cin * (s + c4) + 4 * n * h * w * cin,
        transcendentals=0,
        bytes_accessed=(x_nhwc.size + n * h * w * (s + c4)) * 4
                       + (w_stem.size + w4.size) * 2)

    return pl.pallas_call(
        functools.partial(_x_branches_kernel, bb=bb, H=h, W=w, Cin=cin,
                          S=s, C4=c4),
        grid=(n // bb,),
        in_specs=[
            pl.BlockSpec((bb, h, w, cin), lambda i: (i, 0, 0, 0)),
            pl.BlockSpec((cin, s), lambda i: (0, 0)),
            pl.BlockSpec((1, s), lambda i: (0, 0)),
            pl.BlockSpec((cin, c4), lambda i: (0, 0)),
            pl.BlockSpec((1, c4), lambda i: (0, 0)),
        ],
        out_specs=pl.BlockSpec((bb, h, w, s + c4), lambda i: (i, 0, 0, 0)),
        out_shape=jax.ShapeDtypeStruct((n, h, w, s + c4), jnp.float32),
        scratch_shapes=[pltpu.VMEM((bb, h + 2, w + 2, cin), jnp.float32)],
        compiler_params=pltpu.CompilerParams(
            dimension_semantics=("parallel",)),
        cost_estimate=cost,
    )(x_nhwc, w_stem, b_stem, w4, b4)


# ---------------------------------------------------------------------------
# Kernel 2: both KxK 'same' convs (3x3 and 5x5) + final concat assembly.
# Per-tap accumulating bf16 dots over a zero-padded VMEM scratch; f32 acc,
# bias, ReLU.  Output block is the full concatenated (bb, H, W, Ctot) slab.
# ---------------------------------------------------------------------------
def _kk_branches_kernel(mid_ref, w2_ref, b2_ref, w3_ref, b3_ref, y_ref,
                        z2_ref, z3_ref, *, bb, H, W,
                        c1, c2a, c2b, c3a, c3b, c4):
    M = bb * H * W

    # p1 / p4 pass straight through into their column blocks of the final
    # output (in-kernel assembly; no wrapper-side concat / extra HBM pass).
    y_ref[:, :, :, 0:c1] = mid_ref[:, :, :, 0:c1]
    o4 = c1 + c2b + c3b
    m4 = c1 + c2a + c3a
    y_ref[:, :, :, o4:o4 + c4] = mid_ref[:, :, :, m4:m4 + c4]

    def conv_same_relu(z_ref, col0, cin, w_ref, b_ref, k):
        pad = k // 2
        cout = w_ref.shape[-1]
        # zero 'same' padding built in VMEM scratch (never touches HBM)
        z_ref[...] = jnp.zeros(z_ref.shape, z_ref.dtype)
        z_ref[:, pad:pad + H, pad:pad + W, :] = mid_ref[:, :, :,
                                                        col0:col0 + cin]
        zp = z_ref[...]
        # Per-tap accumulation: no (M, k*k*Cin) im2col slab, no lane-sparse
        # masked scratch stores; operands bf16 at the MXU, f32 accumulator.
        acc = jnp.zeros((M, cout), jnp.float32)
        t = 0
        for dh in range(k):                       # static unroll over taps
            for dw in range(k):
                tap = zp[:, dh:dh + H, dw:dw + W, :].reshape(M, cin)
                acc = acc + jnp.dot(tap.astype(jnp.bfloat16), w_ref[t],
                                    preferred_element_type=jnp.float32)
                t += 1
        return jnp.maximum(acc + b_ref[...], 0.0)

    p2 = conv_same_relu(z2_ref, c1, c2a, w2_ref, b2_ref, 3)
    y_ref[:, :, :, c1:c1 + c2b] = p2.reshape(bb, H, W, c2b)

    p3 = conv_same_relu(z3_ref, c1 + c2a, c3a, w3_ref, b3_ref, 5)
    y_ref[:, :, :, c1 + c2b:c1 + c2b + c3b] = p3.reshape(bb, H, W, c3b)


def _kk_branches(mid, w2, b2, w3, b3, *, dims, bb):
    c1, c2a, c2b, c3a, c3b, c4 = dims
    n, h, w, cmid = mid.shape
    assert cmid == c1 + c2a + c3a + c4 and n % bb == 0
    ct = c1 + c2b + c3b + c4

    cost = pl.CostEstimate(
        flops=2 * n * h * w * (9 * c2a * c2b + 25 * c3a * c3b),
        transcendentals=0,
        bytes_accessed=(mid.size + n * h * w * ct) * 4
                       + (w2.size + w3.size) * 2)

    return pl.pallas_call(
        functools.partial(_kk_branches_kernel, bb=bb, H=h, W=w, c1=c1,
                          c2a=c2a, c2b=c2b, c3a=c3a, c3b=c3b, c4=c4),
        grid=(n // bb,),
        in_specs=[
            pl.BlockSpec((bb, h, w, cmid), lambda i: (i, 0, 0, 0)),
            pl.BlockSpec((9, c2a, c2b), lambda i: (0, 0, 0)),
            pl.BlockSpec((1, c2b), lambda i: (0, 0)),
            pl.BlockSpec((25, c3a, c3b), lambda i: (0, 0, 0)),
            pl.BlockSpec((1, c3b), lambda i: (0, 0)),
        ],
        out_specs=pl.BlockSpec((bb, h, w, ct), lambda i: (i, 0, 0, 0)),
        out_shape=jax.ShapeDtypeStruct((n, h, w, ct), jnp.float32),
        scratch_shapes=[
            pltpu.VMEM((bb, h + 2, w + 2, c2a), jnp.float32),
            pltpu.VMEM((bb, h + 4, w + 4, c3a), jnp.float32),
        ],
        compiler_params=pltpu.CompilerParams(
            dimension_semantics=("parallel",)),
        cost_estimate=cost,
    )(mid, w2, b2, w3, b3)


# ---------------------------------------------------------------------------
# Inception forward (matches the PyTorch module semantics)
# ---------------------------------------------------------------------------
def inception_forward(params, x_nchw, *, bb=1):
    x = jnp.transpose(x_nchw, (0, 2, 3, 1)).astype(jnp.float32)  # NCHW -> NHWC
    n, h, w, cin = x.shape
    c1 = params['p1_1_w'].shape[-1]
    c2a, c2b = params['p2_2_w'].shape[-2], params['p2_2_w'].shape[-1]
    c3a, c3b = params['p3_2_w'].shape[-2], params['p3_2_w'].shape[-1]
    c4 = params['p4_2_w'].shape[-1]

    # Concatenated 1x1 weights/bias for the fused stem matmul (bf16 operands).
    w_stem = jnp.concatenate(
        [params['p1_1_w'].reshape(cin, c1),
         params['p2_1_w'].reshape(cin, c2a),
         params['p3_1_w'].reshape(cin, c3a)], axis=1).astype(jnp.bfloat16)
    b_stem = jnp.concatenate(
        [params['p1_1_b'], params['p2_1_b'], params['p3_1_b']]
    ).reshape(1, -1).astype(jnp.float32)
    w4 = params['p4_2_w'].reshape(cin, c4).astype(jnp.bfloat16)
    b4 = params['p4_2_b'].reshape(1, c4).astype(jnp.float32)

    mid = _x_branches(x, w_stem, b_stem, w4, b4, bb=bb)

    # Per-tap weights: (k*k, Cin, Cout) so the kernel indexes the leading dim.
    w2 = params['p2_2_w'].reshape(9, c2a, c2b).astype(jnp.bfloat16)
    b2 = params['p2_2_b'].reshape(1, c2b).astype(jnp.float32)
    w3 = params['p3_2_w'].reshape(25, c3a, c3b).astype(jnp.bfloat16)
    b3 = params['p3_2_b'].reshape(1, c3b).astype(jnp.float32)

    y = _kk_branches(mid, w2, b2, w3, b3,
                     dims=(c1, c2a, c2b, c3a, c3b, c4), bb=bb)
    return jnp.transpose(y, (0, 3, 1, 2))            # NHWC -> NCHW


# ---------------------------------------------------------------------------
# Pure-JAX reference (for correctness check)
# ---------------------------------------------------------------------------
def _ref_conv_relu(x_nchw, w_hwio, b, pad):
    y = lax.conv_general_dilated(
        x_nchw, w_hwio, window_strides=(1, 1),
        padding=[(pad, pad), (pad, pad)],
        dimension_numbers=('NCHW', 'HWIO', 'NCHW'))
    return jax.nn.relu(y + b[None, :, None, None])


def ref_inception(params, x_nchw):
    p1 = _ref_conv_relu(x_nchw, params['p1_1_w'], params['p1_1_b'], 0)
    p2 = _ref_conv_relu(
        _ref_conv_relu(x_nchw, params['p2_1_w'], params['p2_1_b'], 0),
        params['p2_2_w'], params['p2_2_b'], 1)
    p3 = _ref_conv_relu(
        _ref_conv_relu(x_nchw, params['p3_1_w'], params['p3_1_b'], 0),
        params['p3_2_w'], params['p3_2_b'], 2)
    mp = lax.reduce_window(x_nchw, -jnp.inf, lax.max,
                           (1, 1, 3, 3), (1, 1, 1, 1),
                           [(0, 0), (0, 0), (1, 1), (1, 1)])
    p4 = _ref_conv_relu(mp, params['p4_2_w'], params['p4_2_b'], 0)
    return jnp.concatenate([p1, p2, p3, p4], axis=1)


# ---------------------------------------------------------------------------
# Main
# ---------------------------------------------------------------------------
if __name__ == "__main__":
    # Small Inception(in_c=4, c1=8, c2=(8,16), c3=(4,8), c4=8)
    in_c, c1, c2, c3, c4 = 4, 8, (8, 16), (4, 8), 8
    N, H, W = 2, 16, 16

    key = jax.random.PRNGKey(0)
    keys = jax.random.split(key, 13)

    def init(k, shape):
        return 0.1 * jax.random.normal(k, shape, jnp.float32)

    # weights stored HWIO; biases (Cout,)
    params = {
        'p1_1_w': init(keys[0], (1, 1, in_c, c1)),     'p1_1_b': init(keys[1], (c1,)),
        'p2_1_w': init(keys[2], (1, 1, in_c, c2[0])),  'p2_1_b': init(keys[3], (c2[0],)),
        'p2_2_w': init(keys[4], (3, 3, c2[0], c2[1])), 'p2_2_b': init(keys[5], (c2[1],)),
        'p3_1_w': init(keys[6], (1, 1, in_c, c3[0])),  'p3_1_b': init(keys[7], (c3[0],)),
        'p3_2_w': init(keys[8], (5, 5, c3[0], c3[1])), 'p3_2_b': init(keys[9], (c3[1],)),
        'p4_2_w': init(keys[10], (1, 1, in_c, c4)),    'p4_2_b': init(keys[11], (c4,)),
    }

    x = jax.random.normal(keys[12], (N, in_c, H, W), jnp.float32)

    fwd = jax.jit(inception_forward)
    out = jax.block_until_ready(fwd(params, x))

    assert out.shape == (N, c1 + c2[1] + c3[1] + c4, H, W)
    ref = ref_inception(params, x)
    # Tolerance sized for bf16 MXU operands (f32 accumulation/epilogue).
    assert jnp.allclose(out, ref, atol=5e-2, rtol=5e-2), "mismatch vs reference"

    print("KERNEL_OK")
</pallas_src>

<mosaic_0001>
module attributes {stable_mosaic.version = 11 : i64} {
  func.func @_x_branches_kernel(%arg0: i32, %arg1: memref<1x16x16x4xf32, #tpu.memory_space<vmem>>, %arg2: memref<4x20xbf16, #tpu.memory_space<vmem>>, %arg3: memref<1x20xf32, #tpu.memory_space<vmem>>, %arg4: memref<4x8xbf16, #tpu.memory_space<vmem>>, %arg5: memref<1x8xf32, #tpu.memory_space<vmem>>, %arg6: memref<1x16x16x28xf32, #tpu.memory_space<vmem>>, %arg7: memref<1x18x18x4xf32, #tpu.memory_space<vmem>>) attributes {dimension_semantics = [#tpu.dimension_semantics<parallel>], iteration_bounds = array<i64: 2>, scalar_prefetch = 0 : i64, scratch_operands = 1 : i64, tpu.core_type = #tpu.core_type<tc>, window_params = [{transform_indices = @transform_0, window_bounds = array<i64: 1, 16, 16, 4>}, {pipeline_mode = #tpu.pipeline_mode<synchronous>, transform_indices = @transform_1, window_bounds = array<i64: 4, 20>}, {pipeline_mode = #tpu.pipeline_mode<synchronous>, transform_indices = @transform_2, window_bounds = array<i64: 1, 20>}, {pipeline_mode = #tpu.pipeline_mode<synchronous>, transform_indices = @transform_3, window_bounds = array<i64: 4, 8>}, {pipeline_mode = #tpu.pipeline_mode<synchronous>, transform_indices = @transform_4, window_bounds = array<i64: 1, 8>}, {transform_indices = @transform_5, window_bounds = array<i64: 1, 16, 16, 28>}]} {
    %c0 = arith.constant 0 : index
    %c0_0 = arith.constant 0 : index
    %c0_1 = arith.constant 0 : index
    %c0_2 = arith.constant 0 : index
    %0 = vector.load %arg1[%c0, %c0_0, %c0_1, %c0_2] : memref<1x16x16x4xf32, #tpu.memory_space<vmem>>, vector<1x16x16x4xf32>
    %1 = vector.shape_cast %0 : vector<1x16x16x4xf32> to vector<256x4xf32>
    %2 = arith.truncf %1 : vector<256x4xf32> to vector<256x4xbf16>
    %c0_3 = arith.constant 0 : index
    %c0_4 = arith.constant 0 : index
    %3 = vector.load %arg2[%c0_3, %c0_4] : memref<4x20xbf16, #tpu.memory_space<vmem>>, vector<4x20xbf16>
    %cst = arith.constant dense<0.000000e+00> : vector<256x20xf32>
    %4 = tpu.matmul %2, %3, %cst {dimension_numbers = #tpu.dot_dimension_numbers<[1], [0], [0], [1], [0, 0, 1, 1], [], []>} : vector<256x4xbf16>, vector<4x20xbf16>, vector<256x20xf32> -> vector<256x20xf32>
    %c0_5 = arith.constant 0 : index
    %c0_6 = arith.constant 0 : index
    %5 = vector.load %arg3[%c0_5, %c0_6] : memref<1x20xf32, #tpu.memory_space<vmem>>, vector<1x20xf32>
    %6 = vector.broadcast %5 : vector<1x20xf32> to vector<256x20xf32>
    %7 = arith.addf %4, %6 : vector<256x20xf32>
    %cst_7 = arith.constant 0.000000e+00 : f32
    %8 = vector.broadcast %cst_7 : f32 to vector<256x20xf32>
    %9 = arith.maximumf %7, %8 : vector<256x20xf32>
    %10 = vector.shape_cast %9 : vector<256x20xf32> to vector<1x16x16x20xf32>
    %c0_8 = arith.constant 0 : index
    %c0_9 = arith.constant 0 : index
    %c0_10 = arith.constant 0 : index
    %c0_11 = arith.constant 0 : index
    %11 = vector.load %arg6[%c0_8, %c0_9, %c0_10, %c0_11] : memref<1x16x16x28xf32, #tpu.memory_space<vmem>>, vector<1x16x16x20xf32>
    tpu.vector_store %arg6[%c0_8, %c0_9, %c0_10, %c0_11], %10 {strides = array<i32>} : memref<1x16x16x28xf32, #tpu.memory_space<vmem>>, vector<1x16x16x20xf32>,
    %cst_12 = arith.constant 0xFF800000 : f32
    %12 = vector.broadcast %cst_12 : f32 to vector<1x18x18x4xf32>
    %c0_13 = arith.constant 0 : index
    %c0_14 = arith.constant 0 : index
    %c0_15 = arith.constant 0 : index
    %c0_16 = arith.constant 0 : index
    %13 = vector.load %arg7[%c0_13, %c0_14, %c0_15, %c0_16] : memref<1x18x18x4xf32, #tpu.memory_space<vmem>>, vector<1x18x18x4xf32>
    tpu.vector_store %arg7[%c0_13, %c0_14, %c0_15, %c0_16], %12 {strides = array<i32>} : memref<1x18x18x4xf32, #tpu.memory_space<vmem>>, vector<1x18x18x4xf32>,
    %c0_17 = arith.constant 0 : index
    %c1 = arith.constant 1 : index
    %c1_18 = arith.constant 1 : index
    %c0_19 = arith.constant 0 : index
    %14 = vector.load %arg7[%c0_17, %c1, %c1_18, %c0_19] : memref<1x18x18x4xf32, #tpu.memory_space<vmem>>, vector<1x16x16x4xf32>
    tpu.vector_store %arg7[%c0_17, %c1, %c1_18, %c0_19], %0 {strides = array<i32>} : memref<1x18x18x4xf32, #tpu.memory_space<vmem>>, vector<1x16x16x4xf32>,
    %c0_20 = arith.constant 0 : index
    %c0_21 = arith.constant 0 : index
    %c0_22 = arith.constant 0 : index
    %c0_23 = arith.constant 0 : index
    %15 = vector.load %arg7[%c0_20, %c0_21, %c0_22, %c0_23] : memref<1x18x18x4xf32, #tpu.memory_space<vmem>>, vector<1x18x18x4xf32>
    %16 = vector.extract_strided_slice %15 {offsets = [0, 0, 0, 0], sizes = [1, 16, 18, 4], strides = [1, 1, 1, 1]} : vector<1x18x18x4xf32> to vector<1x16x18x4xf32>
    %17 = vector.extract_strided_slice %15 {offsets = [0, 1, 0, 0], sizes = [1, 16, 18, 4], strides = [1, 1, 1, 1]} : vector<1x18x18x4xf32> to vector<1x16x18x4xf32>
    %18 = arith.maximumf %16, %17 : vector<1x16x18x4xf32>
    %19 = vector.extract_strided_slice %15 {offsets = [0, 2, 0, 0], sizes = [1, 16, 18, 4], strides = [1, 1, 1, 1]} : vector<1x18x18x4xf32> to vector<1x16x18x4xf32>
    %20 = arith.maximumf %18, %19 : vector<1x16x18x4xf32>
    %21 = vector.extract_strided_slice %20 {offsets = [0, 0, 0, 0], sizes = [1, 16, 16, 4], strides = [1, 1, 1, 1]} : vector<1x16x18x4xf32> to vector<1x16x16x4xf32>
    %22 = vector.extract_strided_slice %20 {offsets = [0, 0, 1, 0], sizes = [1, 16, 16, 4], strides = [1, 1, 1, 1]} : vector<1x16x18x4xf32> to vector<1x16x16x4xf32>
    %23 = arith.maximumf %21, %22 : vector<1x16x16x4xf32>
    %24 = vector.extract_strided_slice %20 {offsets = [0, 0, 2, 0], sizes = [1, 16, 16, 4], strides = [1, 1, 1, 1]} : vector<1x16x18x4xf32> to vector<1x16x16x4xf32>
    %25 = arith.maximumf %23, %24 : vector<1x16x16x4xf32>
    %26 = vector.shape_cast %25 : vector<1x16x16x4xf32> to vector<256x4xf32>
    %27 = arith.truncf %26 : vector<256x4xf32> to vector<256x4xbf16>
    %c0_24 = arith.constant 0 : index
    %c0_25 = arith.constant 0 : index
    %28 = vector.load %arg4[%c0_24, %c0_25] : memref<4x8xbf16, #tpu.memory_space<vmem>>, vector<4x8xbf16>
    %cst_26 = arith.constant dense<0.000000e+00> : vector<256x8xf32>
    %29 = tpu.matmul %27, %28, %cst_26 {dimension_numbers = #tpu.dot_dimension_numbers<[1], [0], [0], [1], [0, 0, 1, 1], [], []>} : vector<256x4xbf16>, vector<4x8xbf16>, vector<256x8xf32> -> vector<256x8xf32>
    %c0_27 = arith.constant 0 : index
    %c0_28 = arith.constant 0 : index
    %30 = vector.load %arg5[%c0_27, %c0_28] : memref<1x8xf32, #tpu.memory_space<vmem>>, vector<1x8xf32>
    %31 = vector.broadcast %30 : vector<1x8xf32> to vector<256x8xf32>
    %32 = arith.addf %29, %31 : vector<256x8xf32>
    %cst_29 = arith.constant 0.000000e+00 : f32
    %33 = vector.broadcast %cst_29 : f32 to vector<256x8xf32>
    %34 = arith.maximumf %32, %33 : vector<256x8xf32>
    %35 = vector.shape_cast %34 : vector<256x8xf32> to vector<1x16x16x8xf32>
    %c0_30 = arith.constant 0 : index
    %c0_31 = arith.constant 0 : index
    %c0_32 = arith.constant 0 : index
    %c20 = arith.constant 20 : index
    %36 = vector.load %arg6[%c0_30, %c0_31, %c0_32, %c20] : memref<1x16x16x28xf32, #tpu.memory_space<vmem>>, vector<1x16x16x8xf32>
    tpu.vector_store %arg6[%c0_30, %c0_31, %c0_32, %c20], %35 {strides = array<i32>} : memref<1x16x16x28xf32, #tpu.memory_space<vmem>>, vector<1x16x16x8xf32>,
    return
  }
  func.func @transform_0(%arg0: i32) -> (i32, i32, i32, i32) {
    %c0_i32 = arith.constant 0 : i32
    %c0_i32_0 = arith.constant 0 : i32
    %c0_i32_1 = arith.constant 0 : i32
    %c0_i32_2 = arith.constant 0 : i32
    return %arg0, %c0_i32, %c0_i32_0, %c0_i32_1 : i32, i32, i32, i32
  }
  func.func @transform_1(%arg0: i32) -> (i32, i32) {
    %c0_i32 = arith.constant 0 : i32
    %c0_i32_0 = arith.constant 0 : i32
    %c0_i32_1 = arith.constant 0 : i32
    return %c0_i32, %c0_i32_0 : i32, i32
  }
  func.func @transform_2(%arg0: i32) -> (i32, i32) {
    %c0_i32 = arith.constant 0 : i32
    %c0_i32_0 = arith.constant 0 : i32
    %c0_i32_1 = arith.constant 0 : i32
    return %c0_i32, %c0_i32_0 : i32, i32
  }
  func.func @transform_3(%arg0: i32) -> (i32, i32) {
    %c0_i32 = arith.constant 0 : i32
    %c0_i32_0 = arith.constant 0 : i32
    %c0_i32_1 = arith.constant 0 : i32
    return %c0_i32, %c0_i32_0 : i32, i32
  }
  func.func @transform_4(%arg0: i32) -> (i32, i32) {
    %c0_i32 = arith.constant 0 : i32
    %c0_i32_0 = arith.constant 0 : i32
    %c0_i32_1 = arith.constant 0 : i32
    return %c0_i32, %c0_i32_0 : i32, i32
  }
  func.func @transform_5(%arg0: i32) -> (i32, i32, i32, i32) {
    %c0_i32 = arith.constant 0 : i32
    %c0_i32_0 = arith.constant 0 : i32
    %c0_i32_1 = arith.constant 0 : i32
    %c0_i32_2 = arith.constant 0 : i32
    return %arg0, %c0_i32, %c0_i32_0, %c0_i32_1 : i32, i32, i32, i32
  }
}

module attributes {stable_mosaic.version = 11 : i64} {
  func.func @_kk_branches_kernel(%arg0: i32, %arg1: memref<1x16x16x28xf32, #tpu.memory_space<vmem>>, %arg2: memref<9x8x16xbf16, #tpu.memory_space<vmem>>, %arg3: memref<1x16xf32, #tpu.memory_space<vmem>>, %arg4: memref<25x4x8xbf16, #tpu.memory_space<vmem>>, %arg5: memref<1x8xf32, #tpu.memory_space<vmem>>, %arg6: memref<1x16x16x40xf32, #tpu.memory_space<vmem>>, %arg7: memref<1x18x18x8xf32, #tpu.memory_space<vmem>>, %arg8: memref<1x20x20x4xf32, #tpu.memory_space<vmem>>) attributes {dimension_semantics = [#tpu.dimension_semantics<parallel>], iteration_bounds = array<i64: 2>, scalar_prefetch = 0 : i64, scratch_operands = 2 : i64, tpu.core_type = #tpu.core_type<tc>, window_params = [{transform_indices = @transform_0, window_bounds = array<i64: 1, 16, 16, 28>}, {pipeline_mode = #tpu.pipeline_mode<synchronous>, transform_indices = @transform_1, window_bounds = array<i64: 9, 8, 16>}, {pipeline_mode = #tpu.pipeline_mode<synchronous>, transform_indices = @transform_2, window_bounds = array<i64: 1, 16>}, {pipeline_mode = #tpu.pipeline_mode<synchronous>, transform_indices = @transform_3, window_bounds = array<i64: 25, 4, 8>}, {pipeline_mode = #tpu.pipeline_mode<synchronous>, transform_indices = @transform_4, window_bounds = array<i64: 1, 8>}, {transform_indices = @transform_5, window_bounds = array<i64: 1, 16, 16, 40>}]} {
    %c0 = arith.constant 0 : index
    %c0_0 = arith.constant 0 : index
    %c0_1 = arith.constant 0 : index
    %c0_2 = arith.constant 0 : index
    %0 = vector.load %arg1[%c0, %c0_0, %c0_1, %c0_2] : memref<1x16x16x28xf32, #tpu.memory_space<vmem>>, vector<1x16x16x8xf32>
    %c0_3 = arith.constant 0 : index
    %c0_4 = arith.constant 0 : index
    %c0_5 = arith.constant 0 : index
    %c0_6 = arith.constant 0 : index
    %1 = vector.load %arg6[%c0_3, %c0_4, %c0_5, %c0_6] : memref<1x16x16x40xf32, #tpu.memory_space<vmem>>, vector<1x16x16x8xf32>
    tpu.vector_store %arg6[%c0_3, %c0_4, %c0_5, %c0_6], %0 {strides = array<i32>} : memref<1x16x16x40xf32, #tpu.memory_space<vmem>>, vector<1x16x16x8xf32>,
    %c0_7 = arith.constant 0 : index
    %c0_8 = arith.constant 0 : index
    %c0_9 = arith.constant 0 : index
    %c20 = arith.constant 20 : index
    %2 = vector.load %arg1[%c0_7, %c0_8, %c0_9, %c20] : memref<1x16x16x28xf32, #tpu.memory_space<vmem>>, vector<1x16x16x8xf32>
    %c0_10 = arith.constant 0 : index
    %c0_11 = arith.constant 0 : index
    %c0_12 = arith.constant 0 : index
    %c32 = arith.constant 32 : index
    %3 = vector.load %arg6[%c0_10, %c0_11, %c0_12, %c32] : memref<1x16x16x40xf32, #tpu.memory_space<vmem>>, vector<1x16x16x8xf32>
    tpu.vector_store %arg6[%c0_10, %c0_11, %c0_12, %c32], %2 {strides = array<i32>} : memref<1x16x16x40xf32, #tpu.memory_space<vmem>>, vector<1x16x16x8xf32>,
    %cst = arith.constant 0.000000e+00 : f32
    %4 = vector.broadcast %cst : f32 to vector<1x18x18x8xf32>
    %c0_13 = arith.constant 0 : index
    %c0_14 = arith.constant 0 : index
    %c0_15 = arith.constant 0 : index
    %c0_16 = arith.constant 0 : index
    %5 = vector.load %arg7[%c0_13, %c0_14, %c0_15, %c0_16] : memref<1x18x18x8xf32, #tpu.memory_space<vmem>>, vector<1x18x18x8xf32>
    tpu.vector_store %arg7[%c0_13, %c0_14, %c0_15, %c0_16], %4 {strides = array<i32>} : memref<1x18x18x8xf32, #tpu.memory_space<vmem>>, vector<1x18x18x8xf32>,
    %c0_17 = arith.constant 0 : index
    %c0_18 = arith.constant 0 : index
    %c0_19 = arith.constant 0 : index
    %c8 = arith.constant 8 : index
    %6 = vector.load %arg1[%c0_17, %c0_18, %c0_19, %c8] : memref<1x16x16x28xf32, #tpu.memory_space<vmem>>, vector<1x16x16x8xf32>
    %c0_20 = arith.constant 0 : index
    %c1 = arith.constant 1 : index
    %c1_21 = arith.constant 1 : index
    %c0_22 = arith.constant 0 : index
    %7 = vector.load %arg7[%c0_20, %c1, %c1_21, %c0_22] : memref<1x18x18x8xf32, #tpu.memory_space<vmem>>, vector<1x16x16x8xf32>
    tpu.vector_store %arg7[%c0_20, %c1, %c1_21, %c0_22], %6 {strides = array<i32>} : memref<1x18x18x8xf32, #tpu.memory_space<vmem>>, vector<1x16x16x8xf32>,
    %c0_23 = arith.constant 0 : index
    %c0_24 = arith.constant 0 : index
    %c0_25 = arith.constant 0 : index
    %c0_26 = arith.constant 0 : index
    %8 = vector.load %arg7[%c0_23, %c0_24, %c0_25, %c0_26] : memref<1x18x18x8xf32, #tpu.memory_space<vmem>>, vector<1x18x18x8xf32>
    %cst_27 = arith.constant 0.000000e+00 : f32
    %9 = vector.broadcast %cst_27 : f32 to vector<256x16xf32>
    %10 = vector.extract_strided_slice %8 {offsets = [0, 0, 0, 0], sizes = [1, 16, 16, 8], strides = [1, 1, 1, 1]} : vector<1x18x18x8xf32> to vector<1x16x16x8xf32>
    %11 = vector.shape_cast %10 : vector<1x16x16x8xf32> to vector<256x8xf32>
    %12 = arith.truncf %11 : vector<256x8xf32> to vector<256x8xbf16>
    %c0_28 = arith.constant 0 : index
    %c0_29 = arith.constant 0 : index
    %c0_30 = arith.constant 0 : index
    %13 = vector.load %arg2[%c0_28, %c0_29, %c0_30] : memref<9x8x16xbf16, #tpu.memory_space<vmem>>, vector<1x8x16xbf16>
    %14 = vector.shape_cast %13 : vector<1x8x16xbf16> to vector<8x16xbf16>
    %cst_31 = arith.constant dense<0.000000e+00> : vector<256x16xf32>
    %15 = tpu.matmul %12, %14, %cst_31 {dimension_numbers = #tpu.dot_dimension_numbers<[1], [0], [0], [1], [0, 0, 1, 1], [], []>} : vector<256x8xbf16>, vector<8x16xbf16>, vector<256x16xf32> -> vector<256x16xf32>
    %16 = arith.addf %9, %15 : vector<256x16xf32>
    %17 = vector.extract_strided_slice %8 {offsets = [0, 0, 1, 0], sizes = [1, 16, 16, 8], strides = [1, 1, 1, 1]} : vector<1x18x18x8xf32> to vector<1x16x16x8xf32>
    %18 = vector.shape_cast %17 : vector<1x16x16x8xf32> to vector<256x8xf32>
    %19 = arith.truncf %18 : vector<256x8xf32> to vector<256x8xbf16>
    %c1_32 = arith.constant 1 : index
    %c0_33 = arith.constant 0 : index
    %c0_34 = arith.constant 0 : index
    %20 = vector.load %arg2[%c1_32, %c0_33, %c0_34] : memref<9x8x16xbf16, #tpu.memory_space<vmem>>, vector<1x8x16xbf16>
    %21 = vector.shape_cast %20 : vector<1x8x16xbf16> to vector<8x16xbf16>
    %cst_35 = arith.constant dense<0.000000e+00> : vector<256x16xf32>
    %22 = tpu.matmul %19, %21, %cst_35 {dimension_numbers = #tpu.dot_dimension_numbers<[1], [0], [0], [1], [0, 0, 1, 1], [], []>} : vector<256x8xbf16>, vector<8x16xbf16>, vector<256x16xf32> -> vector<256x16xf32>
    %23 = arith.addf %16, %22 : vector<256x16xf32>
    %24 = vector.extract_strided_slice %8 {offsets = [0, 0, 2, 0], sizes = [1, 16, 16, 8], strides = [1, 1, 1, 1]} : vector<1x18x18x8xf32> to vector<1x16x16x8xf32>
    %25 = vector.shape_cast %24 : vector<1x16x16x8xf32> to vector<256x8xf32>
    %26 = arith.truncf %25 : vector<256x8xf32> to vector<256x8xbf16>
    %c2 = arith.constant 2 : index
    %c0_36 = arith.constant 0 : index
    %c0_37 = arith.constant 0 : index
    %27 = vector.load %arg2[%c2, %c0_36, %c0_37] : memref<9x8x16xbf16, #tpu.memory_space<vmem>>, vector<1x8x16xbf16>
    %28 = vector.shape_cast %27 : vector<1x8x16xbf16> to vector<8x16xbf16>
    %cst_38 = arith.constant dense<0.000000e+00> : vector<256x16xf32>
    %29 = tpu.matmul %26, %28, %cst_38 {dimension_numbers = #tpu.dot_dimension_numbers<[1], [0], [0], [1], [0, 0, 1, 1], [], []>} : vector<256x8xbf16>, vector<8x16xbf16>, vector<256x16xf32> -> vector<256x16xf32>
    %30 = arith.addf %23, %29 : vector<256x16xf32>
    %31 = vector.extract_strided_slice %8 {offsets = [0, 1, 0, 0], sizes = [1, 16, 16, 8], strides = [1, 1, 1, 1]} : vector<1x18x18x8xf32> to vector<1x16x16x8xf32>
    %32 = vector.shape_cast %31 : vector<1x16x16x8xf32> to vector<256x8xf32>
    %33 = arith.truncf %32 : vector<256x8xf32> to vector<256x8xbf16>
    %c3 = arith.constant 3 : index
    %c0_39 = arith.constant 0 : index
    %c0_40 = arith.constant 0 : index
    %34 = vector.load %arg2[%c3, %c0_39, %c0_40] : memref<9x8x16xbf16, #tpu.memory_space<vmem>>, vector<1x8x16xbf16>
    %35 = vector.shape_cast %34 : vector<1x8x16xbf16> to vector<8x16xbf16>
    %cst_41 = arith.constant dense<0.000000e+00> : vector<256x16xf32>
    %36 = tpu.matmul %33, %35, %cst_41 {dimension_numbers = #tpu.dot_dimension_numbers<[1], [0], [0], [1], [0, 0, 1, 1], [], []>} : vector<256x8xbf16>, vector<8x16xbf16>, vector<256x16xf32> -> vector<256x16xf32>
    %37 = arith.addf %30, %36 : vector<256x16xf32>
    %38 = vector.extract_strided_slice %8 {offsets = [0, 1, 1, 0], sizes = [1, 16, 16, 8], strides = [1, 1, 1, 1]} : vector<1x18x18x8xf32> to vector<1x16x16x8xf32>
    %39 = vector.shape_cast %38 : vector<1x16x16x8xf32> to vector<256x8xf32>
    %40 = arith.truncf %39 : vector<256x8xf32> to vector<256x8xbf16>
    %c4 = arith.constant 4 : index
    %c0_42 = arith.constant 0 : index
    %c0_43 = arith.constant 0 : index
    %41 = vector.load %arg2[%c4, %c0_42, %c0_43] : memref<9x8x16xbf16, #tpu.memory_space<vmem>>, vector<1x8x16xbf16>
    %42 = vector.shape_cast %41 : vector<1x8x16xbf16> to vector<8x16xbf16>
    %cst_44 = arith.constant dense<0.000000e+00> : vector<256x16xf32>
    %43 = tpu.matmul %40, %42, %cst_44 {dimension_numbers = #tpu.dot_dimension_numbers<[1], [0], [0], [1], [0, 0, 1, 1], [], []>} : vector<256x8xbf16>, vector<8x16xbf16>, vector<256x16xf32> -> vector<256x16xf32>
    %44 = arith.addf %37, %43 : vector<256x16xf32>
    %45 = vector.extract_strided_slice %8 {offsets = [0, 1, 2, 0], sizes = [1, 16, 16, 8], strides = [1, 1, 1, 1]} : vector<1x18x18x8xf32> to vector<1x16x16x8xf32>
    %46 = vector.shape_cast %45 : vector<1x16x16x8xf32> to vector<256x8xf32>
    %47 = arith.truncf %46 : vector<256x8xf32> to vector<256x8xbf16>
    %c5 = arith.constant 5 : index
    %c0_45 = arith.constant 0 : index
    %c0_46 = arith.constant 0 : index
    %48 = vector.load %arg2[%c5, %c0_45, %c0_46] : memref<9x8x16xbf16, #tpu.memory_space<vmem>>, vector<1x8x16xbf16>
    %49 = vector.shape_cast %48 : vector<1x8x16xbf16> to vector<8x16xbf16>
    %cst_47 = arith.constant dense<0.000000e+00> : vector<256x16xf32>
    %50 = tpu.matmul %47, %49, %cst_47 {dimension_numbers = #tpu.dot_dimension_numbers<[1], [0], [0], [1], [0, 0, 1, 1], [], []>} : vector<256x8xbf16>, vector<8x16xbf16>, vector<256x16xf32> -> vector<256x16xf32>
    %51 = arith.addf %44, %50 : vector<256x16xf32>
    %52 = vector.extract_strided_slice %8 {offsets = [0, 2, 0, 0], sizes = [1, 16, 16, 8], strides = [1, 1, 1, 1]} : vector<1x18x18x8xf32> to vector<1x16x16x8xf32>
    %53 = vector.shape_cast %52 : vector<1x16x16x8xf32> to vector<256x8xf32>
    %54 = arith.truncf %53 : vector<256x8xf32> to vector<256x8xbf16>
    %c6 = arith.constant 6 : index
    %c0_48 = arith.constant 0 : index
    %c0_49 = arith.constant 0 : index
    %55 = vector.load %arg2[%c6, %c0_48, %c0_49] : memref<9x8x16xbf16, #tpu.memory_space<vmem>>, vector<1x8x16xbf16>
    %56 = vector.shape_cast %55 : vector<1x8x16xbf16> to vector<8x16xbf16>
    %cst_50 = arith.constant dense<0.000000e+00> : vector<256x16xf32>
    %57 = tpu.matmul %54, %56, %cst_50 {dimension_numbers = #tpu.dot_dimension_numbers<[1], [0], [0], [1], [0, 0, 1, 1], [], []>} : vector<256x8xbf16>, vector<8x16xbf16>, vector<256x16xf32> -> vector<256x16xf32>
    %58 = arith.addf %51, %57 : vector<256x16xf32>
    %59 = vector.extract_strided_slice %8 {offsets = [0, 2, 1, 0], sizes = [1, 16, 16, 8], strides = [1, 1, 1, 1]} : vector<1x18x18x8xf32> to vector<1x16x16x8xf32>
    %60 = vector.shape_cast %59 : vector<1x16x16x8xf32> to vector<256x8xf32>
    %61 = arith.truncf %60 : vector<256x8xf32> to vector<256x8xbf16>
    %c7 = arith.constant 7 : index
    %c0_51 = arith.constant 0 : index
    %c0_52 = arith.constant 0 : index
    %62 = vector.load %arg2[%c7, %c0_51, %c0_52] : memref<9x8x16xbf16, #tpu.memory_space<vmem>>, vector<1x8x16xbf16>
    %63 = vector.shape_cast %62 : vector<1x8x16xbf16> to vector<8x16xbf16>
    %cst_53 = arith.constant dense<0.000000e+00> : vector<256x16xf32>
    %64 = tpu.matmul %61, %63, %cst_53 {dimension_numbers = #tpu.dot_dimension_numbers<[1], [0], [0], [1], [0, 0, 1, 1], [], []>} : vector<256x8xbf16>, vector<8x16xbf16>, vector<256x16xf32> -> vector<256x16xf32>
    %65 = arith.addf %58, %64 : vector<256x16xf32>
    %66 = vector.extract_strided_slice %8 {offsets = [0, 2, 2, 0], sizes = [1, 16, 16, 8], strides = [1, 1, 1, 1]} : vector<1x18x18x8xf32> to vector<1x16x16x8xf32>
    %67 = vector.shape_cast %66 : vector<1x16x16x8xf32> to vector<256x8xf32>
    %68 = arith.truncf %67 : vector<256x8xf32> to vector<256x8xbf16>
    %c8_54 = arith.constant 8 : index
    %c0_55 = arith.constant 0 : index
    %c0_56 = arith.constant 0 : index
    %69 = vector.load %arg2[%c8_54, %c0_55, %c0_56] : memref<9x8x16xbf16, #tpu.memory_space<vmem>>, vector<1x8x16xbf16>
    %70 = vector.shape_cast %69 : vector<1x8x16xbf16> to vector<8x16xbf16>
    %cst_57 = arith.constant dense<0.000000e+00> : vector<256x16xf32>
    %71 = tpu.matmul %68, %70, %cst_57 {dimension_numbers = #tpu.dot_dimension_numbers<[1], [0], [0], [1], [0, 0, 1, 1], [], []>} : vector<256x8xbf16>, vector<8x16xbf16>, vector<256x16xf32> -> vector<256x16xf32>
    %72 = arith.addf %65, %71 : vector<256x16xf32>
    %c0_58 = arith.constant 0 : index
    %c0_59 = arith.constant 0 : index
    %73 = vector.load %arg3[%c0_58, %c0_59] : memref<1x16xf32, #tpu.memory_space<vmem>>, vector<1x16xf32>
    %74 = vector.broadcast %73 : vector<1x16xf32> to vector<256x16xf32>
    %75 = arith.addf %72, %74 : vector<256x16xf32>
    %cst_60 = arith.constant 0.000000e+00 : f32
    %76 = vector.broadcast %cst_60 : f32 to vector<256x16xf32>
    %77 = arith.maximumf %75, %76 : vector<256x16xf32>
    %78 = vector.shape_cast %77 : vector<256x16xf32> to vector<1x16x16x16xf32>
    %c0_61 = arith.constant 0 : index
    %c0_62 = arith.constant 0 : index
    %c0_63 = arith.constant 0 : index
    %c8_64 = arith.constant 8 : index
    %79 = vector.load %arg6[%c0_61, %c0_62, %c0_63, %c8_64] : memref<1x16x16x40xf32, #tpu.memory_space<vmem>>, vector<1x16x16x16xf32>
    tpu.vector_store %arg6[%c0_61, %c0_62, %c0_63, %c8_64], %78 {strides = array<i32>} : memref<1x16x16x40xf32, #tpu.memory_space<vmem>>, vector<1x16x16x16xf32>,
    %cst_65 = arith.constant 0.000000e+00 : f32
    %80 = vector.broadcast %cst_65 : f32 to vector<1x20x20x4xf32>
    %c0_66 = arith.constant 0 : index
    %c0_67 = arith.constant 0 : index
    %c0_68 = arith.constant 0 : index
    %c0_69 = arith.constant 0 : index
    %81 = vector.load %arg8[%c0_66, %c0_67, %c0_68, %c0_69] : memref<1x20x20x4xf32, #tpu.memory_space<vmem>>, vector<1x20x20x4xf32>
    tpu.vector_store %arg8[%c0_66, %c0_67, %c0_68, %c0_69], %80 {strides = array<i32>} : memref<1x20x20x4xf32, #tpu.memory_space<vmem>>, vector<1x20x20x4xf32>,
    %c0_70 = arith.constant 0 : index
    %c0_71 = arith.constant 0 : index
    %c0_72 = arith.constant 0 : index
    %c16 = arith.constant 16 : index
    %82 = vector.load %arg1[%c0_70, %c0_71, %c0_72, %c16] : memref<1x16x16x28xf32, #tpu.memory_space<vmem>>, vector<1x16x16x4xf32>
    %c0_73 = arith.constant 0 : index
    %c2_74 = arith.constant 2 : index
    %c2_75 = arith.constant 2 : index
    %c0_76 = arith.constant 0 : index
    %83 = vector.load %arg8[%c0_73, %c2_74, %c2_75, %c0_76] : memref<1x20x20x4xf32, #tpu.memory_space<vmem>>, vector<1x16x16x4xf32>
    tpu.vector_store %arg8[%c0_73, %c2_74, %c2_75, %c0_76], %82 {strides = array<i32>} : memref<1x20x20x4xf32, #tpu.memory_space<vmem>>, vector<1x16x16x4xf32>,
    %c0_77 = arith.constant 0 : index
    %c0_78 = arith.constant 0 : index
    %c0_79 = arith.constant 0 : index
    %c0_80 = arith.constant 0 : index
    %84 = vector.load %arg8[%c0_77, %c0_78, %c0_79, %c0_80] : memref<1x20x20x4xf32, #tpu.memory_space<vmem>>, vector<1x20x20x4xf32>
    %cst_81 = arith.constant 0.000000e+00 : f32
    %85 = vector.broadcast %cst_81 : f32 to vector<256x8xf32>
    %86 = vector.extract_strided_slice %84 {offsets = [0, 0, 0, 0], sizes = [1, 16, 16, 4], strides = [1, 1, 1, 1]} : vector<1x20x20x4xf32> to vector<1x16x16x4xf32>
    %87 = vector.shape_cast %86 : vector<1x16x16x4xf32> to vector<256x4xf32>
    %88 = arith.truncf %87 : vector<256x4xf32> to vector<256x4xbf16>
    %c0_82 = arith.constant 0 : index
    %c0_83 = arith.constant 0 : index
    %c0_84 = arith.constant 0 : index
    %89 = vector.load %arg4[%c0_82, %c0_83, %c0_84] : memref<25x4x8xbf16, #tpu.memory_space<vmem>>, vector<1x4x8xbf16>
    %90 = vector.shape_cast %89 : vector<1x4x8xbf16> to vector<4x8xbf16>
    %cst_85 = arith.constant dense<0.000000e+00> : vector<256x8xf32>
    %91 = tpu.matmul %88, %90, %cst_85 {dimension_numbers = #tpu.dot_dimension_numbers<[1], [0], [0], [1], [0, 0, 1, 1], [], []>} : vector<256x4xbf16>, vector<4x8xbf16>, vector<256x8xf32> -> vector<256x8xf32>
    %92 = arith.addf %85, %91 : vector<256x8xf32>
    %93 = vector.extract_strided_slice %84 {offsets = [0, 0, 1, 0], sizes = [1, 16, 16, 4], strides = [1, 1, 1, 1]} : vector<1x20x20x4xf32> to vector<1x16x16x4xf32>
    %94 = vector.shape_cast %93 : vector<1x16x16x4xf32> to vector<256x4xf32>
    %95 = arith.truncf %94 : vector<256x4xf32> to vector<256x4xbf16>
    %c1_86 = arith.constant 1 : index
    %c0_87 = arith.constant 0 : index
    %c0_88 = arith.constant 0 : index
    %96 = vector.load %arg4[%c1_86, %c0_87, %c0_88] : memref<25x4x8xbf16, #tpu.memory_space<vmem>>, vector<1x4x8xbf16>
    %97 = vector.shape_cast %96 : vector<1x4x8xbf16> to vector<4x8xbf16>
    %cst_89 = arith.constant dense<0.000000e+00> : vector<256x8xf32>
    %98 = tpu.matmul %95, %97, %cst_89 {dimension_numbers = #tpu.dot_dimension_numbers<[1], [0], [0], [1], [0, 0, 1, 1], [], []>} : vector<256x4xbf16>, vector<4x8xbf16>, vector<256x8xf32> -> vector<256x8xf32>
    %99 = arith.addf %92, %98 : vector<256x8xf32>
    %100 = vector.extract_strided_slice %84 {offsets = [0, 0, 2, 0], sizes = [1, 16, 16, 4], strides = [1, 1, 1, 1]} : vector<1x20x20x4xf32> to vector<1x16x16x4xf32>
    %101 = vector.shape_cast %100 : vector<1x16x16x4xf32> to vector<256x4xf32>
    %102 = arith.truncf %101 : vector<256x4xf32> to vector<256x4xbf16>
    %c2_90 = arith.constant 2 : index
    %c0_91 = arith.constant 0 : index
    %c0_92 = arith.constant 0 : index
    %103 = vector.load %arg4[%c2_90, %c0_91, %c0_92] : memref<25x4x8xbf16, #tpu.memory_space<vmem>>, vector<1x4x8xbf16>
    %104 = vector.shape_cast %103 : vector<1x4x8xbf16> to vector<4x8xbf16>
    %cst_93 = arith.constant dense<0.000000e+00> : vector<256x8xf32>
    %105 = tpu.matmul %102, %104, %cst_93 {dimension_numbers = #tpu.dot_dimension_numbers<[1], [0], [0], [1], [0, 0, 1, 1], [], []>} : vector<256x4xbf16>, vector<4x8xbf16>, vector<256x8xf32> -> vector<256x8xf32>
    %106 = arith.addf %99, %105 : vector<256x8xf32>
    %107 = vector.extract_strided_slice %84 {offsets = [0, 0, 3, 0], sizes = [1, 16, 16, 4], strides = [1, 1, 1, 1]} : vector<1x20x20x4xf32> to vector<1x16x16x4xf32>
    %108 = vector.shape_cast %107 : vector<1x16x16x4xf32> to vector<256x4xf32>
    %109 = arith.truncf %108 : vector<256x4xf32> to vector<256x4xbf16>
    %c3_94 = arith.constant 3 : index
    %c0_95 = arith.constant 0 : index
    %c0_96 = arith.constant 0 : index
    %110 = vector.load %arg4[%c3_94, %c0_95, %c0_96] : memref<25x4x8xbf16, #tpu.memory_space<vmem>>, vector<1x4x8xbf16>
    %111 = vector.shape_cast %110 : vector<1x4x8xbf16> to vector<4x8xbf16>
    %cst_97 = arith.constant dense<0.000000e+00> : vector<256x8xf32>
    %112 = tpu.matmul %109, %111, %cst_97 {dimension_numbers = #tpu.dot_dimension_numbers<[1], [0], [0], [1], [0, 0, 1, 1], [], []>} : vector<256x4xbf16>, vector<4x8xbf16>, vector<256x8xf32> -> vector<256x8xf32>
    %113 = arith.addf %106, %112 : vector<256x8xf32>
    %114 = vector.extract_strided_slice %84 {offsets = [0, 0, 4, 0], sizes = [1, 16, 16, 4], strides = [1, 1, 1, 1]} : vector<1x20x20x4xf32> to vector<1x16x16x4xf32>
    %115 = vector.shape_cast %114 : vector<1x16x16x4xf32> to vector<256x4xf32>
    %116 = arith.truncf %115 : vector<256x4xf32> to vector<256x4xbf16>
    %c4_98 = arith.constant 4 : index
    %c0_99 = arith.constant 0 : index
    %c0_100 = arith.constant 0 : index
    %117 = vector.load %arg4[%c4_98, %c0_99, %c0_100] : memref<25x4x8xbf16, #tpu.memory_space<vmem>>, vector<1x4x8xbf16>
    %118 = vector.shape_cast %117 : vector<1x4x8xbf16> to vector<4x8xbf16>
    %cst_101 = arith.constant dense<0.000000e+00> : vector<256x8xf32>
    %119 = tpu.matmul %116, %118, %cst_101 {dimension_numbers = #tpu.dot_dimension_numbers<[1], [0], [0], [1], [0, 0, 1, 1], [], []>} : vector<256x4xbf16>, vector<4x8xbf16>, vector<256x8xf32> -> vector<256x8xf32>
    %120 = arith.addf %113, %119 : vector<256x8xf32>
    %121 = vector.extract_strided_slice %84 {offsets = [0, 1, 0, 0], sizes = [1, 16, 16, 4], strides = [1, 1, 1, 1]} : vector<1x20x20x4xf32> to vector<1x16x16x4xf32>
    %122 = vector.shape_cast %121 : vector<1x16x16x4xf32> to vector<256x4xf32>
    %123 = arith.truncf %122 : vector<256x4xf32> to vector<256x4xbf16>
    %c5_102 = arith.constant 5 : index
    %c0_103 = arith.constant 0 : index
    %c0_104 = arith.constant 0 : index
    %124 = vector.load %arg4[%c5_102, %c0_103, %c0_104] : memref<25x4x8xbf16, #tpu.memory_space<vmem>>, vector<1x4x8xbf16>
    %125 = vector.shape_cast %124 : vector<1x4x8xbf16> to vector<4x8xbf16>
    %cst_105 = arith.constant dense<0.000000e+00> : vector<256x8xf32>
    %126 = tpu.matmul %123, %125, %cst_105 {dimension_numbers = #tpu.dot_dimension_numbers<[1], [0], [0], [1], [0, 0, 1, 1], [], []>} : vector<256x4xbf16>, vector<4x8xbf16>, vector<256x8xf32> -> vector<256x8xf32>
    %127 = arith.addf %120, %126 : vector<256x8xf32>
    %128 = vector.extract_strided_slice %84 {offsets = [0, 1, 1, 0], sizes = [1, 16, 16, 4], strides = [1, 1, 1, 1]} : vector<1x20x20x4xf32> to vector<1x16x16x4xf32>
    %129 = vector.shape_cast %128 : vector<1x16x16x4xf32> to vector<256x4xf32>
    %130 = arith.truncf %129 : vector<256x4xf32> to vector<256x4xbf16>
    %c6_106 = arith.constant 6 : index
    %c0_107 = arith.constant 0 : index
    %c0_108 = arith.constant 0 : index
    %131 = vector.load %arg4[%c6_106, %c0_107, %c0_108] : memref<25x4x8xbf16, #tpu.memory_space<vmem>>, vector<1x4x8xbf16>
    %132 = vector.shape_cast %131 : vector<1x4x8xbf16> to vector<4x8xbf16>
    %cst_109 = arith.constant dense<0.000000e+00> : vector<256x8xf32>
    %133 = tpu.matmul %130, %132, %cst_109 {dimension_numbers = #tpu.dot_dimension_numbers<[1], [0], [0], [1], [0, 0, 1, 1], [], []>} : vector<256x4xbf16>, vector<4x8xbf16>, vector<256x8xf32> -> vector<256x8xf32>
    %134 = arith.addf %127, %133 : vector<256x8xf32>
    %135 = vector.extract_strided_slice %84 {offsets = [0, 1, 2, 0], sizes = [1, 16, 16, 4], strides = [1, 1, 1, 1]} : vector<1x20x20x4xf32> to vector<1x16x16x4xf32>
    %136 = vector.shape_cast %135 : vector<1x16x16x4xf32> to vector<256x4xf32>
    %137 = arith.truncf %136 : vector<256x4xf32> to vector<256x4xbf16>
    %c7_110 = arith.constant 7 : index
    %c0_111 = arith.constant 0 : index
    %c0_112 = arith.constant 0 : index
    %138 = vector.load %arg4[%c7_110, %c0_111, %c0_112] : memref<25x4x8xbf16, #tpu.memory_space<vmem>>, vector<1x4x8xbf16>
    %139 = vector.shape_cast %138 : vector<1x4x8xbf16> to vector<4x8xbf16>
    %cst_113 = arith.constant dense<0.000000e+00> : vector<256x8xf32>
    %140 = tpu.matmul %137, %139, %cst_113 {dimension_numbers = #tpu.dot_dimension_numbers<[1], [0], [0], [1], [0, 0, 1, 1], [], []>} : vector<256x4xbf16>, vector<4x8xbf16>, vector<256x8xf32> -> vector<256x8xf32>
    %141 = arith.addf %134, %140 : vector<256x8xf32>
    %142 = vector.extract_strided_slice %84 {offsets = [0, 1, 3, 0], sizes = [1, 16, 16, 4], strides = [1, 1, 1, 1]} : vector<1x20x20x4xf32> to vector<1x16x16x4xf32>
    %143 = vector.shape_cast %142 : vector<1x16x16x4xf32> to vector<256x4xf32>
    %144 = arith.truncf %143 : vector<256x4xf32> to vector<256x4xbf16>
    %c8_114 = arith.constant 8 : index
    %c0_115 = arith.constant 0 : index
    %c0_116 = arith.constant 0 : index
    %145 = vector.load %arg4[%c8_114, %c0_115, %c0_116] : memref<25x4x8xbf16, #tpu.memory_space<vmem>>, vector<1x4x8xbf16>
    %146 = vector.shape_cast %145 : vector<1x4x8xbf16> to vector<4x8xbf16>
    %cst_117 = arith.constant dense<0.000000e+00> : vector<256x8xf32>
    %147 = tpu.matmul %144, %146, %cst_117 {dimension_numbers = #tpu.dot_dimension_numbers<[1], [0], [0], [1], [0, 0, 1, 1], [], []>} : vector<256x4xbf16>, vector<4x8xbf16>, vector<256x8xf32> -> vector<256x8xf32>
    %148 = arith.addf %141, %147 : vector<256x8xf32>
    %149 = vector.extract_strided_slice %84 {offsets = [0, 1, 4, 0], sizes = [1, 16, 16, 4], strides = [1, 1, 1, 1]} : vector<1x20x20x4xf32> to vector<1x16x16x4xf32>
    %150 = vector.shape_cast %149 : vector<1x16x16x4xf32> to vector<256x4xf32>
    %151 = arith.truncf %150 : vector<256x4xf32> to vector<256x4xbf16>
    %c9 = arith.constant 9 : index
    %c0_118 = arith.constant 0 : index
    %c0_119 = arith.constant 0 : index
    %152 = vector.load %arg4[%c9, %c0_118, %c0_119] : memref<25x4x8xbf16, #tpu.memory_space<vmem>>, vector<1x4x8xbf16>
    %153 = vector.shape_cast %152 : vector<1x4x8xbf16> to vector<4x8xbf16>
    %cst_120 = arith.constant dense<0.000000e+00> : vector<256x8xf32>
    %154 = tpu.matmul %151, %153, %cst_120 {dimension_numbers = #tpu.dot_dimension_numbers<[1], [0], [0], [1], [0, 0, 1, 1], [], []>} : vector<256x4xbf16>, vector<4x8xbf16>, vector<256x8xf32> -> vector<256x8xf32>
    %155 = arith.addf %148, %154 : vector<256x8xf32>
    %156 = vector.extract_strided_slice %84 {offsets = [0, 2, 0, 0], sizes = [1, 16, 16, 4], strides = [1, 1, 1, 1]} : vector<1x20x20x4xf32> to vector<1x16x16x4xf32>
    %157 = vector.shape_cast %156 : vector<1x16x16x4xf32> to vector<256x4xf32>
    %158 = arith.truncf %157 : vector<256x4xf32> to vector<256x4xbf16>
    %c10 = arith.constant 10 : index
    %c0_121 = arith.constant 0 : index
    %c0_122 = arith.constant 0 : index
    %159 = vector.load %arg4[%c10, %c0_121, %c0_122] : memref<25x4x8xbf16, #tpu.memory_space<vmem>>, vector<1x4x8xbf16>
    %160 = vector.shape_cast %159 : vector<1x4x8xbf16> to vector<4x8xbf16>
    %cst_123 = arith.constant dense<0.000000e+00> : vector<256x8xf32>
    %161 = tpu.matmul %158, %160, %cst_123 {dimension_numbers = #tpu.dot_dimension_numbers<[1], [0], [0], [1], [0, 0, 1, 1], [], []>} : vector<256x4xbf16>, vector<4x8xbf16>, vector<256x8xf32> -> vector<256x8xf32>
    %162 = arith.addf %155, %161 : vector<256x8xf32>
    %163 = vector.extract_strided_slice %84 {offsets = [0, 2, 1, 0], sizes = [1, 16, 16, 4], strides = [1, 1, 1, 1]} : vector<1x20x20x4xf32> to vector<1x16x16x4xf32>
    %164 = vector.shape_cast %163 : vector<1x16x16x4xf32> to vector<256x4xf32>
    %165 = arith.truncf %164 : vector<256x4xf32> to vector<256x4xbf16>
    %c11 = arith.constant 11 : index
    %c0_124 = arith.constant 0 : index
    %c0_125 = arith.constant 0 : index
    %166 = vector.load %arg4[%c11, %c0_124, %c0_125] : memref<25x4x8xbf16, #tpu.memory_space<vmem>>, vector<1x4x8xbf16>
    %167 = vector.shape_cast %166 : vector<1x4x8xbf16> to vector<4x8xbf16>
    %cst_126 = arith.constant dense<0.000000e+00> : vector<256x8xf32>
    %168 = tpu.matmul %165, %167, %cst_126 {dimension_numbers = #tpu.dot_dimension_numbers<[1], [0], [0], [1], [0, 0, 1, 1], [], []>} : vector<256x4xbf16>, vector<4x8xbf16>, vector<256x8xf32> -> vector<256x8xf32>
    %169 = arith.addf %162, %168 : vector<256x8xf32>
    %170 = vector.extract_strided_slice %84 {offsets = [0, 2, 2, 0], sizes = [1, 16, 16, 4], strides = [1, 1, 1, 1]} : vector<1x20x20x4xf32> to vector<1x16x16x4xf32>
    %171 = vector.shape_cast %170 : vector<1x16x16x4xf32> to vector<256x4xf32>
    %172 = arith.truncf %171 : vector<256x4xf32> to vector<256x4xbf16>
    %c12 = arith.constant 12 : index
    %c0_127 = arith.constant 0 : index
    %c0_128 = arith.constant 0 : index
    %173 = vector.load %arg4[%c12, %c0_127, %c0_128] : memref<25x4x8xbf16, #tpu.memory_space<vmem>>, vector<1x4x8xbf16>
    %174 = vector.shape_cast %173 : vector<1x4x8xbf16> to vector<4x8xbf16>
    %cst_129 = arith.constant dense<0.000000e+00> : vector<256x8xf32>
    %175 = tpu.matmul %172, %174, %cst_129 {dimension_numbers = #tpu.dot_dimension_numbers<[1], [0], [0], [1], [0, 0, 1, 1], [], []>} : vector<256x4xbf16>, vector<4x8xbf16>, vector<256x8xf32> -> vector<256x8xf32>
    %176 = arith.addf %169, %175 : vector<256x8xf32>
    %177 = vector.extract_strided_slice %84 {offsets = [0, 2, 3, 0], sizes = [1, 16, 16, 4], strides = [1, 1, 1, 1]} : vector<1x20x20x4xf32> to vector<1x16x16x4xf32>
    %178 = vector.shape_cast %177 : vector<1x16x16x4xf32> to vector<256x4xf32>
    %179 = arith.truncf %178 : vector<256x4xf32> to vector<256x4xbf16>
    %c13 = arith.constant 13 : index
    %c0_130 = arith.constant 0 : index
    %c0_131 = arith.constant 0 : index
    %180 = vector.load %arg4[%c13, %c0_130, %c0_131] : memref<25x4x8xbf16, #tpu.memory_space<vmem>>, vector<1x4x8xbf16>
    %181 = vector.shape_cast %180 : vector<1x4x8xbf16> to vector<4x8xbf16>
    %cst_132 = arith.constant dense<0.000000e+00> : vector<256x8xf32>
    %182 = tpu.matmul %179, %181, %cst_132 {dimension_numbers = #tpu.dot_dimension_numbers<[1], [0], [0], [1], [0, 0, 1, 1], [], []>} : vector<256x4xbf16>, vector<4x8xbf16>, vector<256x8xf32> -> vector<256x8xf32>
    %183 = arith.addf %176, %182 : vector<256x8xf32>
    %184 = vector.extract_strided_slice %84 {offsets = [0, 2, 4, 0], sizes = [1, 16, 16, 4], strides = [1, 1, 1, 1]} : vector<1x20x20x4xf32> to vector<1x16x16x4xf32>
    %185 = vector.shape_cast %184 : vector<1x16x16x4xf32> to vector<256x4xf32>
    %186 = arith.truncf %185 : vector<256x4xf32> to vector<256x4xbf16>
    %c14 = arith.constant 14 : index
    %c0_133 = arith.constant 0 : index
    %c0_134 = arith.constant 0 : index
    %187 = vector.load %arg4[%c14, %c0_133, %c0_134] : memref<25x4x8xbf16, #tpu.memory_space<vmem>>, vector<1x4x8xbf16>
    %188 = vector.shape_cast %187 : vector<1x4x8xbf16> to vector<4x8xbf16>
    %cst_135 = arith.constant dense<0.000000e+00> : vector<256x8xf32>
    %189 = tpu.matmul %186, %188, %cst_135 {dimension_numbers = #tpu.dot_dimension_numbers<[1], [0], [0], [1], [0, 0, 1, 1], [], []>} : vector<256x4xbf16>, vector<4x8xbf16>, vector<256x8xf32> -> vector<256x8xf32>
    %190 = arith.addf %183, %189 : vector<256x8xf32>
    %191 = vector.extract_strided_slice %84 {offsets = [0, 3, 0, 0], sizes = [1, 16, 16, 4], strides = [1, 1, 1, 1]} : vector<1x20x20x4xf32> to vector<1x16x16x4xf32>
    %192 = vector.shape_cast %191 : vector<1x16x16x4xf32> to vector<256x4xf32>
    %193 = arith.truncf %192 : vector<256x4xf32> to vector<256x4xbf16>
    %c15 = arith.constant 15 : index
    %c0_136 = arith.constant 0 : index
    %c0_137 = arith.constant 0 : index
    %194 = vector.load %arg4[%c15, %c0_136, %c0_137] : memref<25x4x8xbf16, #tpu.memory_space<vmem>>, vector<1x4x8xbf16>
    %195 = vector.shape_cast %194 : vector<1x4x8xbf16> to vector<4x8xbf16>
    %cst_138 = arith.constant dense<0.000000e+00> : vector<256x8xf32>
    %196 = tpu.matmul %193, %195, %cst_138 {dimension_numbers = #tpu.dot_dimension_numbers<[1], [0], [0], [1], [0, 0, 1, 1], [], []>} : vector<256x4xbf16>, vector<4x8xbf16>, vector<256x8xf32> -> vector<256x8xf32>
    %197 = arith.addf %190, %196 : vector<256x8xf32>
    %198 = vector.extract_strided_slice %84 {offsets = [0, 3, 1, 0], sizes = [1, 16, 16, 4], strides = [1, 1, 1, 1]} : vector<1x20x20x4xf32> to vector<1x16x16x4xf32>
    %199 = vector.shape_cast %198 : vector<1x16x16x4xf32> to vector<256x4xf32>
    %200 = arith.truncf %199 : vector<256x4xf32> to vector<256x4xbf16>
    %c16_139 = arith.constant 16 : index
    %c0_140 = arith.constant 0 : index
    %c0_141 = arith.constant 0 : index
    %201 = vector.load %arg4[%c16_139, %c0_140, %c0_141] : memref<25x4x8xbf16, #tpu.memory_space<vmem>>, vector<1x4x8xbf16>
    %202 = vector.shape_cast %201 : vector<1x4x8xbf16> to vector<4x8xbf16>
    %cst_142 = arith.constant dense<0.000000e+00> : vector<256x8xf32>
    %203 = tpu.matmul %200, %202, %cst_142 {dimension_numbers = #tpu.dot_dimension_numbers<[1], [0], [0], [1], [0, 0, 1, 1], [], []>} : vector<256x4xbf16>, vector<4x8xbf16>, vector<256x8xf32> -> vector<256x8xf32>
    %204 = arith.addf %197, %203 : vector<256x8xf32>
    %205 = vector.extract_strided_slice %84 {offsets = [0, 3, 2, 0], sizes = [1, 16, 16, 4], strides = [1, 1, 1, 1]} : vector<1x20x20x4xf32> to vector<1x16x16x4xf32>
    %206 = vector.shape_cast %205 : vector<1x16x16x4xf32> to vector<256x4xf32>
    %207 = arith.truncf %206 : vector<256x4xf32> to vector<256x4xbf16>
    %c17 = arith.constant 17 : index
    %c0_143 = arith.constant 0 : index
    %c0_144 = arith.constant 0 : index
    %208 = vector.load %arg4[%c17, %c0_143, %c0_144] : memref<25x4x8xbf16, #tpu.memory_space<vmem>>, vector<1x4x8xbf16>
    %209 = vector.shape_cast %208 : vector<1x4x8xbf16> to vector<4x8xbf16>
    %cst_145 = arith.constant dense<0.000000e+00> : vector<256x8xf32>
    %210 = tpu.matmul %207, %209, %cst_145 {dimension_numbers = #tpu.dot_dimension_numbers<[1], [0], [0], [1], [0, 0, 1, 1], [], []>} : vector<256x4xbf16>, vector<4x8xbf16>, vector<256x8xf32> -> vector<256x8xf32>
    %211 = arith.addf %204, %210 : vector<256x8xf32>
    %212 = vector.extract_strided_slice %84 {offsets = [0, 3, 3, 0], sizes = [1, 16, 16, 4], strides = [1, 1, 1, 1]} : vector<1x20x20x4xf32> to vector<1x16x16x4xf32>
    %213 = vector.shape_cast %212 : vector<1x16x16x4xf32> to vector<256x4xf32>
    %214 = arith.truncf %213 : vector<256x4xf32> to vector<256x4xbf16>
    %c18 = arith.constant 18 : index
    %c0_146 = arith.constant 0 : index
    %c0_147 = arith.constant 0 : index
    %215 = vector.load %arg4[%c18, %c0_146, %c0_147] : memref<25x4x8xbf16, #tpu.memory_space<vmem>>, vector<1x4x8xbf16>
    %216 = vector.shape_cast %215 : vector<1x4x8xbf16> to vector<4x8xbf16>
    %cst_148 = arith.constant dense<0.000000e+00> : vector<256x8xf32>
    %217 = tpu.matmul %214, %216, %cst_148 {dimension_numbers = #tpu.dot_dimension_numbers<[1], [0], [0], [1], [0, 0, 1, 1], [], []>} : vector<256x4xbf16>, vector<4x8xbf16>, vector<256x8xf32> -> vector<256x8xf32>
    %218 = arith.addf %211, %217 : vector<256x8xf32>
    %219 = vector.extract_strided_slice %84 {offsets = [0, 3, 4, 0], sizes = [1, 16, 16, 4], strides = [1, 1, 1, 1]} : vector<1x20x20x4xf32> to vector<1x16x16x4xf32>
    %220 = vector.shape_cast %219 : vector<1x16x16x4xf32> to vector<256x4xf32>
    %221 = arith.truncf %220 : vector<256x4xf32> to vector<256x4xbf16>
    %c19 = arith.constant 19 : index
    %c0_149 = arith.constant 0 : index
    %c0_150 = arith.constant 0 : index
    %222 = vector.load %arg4[%c19, %c0_149, %c0_150] : memref<25x4x8xbf16, #tpu.memory_space<vmem>>, vector<1x4x8xbf16>
    %223 = vector.shape_cast %222 : vector<1x4x8xbf16> to vector<4x8xbf16>
    %cst_151 = arith.constant dense<0.000000e+00> : vector<256x8xf32>
    %224 = tpu.matmul %221, %223, %cst_151 {dimension_numbers = #tpu.dot_dimension_numbers<[1], [0], [0], [1], [0, 0, 1, 1], [], []>} : vector<256x4xbf16>, vector<4x8xbf16>, vector<256x8xf32> -> vector<256x8xf32>
    %225 = arith.addf %218, %224 : vector<256x8xf32>
    %226 = vector.extract_strided_slice %84 {offsets = [0, 4, 0, 0], sizes = [1, 16, 16, 4], strides = [1, 1, 1, 1]} : vector<1x20x20x4xf32> to vector<1x16x16x4xf32>
    %227 = vector.shape_cast %226 : vector<1x16x16x4xf32> to vector<256x4xf32>
    %228 = arith.truncf %227 : vector<256x4xf32> to vector<256x4xbf16>
    %c20_152 = arith.constant 20 : index
    %c0_153 = arith.constant 0 : index
    %c0_154 = arith.constant 0 : index
    %229 = vector.load %arg4[%c20_152, %c0_153, %c0_154] : memref<25x4x8xbf16, #tpu.memory_space<vmem>>, vector<1x4x8xbf16>
    %230 = vector.shape_cast %229 : vector<1x4x8xbf16> to vector<4x8xbf16>
    %cst_155 = arith.constant dense<0.000000e+00> : vector<256x8xf32>
    %231 = tpu.matmul %228, %230, %cst_155 {dimension_numbers = #tpu.dot_dimension_numbers<[1], [0], [0], [1], [0, 0, 1, 1], [], []>} : vector<256x4xbf16>, vector<4x8xbf16>, vector<256x8xf32> -> vector<256x8xf32>
    %232 = arith.addf %225, %231 : vector<256x8xf32>
    %233 = vector.extract_strided_slice %84 {offsets = [0, 4, 1, 0], sizes = [1, 16, 16, 4], strides = [1, 1, 1, 1]} : vector<1x20x20x4xf32> to vector<1x16x16x4xf32>
    %234 = vector.shape_cast %233 : vector<1x16x16x4xf32> to vector<256x4xf32>
    %235 = arith.truncf %234 : vector<256x4xf32> to vector<256x4xbf16>
    %c21 = arith.constant 21 : index
    %c0_156 = arith.constant 0 : index
    %c0_157 = arith.constant 0 : index
    %236 = vector.load %arg4[%c21, %c0_156, %c0_157] : memref<25x4x8xbf16, #tpu.memory_space<vmem>>, vector<1x4x8xbf16>
    %237 = vector.shape_cast %236 : vector<1x4x8xbf16> to vector<4x8xbf16>
    %cst_158 = arith.constant dense<0.000000e+00> : vector<256x8xf32>
    %238 = tpu.matmul %235, %237, %cst_158 {dimension_numbers = #tpu.dot_dimension_numbers<[1], [0], [0], [1], [0, 0, 1, 1], [], []>} : vector<256x4xbf16>, vector<4x8xbf16>, vector<256x8xf32> -> vector<256x8xf32>
    %239 = arith.addf %232, %238 : vector<256x8xf32>
    %240 = vector.extract_strided_slice %84 {offsets = [0, 4, 2, 0], sizes = [1, 16, 16, 4], strides = [1, 1, 1, 1]} : vector<1x20x20x4xf32> to vector<1x16x16x4xf32>
    %241 = vector.shape_cast %240 : vector<1x16x16x4xf32> to vector<256x4xf32>
    %242 = arith.truncf %241 : vector<256x4xf32> to vector<256x4xbf16>
    %c22 = arith.constant 22 : index
    %c0_159 = arith.constant 0 : index
    %c0_160 = arith.constant 0 : index
    %243 = vector.load %arg4[%c22, %c0_159, %c0_160] : memref<25x4x8xbf16, #tpu.memory_space<vmem>>, vector<1x4x8xbf16>
    %244 = vector.shape_cast %243 : vector<1x4x8xbf16> to vector<4x8xbf16>
    %cst_161 = arith.constant dense<0.000000e+00> : vector<256x8xf32>
    %245 = tpu.matmul %242, %244, %cst_161 {dimension_numbers = #tpu.dot_dimension_numbers<[1], [0], [0], [1], [0, 0, 1, 1], [], []>} : vector<256x4xbf16>, vector<4x8xbf16>, vector<256x8xf32> -> vector<256x8xf32>
    %246 = arith.addf %239, %245 : vector<256x8xf32>
    %247 = vector.extract_strided_slice %84 {offsets = [0, 4, 3, 0], sizes = [1, 16, 16, 4], strides = [1, 1, 1, 1]} : vector<1x20x20x4xf32> to vector<1x16x16x4xf32>
    %248 = vector.shape_cast %247 : vector<1x16x16x4xf32> to vector<256x4xf32>
    %249 = arith.truncf %248 : vector<256x4xf32> to vector<256x4xbf16>
    %c23 = arith.constant 23 : index
    %c0_162 = arith.constant 0 : index
    %c0_163 = arith.constant 0 : index
    %250 = vector.load %arg4[%c23, %c0_162, %c0_163] : memref<25x4x8xbf16, #tpu.memory_space<vmem>>, vector<1x4x8xbf16>
    %251 = vector.shape_cast %250 : vector<1x4x8xbf16> to vector<4x8xbf16>
    %cst_164 = arith.constant dense<0.000000e+00> : vector<256x8xf32>
    %252 = tpu.matmul %249, %251, %cst_164 {dimension_numbers = #tpu.dot_dimension_numbers<[1], [0], [0], [1], [0, 0, 1, 1], [], []>} : vector<256x4xbf16>, vector<4x8xbf16>, vector<256x8xf32> -> vector<256x8xf32>
    %253 = arith.addf %246, %252 : vector<256x8xf32>
    %254 = vector.extract_strided_slice %84 {offsets = [0, 4, 4, 0], sizes = [1, 16, 16, 4], strides = [1, 1, 1, 1]} : vector<1x20x20x4xf32> to vector<1x16x16x4xf32>
    %255 = vector.shape_cast %254 : vector<1x16x16x4xf32> to vector<256x4xf32>
    %256 = arith.truncf %255 : vector<256x4xf32> to vector<256x4xbf16>
    %c24 = arith.constant 24 : index
    %c0_165 = arith.constant 0 : index
    %c0_166 = arith.constant 0 : index
    %257 = vector.load %arg4[%c24, %c0_165, %c0_166] : memref<25x4x8xbf16, #tpu.memory_space<vmem>>, vector<1x4x8xbf16>
    %258 = vector.shape_cast %257 : vector<1x4x8xbf16> to vector<4x8xbf16>
    %cst_167 = arith.constant dense<0.000000e+00> : vector<256x8xf32>
    %259 = tpu.matmul %256, %258, %cst_167 {dimension_numbers = #tpu.dot_dimension_numbers<[1], [0], [0], [1], [0, 0, 1, 1], [], []>} : vector<256x4xbf16>, vector<4x8xbf16>, vector<256x8xf32> -> vector<256x8xf32>
    %260 = arith.addf %253, %259 : vector<256x8xf32>
    %c0_168 = arith.constant 0 : index
    %c0_169 = arith.constant 0 : index
    %261 = vector.load %arg5[%c0_168, %c0_169] : memref<1x8xf32, #tpu.memory_space<vmem>>, vector<1x8xf32>
    %262 = vector.broadcast %261 : vector<1x8xf32> to vector<256x8xf32>
    %263 = arith.addf %260, %262 : vector<256x8xf32>
    %cst_170 = arith.constant 0.000000e+00 : f32
    %264 = vector.broadcast %cst_170 : f32 to vector<256x8xf32>
    %265 = arith.maximumf %263, %264 : vector<256x8xf32>
    %266 = vector.shape_cast %265 : vector<256x8xf32> to vector<1x16x16x8xf32>
    %c0_171 = arith.constant 0 : index
    %c0_172 = arith.constant 0 : index
    %c0_173 = arith.constant 0 : index
    %c24_174 = arith.constant 24 : index
    %267 = vector.load %arg6[%c0_171, %c0_172, %c0_173, %c24_174] : memref<1x16x16x40xf32, #tpu.memory_space<vmem>>, vector<1x16x16x8xf32>
    tpu.vector_store %arg6[%c0_171, %c0_172, %c0_173, %c24_174], %266 {strides = array<i32>} : memref<1x16x16x40xf32, #tpu.memory_space<vmem>>, vector<1x16x16x8xf32>,
    return
  }
  func.func @transform_0(%arg0: i32) -> (i32, i32, i32, i32) {
    %c0_i32 = arith.constant 0 : i32
    %c0_i32_0 = arith.constant 0 : i32
    %c0_i32_1 = arith.constant 0 : i32
    %c0_i32_2 = arith.constant 0 : i32
    return %arg0, %c0_i32, %c0_i32_0, %c0_i32_1 : i32, i32, i32, i32
  }
  func.func @transform_1(%arg0: i32) -> (i32, i32, i32) {
    %c0_i32 = arith.constant 0 : i32
    %c0_i32_0 = arith.constant 0 : i32
    %c0_i32_1 = arith.constant 0 : i32
    %c0_i32_2 = arith.constant 0 : i32
    return %c0_i32, %c0_i32_0, %c0_i32_1 : i32, i32, i32
  }
  func.func @transform_2(%arg0: i32) -> (i32, i32) {
    %c0_i32 = arith.constant 0 : i32
    %c0_i32_0 = arith.constant 0 : i32
    %c0_i32_1 = arith.constant 0 : i32
    return %c0_i32, %c0_i32_0 : i32, i32
  }
  func.func @transform_3(%arg0: i32) -> (i32, i32, i32) {
    %c0_i32 = arith.constant 0 : i32
    %c0_i32_0 = arith.constant 0 : i32
    %c0_i32_1 = arith.constant 0 : i32
    %c0_i32_2 = arith.constant 0 : i32
    return %c0_i32, %c0_i32_0, %c0_i32_1 : i32, i32, i32
  }
  func.func @transform_4(%arg0: i32) -> (i32, i32) {
    %c0_i32 = arith.constant 0 : i32
    %c0_i32_0 = arith.constant 0 : i32
    %c0_i32_1 = arith.constant 0 : i32
    return %c0_i32, %c0_i32_0 : i32, i32
  }
  func.func @transform_5(%arg0: i32) -> (i32, i32, i32, i32) {
    %c0_i32 = arith.constant 0 : i32
    %c0_i32_0 = arith.constant 0 : i32
    %c0_i32_1 = arith.constant 0 : i32
    %c0_i32_2 = arith.constant 0 : i32
    return %arg0, %c0_i32, %c0_i32_0, %c0_i32_1 : i32, i32, i32, i32
  }
}

</mosaic_0001>

<bundles_post_ra>
// kernel: inception_forward.2
= control target key start
LH: loop header
LB: loop body
LE: loop exit
PB: predicated region body
PF: predicated region fallthrough
CT: control target
= control target key end

     0   :  { %s1570_s18 = smov 0   ;;  %s2475_s0 = inlined_call_operand.vmem [shape: f32[2,16,16,4], index: 0, kind: input, shape index: {}]   ;;  %s2476_s1 = inlined_call_operand.vmem [shape: bf16[4,20], index: 1, kind: input, shape index: {}]   ;;  %s2477_s2 = inlined_call_operand.vmem [shape: f32[1,20], index: 2, kind: input, shape index: {}]   ;;  %s2478_s3 = inlined_call_operand.vmem [shape: bf16[4,8], index: 3, kind: input, shape index: {}]   ;;  %s2479_s4 = inlined_call_operand.vmem [shape: f32[1,8], index: 4, kind: input, shape index: {}]   ;;  %s2480_s5 = inlined_call_operand.vmem [shape: f32[2,16,16,28], index: 5, kind: output, shape index: {}]  }
   0x1 LB: > { %s1471_s19 = sadd.s32 4294967295, %s1536_s18   ;;  %p1475_p0 = scmp.ge.s32.totalorder %s1536_s18, 1  ;;  %s1536_s18 = sphi %s1570_s18, %s15_s18  }
   0x2   : > { %p187_p1 = scmp.lt.s32.totalorder %s1536_s18, 3 }
   0x4   : > { %p188_p2 = pnand %p1475_p0, %p187_p1 }
   0x6   : > { %191 = sbr.rel (%p188_p2) target bundleno = 468 (0x1d4), region = 40 }
   0xb   : > { %vm328_vm0 = vcmask 1041408   ;;  %v1078_v0 = vld [vmem:[%s2478_s3] sm:$0x3]  ;;  %p215_p3 = scmp.lt.s32.totalorder %s1471_s19, 1  ;;  %vm279_vm1 = vcmask 31744   ;;  %v1538_v2 = vmov -inf  }
   0xc   : > { %v1132_v1 = vsel %vm328_vm0, %v1078_v0, 0  ;;  %486 = vst.msk [vmem:[#allocation2] sm:$0xff] %vm279_vm1, %v1538_v2  ;;  %vm488_vm2 = vcmask 25600   ;;  %vm772_vm3 = vcmask 1046528   ;;  %vm917_vm4 = vcmask 1045504   ;;  %s1539_s30 = smov 20  }
   0xd   : > { %1141 = vmatpush.bf16.msra.mxu1 %v1132_v1  ;;  %1517 = vmatpush.bf16.msra.mxu3 %v1132_v1  ;;  %s2515_s19 = smov (!%p215_p3, %s1471_s19), 1  ;;  %487 = vst.msk [vmem:[#allocation2 + $0x8] sm:$0xff] %vm279_vm1, %v1538_v2  ;;  %vm453_vm5 = vcmask 162816   ;;  %vm1383_vm6 = vcmask 228512  }
   0xe   : > { %489 = vst.msk [vmem:[#allocation2 + $0x10] sm:$0x3] %vm488_vm2, %v1538_v2  ;;  %s1514_s22 = sshll.u32 %s2515_s19, 8 }
   0xf   : > { %490 = vst.msk [vmem:[#allocation2 + $0x18] sm:$0xff] %vm279_vm1, %v1538_v2  ;;  %s1598_s25 = scalar_lea.vmem %s2475_s0, %s1514_s22  ;;  %s2275_s10 = scalar_lea.vmem %s2480_s5, %s1514_s22 }
  0x10   : > { %491 = vst.msk [vmem:[#allocation2 + $0x20] sm:$0xff] %vm279_vm1, %v1538_v2  ;;  %v1605_v3 = vld [vmem:[%s1598_s25] sm:$0xff]  ;;  %v1610_v4 = vld [vmem:[%s1598_s25 + $0x8] sm:$0xff]  ;;  %v1615_v5 = vld [vmem:[%s1598_s25 + $0x10] sm:$0xff] }
  0x11   : > { %492 = vst.msk [vmem:[#allocation2 + $0x28] sm:$0x3] %vm488_vm2, %v1538_v2  ;;  %v1620_v6 = vld [vmem:[%s1598_s25 + $0x18] sm:$0xff]  ;;  %v1740_v37 = vld [vmem:[%s1598_s25 + $0x70] sm:$0xff]  ;;  %v1750_v39 = vld [vmem:[%s1598_s25 + $0x80] sm:$0xff] }
  0x12   : > { %493 = vst.msk [vmem:[#allocation2 + $0x30] sm:$0xff] %vm279_vm1, %v1538_v2  ;;  %v1745_v38 = vld [vmem:[%s1598_s25 + $0x78] sm:$0xff]  ;;  %v1753_v40 = vld [vmem:[%s1598_s25 + $0x88] sm:$0xff]  ;;  %v1758_v41 = vld [vmem:[%s1598_s25 + $0x90] sm:$0xff] }
  0x13   : > { %494 = vst.msk [vmem:[#allocation2 + $0x38] sm:$0xff] %vm279_vm1, %v1538_v2  ;;  %v574_v7 = vld [vmem:[#allocation2] sm:$0xff]  ;;  %v1763_v42 = vld [vmem:[%s1598_s25 + $0x98] sm:$0xff]  ;;  %v1775_v44 = vld [vmem:[%s1598_s25 + $0x28] sm:$0xff] }
  0x14   : > { %495 = vst.msk [vmem:[#allocation2 + $0x40] sm:$0x3] %vm488_vm2, %v1538_v2  ;;  %v575_v8 = vld [vmem:[#allocation2 + $0x8] sm:$0xff]  ;;  %v1770_v43 = vld [vmem:[%s1598_s25 + $0x20] sm:$0xff]  ;;  %v1792_v48 = vld [vmem:[%s1598_s25 + $0x30] sm:$0xff] }
  0x15   : > { %542 = vst.msk [vmem:[#allocation2 + $0x19] sm:$0xff] %vm279_vm1, %v1605_v3  ;;  %v576_v9 = vld [vmem:[#allocation2 + $0x10] sm:$0x3]  ;;  %v1780_v45 = vld [vmem:[%s1598_s25 + $0xa0] sm:$0xff]  ;;  %v1785_v46 = vld [vmem:[%s1598_s25 + $0xa8] sm:$0xff] }
  0x16   : > { %543 = vst.msk [vmem:[#allocation2 + $0x21] sm:$0xff] %vm279_vm1, %v1610_v4  ;;  %v1801_v51 = vld [vmem:[%s1598_s25 + $0x38] sm:$0xff]  ;;  %v1808_v53 = vld [vmem:[%s1598_s25 + $0xb0] sm:$0xff] }
  0x17   : > { %544 = vst.msk [vmem:[#allocation2 + $0x31] sm:$0xff] %vm279_vm1, %v1615_v5  ;;  %v1821_v58 = vld [vmem:[%s1598_s25 + $0xb8] sm:$0xff] }
  0x18   : > { %545 = vst.msk [vmem:[#allocation2 + $0x39] sm:$0xff] %vm279_vm1, %v1620_v6 }
  0x19   : > { %496 = vst.msk [vmem:[#allocation2 + $0x48] sm:$0xff] %vm279_vm1, %v1538_v2 }
  0x1a   : > { %497 = vst.msk [vmem:[#allocation2 + $0x50] sm:$0xff] %vm279_vm1, %v1538_v2 }
  0x1b   : > { %498 = vst.msk [vmem:[#allocation2 + $0x58] sm:$0x3] %vm488_vm2, %v1538_v2 }
  0x1c   : > { %v1636_v10 = vld [vmem:[#allocation2 + $0x18] sm:$0xff]  ;;  %499 = vst.msk [vmem:[#allocation2 + $0x60] sm:$0xff] %vm279_vm1, %v1538_v2 }
  0x1d   : > { %v1640_v11 = vld [vmem:[#allocation2 + $0x20] sm:$0xff]  ;;  %v1642_v12 = vld [vmem:[#allocation2 + $0x28] sm:$0x3]  ;;  %v628_v13 = vmax.f32 %v574_v7, %v1636_v10  ;;  %500 = vst.msk [vmem:[#allocation2 + $0x68] sm:$0xff] %vm279_vm1, %v1538_v2 }
  0x1e   : > { %v1647_v14 = vld [vmem:[#allocation2 + $0x30] sm:$0xff]  ;;  %v629_v15 = vmax.f32 %v575_v8, %v1640_v11  ;;  %v630_v16 = vmax.f32 %v576_v9, %v1642_v12  ;;  %501 = vst.msk [vmem:[#allocation2 + $0x70] sm:$0x3] %vm488_vm2, %v1538_v2 }
  0x1f   : > { %v1653_v17 = vld [vmem:[#allocation2 + $0x38] sm:$0xff]  ;;  %v1655_v18 = vld [vmem:[#allocation2 + $0x40] sm:$0x3]  ;;  %v676_v19 = vmax.f32 %v628_v13, %v1647_v14  ;;  %502 = vst.msk [vmem:[#allocation2 + $0x78] sm:$0xff] %vm279_vm1, %v1538_v2  ;;  %v631_v57 = vmax.f32 %v1636_v10, %v1647_v14 }
  0x20   : > { %v677_v20 = vmax.f32 %v629_v15, %v1653_v17  ;;  %v678_v21 = vmax.f32 %v630_v16, %v1655_v18  ;;  %503 = vst.msk [vmem:[#allocation2 + $0x80] sm:$0xff] %vm279_vm1, %v1538_v2  ;;  %v632_v1 = vmax.f32 %v1640_v11, %v1653_v17 }
  0x21   : > { %v773_v22 = vrot.slane %v676_v19, 1  ;;  %v918_v23 = vrot.slane %v676_v19, 2  ;;  %504 = vst.msk [vmem:[#allocation2 + $0x88] sm:$0x3] %vm488_vm2, %v1538_v2 }
  0x22   : > { %v774_v24 = vrot.slane %v677_v20, 1  ;;  %v776_v25 = vrot.slane %v678_v21, 1  ;;  %v919_v26 = vrot.slane %v677_v20, 2  ;;  %v921_v27 = vrot.slane %v678_v21, 2  ;;  %505 = vst.msk [vmem:[#allocation2 + $0x90] sm:$0xff] %vm279_vm1, %v1538_v2 }
  0x23   : > { %506 = vst.msk [vmem:[#allocation2 + $0x98] sm:$0xff] %vm279_vm1, %v1538_v2 }
  0x24   : > { %v775_v28 = vsel %vm772_vm3, %v773_v22, %v774_v24  ;;  %v777_v29 = vsel %vm772_vm3, %v774_v24, %v776_v25  ;;  %v920_v30 = vsel %vm917_vm4, %v918_v23, %v919_v26  ;;  %v922_v31 = vsel %vm917_vm4, %v919_v26, %v921_v27  ;;  %507 = vst.msk [vmem:[#allocation2 + $0xa0] sm:$0x3] %vm488_vm2, %v1538_v2 }
  0x25   : > { %v885_v32 = vmax.f32 %v676_v19, %v775_v28  ;;  %v886_v33 = vmax.f32 %v677_v20, %v777_v29  ;;  %508 = vst.msk [vmem:[#allocation2 + $0xa8] sm:$0xff] %vm279_vm1, %v1538_v2 }
  0x26   : > { %509 = vst.msk [vmem:[#allocation2 + $0xb0] sm:$0xff] %vm279_vm1, %v1538_v2 }
  0x27   : > { %v1030_v34 = vmax.f32 %v885_v32, %v920_v30  ;;  %v1031_v35 = vmax.f32 %v886_v33, %v922_v31  ;;  %510 = vst.msk [vmem:[#allocation2 + $0xb8] sm:$0x3] %vm488_vm2, %v1538_v2 }
  0x28   : > { %511 = vst.msk [vmem:[#allocation2 + $0xc0] sm:$0xff] %vm279_vm1, %v1538_v2 }
  0x29   : > { %v1062_v36 = vpack.c.bf16 %v1031_v35, %v1030_v34  ;;  %512 = vst.msk [vmem:[#allocation2 + $0xc8] sm:$0xff] %vm279_vm1, %v1538_v2 }
  0x2a   : > { %513 = vst.msk [vmem:[#allocation2 + $0xd0] sm:$0x3] %vm488_vm2, %v1538_v2 }
  0x2b   : > { %1496 = vmatmul.msk.bf16.vlgmr.msra.gmra.mxu1 %vm279_vm1, %v1062_v36  ;;  %514 = vst.msk [vmem:[#allocation2 + $0xd8] sm:$0xff] %vm279_vm1, %v1538_v2 }
  0x2c   : > { %515 = vst.msk [vmem:[#allocation2 + $0xe0] sm:$0xff] %vm279_vm1, %v1538_v2 }
  0x2d   : > { %516 = vst.msk [vmem:[#allocation2 + $0xe8] sm:$0x3] %vm488_vm2, %v1538_v2 }
  0x2e   : > { %517 = vst.msk [vmem:[#allocation2 + $0xf0] sm:$0xff] %vm279_vm1, %v1538_v2 }
  0x2f   : > { %518 = vst.msk [vmem:[#allocation2 + $0xf8] sm:$0xff] %vm279_vm1, %v1538_v2 }
  0x30   : > { %519 = vst.msk [vmem:[#allocation2 + $0x100] sm:$0x3] %vm488_vm2, %v1538_v2 }
  0x31   : > { %520 = vst.msk [vmem:[#allocation2 + $0x108] sm:$0xff] %vm279_vm1, %v1538_v2 }
  0x32   : > { %521 = vst.msk [vmem:[#allocation2 + $0x110] sm:$0xff] %vm279_vm1, %v1538_v2 }
  0x33   : > { %522 = vst.msk [vmem:[#allocation2 + $0x118] sm:$0x3] %vm488_vm2, %v1538_v2 }
  0x34   : > { %523 = vst.msk [vmem:[#allocation2 + $0x120] sm:$0xff] %vm279_vm1, %v1538_v2 }
  0x35   : > { %524 = vst.msk [vmem:[#allocation2 + $0x128] sm:$0xff] %vm279_vm1, %v1538_v2 }
  0x36   : > { %525 = vst.msk [vmem:[#allocation2 + $0x130] sm:$0x3] %vm488_vm2, %v1538_v2 }
  0x37   : > { %526 = vst.msk [vmem:[#allocation2 + $0x138] sm:$0xff] %vm279_vm1, %v1538_v2 }
  0x38   : > { %527 = vst.msk [vmem:[#allocation2 + $0x140] sm:$0xff] %vm279_vm1, %v1538_v2 }
  0x39   : > { %528 = vst.msk [vmem:[#allocation2 + $0x148] sm:$0x3] %vm488_vm2, %v1538_v2 }
  0x3a   : > { %529 = vst.msk [vmem:[#allocation2 + $0x150] sm:$0xff] %vm279_vm1, %v1538_v2 }
  0x3b   : > { %530 = vst.msk [vmem:[#allocation2 + $0x158] sm:$0xff] %vm279_vm1, %v1538_v2 }
  0x3c   : > { %531 = vst.msk [vmem:[#allocation2 + $0x160] sm:$0x3] %vm488_vm2, %v1538_v2 }
  0x3d   : > { %532 = vst.msk [vmem:[#allocation2 + $0x168] sm:$0xff] %vm279_vm1, %v1538_v2 }
  0x3e   : > { %533 = vst.msk [vmem:[#allocation2 + $0x170] sm:$0xff] %vm279_vm1, %v1538_v2 }
  0x3f   : > { %534 = vst.msk [vmem:[#allocation2 + $0x178] sm:$0x3] %vm488_vm2, %v1538_v2 }
  0x40   : > { %535 = vst.msk [vmem:[#allocation2 + $0x180] sm:$0xff] %vm279_vm1, %v1538_v2 }
  0x41   : > { %536 = vst.msk [vmem:[#allocation2 + $0x188] sm:$0xff] %vm279_vm1, %v1538_v2 }
  0x42   : > { %537 = vst.msk [vmem:[#allocation2 + $0x190] sm:$0x3] %vm488_vm2, %v1538_v2 }
  0x43   : > { %538 = vst.msk [vmem:[#allocation2 + $0x198] sm:$0xff] %vm279_vm1, %v1538_v2 }
  0x44   : > { %2492 = vst [vmem:[#allocation3_spill] sm:$0xff] %v1740_v37 }
  0x45   : > { %539 = vst.msk [vmem:[#allocation2 + $0x1a0] sm:$0xff] %vm279_vm1, %v1538_v2 }
  0x46   : > { %2493 = vst [vmem:[#allocation4_spill] sm:$0xff] %v1745_v38 }
  0x47   : > { %540 = vst.msk [vmem:[#allocation2 + $0x1a8] sm:$0x3] %vm488_vm2, %v1538_v2  ;;  %v633_v2 = vmax.f32 %v1642_v12, %v1655_v18 }
  0x48   : > { %556 = vst.msk [vmem:[#allocation2 + $0xc1] sm:$0xff] %vm279_vm1, %v1740_v37 }
  0x49   : > { %557 = vst.msk [vmem:[#allocation2 + $0xc9] sm:$0xff] %vm279_vm1, %v1745_v38 }
  0x4a   : > { %558 = vst.msk [vmem:[#allocation2 + $0xd9] sm:$0xff] %vm279_vm1, %v1750_v39 }
  0x4b   : > { %559 = vst.msk [vmem:[#allocation2 + $0xe1] sm:$0xff] %vm279_vm1, %v1753_v40 }
  0x4c   : > { %560 = vst.msk [vmem:[#allocation2 + $0xf1] sm:$0xff] %vm279_vm1, %v1758_v41 }
  0x4d   : > { %561 = vst.msk [vmem:[#allocation2 + $0xf9] sm:$0xff] %vm279_vm1, %v1763_v42 }
  0x4e   : > { %546 = vst.msk [vmem:[#allocation2 + $0x49] sm:$0xff] %vm279_vm1, %v1770_v43 }
  0x4f   : > { %v1787_v47 = vld [vmem:[#allocation2 + $0xc0] sm:$0xff]  ;;  %547 = vst.msk [vmem:[#allocation2 + $0x51] sm:$0xff] %vm279_vm1, %v1775_v44 }
  0x50   : > { %v1794_v49 = vld [vmem:[#allocation2 + $0xc8] sm:$0xff]  ;;  %v1796_v50 = vld [vmem:[#allocation2 + $0xd0] sm:$0x3]  ;;  %562 = vst.msk [vmem:[#allocation2 + $0x109] sm:$0xff] %vm279_vm1, %v1780_v45 }
  0x51   : > { %v1803_v52 = vld [vmem:[#allocation2 + $0xd8] sm:$0xff]  ;;  %563 = vst.msk [vmem:[#allocation2 + $0x111] sm:$0xff] %vm279_vm1, %v1785_v46 }
  0x52   : > { %v1810_v54 = vld [vmem:[#allocation2 + $0xe0] sm:$0xff]  ;;  %v1812_v55 = vld [vmem:[#allocation2 + $0xe8] sm:$0x3]  ;;  %v652_v56 = vmax.f32 %v1787_v47, %v1803_v52  ;;  %548 = vst.msk [vmem:[#allocation2 + $0x61] sm:$0xff] %vm279_vm1, %v1792_v48 }
  0x53   : > { %v1823_v59 = vld [vmem:[#allocation2 + $0xf0] sm:$0xff]  ;;  %v653_v60 = vmax.f32 %v1794_v49, %v1810_v54  ;;  %v654_v61 = vmax.f32 %v1796_v50, %v1812_v55  ;;  %549 = vst.msk [vmem:[#allocation2 + $0x69] sm:$0xff] %vm279_vm1, %v1801_v51 }
  0x54   : > { %v1831_v62 = vld [vmem:[#allocation2 + $0xf8] sm:$0xff]  ;;  %v1833_v63 = vld [vmem:[#allocation2 + $0x100] sm:$0x3]  ;;  %v700_v0 = vmax.f32 %v652_v56, %v1823_v59  ;;  %v655_v7 = vmax.f32 %v1803_v52, %v1823_v59  ;;  %564 = vst.msk [vmem:[#allocation2 + $0x121] sm:$0xff] %vm279_vm1, %v1808_v53 }
  0x55   : > { %v701_v8 = vmax.f32 %v653_v60, %v1831_v62  ;;  %v702_v9 = vmax.f32 %v654_v61, %v1833_v63  ;;  %v1846_v10 = vld [vmem:[#allocation2 + $0x48] sm:$0xff]  ;;  %v656_v13 = vmax.f32 %v1810_v54, %v1831_v62  ;;  %v657_v11 = vmax.f32 %v1812_v55, %v1833_v63  ;;  %565 = vst.msk [vmem:[#allocation2 + $0x129] sm:$0xff] %vm279_vm1, %v1821_v58 }
  0x56   : > { %v813_v12 = vrot.slane %v700_v0, 1  ;;  %v958_v15 = vrot.slane %v700_v0, 2  ;;  %v1854_v16 = vld [vmem:[#allocation2 + $0x50] sm:$0xff]  ;;  %v1856_v19 = vld [vmem:[#allocation2 + $0x58] sm:$0x3]  ;;  %v679_v20 = vmax.f32 %v631_v57, %v1846_v10  ;;  %v634_v21 = vmax.f32 %v1647_v14, %v1846_v10 }
  0x57   : > { %v814_v22 = vrot.slane %v701_v8, 1  ;;  %v816_v23 = vrot.slane %v702_v9, 1  ;;  %v959_v24 = vrot.slane %v701_v8, 2  ;;  %v961_v25 = vrot.slane %v702_v9, 2  ;;  %v1863_v30 = vld [vmem:[#allocation2 + $0x108] sm:$0xff] }
  0x58   : > { %v680_v26 = vmax.f32 %v632_v1, %v1854_v16  ;;  %v681_v27 = vmax.f32 %v633_v2, %v1856_v19  ;;  %v778_v28 = vrot.slane %v679_v20, 1  ;;  %v923_v29 = vrot.slane %v679_v20, 2  ;;  %v1865_v31 = vld [vmem:[#allocation2 + $0x110] sm:$0xff]  ;;  %v1871_v1 = vld [vmem:[#allocation2 + $0x118] sm:$0x3] }
  0x59   : > { %v815_v32 = vsel %vm772_vm3, %v813_v12, %v814_v22  ;;  %v817_v33 = vsel %vm772_vm3, %v814_v22, %v816_v23  ;;  %v960_v14 = vsel %vm917_vm4, %v958_v15, %v959_v24  ;;  %v962_v34 = vsel %vm917_vm4, %v959_v24, %v961_v25 }
  0x5a   : > { %v901_v35 = vmax.f32 %v700_v0, %v815_v32  ;;  %v902_v36 = vmax.f32 %v701_v8, %v817_v33  ;;  %v779_v56 = vrot.slane %v680_v26, 1  ;;  %v781_v57 = vrot.slane %v681_v27, 1  ;;  %v1880_v8 = vld [vmem:[%s1598_s25 + $0x40] sm:$0xff]  ;;  %v1885_v32 = vld [vmem:[%s1598_s25 + $0x48] sm:$0xff] }
  0x5b   : > { %v924_v60 = vrot.slane %v680_v26, 2  ;;  %v926_v61 = vrot.slane %v681_v27, 2  ;;  %v703_v2 = vmax.f32 %v655_v7, %v1863_v30  ;;  %v1875_v9 = vmax.f32 %v656_v13, %v1865_v31  ;;  %550 = vst.msk [vmem:[#allocation2 + $0x79] sm:$0xff] %vm279_vm1, %v1880_v8  ;;  %v1890_v7 = vld [vmem:[%s1598_s25 + $0xc0] sm:$0xff]  ;;  %v1893_v13 = vld [vmem:[%s1598_s25 + $0xc8] sm:$0xff] }
  0x5c   : > { %v1046_v12 = vmax.f32 %v901_v35, %v960_v14  ;;  %v1047_v15 = vmax.f32 %v902_v36, %v962_v34  ;;  %v780_v22 = vsel %vm772_vm3, %v778_v28, %v779_v56  ;;  %v782_v0 = vsel %vm772_vm3, %v779_v56, %v781_v57  ;;  %2494 = vst [vmem:[#allocation5_spill] sm:$0xff] %v1893_v13  ;;  %v1900_v36 = vld [vmem:[#allocation2 + $0x60] sm:$0xff]  ;;  %v1902_v56 = vld [vmem:[#allocation2 + $0x68] sm:$0xff] }
  0x5d   : > { %v887_v23 = vmax.f32 %v679_v20, %v780_v22  ;;  %v888_v24 = vmax.f32 %v680_v26, %v782_v0  ;;  %v925_v25 = vsel %vm917_vm4, %v923_v29, %v924_v60  ;;  %v927_v27 = vsel %vm917_vm4, %v924_v60, %v926_v61  ;;  %551 = vst.msk [vmem:[#allocation2 + $0x81] sm:$0xff] %vm279_vm1, %v1885_v32  ;;  %v1908_v60 = vld [vmem:[#allocation2 + $0x70] sm:$0x3] }
  0x5e   : > { %v1070_v28 = vpack.c.bf16 %v1047_v15, %v1046_v12  ;;  %v705_v33 = vmax.f32 %v657_v11, %v1871_v1  ;;  %v818_v14 = vrot.slane %v703_v2, 1  ;;  %v819_v20 = vrot.slane %v1875_v9, 1  ;;  %566 = vst.msk [vmem:[#allocation2 + $0x139] sm:$0xff] %vm279_vm1, %v1890_v7 }
  0x5f   : > { %v1032_v26 = vmax.f32 %v887_v23, %v925_v25  ;;  %v1033_v29 = vmax.f32 %v888_v24, %v927_v27  ;;  %v963_v34 = vrot.slane %v703_v2, 2  ;;  %v964_v35 = vrot.slane %v1875_v9, 2  ;;  %567 = vst.msk [vmem:[#allocation2 + $0x141] sm:$0xff] %vm279_vm1, %v1893_v13 }
  0x60   : > { %1504 = vmatmul.msk.bf16.vlgmr.msra.gmra.mxu3 %vm279_vm1, %v1070_v28  ;;  %v820_v11 = vsel %vm772_vm3, %v818_v14, %v819_v20  ;;  %v821_v57 = vrot.slane %v705_v33, 1  ;;  %v635_v61 = vmax.f32 %v1653_v17, %v1854_v16  ;;  %v966_v15 = vrot.slane %v705_v33, 2  ;;  %v1923_v14 = vld [vmem:[#allocation2 + $0x120] sm:$0xff] }
  0x61   : > { %v1063_v12 = vpack.c.bf16 %v1033_v29, %v1032_v26  ;;  %v636_v22 = vmax.f32 %v1655_v18, %v1856_v19  ;;  %v903_v23 = vmax.f32 %v703_v2, %v820_v11  ;;  %v682_v24 = vmax.f32 %v634_v21, %v1900_v36 }
  0x62   : > { %v822_v0 = vsel %vm772_vm3, %v819_v20, %v821_v57  ;;  %v683_v25 = vmax.f32 %v635_v61, %v1902_v56  ;;  %v965_v17 = vsel %vm917_vm4, %v963_v34, %v964_v35  ;;  %v658_v18 = vmax.f32 %v1823_v59, %v1863_v30  ;;  %v1928_v57 = vld [vmem:[#allocation2 + $0x128] sm:$0xff] }
  0x63   : > { %1497 = vmatmul.msk.bf16.gmra.mxu1 %vm279_vm1, %v1063_v12  ;;  %v904_v27 = vmax.f32 %v1875_v9, %v822_v0  ;;  %v684_v28 = vmax.f32 %v636_v22, %v1908_v60  ;;  %v783_v33 = vrot.slane %v682_v24, 1  ;;  %v928_v2 = vrot.slane %v682_v24, 2  ;;  %v1930_v9 = vld [vmem:[#allocation2 + $0x130] sm:$0x3] }
  0x64   : > { %v784_v20 = vrot.slane %v683_v25, 1  ;;  %v929_v26 = vrot.slane %v683_v25, 2  ;;  %v967_v21 = vsel %vm917_vm4, %v964_v35, %v966_v15  ;;  %v659_v34 = vmax.f32 %v1831_v62, %v1865_v31 }
  0x65   : > { %v786_v29 = vrot.slane %v684_v28, 1  ;;  %v931_v11 = vrot.slane %v684_v28, 2  ;;  %v660_v59 = vmax.f32 %v1833_v63, %v1871_v1  ;;  %v706_v22 = vmax.f32 %v658_v18, %v1923_v14  ;;  %v1951_v18 = vld [vmem:[#allocation2 + $0x88] sm:$0x3] }
  0x66   : > { %v785_v61 = vsel %vm772_vm3, %v783_v33, %v784_v20  ;;  %v930_v12 = vsel %vm917_vm4, %v928_v2, %v929_v26  ;;  %v1048_v0 = vmax.f32 %v903_v23, %v965_v17  ;;  %v1049_v38 = vmax.f32 %v904_v27, %v967_v21  ;;  %v1943_v33 = vld [vmem:[#allocation2 + $0x78] sm:$0xff]  ;;  %v1945_v2 = vld [vmem:[#allocation2 + $0x80] sm:$0xff] }
  0x67   : > { %v787_v35 = vsel %vm772_vm3, %v784_v20, %v786_v29  ;;  %v889_v15 = vmax.f32 %v682_v24, %v785_v61  ;;  %v932_v28 = vsel %vm917_vm4, %v929_v26, %v931_v11  ;;  %v707_v13 = vmax.f32 %v659_v34, %v1928_v57  ;;  %v1961_v61 = vld [vmem:[%s1598_s25 + $0x58] sm:$0xff] }
  0x68   : > { %v890_v37 = vmax.f32 %v683_v25, %v787_v35  ;;  %v708_v62 = vmax.f32 %v660_v59, %v1930_v9  ;;  %v637_v23 = vmax.f32 %v1846_v10, %v1900_v36  ;;  %v638_v24 = vmax.f32 %v1854_v16, %v1902_v56  ;;  %v1958_v10 = vld [vmem:[%s1598_s25 + $0x50] sm:$0xff]  ;;  %2496 = vst [vmem:[#allocation7_spill] sm:$0xff] %v1961_v61 }
  0x69   : > { %v1034_v63 = vmax.f32 %v889_v15, %v930_v12  ;;  %v823_v25 = vrot.slane %v706_v22, 1  ;;  %v824_v17 = vrot.slane %v707_v13, 1  ;;  %v639_v26 = vmax.f32 %v1856_v19, %v1908_v60  ;;  %2495 = vst [vmem:[#allocation6_spill] sm:$0xff] %v1958_v10 }
  0x6a   : > { %v1035_v27 = vmax.f32 %v890_v37, %v932_v28  ;;  %v826_v20 = vrot.slane %v708_v62, 1  ;;  %v685_v21 = vmax.f32 %v637_v23, %v1943_v33  ;;  %v686_v29 = vmax.f32 %v638_v24, %v1945_v2  ;;  %v1964_v37 = vld [vmem:[%s1598_s25 + $0xd0] sm:$0xff]  ;;  %552 = vst.msk [vmem:[#allocation2 + $0x91] sm:$0xff] %vm279_vm1, %v1958_v10 }
  0x6b   : > { %v1071_v11 = vpack.c.bf16 %v1049_v38, %v1048_v0  ;;  %2497 = vst [vmem:[#allocation8_spill] sm:$0xff] %v1964_v37  ;;  %v968_v16 = vrot.slane %v706_v22, 2  ;;  %v969_v12 = vrot.slane %v707_v13, 2  ;;  %v687_v59 = vmax.f32 %v639_v26, %v1951_v18  ;;  %v1973_v38 = vld [vmem:[%s1598_s25 + $0xd8] sm:$0xff] }
  0x6c   : > { %v1064_v34 = vpack.c.bf16 %v1035_v27, %v1034_v63  ;;  %v825_v19 = vsel %vm772_vm3, %v823_v25, %v824_v17  ;;  %v971_v35 = vrot.slane %v708_v62, 2  ;;  %553 = vst.msk [vmem:[#allocation2 + $0x99] sm:$0xff] %vm279_vm1, %v1961_v61  ;;  %v827_v0 = vsel %vm772_vm3, %v824_v17, %v826_v20 }
  0x6d   : > { %2498 = vst [vmem:[#allocation9_spill] sm:$0xff] %v1973_v38  ;;  %v788_v15 = vrot.slane %v685_v21, 1  ;;  %v789_v28 = vrot.slane %v686_v29, 1  ;;  %v791_v63 = vrot.slane %v687_v59, 1  ;;  %v905_v23 = vmax.f32 %v706_v22, %v825_v19  ;;  %v1992_v19 = vld [vmem:[#allocation2 + $0x138] sm:$0xff] }
  0x6e   : > { %568 = vst.msk [vmem:[#allocation2 + $0x151] sm:$0xff] %vm279_vm1, %v1964_v37  ;;  %v970_v24 = vsel %vm917_vm4, %v968_v16, %v969_v12  ;;  %v906_v62 = vmax.f32 %v707_v13, %v827_v0  ;;  %v972_v27 = vsel %vm917_vm4, %v969_v12, %v971_v35  ;;  %v933_v25 = vrot.slane %v685_v21, 2  ;;  %v1994_v12 = vld [vmem:[#allocation2 + $0x140] sm:$0xff]  ;;  %v1996_v35 = vld [vmem:[#allocation2 + $0x148] sm:$0x3] }
  0x6f   : > { %569 = vst.msk [vmem:[#allocation2 + $0x159] sm:$0xff] %vm279_vm1, %v1973_v38  ;;  %v934_v26 = vrot.slane %v686_v29, 2  ;;  %v790_v17 = vsel %vm772_vm3, %v788_v15, %v789_v28  ;;  %v661_v20 = vmax.f32 %v1863_v30, %v1923_v14  ;;  %v662_v22 = vmax.f32 %v1865_v31, %v1928_v57 }
  0x70   : > { %1505 = vmatmul.msk.bf16.gmra.mxu3 %vm279_vm1, %v1071_v11  ;;  %v663_v11 = vmax.f32 %v1871_v1, %v1930_v9  ;;  %v792_v16 = vsel %vm772_vm3, %v789_v28, %v791_v63  ;;  %v936_v13 = vrot.slane %v687_v59, 2  ;;  %v1051_v0 = vmax.f32 %v906_v62, %v972_v27 }
  0x71   : > { %v891_v15 = vmax.f32 %v685_v21, %v790_v17  ;;  %v935_v30 = vsel %vm917_vm4, %v933_v25, %v934_v26  ;;  %v892_v38 = vmax.f32 %v686_v29, %v792_v16  ;;  %v709_v31 = vmax.f32 %v661_v20, %v1992_v19  ;;  %v2009_v29 = vld [vmem:[#allocation2 + $0x90] sm:$0xff]  ;;  %v2025_v16 = vld [vmem:[%s1598_s25 + $0xe0] sm:$0xff] }
  0x72   : > { %v710_v37 = vmax.f32 %v662_v22, %v1994_v12  ;;  %v711_v1 = vmax.f32 %v663_v11, %v1996_v35  ;;  %v937_v59 = vsel %vm917_vm4, %v934_v26, %v936_v13  ;;  %v640_v28 = vmax.f32 %v1900_v36, %v1943_v33  ;;  %v2022_v11 = vld [vmem:[%s1598_s25 + $0x68] sm:$0xff]  ;;  %2501 = vst [vmem:[#allocation12_spill] sm:$0xff] %v2025_v16 }
  0x73   : > { %1498 = vmatmul.msk.bf16.gmra.mxu1 %vm279_vm1, %v1064_v34  ;;  %v1050_v34 = vmax.f32 %v905_v23, %v970_v24  ;;  %v641_v63 = vmax.f32 %v1902_v56, %v1945_v2  ;;  %v642_v21 = vmax.f32 %v1908_v60, %v1951_v18  ;;  %v2011_v23 = vld [vmem:[#allocation2 + $0x98] sm:$0xff]  ;;  %v2013_v24 = vld [vmem:[#allocation2 + $0xa0] sm:$0x3]  ;;  %v1036_v62 = vmax.f32 %v891_v15, %v935_v30 }
  0x74   : > { %v1037_v27 = vmax.f32 %v892_v38, %v937_v59  ;;  %v828_v25 = vrot.slane %v709_v31, 1  ;;  %v829_v26 = vrot.slane %v710_v37, 1  ;;  %v831_v36 = vrot.slane %v711_v1, 1  ;;  %v2019_v60 = vld [vmem:[%s1598_s25 + $0x60] sm:$0xff]  ;;  %2500 = vst [vmem:[#allocation11_spill] sm:$0xff] %v2022_v11 }
  0x75   : > { %v1072_v17 = vpack.c.bf16 %v1051_v0, %v1050_v34  ;;  %v688_v20 = vmax.f32 %v640_v28, %v2009_v29  ;;  %v689_v56 = vmax.f32 %v641_v63, %v2011_v23  ;;  %v690_v22 = vmax.f32 %v642_v21, %v2013_v24  ;;  %2499 = vst [vmem:[#allocation10_spill] sm:$0xff] %v2019_v60  ;;  %v2032_v34 = vld [vmem:[%s1598_s25 + $0xe8] sm:$0xff] }
  0x76   : > { %554 = vst.msk [vmem:[#allocation2 + $0xa9] sm:$0xff] %vm279_vm1, %v2019_v60  ;;  %v973_v38 = vrot.slane %v709_v31, 2  ;;  %v974_v13 = vrot.slane %v710_v37, 2  ;;  %v1065_v0 = vpack.c.bf16 %v1037_v27, %v1036_v62  ;;  %v830_v15 = vsel %vm772_vm3, %v828_v25, %v829_v26 }
  0x77   : > { %555 = vst.msk [vmem:[#allocation2 + $0xb1] sm:$0xff] %vm279_vm1, %v2022_v11  ;;  %v832_v30 = vsel %vm772_vm3, %v829_v26, %v831_v36  ;;  %v976_v59 = vrot.slane %v711_v1, 2  ;;  %v793_v28 = vrot.slane %v688_v20, 1  ;;  %v794_v63 = vrot.slane %v689_v56, 1  ;;  %v2050_v11 = vld [vmem:[#allocation2 + $0x158] sm:$0xff] }
  0x78   : > { %2502 = vst [vmem:[#allocation13_spill] sm:$0xff] %v2032_v34  ;;  %v796_v21 = vrot.slane %v690_v22, 1  ;;  %v664_v60 = vmax.f32 %v1923_v14, %v1992_v19  ;;  %v907_v62 = vmax.f32 %v709_v31, %v830_v15  ;;  %v908_v27 = vmax.f32 %v710_v37, %v832_v30  ;;  %v2056_v15 = vld [vmem:[#allocation2 + $0x160] sm:$0x3] }
  0x79   : > { %570 = vst.msk [vmem:[#allocation2 + $0x169] sm:$0xff] %vm279_vm1, %v2025_v16  ;;  %v975_v25 = vsel %vm917_vm4, %v973_v38, %v974_v13  ;;  %v665_v1 = vmax.f32 %v1928_v57, %v1994_v12  ;;  %v977_v26 = vsel %vm917_vm4, %v974_v13, %v976_v59  ;;  %v938_v36 = vrot.slane %v688_v20, 2  ;;  %v2048_v16 = vld [vmem:[#allocation2 + $0x150] sm:$0xff] }
  0x7a   : > { %571 = vst.msk [vmem:[#allocation2 + $0x171] sm:$0xff] %vm279_vm1, %v2032_v34  ;;  %v666_v14 = vmax.f32 %v1930_v9, %v1996_v35  ;;  %v795_v37 = vsel %vm772_vm3, %v793_v28, %v794_v63  ;;  %v797_v31 = vsel %vm772_vm3, %v794_v63, %v796_v21  ;;  %v941_v38 = vrot.slane %v690_v22, 2 }
  0x7b   : > { %v1052_v57 = vmax.f32 %v907_v62, %v975_v25  ;;  %v712_v13 = vmax.f32 %v664_v60, %v2048_v16  ;;  %v713_v30 = vmax.f32 %v665_v1, %v2050_v11  ;;  %v893_v59 = vmax.f32 %v688_v20, %v795_v37  ;;  %v2082_v37 = vld [vmem:[%s1598_s25 + $0xf8] sm:$0xff] }
  0x7c   : > { %v894_v34 = vmax.f32 %v689_v56, %v797_v31  ;;  %v714_v10 = vmax.f32 %v666_v14, %v2056_v15  ;;  %v643_v28 = vmax.f32 %v1943_v33, %v2009_v29  ;;  %v644_v22 = vmax.f32 %v1945_v2, %v2011_v23  ;;  %v2079_v14 = vld [vmem:[%s1598_s25 + $0xf0] sm:$0xff]  ;;  %573 = vst.msk [vmem:[#allocation2 + $0x189] sm:$0xff] %vm279_vm1, %v2082_v37 }
  0x7d   : > { %v645_v60 = vmax.f32 %v1951_v18, %v2013_v24  ;;  %v2069_v63 = vld [vmem:[#allocation2 + $0xa8] sm:$0xff]  ;;  %v833_v62 = vrot.slane %v712_v13, 1  ;;  %572 = vst.msk [vmem:[#allocation2 + $0x181] sm:$0xff] %vm279_vm1, %v2079_v14 }
  0x7e   : > { %v2071_v20 = vld [vmem:[#allocation2 + $0xb0] sm:$0xff]  ;;  %v836_v33 = vrot.slane %v714_v10, 1  ;;  %v691_v2 = vmax.f32 %v643_v28, %v2069_v63  ;;  %v274_v28 = vld [vmem:[%s2476_s1] sm:$0x3] }
  0x80   : > { %1506 = vmatmul.msk.bf16.gmra.mxu3 %vm279_vm1, %v1072_v17  ;;  %v939_v17 = vrot.slane %v689_v56, 2  ;;  %v2073_v56 = vld [vmem:[#allocation2 + $0xb8] sm:$0x3] }
  0x81   : > { %v693_v18 = vmax.f32 %v645_v60, %v2073_v56  ;;  %v330_v60 = vsel %vm328_vm0, %v274_v28, 0 }
  0x82   : > { %v940_v61 = vsel %vm917_vm4, %v938_v36, %v939_v17  ;;  %v942_v9 = vsel %vm917_vm4, %v939_v17, %v941_v38  ;;  %v979_v36 = vrot.slane %v713_v30, 2  ;;  %v692_v17 = vmax.f32 %v644_v22, %v2071_v20  ;;  %339 = vmatpush.bf16.msra.mxu0 %v330_v60  ;;  %1516 = vmatpush.bf16.msra.mxu2 %v330_v60 }
  0x83   : > { %1499 = vmatmul.msk.bf16.gmra.mxu1 %vm279_vm1, %v1065_v0  ;;  %v1053_v0 = vmax.f32 %v908_v27, %v977_v26  ;;  %v834_v27 = vrot.slane %v713_v30, 1  ;;  %v1038_v25 = vmax.f32 %v893_v59, %v940_v61  ;;  %v1039_v1 = vmax.f32 %v894_v34, %v942_v9 }
  0x84   : > { %v978_v26 = vrot.slane %v712_v13, 2  ;;  %v981_v38 = vrot.slane %v714_v10, 2  ;;  %v799_v59 = vrot.slane %v692_v17, 1  ;;  %v801_v9 = vrot.slane %v693_v18, 1 }
  0x85   : > { %v1073_v21 = vpack.c.bf16 %v1053_v0, %v1052_v57  ;;  %v835_v31 = vsel %vm772_vm3, %v833_v62, %v834_v27  ;;  %v1066_v61 = vpack.c.bf16 %v1039_v1, %v1038_v25  ;;  %v837_v34 = vsel %vm772_vm3, %v834_v27, %v836_v33 }
  0x86   : > { %v980_v57 = vsel %vm917_vm4, %v978_v26, %v979_v36  ;;  %v798_v0 = vrot.slane %v691_v2, 1  ;;  %v909_v22 = vmax.f32 %v712_v13, %v835_v31  ;;  %v258_v62 = vpack.c.bf16 %v1610_v4, %v1605_v3  ;;  %v2106_v26 = vld [vmem:[#allocation2 + $0x168] sm:$0xff]  ;;  %v2108_v3 = vld [vmem:[#allocation2 + $0x170] sm:$0xff] }
  0x87   : > { %v266_v10 = vpack.c.bf16 %v1753_v40, %v1750_v39  ;;  %v910_v27 = vmax.f32 %v713_v30, %v837_v34  ;;  %v668_v25 = vmax.f32 %v1994_v12, %v2050_v11  ;;  %v982_v13 = vsel %vm917_vm4, %v979_v36, %v981_v38  ;;  %v2114_v12 = vld [vmem:[#allocation2 + $0x178] sm:$0x3] }
  0x88   : > { %v943_v1 = vrot.slane %v691_v2, 2  ;;  %v944_v33 = vrot.slane %v692_v17, 2  ;;  %v669_v4 = vmax.f32 %v1996_v35, %v2056_v15  ;;  %v800_v39 = vsel %vm772_vm3, %v798_v0, %v799_v59  ;;  %1480 = vmatmul.msk.bf16.vlgmr.msra.gmra.mxu0 %vm279_vm1, %v258_v62 }
  0x89   : > { %v802_v40 = vsel %vm772_vm3, %v799_v59, %v801_v9  ;;  %1488 = vmatmul.msk.bf16.vlgmr.msra.gmra.mxu2 %vm279_vm1, %v266_v10  ;;  %v1054_v30 = vmax.f32 %v909_v22, %v980_v57  ;;  %v1055_v36 = vmax.f32 %v910_v27, %v982_v13  ;;  %v895_v34 = vmax.f32 %v691_v2, %v800_v39 }
  0x8a   : > { %v896_v38 = vmax.f32 %v692_v17, %v802_v40  ;;  %v945_v35 = vsel %vm917_vm4, %v943_v1, %v944_v33  ;;  %v717_v0 = vmax.f32 %v669_v4, %v2114_v12  ;;  %v646_v59 = vmax.f32 %v2009_v29, %v2069_v63 }
  0x8b   : > { %v647_v9 = vmax.f32 %v2011_v23, %v2071_v20  ;;  %v648_v57 = vmax.f32 %v2013_v24, %v2073_v56  ;;  %v1040_v60 = vmax.f32 %v895_v34, %v945_v35  ;;  %v1074_v62 = vpack.c.bf16 %v1055_v36, %v1054_v30 }
  0x8c   : > { %v841_v17 = vrot.slane %v717_v0, 1  ;;  %v694_v10 = vmax.f32 %v646_v59, %v1787_v47  ;;  %v986_v24 = vrot.slane %v717_v0, 2  ;;  %v267_v30 = vpack.c.bf16 %v1763_v42, %v1758_v41  ;;  %v2146_v59 = vld [vmem:[#allocation2 + $0x180] sm:$0xff] }
  0x8d   : > { %v695_v27 = vmax.f32 %v647_v9, %v1794_v49  ;;  %v671_v35 = vmax.f32 %v2050_v11, %v2108_v3 }
  0x8f   : > { %v804_v4 = vrot.slane %v695_v27, 1 }
  0x90   : > { %1507 = vmatmul.msk.bf16.gmra.mxu3 %vm279_vm1, %v1073_v21  ;;  %v667_v21 = vmax.f32 %v1992_v19, %v2048_v16  ;;  %v946_v19 = vrot.slane %v693_v18, 2 }
  0x92   : > { %v715_v31 = vmax.f32 %v667_v21, %v2106_v26  ;;  %v947_v18 = vsel %vm917_vm4, %v944_v33, %v946_v19  ;;  %v696_v21 = vmax.f32 %v648_v57, %v1796_v50  ;;  %v803_v33 = vrot.slane %v694_v10, 1 }
  0x93   : > { %1500 = vmatmul.msk.bf16.gmra.mxu1 %vm279_vm1, %v1066_v61  ;;  %v716_v61 = vmax.f32 %v668_v25, %v2108_v3  ;;  %v1041_v2 = vmax.f32 %v896_v38, %v947_v18  ;;  %v259_v19 = vpack.c.bf16 %v1620_v6, %v1615_v5  ;;  %v670_v38 = vmax.f32 %v2048_v16, %v2106_v26  ;;  %v2148_v5 = vld [vmem:[#allocation2 + $0x188] sm:$0xff] }
  0x94   : > { %v838_v28 = vrot.slane %v715_v31, 1  ;;  %v983_v25 = vrot.slane %v715_v31, 2  ;;  %v806_v39 = vrot.slane %v696_v21, 1  ;;  %v949_v18 = vrot.slane %v695_v27, 2 }
  0x95   : > { %v839_v22 = vrot.slane %v716_v61, 1  ;;  %v984_v13 = vrot.slane %v716_v61, 2  ;;  %v1067_v23 = vpack.c.bf16 %v1041_v2, %v1040_v60  ;;  %v672_v6 = vmax.f32 %v2056_v15, %v2114_v12 }
  0x96   : > { %v805_v41 = vsel %vm772_vm3, %v803_v33, %v804_v4  ;;  %v807_v42 = vsel %vm772_vm3, %v804_v4, %v806_v39  ;;  %v951_v16 = vrot.slane %v696_v21, 2  ;;  %v718_v57 = vmax.f32 %v670_v38, %v2146_v59 }
  0x97   : > { %v840_v29 = vsel %vm772_vm3, %v838_v28, %v839_v22  ;;  %v842_v1 = vsel %vm772_vm3, %v839_v22, %v841_v17  ;;  %v985_v34 = vsel %vm917_vm4, %v983_v25, %v984_v13  ;;  %v987_v0 = vsel %vm917_vm4, %v984_v13, %v986_v24 }
  0x98   : > { %v911_v40 = vmax.f32 %v715_v31, %v840_v29  ;;  %v912_v36 = vmax.f32 %v716_v61, %v842_v1  ;;  %v948_v31 = vrot.slane %v694_v10, 2  ;;  %v2154_v61 = vld [vmem:[#allocation2 + $0x190] sm:$0x3]  ;;  %1481 = vmatmul.msk.bf16.gmra.mxu0 %vm279_vm1, %v259_v19  ;;  %v719_v28 = vmax.f32 %v671_v35, %v2148_v5 }
  0x99   : > { %1489 = vmatmul.msk.bf16.gmra.mxu2 %vm279_vm1, %v267_v30  ;;  %v897_v22 = vmax.f32 %v694_v10, %v805_v41  ;;  %v898_v60 = vmax.f32 %v695_v27, %v807_v42  ;;  %v720_v2 = vmax.f32 %v672_v6, %v2154_v61  ;;  %v952_v17 = vsel %vm917_vm4, %v949_v18, %v951_v16  ;;  %v625_v16 = vld [vmem:[#allocation2 + $0x198] sm:$0xff] }
  0x9a   : > { %v1056_v11 = vmax.f32 %v911_v40, %v985_v34  ;;  %v1057_v9 = vmax.f32 %v912_v36, %v987_v0  ;;  %v950_v15 = vsel %vm917_vm4, %v948_v31, %v949_v18  ;;  %v650_v21 = vmax.f32 %v2071_v20, %v1794_v49 }
  0x9b   : > { %v651_v29 = vmax.f32 %v2073_v56, %v1796_v50  ;;  %v843_v25 = vrot.slane %v718_v57, 1  ;;  %v1042_v13 = vmax.f32 %v897_v22, %v950_v15  ;;  %v844_v10 = vrot.slane %v719_v28, 1 }
  0x9c   : > { %v846_v27 = vrot.slane %v720_v2, 1  ;;  %v1075_v1 = vpack.c.bf16 %v1057_v9, %v1056_v11  ;;  %v698_v33 = vmax.f32 %v650_v21, %v1810_v54  ;;  %v988_v39 = vrot.slane %v718_v57, 2  ;;  %v626_v11 = vld [vmem:[#allocation2 + $0x1a0] sm:$0xff]  ;;  %v627_v9 = vld [vmem:[#allocation2 + $0x1a8] sm:$0x3] }
  0x9d   : > { %v699_v4 = vmax.f32 %v651_v29, %v1812_v55  ;;  %v845_v49 = vsel %vm772_vm3, %v843_v25, %v844_v10  ;;  %v991_v50 = vrot.slane %v720_v2, 2  ;;  %v260_v55 = vpack.c.bf16 %v1775_v44, %v1770_v43 }
  0x9e   : > { %v847_v20 = vsel %vm772_vm3, %v844_v10, %v846_v27  ;;  %v809_v40 = vrot.slane %v698_v33, 1  ;;  %v268_v30 = vpack.c.bf16 %v1785_v46, %v1780_v45  ;;  %v913_v36 = vmax.f32 %v718_v57, %v845_v49 }
  0x9f   : > { %v811_v19 = vrot.slane %v699_v4, 1  ;;  %v914_v34 = vmax.f32 %v719_v28, %v847_v20  ;;  %v954_v18 = vrot.slane %v698_v33, 2  ;;  %v956_v43 = vrot.slane %v699_v4, 2 }
  0xa0   : > { %1508 = vmatmul.msk.bf16.gmra.mxu3 %vm279_vm1, %v1074_v62  ;;  %v649_v62 = vmax.f32 %v2069_v63, %v1787_v47  ;;  %v989_v47 = vrot.slane %v719_v28, 2  ;;  %v673_v45 = vmax.f32 %v2106_v26, %v2146_v59  ;;  %v674_v46 = vmax.f32 %v2108_v3, %v2148_v5 }
  0xa1   : > { %v812_v41 = vsel %vm772_vm3, %v809_v40, %v811_v19  ;;  %v675_v42 = vmax.f32 %v2114_v12, %v2154_v61  ;;  %v957_v3 = vsel %vm917_vm4, %v954_v18, %v956_v43  ;;  %v262_v19 = vpack.c.bf16 %v1885_v32, %v1880_v8  ;;  %v2506_v32 = vld [vmem:[#allocation8_spill] sm:$0xff] }
  0xa2   : > { %v697_v24 = vmax.f32 %v649_v62, %v1803_v52  ;;  %v2178_v52 = vld [vmem:[%s2479_s4] ss:$0 sm:$0xff]  ;;  %v990_v35 = vsel %vm917_vm4, %v988_v39, %v989_v47  ;;  %v992_v0 = vsel %vm917_vm4, %v989_v47, %v991_v50  ;;  %v900_v28 = vmax.f32 %v698_v33, %v812_v41 }
  0xa3   : > { %1501 = vmatmul.msk.bf16.gmra.mxu1 %vm279_vm1, %v1067_v23  ;;  %v1043_v23 = vmax.f32 %v898_v60, %v952_v17  ;;  %v1058_v22 = vmax.f32 %v913_v36, %v990_v35  ;;  %v1059_v26 = vmax.f32 %v914_v34, %v992_v0  ;;  %v721_v5 = vmax.f32 %v673_v45, %v625_v16  ;;  %v2504_v34 = vld [vmem:[#allocation6_spill] sm:$0xff]  ;;  %v2507_v35 = vld [vmem:[#allocation9_spill] sm:$0xff] }
  0xa4   : > { %v808_v56 = vrot.slane %v697_v24, 1  ;;  %v953_v31 = vrot.slane %v697_v24, 2  ;;  %v722_v12 = vmax.f32 %v674_v46, %v626_v11  ;;  %v723_v61 = vmax.f32 %v675_v42, %v627_v9 }
  0xa5   : > { %v1068_v63 = vpack.c.bf16 %v1043_v23, %v1042_v13  ;;  %v1045_v15 = vmax.f32 %v900_v28, %v957_v3  ;;  %v1076_v2 = vpack.c.bf16 %v1059_v26, %v1058_v22  ;;  %v848_v17 = vrot.slane %v721_v5, 1  ;;  %v2509_v28 = vld [vmem:[#allocation11_spill] sm:$0xff] }
  0xa6   : > { %v810_v6 = vsel %vm772_vm3, %v808_v56, %v809_v40  ;;  %v955_v59 = vsel %vm917_vm4, %v953_v31, %v954_v18  ;;  %v849_v62 = vrot.slane %v722_v12, 1  ;;  %v851_v21 = vrot.slane %v723_v61, 1 }
  0xa7   : > { %v899_v57 = vmax.f32 %v697_v24, %v810_v6  ;;  %v993_v25 = vrot.slane %v721_v5, 2  ;;  %v994_v10 = vrot.slane %v722_v12, 2  ;;  %v996_v27 = vrot.slane %v723_v61, 2  ;;  %v2511_v61 = vld [vmem:[#allocation13_spill] sm:$0xff] }
  0xa8   : > { %v1143_v54 = vpop.f32.mrf.mxu1  ;;  %1482 = vmatmul.msk.bf16.gmra.mxu0 %vm279_vm1, %v260_v55  ;;  %v850_v13 = vsel %vm772_vm3, %v848_v17, %v849_v62  ;;  %v852_v23 = vsel %vm772_vm3, %v849_v62, %v851_v21  ;;  %v261_v56 = vpack.c.bf16 %v1801_v51, %v1792_v48  ;;  %v2512_v21 = vld [vmem:[#allocation3_spill] sm:$0xff] }
  0xa9   : > { %v1144_v38 = vadd.f32 %v2178_v52, %v1143_v54  ;;  %1490 = vmatmul.msk.bf16.gmra.mxu2 %vm279_vm1, %v268_v30  ;;  %v1044_v60 = vmax.f32 %v899_v57, %v955_v59  ;;  %v916_v24 = vmax.f32 %v722_v12, %v852_v23  ;;  %v995_v33 = vsel %vm917_vm4, %v993_v25, %v994_v10  ;;  %v2508_v57 = vld [vmem:[#allocation10_spill] sm:$0xff]  ;;  %v2510_v12 = vld [vmem:[#allocation12_spill] sm:$0xff] }
  0xaa   : > { %v997_v4 = vsel %vm917_vm4, %v994_v10, %v996_v27  ;;  %v264_v22 = vpack.c.bf16 %v2509_v28, %v2508_v57 }
  0xab   : > { %v1223_v44 = vmax.f32 %v1144_v38, 0.0  ;;  %v1069_v29 = vpack.c.bf16 %v1045_v15, %v1044_v60  ;;  %v1061_v20 = vmax.f32 %v916_v24, %v997_v4  ;;  %v2505_v38 = vld [vmem:[#allocation7_spill] sm:$0xff]  ;;  %v272_v60 = vpack.c.bf16 %v2511_v61, %v2510_v12 }
  0xac   : > { %v263_v8 = vpack.c.bf16 %v2505_v38, %v2504_v34 }
  0xad   : > { %1287 = vrot.lane.b32.xlu0 %v1223_v44, %s1539_s30 }
  0xb0   : > { %1509 = vmatmul.msk.bf16.gmra.mxu3 %vm279_vm1, %v1075_v1  ;;  %v915_v1 = vmax.f32 %v721_v5, %v850_v13  ;;  %v1145_v39 = vpop.f32.mrf.mxu1 }
  0xb1   : > { %v1146_v47 = vadd.f32 %v2178_v52, %v1145_v39 }
  0xb2   : > { %v1060_v49 = vmax.f32 %v915_v1, %v995_v33 }
  0xb3   : > { %1502 = vmatmul.msk.bf16.gmra.mxu1 %vm279_vm1, %v1068_v63  ;;  %v269_v63 = vpack.c.bf16 %v1821_v58, %v1808_v53  ;;  %v1224_v50 = vmax.f32 %v1146_v47, 0.0  ;;  %v2503_v53 = vld [vmem:[#allocation5_spill] sm:$0xff] }
  0xb4   : > { %v1077_v40 = vpack.c.bf16 %v1061_v20, %v1060_v49  ;;  %v270_v58 = vpack.c.bf16 %v2503_v53, %v1890_v7  ;;  %v271_v7 = vpack.c.bf16 %v2507_v35, %v2506_v32  ;;  %v2262_v49 = vld [vmem:[%s2477_s2] ss:$0 sm:$0xff]  ;;  %v273_v53 = vpack.c.bf16 %v2082_v37, %v2079_v14 }
  0xb5   : > { %1289 = vrot.lane.b32.xlu0 %v1224_v50, %s1539_s30 }
  0xb8   : > { %1483 = vmatmul.msk.bf16.gmra.mxu0 %vm279_vm1, %v261_v56 }
  0xb9   : > { %1491 = vmatmul.msk.bf16.gmra.mxu2 %vm279_vm1, %v269_v63 }
  0xc0   : > { %1510 = vmatmul.msk.bf16.gmra.mxu3 %vm279_vm1, %v1076_v2 }
  0xc3   : > { %1503 = vmatmul.msk.bf16.gmra.mxu1 %vm279_vm1, %v1069_v29  ;;  %v2513_v29 = vld [vmem:[#allocation4_spill] sm:$0xff] }
  0xc4   : > { %v265_v25 = vpack.c.bf16 %v2513_v29, %v2512_v21 }
  0xc8   : > { %1484 = vmatmul.msk.bf16.gmra.mxu0 %vm279_vm1, %v262_v19 }
  0xc9   : > { %1492 = vmatmul.msk.bf16.gmra.mxu2 %vm279_vm1, %v270_v58 }
  0xd0   : > { %1511 = vmatmul.msk.bf16.gmra.mxu3 %vm279_vm1, %v1077_v40 }
  0xd8   : > { %1485 = vmatmul.msk.bf16.gmra.mxu0 %vm279_vm1, %v263_v8 }
  0xd9   : > { %1493 = vmatmul.msk.bf16.gmra.mxu2 %vm279_vm1, %v271_v7 }
  0xe0   : > { %v1148_v54 = vpop.f32.mrf.mxu1 }
  0xe1   : > { %v1149_v30 = vadd.f32 %v2178_v52, %v1148_v54 }
  0xe3   : > { %v1183_v55 = vpop.f32.mrf.mxu3  ;;  %v1225_v18 = vmax.f32 %v1149_v30, 0.0 }
  0xe4   : > { %v1184_v48 = vadd.f32 %v2178_v52, %v1183_v55 }
  0xe6   : > { %v1239_v51 = vmax.f32 %v1184_v48, 0.0 }
  0xe8   : > { %1319 = vrot.lane.b32.xlu1 %v1239_v51, %s1539_s30  ;;  %v1150_v36 = vpop.f32.mrf.mxu1  ;;  %1486 = vmatmul.msk.bf16.gmra.mxu0 %vm279_vm1, %v264_v22 }
  0xe9   : > { %v1151_v41 = vadd.f32 %v2178_v52, %v1150_v36  ;;  %1494 = vmatmul.msk.bf16.gmra.mxu2 %vm279_vm1, %v272_v60 }
  0xeb   : > { %v1185_v0 = vpop.f32.mrf.mxu3  ;;  %v1226_v42 = vmax.f32 %v1151_v41, 0.0 }
  0xec   : > { %v1186_v31 = vadd.f32 %v2178_v52, %v1185_v0 }
  0xee   : > { %v1240_v6 = vmax.f32 %v1186_v31, 0.0 }
  0xf0   : > { %1321 = vrot.lane.b32.xlu2 %v1240_v6, %s1539_s30  ;;  %1291 = vrot.lane.b32.xlu1 %v1225_v18, %s1539_s30  ;;  %v1153_v43 = vpop.f32.mrf.mxu1 }
  0xf1   : > { %v1154_v44 = vadd.f32 %v2178_v52, %v1153_v43 }
  0xf3   : > { %v1188_v45 = vpop.f32.mrf.mxu3  ;;  %v1227_v16 = vmax.f32 %v1154_v44, 0.0 }
  0xf4   : > { %v1189_v46 = vadd.f32 %v2178_v52, %v1188_v45 }
  0xf6   : > { %v1241_v11 = vmax.f32 %v1189_v46, 0.0 }
  0xf8   : > { %1293 = vrot.lane.b32.xlu1 %v1226_v42, %s1539_s30  ;;  %1323 = vrot.lane.b32.xlu0 %v1241_v11, %s1539_s30  ;;  %v1155_v9 = vpop.f32.mrf.mxu1 }
  0xf9   : > { %1295 = vrot.lane.b32.xlu2 %v1227_v16, %s1539_s30  ;;  %v1156_v13 = vadd.f32 %v2178_v52, %v1155_v9  ;;  %1487 = vmatmul.msk.bf16.gmra.mxu0 %vm279_vm1, %v265_v25 }
  0xfa   : > { %1495 = vmatmul.msk.bf16.gmra.mxu2 %vm279_vm1, %v273_v53 }
  0xfb   : > { %v1190_v26 = vpop.f32.mrf.mxu3  ;;  %v1228_v27 = vmax.f32 %v1156_v13, 0.0 }
  0xfc   : > { %v1191_v59 = vadd.f32 %v2178_v52, %v1190_v26 }
  0xfe   : > { %v1242_v3 = vmax.f32 %v1191_v59, 0.0 }
 0x100   : > { %1325 = vrot.lane.b32.xlu1 %v1242_v3, %s1539_s30  ;;  %v1158_v5 = vpop.f32.mrf.mxu1 }
 0x101   : > { %v1159_v33 = vadd.f32 %v2178_v52, %v1158_v5 }
 0x103   : > { %v1193_v15 = vpop.f32.mrf.mxu3  ;;  %v1229_v47 = vmax.f32 %v1159_v33, 0.0 }
 0x104   : > { %v1194_v2 = vadd.f32 %v2178_v52, %v1193_v15 }
 0x105   : > { %v341_v20 = vpop.f32.mrf.mxu0 }
 0x106   : > { %v1243_v17 = vmax.f32 %v1194_v2, 0.0  ;;  %v342_v56 = vadd.f32 %v2262_v49, %v341_v20 }
 0x108   : > { %1327 = vrot.lane.b32.xlu2 %v1243_v17, %s1539_s30  ;;  %v1160_v62 = vpop.f32.mrf.mxu1  ;;  %v421_v19 = vmax.f32 %v342_v56, 0.0 }
 0x109   : > { %v1161_v40 = vadd.f32 %v2178_v52, %v1160_v62 }
 0x10a   : > { %454 = vst.msk [vmem:[%s2275_s10] sm:$0xff] %vm453_vm5, %v421_v19 }
 0x10b   : > { %v1195_v23 = vpop.f32.mrf.mxu3  ;;  %v1230_v48 = vmax.f32 %v1161_v40, 0.0 }
 0x10c   : > { %v1196_v10 = vadd.f32 %v2178_v52, %v1195_v23  ;;  %v381_v55 = vpop.f32.mrf.mxu2 }
 0x10d   : > { %v382_v37 = vadd.f32 %v2262_v49, %v381_v55  ;;  %v343_v51 = vpop.f32.mrf.mxu0 }
 0x10e   : > { %v1244_v1 = vmax.f32 %v1196_v10, 0.0  ;;  %v344_v30 = vadd.f32 %v2262_v49, %v343_v51 }
 0x10f   : > { %v437_v34 = vmax.f32 %v382_v37, 0.0 }
 0x110   : > { %1329 = vrot.lane.b32.xlu0 %v1244_v1, %s1539_s30  ;;  %1297 = vrot.lane.b32.xlu2 %v1228_v27, %s1539_s30  ;;  %v1163_v24 = vpop.f32.mrf.mxu1  ;;  %v422_v38 = vmax.f32 %v344_v30, 0.0 }
 0x111   : > { %v1164_v8 = vadd.f32 %v2178_v52, %v1163_v24  ;;  %470 = vst.msk [vmem:[%s2275_s10 + $0x80] sm:$0xff] %vm453_vm5, %v437_v34 }
 0x112   : > { %455 = vst.msk [vmem:[%s2275_s10 + $0x8] sm:$0xff] %vm453_vm5, %v422_v38 }
 0x113   : > { %v1198_v4 = vpop.f32.mrf.mxu3  ;;  %v1231_v0 = vmax.f32 %v1164_v8, 0.0 }
 0x114   : > { %v1199_v39 = vadd.f32 %v2178_v52, %v1198_v4  ;;  %v383_v7 = vpop.f32.mrf.mxu2 }
 0x115   : > { %v384_v18 = vadd.f32 %v2262_v49, %v383_v7  ;;  %v346_v6 = vpop.f32.mrf.mxu0 }
 0x116   : > { %v1245_v63 = vmax.f32 %v1199_v39, 0.0  ;;  %v347_v41 = vadd.f32 %v2262_v49, %v346_v6 }
 0x117   : > { %v438_v44 = vmax.f32 %v384_v18, 0.0 }
 0x118   : > { %1331 = vrot.lane.b32.xlu1 %v1245_v63, %s1539_s30  ;;  %1299 = vrot.lane.b32.xlu0 %v1229_v47, %s1539_s30  ;;  %v1165_v50 = vpop.f32.mrf.mxu1  ;;  %v423_v45 = vmax.f32 %v347_v41, 0.0 }
 0x119   : > { %v1166_v46 = vadd.f32 %v2178_v52, %v1165_v50  ;;  %471 = vst.msk [vmem:[%s2275_s10 + $0x88] sm:$0xff] %vm453_vm5, %v438_v44 }
 0x11a   : > { %456 = vst.msk [vmem:[%s2275_s10 + $0x10] sm:$0xff] %vm453_vm5, %v423_v45 }
 0x11b   : > { %v1200_v58 = vpop.f32.mrf.mxu3  ;;  %v1232_v9 = vmax.f32 %v1166_v46, 0.0 }
 0x11c   : > { %v1201_v54 = vadd.f32 %v2178_v52, %v1200_v58  ;;  %v386_v11 = vpop.f32.mrf.mxu2 }
 0x11d   : > { %v387_v28 = vadd.f32 %v2262_v49, %v386_v11  ;;  %v348_v22 = vpop.f32.mrf.mxu0 }
 0x11e   : > { %v1246_v14 = vmax.f32 %v1201_v54, 0.0  ;;  %v349_v26 = vadd.f32 %v2262_v49, %v348_v22 }
 0x11f   : > { %v439_v3 = vmax.f32 %v387_v28, 0.0  ;;  %v1288_v15 = vpop.permute.xlu0 %1287 }
 0x120   : > { %1333 = vrot.lane.b32.xlu2 %v1246_v14, %s1539_s30  ;;  %1301 = vrot.lane.b32.xlu1 %v1230_v48, %s1539_s30  ;;  %v1168_v36 = vpop.f32.mrf.mxu1  ;;  %v424_v5 = vmax.f32 %v349_v26, 0.0  ;;  %1384 = vst.msk [vmem:[%s2275_s10] sm:$0xff] %vm1383_vm6, %v1288_v15 }
 0x121   : > { %v1169_v12 = vadd.f32 %v2178_v52, %v1168_v36  ;;  %472 = vst.msk [vmem:[%s2275_s10 + $0x90] sm:$0xff] %vm453_vm5, %v439_v3 }
 0x122   : > { %457 = vst.msk [vmem:[%s2275_s10 + $0x18] sm:$0xff] %vm453_vm5, %v424_v5 }
 0x123   : > { %v1203_v32 = vpop.f32.mrf.mxu3  ;;  %v1233_v17 = vmax.f32 %v1169_v12, 0.0 }
 0x124   : > { %v1204_v35 = vadd.f32 %v2178_v52, %v1203_v32  ;;  %v388_v2 = vpop.f32.mrf.mxu2 }
 0x125   : > { %v389_v21 = vadd.f32 %v2262_v49, %v388_v2  ;;  %v351_v29 = vpop.f32.mrf.mxu0 }
 0x126   : > { %v1247_v31 = vmax.f32 %v1204_v35, 0.0  ;;  %v352_v25 = vadd.f32 %v2262_v49, %v351_v29 }
 0x127   : > { %v440_v23 = vmax.f32 %v389_v21, 0.0  ;;  %v1290_v33 = vpop.permute.xlu0 %1289 }
 0x128   : > { %1303 = vrot.lane.b32.xlu2 %v1231_v0, %s1539_s30  ;;  %1335 = vrot.lane.b32.xlu0 %v1247_v31, %s1539_s30  ;;  %v1170_v43 = vpop.f32.mrf.mxu1  ;;  %v425_v10 = vmax.f32 %v352_v25, 0.0  ;;  %1385 = vst.msk [vmem:[%s2275_s10 + $0x8] sm:$0xff] %vm1383_vm6, %v1290_v33 }
 0x129   : > { %v1171_v27 = vadd.f32 %v2178_v52, %v1170_v43  ;;  %473 = vst.msk [vmem:[%s2275_s10 + $0x98] sm:$0xff] %vm453_vm5, %v440_v23 }
 0x12a   : > { %458 = vst.msk [vmem:[%s2275_s10 + $0x20] sm:$0xff] %vm453_vm5, %v425_v10 }
 0x12b   : > { %v1205_v42 = vpop.f32.mrf.mxu3  ;;  %v1234_v39 = vmax.f32 %v1171_v27, 0.0 }
 0x12c   : > { %v1206_v16 = vadd.f32 %v2178_v52, %v1205_v42  ;;  %v391_v4 = vpop.f32.mrf.mxu2 }
 0x12d   : > { %v392_v63 = vadd.f32 %v2262_v49, %v391_v4  ;;  %v353_v20 = vpop.f32.mrf.mxu0 }
 0x12e   : > { %v1248_v57 = vmax.f32 %v1206_v16, 0.0  ;;  %v354_v50 = vadd.f32 %v2262_v49, %v353_v20 }
 0x12f   : > { %v441_v40 = vmax.f32 %v392_v63, 0.0 }
 0x130   : > { %1337 = vrot.lane.b32.xlu1 %v1248_v57, %s1539_s30  ;;  %1305 = vrot.lane.b32.xlu0 %v1232_v9, %s1539_s30  ;;  %v1173_v59 = vpop.f32.mrf.mxu1  ;;  %v426_v53 = vmax.f32 %v354_v50, 0.0 }
 0x131   : > { %v1174_v58 = vadd.f32 %v2178_v52, %v1173_v59  ;;  %474 = vst.msk [vmem:[%s2275_s10 + $0xa0] sm:$0xff] %vm453_vm5, %v441_v40 }
 0x132   : > { %459 = vst.msk [vmem:[%s2275_s10 + $0x28] sm:$0xff] %vm453_vm5, %v426_v53 }
 0x133   : > { %v1208_v61 = vpop.f32.mrf.mxu3  ;;  %v1235_v37 = vmax.f32 %v1174_v58, 0.0 }
 0x134   : > { %v1209_v60 = vadd.f32 %v2178_v52, %v1208_v61  ;;  %v393_v14 = vpop.f32.mrf.mxu2 }
 0x135   : > { %v394_v30 = vadd.f32 %v2262_v49, %v393_v14  ;;  %v356_v36 = vpop.f32.mrf.mxu0 }
 0x136   : > { %v1249_v62 = vmax.f32 %v1209_v60, 0.0  ;;  %v357_v8 = vadd.f32 %v2262_v49, %v356_v36 }
 0x137   : > { %v442_v38 = vmax.f32 %v394_v30, 0.0 }
 0x138   : > { %1339 = vrot.lane.b32.xlu2 %v1249_v62, %s1539_s30  ;;  %1307 = vrot.lane.b32.xlu1 %v1233_v17, %s1539_s30  ;;  %v1175_v13 = vpop.f32.mrf.mxu1  ;;  %v427_v0 = vmax.f32 %v357_v8, 0.0 }
 0x139   : > { %v1176_v35 = vadd.f32 %v2178_v52, %v1175_v13  ;;  %475 = vst.msk [vmem:[%s2275_s10 + $0xa8] sm:$0xff] %vm453_vm5, %v442_v38 }
 0x13a   : > { %460 = vst.msk [vmem:[%s2275_s10 + $0x30] sm:$0xff] %vm453_vm5, %v427_v0 }
 0x13b   : > { %v1210_v1 = vpop.f32.mrf.mxu3  ;;  %v1236_v43 = vmax.f32 %v1176_v35, 0.0 }
 0x13c   : > { %v1211_v24 = vadd.f32 %v2178_v52, %v1210_v1  ;;  %v396_v41 = vpop.f32.mrf.mxu2 }
 0x13d   : > { %v397_v44 = vadd.f32 %v2262_v49, %v396_v41  ;;  %v358_v46 = vpop.f32.mrf.mxu0 }
 0x13e   : > { %v1250_v47 = vmax.f32 %v1211_v24, 0.0  ;;  %v359_v16 = vadd.f32 %v2262_v49, %v358_v46 }
 0x13f   : > { %v443_v42 = vmax.f32 %v397_v44, 0.0 }
 0x140   : > { %1309 = vrot.lane.b32.xlu2 %v1234_v39, %s1539_s30  ;;  %1341 = vrot.lane.b32.xlu0 %v1250_v47, %s1539_s30  ;;  %v1178_v56 = vpop.f32.mrf.mxu1  ;;  %v428_v11 = vmax.f32 %v359_v16, 0.0 }
 0x141   : > { %v1179_v19 = vadd.f32 %v2178_v52, %v1178_v56  ;;  %476 = vst.msk [vmem:[%s2275_s10 + $0xb0] sm:$0xff] %vm453_vm5, %v443_v42 }
 0x142   : > { %461 = vst.msk [vmem:[%s2275_s10 + $0x38] sm:$0xff] %vm453_vm5, %v428_v11 }
 0x143   : > { %v1213_v54 = vpop.f32.mrf.mxu3  ;;  %v1237_v48 = vmax.f32 %v1179_v19, 0.0 }
 0x144   : > { %v1214_v55 = vadd.f32 %v2178_v52, %v1213_v54  ;;  %v398_v22 = vpop.f32.mrf.mxu2 }
 0x145   : > { %v399_v59 = vadd.f32 %v2262_v49, %v398_v22  ;;  %v361_v3 = vpop.f32.mrf.mxu0 }
 0x146   : > { %v1251_v51 = vmax.f32 %v1214_v55, 0.0  ;;  %v362_v12 = vadd.f32 %v2262_v49, %v361_v3 }
 0x147   : > { %v444_v5 = vmax.f32 %v399_v59, 0.0 }
 0x148   : > { %1343 = vrot.lane.b32.xlu1 %v1251_v51, %s1539_s30  ;;  %1311 = vrot.lane.b32.xlu0 %v1235_v37, %s1539_s30  ;;  %v1180_v34 = vpop.f32.mrf.mxu1  ;;  %v429_v60 = vmax.f32 %v362_v12, 0.0 }
 0x149   : > { %1315 = vrot.lane.b32.xlu2 %v1237_v48, %s1539_s30  ;;  %v1181_v32 = vadd.f32 %v2178_v52, %v1180_v34  ;;  %477 = vst.msk [vmem:[%s2275_s10 + $0xb8] sm:$0xff] %vm453_vm5, %v444_v5 }
 0x14a   : > { %v1322_v7 = vpop.permute.xlu2 %1321  ;;  %462 = vst.msk [vmem:[%s2275_s10 + $0x40] sm:$0xff] %vm453_vm5, %v429_v60 }
 0x14b   : > { %1401 = vst.msk [vmem:[%s2275_s10 + $0x88] sm:$0xff] %vm1383_vm6, %v1322_v7  ;;  %v1215_v31 = vpop.f32.mrf.mxu3  ;;  %v1238_v6 = vmax.f32 %v1181_v32, 0.0 }
 0x14c   : > { %v1216_v18 = vadd.f32 %v2178_v52, %v1215_v31  ;;  %v401_v21 = vpop.f32.mrf.mxu2 }
 0x14d   : > { %v363_v62 = vpop.f32.mrf.mxu0  ;;  %v402_v25 = vadd.f32 %v2262_v49, %v401_v21 }
 0x14e   : > { %v1252_v45 = vmax.f32 %v1216_v18, 0.0  ;;  %v364_v29 = vadd.f32 %v2262_v49, %v363_v62 }
 0x14f   : > { %v445_v27 = vmax.f32 %v402_v25, 0.0 }
 0x150   : > { %1313 = vrot.lane.b32.xlu1 %v1236_v43, %s1539_s30  ;;  %1317 = vrot.lane.b32.xlu0 %v1238_v6, %s1539_s30  ;;  %v430_v10 = vmax.f32 %v364_v29, 0.0 }
 0x151   : > { %1345 = vrot.lane.b32.xlu2 %v1252_v45, %s1539_s30  ;;  %478 = vst.msk [vmem:[%s2275_s10 + $0xc0] sm:$0xff] %vm453_vm5, %v445_v27 }
 0x152   : > { %463 = vst.msk [vmem:[%s2275_s10 + $0x48] sm:$0xff] %vm453_vm5, %v430_v10 }
 0x153   : > { %v1218_v9 = vpop.f32.mrf.mxu3  ;;  %v1296_v57 = vpop.permute.xlu2 %1295 }
 0x154   : > { %v1219_v28 = vadd.f32 %v2178_v52, %v1218_v9  ;;  %1388 = vst.msk [vmem:[%s2275_s10 + $0x20] sm:$0xff] %vm1383_vm6, %v1296_v57  ;;  %v403_v1 = vpop.f32.mrf.mxu2 }
 0x155   : > { %v404_v33 = vadd.f32 %v2262_v49, %v403_v1 }
 0x156   : > { %v1253_v26 = vmax.f32 %v1219_v28, 0.0 }
 0x157   : > { %v446_v20 = vmax.f32 %v404_v33, 0.0 }
 0x158   : > { %1347 = vrot.lane.b32.xlu0 %v1253_v26, %s1539_s30 }
 0x159   : > { %479 = vst.msk [vmem:[%s2275_s10 + $0xc8] sm:$0xff] %vm453_vm5, %v446_v20 }
 0x15a   : > { %v1320_v61 = vpop.permute.xlu1 %1319 }
 0x15b   : > { %v1220_v15 = vpop.f32.mrf.mxu3  ;;  %1400 = vst.msk [vmem:[%s2275_s10 + $0x80] sm:$0xff] %vm1383_vm6, %v1320_v61 }
 0x15c   : > { %v1221_v2 = vadd.f32 %v2178_v52, %v1220_v15  ;;  %v366_v52 = vpop.f32.mrf.mxu0  ;;  %v406_v56 = vpop.f32.mrf.mxu2 }
 0x15d   : > { %v367_v24 = vadd.f32 %v2262_v49, %v366_v52  ;;  %v407_v19 = vadd.f32 %v2262_v49, %v406_v56 }
 0x15e   : > { %v1254_v17 = vmax.f32 %v1221_v2, 0.0 }
 0x15f   : > { %v431_v47 = vmax.f32 %v367_v24, 0.0  ;;  %v447_v54 = vmax.f32 %v407_v19, 0.0 }
 0x160   : > { %1349 = vrot.lane.b32.xlu1 %v1254_v17, %s1539_s30 }
 0x161   : > { %464 = vst.msk [vmem:[%s2275_s10 + $0x50] sm:$0xff] %vm453_vm5, %v431_v47 }
 0x162   : > { %v1328_v13 = vpop.permute.xlu2 %1327  ;;  %v1292_v23 = vpop.permute.xlu1 %1291  ;;  %480 = vst.msk [vmem:[%s2275_s10 + $0xd0] sm:$0xff] %vm453_vm5, %v447_v54 }
 0x163   : > { %1404 = vst.msk [vmem:[%s2275_s10 + $0xa0] sm:$0xff] %vm1383_vm6, %v1328_v13 }
 0x164   : > { %1386 = vst.msk [vmem:[%s2275_s10 + $0x10] sm:$0xff] %vm1383_vm6, %v1292_v23  ;;  %v368_v50 = vpop.f32.mrf.mxu0  ;;  %v408_v51 = vpop.f32.mrf.mxu2 }
 0x165   : > { %v369_v40 = vadd.f32 %v2262_v49, %v368_v50  ;;  %v409_v30 = vadd.f32 %v2262_v49, %v408_v51 }
 0x167   : > { %v432_v58 = vmax.f32 %v369_v40, 0.0  ;;  %v448_v34 = vmax.f32 %v409_v30, 0.0 }
 0x169   : > { %465 = vst.msk [vmem:[%s2275_s10 + $0x58] sm:$0xff] %vm453_vm5, %v432_v58 }
 0x16a   : > { %v1298_v4 = vpop.permute.xlu2 %1297  ;;  %v1294_v39 = vpop.permute.xlu1 %1293  ;;  %481 = vst.msk [vmem:[%s2275_s10 + $0xd8] sm:$0xff] %vm453_vm5, %v448_v34 }
 0x16b   : > { %1389 = vst.msk [vmem:[%s2275_s10 + $0x28] sm:$0xff] %vm1383_vm6, %v1298_v4  ;;  %v1324_v63 = vpop.permute.xlu0 %1323 }
 0x16c   : > { %1387 = vst.msk [vmem:[%s2275_s10 + $0x18] sm:$0xff] %vm1383_vm6, %v1294_v39  ;;  %v371_v55 = vpop.f32.mrf.mxu0  ;;  %v411_v0 = vpop.f32.mrf.mxu2 }
 0x16d   : > { %1402 = vst.msk [vmem:[%s2275_s10 + $0x90] sm:$0xff] %vm1383_vm6, %v1324_v63  ;;  %v372_v48 = vadd.f32 %v2262_v49, %v371_v55  ;;  %v412_v18 = vadd.f32 %v2262_v49, %v411_v0 }
 0x16f   : > { %v433_v37 = vmax.f32 %v372_v48, 0.0  ;;  %v449_v44 = vmax.f32 %v412_v18, 0.0 }
 0x171   : > { %466 = vst.msk [vmem:[%s2275_s10 + $0x60] sm:$0xff] %vm453_vm5, %v433_v37 }
 0x172   : > { %v1326_v53 = vpop.permute.xlu1 %1325  ;;  %482 = vst.msk [vmem:[%s2275_s10 + $0xe0] sm:$0xff] %vm453_vm5, %v449_v44 }
 0x173   : > { %1403 = vst.msk [vmem:[%s2275_s10 + $0x98] sm:$0xff] %vm1383_vm6, %v1326_v53 }
 0x174   : > { %v373_v36 = vpop.f32.mrf.mxu0  ;;  %v413_v45 = vpop.f32.mrf.mxu2 }
 0x175   : > { %v374_v38 = vadd.f32 %v2262_v49, %v373_v36  ;;  %v414_v46 = vadd.f32 %v2262_v49, %v413_v45 }
 0x177   : > { %v434_v35 = vmax.f32 %v374_v38, 0.0  ;;  %v450_v11 = vmax.f32 %v414_v46, 0.0 }
 0x179   : > { %467 = vst.msk [vmem:[%s2275_s10 + $0x68] sm:$0xff] %vm453_vm5, %v434_v35 }
 0x17a   : > { %v1334_v14 = vpop.permute.xlu2 %1333  ;;  %483 = vst.msk [vmem:[%s2275_s10 + $0xe8] sm:$0xff] %vm453_vm5, %v450_v11 }
 0x17b   : > { %1407 = vst.msk [vmem:[%s2275_s10 + $0xb8] sm:$0xff] %vm1383_vm6, %v1334_v14 }
 0x17c   : > { %v376_v7 = vpop.f32.mrf.mxu0 }
 0x17d   : > { %v377_v31 = vadd.f32 %v2262_v49, %v376_v7  ;;  %v416_v28 = vpop.f32.mrf.mxu2 }
 0x17e   : > { %v417_v22 = vadd.f32 %v2262_v49, %v416_v28 }
 0x17f   : > { %v435_v43 = vmax.f32 %v377_v31, 0.0 }
 0x180   : > { %v451_v3 = vmax.f32 %v417_v22, 0.0 }
 0x181   : > { %468 = vst.msk [vmem:[%s2275_s10 + $0x70] sm:$0xff] %vm453_vm5, %v435_v43 }
 0x182   : > { %v1304_v8 = vpop.permute.xlu2 %1303  ;;  %v1330_v32 = vpop.permute.xlu0 %1329  ;;  %484 = vst.msk [vmem:[%s2275_s10 + $0xf0] sm:$0xff] %vm453_vm5, %v451_v3 }
 0x183   : > { %1392 = vst.msk [vmem:[%s2275_s10 + $0x40] sm:$0xff] %vm1383_vm6, %v1304_v8 }
 0x184   : > { %1405 = vst.msk [vmem:[%s2275_s10 + $0xa8] sm:$0xff] %vm1383_vm6, %v1330_v32  ;;  %v378_v12 = vpop.f32.mrf.mxu0 }
 0x185   : > { %v379_v61 = vadd.f32 %v2262_v49, %v378_v12  ;;  %v418_v15 = vpop.f32.mrf.mxu2 }
 0x186   : > { %v419_v2 = vadd.f32 %v2262_v49, %v418_v15 }
 0x187   : > { %v436_v60 = vmax.f32 %v379_v61, 0.0 }
 0x188   : > { %v452_v62 = vmax.f32 %v419_v2, 0.0 }
 0x189   : > { %469 = vst.msk [vmem:[%s2275_s10 + $0x78] sm:$0xff] %vm453_vm5, %v436_v60 }
 0x18a   : > { %v1332_v6 = vpop.permute.xlu1 %1331  ;;  %v1300_v41 = vpop.permute.xlu0 %1299  ;;  %485 = vst.msk [vmem:[%s2275_s10 + $0xf8] sm:$0xff] %vm453_vm5, %v452_v62 }
 0x18b   : > { %1406 = vst.msk [vmem:[%s2275_s10 + $0xb0] sm:$0xff] %vm1383_vm6, %v1332_v6 }
 0x18c   : > { %1390 = vst.msk [vmem:[%s2275_s10 + $0x30] sm:$0xff] %vm1383_vm6, %v1300_v41 }
 0x192   : > { %v1340_v42 = vpop.permute.xlu2 %1339  ;;  %v1302_v16 = vpop.permute.xlu1 %1301 }
 0x193   : > { %1410 = vst.msk [vmem:[%s2275_s10 + $0xd0] sm:$0xff] %vm1383_vm6, %v1340_v42 }
 0x194   : > { %1391 = vst.msk [vmem:[%s2275_s10 + $0x38] sm:$0xff] %vm1383_vm6, %v1302_v16 }
 0x19a   : > { %v1310_v9 = vpop.permute.xlu2 %1309  ;;  %v1336_v57 = vpop.permute.xlu0 %1335 }
 0x19b   : > { %1395 = vst.msk [vmem:[%s2275_s10 + $0x58] sm:$0xff] %vm1383_vm6, %v1310_v9 }
 0x19c   : > { %1408 = vst.msk [vmem:[%s2275_s10 + $0xc0] sm:$0xff] %vm1383_vm6, %v1336_v57 }
 0x1a2   : > { %v1338_v26 = vpop.permute.xlu1 %1337  ;;  %v1306_v59 = vpop.permute.xlu0 %1305 }
 0x1a3   : > { %1409 = vst.msk [vmem:[%s2275_s10 + $0xc8] sm:$0xff] %vm1383_vm6, %v1338_v26  ;;  %v1316_v5 = vpop.permute.xlu2 %1315 }
 0x1a4   : > { %1393 = vst.msk [vmem:[%s2275_s10 + $0x48] sm:$0xff] %vm1383_vm6, %v1306_v59 }
 0x1a5   : > { %1398 = vst.msk [vmem:[%s2275_s10 + $0x70] sm:$0xff] %vm1383_vm6, %v1316_v5 }
 0x1aa   : > { %v1308_v17 = vpop.permute.xlu1 %1307 }
 0x1ab   : > { %1394 = vst.msk [vmem:[%s2275_s10 + $0x50] sm:$0xff] %vm1383_vm6, %v1308_v17  ;;  %v1346_v21 = vpop.permute.xlu2 %1345 }
 0x1ac   : > { %1413 = vst.msk [vmem:[%s2275_s10 + $0xe8] sm:$0xff] %vm1383_vm6, %v1346_v21 }
 0x1b2   : > { %v1342_v29 = vpop.permute.xlu0 %1341 }
 0x1b3   : > { %1411 = vst.msk [vmem:[%s2275_s10 + $0xd8] sm:$0xff] %vm1383_vm6, %v1342_v29 }
 0x1ba   : > { %v1344_v25 = vpop.permute.xlu1 %1343  ;;  %v1312_v13 = vpop.permute.xlu0 %1311 }
 0x1bb   : > { %1412 = vst.msk [vmem:[%s2275_s10 + $0xe0] sm:$0xff] %vm1383_vm6, %v1344_v25 }
 0x1bc   : > { %1396 = vst.msk [vmem:[%s2275_s10 + $0x60] sm:$0xff] %vm1383_vm6, %v1312_v13 }
 0x1c2   : > { %v1314_v49 = vpop.permute.xlu1 %1313  ;;  %v1318_v23 = vpop.permute.xlu0 %1317 }
 0x1c3   : > { %1397 = vst.msk [vmem:[%s2275_s10 + $0x68] sm:$0xff] %vm1383_vm6, %v1314_v49 }
 0x1c4   : > { %1399 = vst.msk [vmem:[%s2275_s10 + $0x78] sm:$0xff] %vm1383_vm6, %v1318_v23 }
 0x1ca   : > { %v1348_v10 = vpop.permute.xlu0 %1347 }
 0x1cb   : > { %1414 = vst.msk [vmem:[%s2275_s10 + $0xf0] sm:$0xff] %vm1383_vm6, %v1348_v10 }
 0x1d2   : > { %v1350_v27 = vpop.permute.xlu1 %1349 }
 0x1d3   : > { %1415 = vst.msk [vmem:[%s2275_s10 + $0xf8] sm:$0xff] %vm1383_vm6, %v1350_v27 }
 0x1d4 PF: > { %s15_s18 = sadd.s32 1, %s1536_s18  }
 0x1d5   : > { %p12_p4 = scmp.ge.s32.totalorder %s15_s18, 4  }
 0x1d7   :  { %14 = sbr.rel (!%p12_p4) target bundleno = 1 (0x1), region = 71 }

// kernel: inception_forward.3
= control target key start
LH: loop header
LB: loop body
LE: loop exit
PB: predicated region body
PF: predicated region fallthrough
CT: control target
= control target key end

     0   :  { %10 = vsyncpa [#allocation5], 0  ;;  %s12407_s0 = inlined_call_operand.vmem [shape: f32[2,16,16,28], index: 0, kind: input, shape index: {}]   ;;  %s12408_s1 = inlined_call_operand.vmem [shape: bf16[9,8,16], index: 1, kind: input, shape index: {}]   ;;  %s12409_s2 = inlined_call_operand.vmem [shape: f32[1,16], index: 2, kind: input, shape index: {}]   ;;  %s12410_s3 = inlined_call_operand.vmem [shape: bf16[25,4,8], index: 3, kind: input, shape index: {}]   ;;  %s12411_s4 = inlined_call_operand.vmem [shape: f32[1,8], index: 4, kind: input, shape index: {}]   ;;  %s12412_s5 = inlined_call_operand.hbm [shape: f32[2,16,16,40], index: 5, kind: output, shape index: {}]  }
   0x1   :  { %12 = vsyncpa [#allocation5 + $0x1], 0  ;;  %s8085_s18 = smov 0   ;;  %s8087_s19 = smov 0  }
   0x2   :  { %s8089_s20 = smov 0   ;;  %s8091_s21 = smov 0  }
   0x3 LB: > { %s8106_s22 = sadd.s32 4294967295, %s8046_s21   ;;  %s7336_s23 = sadd.s32 4294967294, %s8046_s21   ;;  %s8046_s21 = sphi %s8091_s21, %s13244_s21   ;;  %s8042_s20 = sphi %s8089_s20, %s13243_s20   ;;  %s8038_s19 = sphi %s8087_s19, %s13242_s19   ;;  %s8034_s18 = sphi %s8085_s18, %s13241_s18  }
   0x4   : > { %s8110_s24 = sadd.s32 1, %s8046_s21   ;;  %s135_s25 = sadd.s32 1, %s8042_s20 }
   0x5   : > { %s132_s26 = ssub.s32 %s8046_s21, %s8110_s24  ;;  %p145_p0 = scmp.ne.s32.totalorder %s8042_s20, %s8038_s19 }
   0x6   : > { %p133_p1 = scmp.eq.s32.totalorder %s132_s26, 0  ;;  %p146_p2 = scmp.eq.s32.totalorder %s8106_s22, 1 }
   0x7   : > { %p151_p3 = scmp.ne.s32.totalorder %s8038_s19, %s8034_s18  ;;  %p152_p4 = scmp.eq.s32.totalorder %s7336_s23, 1 }
   0x8   : > { %s8121_s27 = scalar_select %p133_p1, %s8042_s20, %s135_s25  }
   0x9   : > { %p8123_p5 = por %p146_p2, %p145_p0  ;;  %p8127_p6 = por %p152_p4, %p151_p3 }
   0xa   : > { %p7339_p7 = scmp.ge.s32.totalorder %s8046_s21, 1  ;;  %p190_p8 = scmp.lt.s32.totalorder %s8046_s21, 3 }
   0xc   : > { %p191_p9 = pnand %p7339_p7, %p190_p8 }
   0xe   : > { %194 = sbr.rel (%p191_p9) target bundleno = 2602 (0xa2a), region = 40 }
  0x13   : > { %p218_p10 = scmp.lt.s32.totalorder %s8106_s22, 1  ;;  %s8048_s10 = smov 120   ;;  %v800_v18 = vld [vmem:[%s12408_s1] sm:$0xf]  ;;  %vm1028_vm0 = vcmask 1043456   ;;  %vm256_vm1 = vcmask 64512  }
  0x14   : > { %v1170_v19 = vsel %vm1028_vm0, %v800_v18, 0  ;;  %v12413_v20 = vmov 0.0   ;;  %vm484_vm2 = vcmask 58368   ;;  %v7343_v32 = vld [vmem:[%s12408_s1 + $0x4] sm:$0xf]  ;;  %vm849_vm3 = vcmask 1046528  }
  0x15   : > { %s219_s30 = scalar_select %p218_p10, %s8106_s22, 1  ;;  %507 = vst.msk [vmem:[#allocation2 + $0xc0] sm:$0xff] %vm256_vm1, %v12413_v20  ;;  %1179 = vmatpush.bf16.msra.mxu1 %v1170_v19  ;;  %7927 = vmatpush.bf16.msra.mxu3 %v1170_v19  ;;  %v1030_v37 = vsel %vm1028_vm0, %v7343_v32, 0  ;;  %v7376_v48 = vld [vmem:[%s12408_s1 + $0x8] sm:$0xf]  ;;  %vm1261_vm4 = vcmask 1045504  }
  0x16   : > { %508 = vst.msk [vmem:[#allocation2 + $0xc8] sm:$0xff] %vm256_vm1, %v12413_v20  ;;  %1039 = vmatpush.bf16.msra.mxu0 %v1030_v37  ;;  %7926 = vmatpush.bf16.msra.mxu2 %v1030_v37  ;;  %v7393_v49 = vld [vmem:[%s12408_s1 + $0xc] sm:$0xf]  ;;  %v1441_v50 = vsel %vm1028_vm0, %v7376_v48, 0  ;;  %v7410_v53 = vld [vmem:[%s12408_s1 + $0x10] sm:$0xf] }
  0x17   : > { %s7924_s6 = sshll.u32 %s219_s30, 8  ;;  %482 = vst.msk [vmem:[#allocation2] sm:$0xff] %vm256_vm1, %v12413_v20  ;;  %v1571_v51 = vsel %vm1028_vm0, %v7393_v49, 0  ;;  %v1711_v57 = vsel %vm1028_vm0, %v7410_v53, 0  ;;  %v7427_v58 = vld [vmem:[%s12408_s1 + $0x14] sm:$0xf] }
  0x18   : > { %s8138_s9 = scalar_lea.vmem %s12407_s0, %s7924_s6  ;;  %483 = vst.msk [vmem:[#allocation2 + $0x8] sm:$0xff] %vm256_vm1, %v12413_v20  ;;  %v1848_v62 = vsel %vm1028_vm0, %v7427_v58, 0  ;;  %vm3165_vm5 = vcmask 1041408   ;;  %vm2607_vm6 = vcmask 31744   ;;  %vm2610_vm7 = vcmask 27648   ;;  %s8051_s11 = smov 12  }
  0x19   : > { %v551_v0 = vld [vmem:[%s8138_s9 + $0x70] sm:$0xff]  ;;  %v553_v1 = vld [vmem:[%s8138_s9 + $0x80] sm:$0xff]  ;;  %v552_v3 = vld [vmem:[%s8138_s9 + $0x78] sm:$0xff]  ;;  %486 = vst.msk [vmem:[#allocation2 + $0x18] sm:$0xff] %vm256_vm1, %v12413_v20  ;;  %1580 = vmatpush.bf16.msrb.mxu3 %v1571_v51  ;;  %1857 = vmatpush.bf16.msrb.mxu1 %v1848_v62  ;;  %vm3700_vm8 = vcmask 1044480   ;;  %s215_s12 = sand.u32 1, %s8038_s19  }
  0x1a   : > { %629 = vrot.lane.b32.xlu0 %v551_v0, %s8048_s10  ;;  %633 = vrot.lane.b32.xlu1 %v553_v1, %s8048_s10  ;;  %v537_v2 = vld [vmem:[%s8138_s9] sm:$0xff]  ;;  %v554_v4 = vld [vmem:[%s8138_s9 + $0x88] sm:$0xff]  ;;  %487 = vst.msk [vmem:[#allocation2 + $0x20] sm:$0xff] %vm256_vm1, %v12413_v20  ;;  %s7340_s13 = sshll.u32 %s215_s12, 8  ;;  %vm449_vm9 = vcmask 326912   ;;  %vm2574_vm10 = vcmask 195648  }
  0x1b   : > { %601 = vrot.lane.b32.xlu2 %v537_v2, %s8048_s10  ;;  %v538_v5 = vld [vmem:[%s8138_s9 + $0x8] sm:$0xff]  ;;  %v555_v6 = vld [vmem:[%s8138_s9 + $0x90] sm:$0xff]  ;;  %v556_v7 = vld [vmem:[%s8138_s9 + $0x98] sm:$0xff]  ;;  %489 = vst.msk [vmem:[#allocation2 + $0x30] sm:$0xff] %vm256_vm1, %v12413_v20  ;;  %1450 = vmatpush.bf16.msrb.mxu2 %v1441_v50  ;;  %s9843_s14 = scalar_lea.vmem [#allocation4], %s7340_s13  ;;  %s8053_s30 = smov 24  }
  0x1c   : > { %v539_v8 = vld [vmem:[%s8138_s9 + $0x10] sm:$0xff]  ;;  %v540_v9 = vld [vmem:[%s8138_s9 + $0x18] sm:$0xff]  ;;  %v557_v10 = vld [vmem:[%s8138_s9 + $0xa0] sm:$0xff]  ;;  %490 = vst.msk [vmem:[#allocation2 + $0x38] sm:$0xff] %vm256_vm1, %v12413_v20  ;;  %1720 = vmatpush.bf16.msrb.mxu0 %v1711_v57  ;;  %vm7225_vm11 = vcmask 261312   ;;  %s7925_s6 = sshll.u32 %s8106_s22, 8 }
  0x1d   : > { %v558_v11 = vld [vmem:[%s8138_s9 + $0xa8] sm:$0xff]  ;;  %v541_v13 = vld [vmem:[%s8138_s9 + $0x20] sm:$0xff]  ;;  %v559_v14 = vld [vmem:[%s8138_s9 + $0xb0] sm:$0xff]  ;;  %492 = vst.msk [vmem:[#allocation2 + $0x48] sm:$0xff] %vm256_vm1, %v12413_v20  ;;  %s7271_s13 = sshll.u32 %s9843_s14, 4  ;;  %s7259_s16 = scalar_lea.sflag [#allocation5], %s215_s12  ;;  %s7272_s13 = int_to_ptr.vmem [resolvable:$true] %s7271_s13 }
  0x1e   : > { %v542_v12 = vld [vmem:[%s8138_s9 + $0x28] sm:$0xff]  ;;  %v543_v15 = vld [vmem:[%s8138_s9 + $0x30] sm:$0xff]  ;;  %v560_v16 = vld [vmem:[%s8138_s9 + $0xb8] sm:$0xff]  ;;  %493 = vst.msk [vmem:[#allocation2 + $0x50] sm:$0xff] %vm256_vm1, %v12413_v20  ;;  %s8004_s25 = scalar_lea.hbm %s12412_s5, 512 }
  0x1f   : > { %v544_v17 = vld [vmem:[%s8138_s9 + $0x38] sm:$0xff]  ;;  %v561_v21 = vld [vmem:[%s8138_s9 + $0xc0] sm:$0xff]  ;;  %v562_v22 = vld [vmem:[%s8138_s9 + $0xc8] sm:$0xff]  ;;  %495 = vst.msk [vmem:[#allocation2 + $0x60] sm:$0xff] %vm256_vm1, %v12413_v20 }
  0x20   : > { %v545_v23 = vld [vmem:[%s8138_s9 + $0x40] sm:$0xff]  ;;  %496 = vst.msk [vmem:[#allocation2 + $0x68] sm:$0xff] %vm256_vm1, %v12413_v20  ;;  %v546_v24 = vld [vmem:[%s8138_s9 + $0x48] sm:$0xff]  ;;  %v563_v25 = vld [vmem:[%s8138_s9 + $0xd0] sm:$0xff] }
  0x21   : > { %498 = vst.msk [vmem:[#allocation2 + $0x78] sm:$0xff] %vm256_vm1, %v12413_v20  ;;  %v564_v26 = vld [vmem:[%s8138_s9 + $0xd8] sm:$0xff]  ;;  %v547_v28 = vld [vmem:[%s8138_s9 + $0x50] sm:$0xff]  ;;  %v549_v29 = vld [vmem:[%s8138_s9 + $0x60] sm:$0xff] }
  0x22   : > { %631 = vrot.lane.b32.xlu0 %v552_v3, %s8048_s10  ;;  %635 = vrot.lane.b32.xlu1 %v554_v4, %s8048_s10  ;;  %499 = vst.msk [vmem:[#allocation2 + $0x80] sm:$0xff] %vm256_vm1, %v12413_v20  ;;  %v548_v27 = vld [vmem:[%s8138_s9 + $0x58] sm:$0xff]  ;;  %v8280_v30 = vld [vmem:[#allocation2] sm:$0xff]  ;;  %v8282_v31 = vld [vmem:[#allocation2 + $0x8] sm:$0xff] }
  0x23   : > { %603 = vrot.lane.b32.xlu2 %v538_v5, %s8048_s10  ;;  %501 = vst.msk [vmem:[#allocation2 + $0x90] sm:$0xff] %vm256_vm1, %v12413_v20  ;;  %v784_v33 = vpack.c.bf16 %v8282_v31, %v8280_v30  ;;  %v850_v34 = vrot.slane %v8280_v30, 1  ;;  %v851_v35 = vrot.slane %v8282_v31, 1  ;;  %v566_v36 = vld [vmem:[%s8138_s9 + $0xe8] sm:$0xff]  ;;  %v565_v39 = vld [vmem:[%s8138_s9 + $0xe0] sm:$0xff] }
  0x24   : > { %502 = vst.msk [vmem:[#allocation2 + $0x98] sm:$0xff] %vm256_vm1, %v12413_v20  ;;  %v550_v44 = vld [vmem:[%s8138_s9 + $0x68] sm:$0xff] }
  0x25   : > { %504 = vst.msk [vmem:[#allocation2 + $0xa8] sm:$0xff] %vm256_vm1, %v12413_v20  ;;  %7360 = vmatmul.msk.bf16.vlgmr.msra.gmra.mxu1 %vm256_vm1, %v784_v33  ;;  %v852_v40 = vsel %vm849_vm3, %v850_v34, %v851_v35 }
  0x26   : > { %505 = vst.msk [vmem:[#allocation2 + $0xb0] sm:$0xff] %vm256_vm1, %v12413_v20 }
  0x27   : > { %510 = vst.msk [vmem:[#allocation2 + $0xd8] sm:$0xff] %vm256_vm1, %v12413_v20 }
  0x28   : > { %511 = vst.msk [vmem:[#allocation2 + $0xe0] sm:$0xff] %vm256_vm1, %v12413_v20 }
  0x29   : > { %513 = vst.msk [vmem:[#allocation2 + $0xf0] sm:$0xff] %vm256_vm1, %v12413_v20 }
  0x2a   : > { %637 = vrot.lane.b32.xlu0 %v555_v6, %s8048_s10  ;;  %639 = vrot.lane.b32.xlu1 %v556_v7, %s8048_s10  ;;  %514 = vst.msk [vmem:[#allocation2 + $0xf8] sm:$0xff] %vm256_vm1, %v12413_v20 }
  0x2b   : > { %605 = vrot.lane.b32.xlu2 %v539_v8, %s8048_s10  ;;  %516 = vst.msk [vmem:[#allocation2 + $0x108] sm:$0xff] %vm256_vm1, %v12413_v20 }
  0x2c   : > { %517 = vst.msk [vmem:[#allocation2 + $0x110] sm:$0xff] %vm256_vm1, %v12413_v20 }
  0x2d   : > { %519 = vst.msk [vmem:[#allocation2 + $0x120] sm:$0xff] %vm256_vm1, %v12413_v20 }
  0x2e   : > { %520 = vst.msk [vmem:[#allocation2 + $0x128] sm:$0xff] %vm256_vm1, %v12413_v20 }
  0x2f   : > { %522 = vst.msk [vmem:[#allocation2 + $0x138] sm:$0xff] %vm256_vm1, %v12413_v20 }
  0x30   : > { %523 = vst.msk [vmem:[#allocation2 + $0x140] sm:$0xff] %vm256_vm1, %v12413_v20 }
  0x31   : > { %525 = vst.msk [vmem:[#allocation2 + $0x150] sm:$0xff] %vm256_vm1, %v12413_v20 }
  0x32   : > { %607 = vrot.lane.b32.xlu0 %v540_v9, %s8048_s10  ;;  %641 = vrot.lane.b32.xlu1 %v557_v10, %s8048_s10  ;;  %526 = vst.msk [vmem:[#allocation2 + $0x158] sm:$0xff] %vm256_vm1, %v12413_v20 }
  0x33   : > { %643 = vrot.lane.b32.xlu2 %v558_v11, %s8048_s10  ;;  %528 = vst.msk [vmem:[#allocation2 + $0x168] sm:$0xff] %vm256_vm1, %v12413_v20 }
  0x34   : > { %529 = vst.msk [vmem:[#allocation2 + $0x170] sm:$0xff] %vm256_vm1, %v12413_v20 }
  0x35   : > { %531 = vst.msk [vmem:[#allocation2 + $0x180] sm:$0xff] %vm256_vm1, %v12413_v20 }
  0x36   : > { %532 = vst.msk [vmem:[#allocation2 + $0x188] sm:$0xff] %vm256_vm1, %v12413_v20 }
  0x37   : > { %534 = vst.msk [vmem:[#allocation2 + $0x198] sm:$0xff] %vm256_vm1, %v12413_v20 }
  0x38   : > { %535 = vst.msk [vmem:[#allocation2 + $0x1a0] sm:$0xff] %vm256_vm1, %v12413_v20 }
  0x39   : > { %485 = vst.msk [vmem:[#allocation2 + $0x10] sm:$0x3] %vm484_vm2, %v12413_v20 }
  0x3a   : > { %611 = vrot.lane.b32.xlu1 %v542_v12, %s8048_s10  ;;  %609 = vrot.lane.b32.xlu0 %v541_v13, %s8048_s10  ;;  %488 = vst.msk [vmem:[#allocation2 + $0x28] sm:$0x3] %vm484_vm2, %v12413_v20 }
  0x3b   : > { %645 = vrot.lane.b32.xlu2 %v559_v14, %s8048_s10  ;;  %491 = vst.msk [vmem:[#allocation2 + $0x40] sm:$0x3] %vm484_vm2, %v12413_v20 }
  0x3c   : > { %494 = vst.msk [vmem:[#allocation2 + $0x58] sm:$0x3] %vm484_vm2, %v12413_v20 }
  0x3d   : > { %497 = vst.msk [vmem:[#allocation2 + $0x70] sm:$0x3] %vm484_vm2, %v12413_v20 }
  0x3e   : > { %500 = vst.msk [vmem:[#allocation2 + $0x88] sm:$0x3] %vm484_vm2, %v12413_v20 }
  0x3f   : > { %503 = vst.msk [vmem:[#allocation2 + $0xa0] sm:$0x3] %vm484_vm2, %v12413_v20 }
  0x40   : > { %v8295_v38 = vld [vmem:[#allocation2 + $0x10] sm:$0x3]  ;;  %506 = vst.msk [vmem:[#allocation2 + $0xb8] sm:$0x3] %vm484_vm2, %v12413_v20 }
  0x41   : > { %v853_v41 = vrot.slane %v8295_v38, 1  ;;  %509 = vst.msk [vmem:[#allocation2 + $0xd0] sm:$0x3] %vm484_vm2, %v12413_v20 }
  0x42   : > { %613 = vrot.lane.b32.xlu1 %v543_v15, %s8048_s10  ;;  %647 = vrot.lane.b32.xlu0 %v560_v16, %s8048_s10  ;;  %512 = vst.msk [vmem:[#allocation2 + $0xe8] sm:$0x3] %vm484_vm2, %v12413_v20 }
  0x43   : > { %615 = vrot.lane.b32.xlu2 %v544_v17, %s8048_s10  ;;  %v854_v42 = vsel %vm849_vm3, %v851_v35, %v853_v41  ;;  %515 = vst.msk [vmem:[#allocation2 + $0x100] sm:$0x3] %vm484_vm2, %v12413_v20 }
  0x44   : > { %v962_v43 = vpack.c.bf16 %v854_v42, %v852_v40  ;;  %518 = vst.msk [vmem:[#allocation2 + $0x118] sm:$0x3] %vm484_vm2, %v12413_v20 }
  0x45   : > { %521 = vst.msk [vmem:[#allocation2 + $0x130] sm:$0x3] %vm484_vm2, %v12413_v20 }
  0x46   : > { %7344 = vmatmul.msk.bf16.vlgmr.msra.gmra.mxu0 %vm256_vm1, %v962_v43  ;;  %524 = vst.msk [vmem:[#allocation2 + $0x148] sm:$0x3] %vm484_vm2, %v12413_v20 }
  0x47   : > { %527 = vst.msk [vmem:[#allocation2 + $0x160] sm:$0x3] %vm484_vm2, %v12413_v20 }
  0x48   : > { %530 = vst.msk [vmem:[#allocation2 + $0x178] sm:$0x3] %vm484_vm2, %v12413_v20 }
  0x49   : > { %533 = vst.msk [vmem:[#allocation2 + $0x190] sm:$0x3] %vm484_vm2, %v12413_v20 }
  0x4a   : > { %649 = vrot.lane.b32.xlu0 %v561_v21, %s8048_s10  ;;  %651 = vrot.lane.b32.xlu1 %v562_v22, %s8048_s10  ;;  %536 = vst.msk [vmem:[#allocation2 + $0x1a8] sm:$0x3] %vm484_vm2, %v12413_v20 }
  0x4b   : > { %617 = vrot.lane.b32.xlu2 %v545_v23, %s8048_s10 }
  0x52   : > { %619 = vrot.lane.b32.xlu0 %v546_v24, %s8048_s10  ;;  %653 = vrot.lane.b32.xlu1 %v563_v25, %s8048_s10 }
  0x53   : > { %655 = vrot.lane.b32.xlu2 %v564_v26, %s8048_s10 }
  0x5a   : > { %623 = vrot.lane.b32.xlu1 %v548_v27, %s8048_s10  ;;  %621 = vrot.lane.b32.xlu0 %v547_v28, %s8048_s10 }
  0x5b   : > { %657 = vrot.lane.b32.xlu2 %v565_v39, %s8048_s10 }
  0x62   : > { %625 = vrot.lane.b32.xlu1 %v549_v29, %s8048_s10  ;;  %659 = vrot.lane.b32.xlu0 %v566_v36, %s8048_s10 }
  0x63   : > { %627 = vrot.lane.b32.xlu2 %v550_v44, %s8048_s10 }
  0x75   : > { %v602_v45 = vpop.permute.xlu2 %601 }
  0x76   : > { %698 = vst.msk [vmem:[#allocation2 + $0x19] sm:$0xff] %vm256_vm1, %v602_v45 }
  0x7d   : > { %v604_v46 = vpop.permute.xlu2 %603  ;;  %v733_v47 = vld [vmem:[#allocation2 + $0x18] sm:$0xff] }
  0x7e   : > { %699 = vst.msk [vmem:[#allocation2 + $0x21] sm:$0xff] %vm256_vm1, %v604_v46  ;;  %v855_v52 = vrot.slane %v733_v47, 1  ;;  %v1267_v4 = vrot.slane %v733_v47, 2 }
  0x85   : > { %v734_v54 = vld [vmem:[#allocation2 + $0x20] sm:$0xff]  ;;  %v735_v55 = vld [vmem:[#allocation2 + $0x28] sm:$0x3]  ;;  %v606_v56 = vpop.permute.xlu2 %605 }
  0x86   : > { %v8348_v59 = vpack.c.bf16 %v734_v54, %v733_v47  ;;  %v856_v60 = vrot.slane %v734_v54, 1  ;;  %v858_v61 = vrot.slane %v735_v55, 1  ;;  %700 = vst.msk [vmem:[#allocation2 + $0x31] sm:$0xff] %vm256_vm1, %v606_v56  ;;  %v1268_v5 = vrot.slane %v734_v54, 2 }
  0x87   : > { %v1270_v6 = vrot.slane %v735_v55, 2 }
  0x88   : > { %7361 = vmatmul.msk.bf16.gmra.mxu1 %vm256_vm1, %v8348_v59  ;;  %v857_v63 = vsel %vm849_vm3, %v855_v52, %v856_v60  ;;  %v859_v0 = vsel %vm849_vm3, %v856_v60, %v858_v61  ;;  %v1269_v8 = vsel %vm1261_vm4, %v1267_v4, %v1268_v5 }
  0x89   : > { %v8356_v1 = vpack.c.bf16 %v859_v0, %v857_v63  ;;  %v1271_v9 = vsel %vm1261_vm4, %v1268_v5, %v1270_v6 }
  0x8a   : > { %v8365_v10 = vpack.c.bf16 %v1271_v9, %v1269_v8 }
  0x8b   : > { %7345 = vmatmul.msk.bf16.gmra.mxu0 %vm256_vm1, %v8356_v1 }
  0x8c   : > { %v630_v2 = vpop.permute.xlu0 %629  ;;  %v634_v3 = vpop.permute.xlu1 %633 }
  0x8d   : > { %712 = vst.msk [vmem:[#allocation2 + $0xc1] sm:$0xff] %vm256_vm1, %v630_v2  ;;  %v644_v7 = vpop.permute.xlu2 %643  ;;  %v736_v54 = vld [vmem:[#allocation2 + $0x30] sm:$0xff] }
  0x8e   : > { %714 = vst.msk [vmem:[#allocation2 + $0xd9] sm:$0xff] %vm256_vm1, %v634_v3  ;;  %v860_v62 = vrot.slane %v736_v54, 1  ;;  %v1272_v0 = vrot.slane %v736_v54, 2 }
  0x8f   : > { %719 = vst.msk [vmem:[#allocation2 + $0x111] sm:$0xff] %vm256_vm1, %v644_v7 }
  0x94   : > { %v632_v11 = vpop.permute.xlu0 %631  ;;  %v636_v12 = vpop.permute.xlu1 %635  ;;  %v754_v13 = vld [vmem:[#allocation2 + $0xc0] sm:$0xff] }
  0x95   : > { %713 = vst.msk [vmem:[#allocation2 + $0xc9] sm:$0xff] %vm256_vm1, %v632_v11  ;;  %v757_v14 = vld [vmem:[#allocation2 + $0xd8] sm:$0xff]  ;;  %v646_v15 = vpop.permute.xlu2 %645  ;;  %v890_v18 = vrot.slane %v754_v13, 1  ;;  %v1302_v28 = vrot.slane %v754_v13, 2 }
  0x96   : > { %715 = vst.msk [vmem:[#allocation2 + $0xe1] sm:$0xff] %vm256_vm1, %v636_v12  ;;  %v1307_v22 = vrot.slane %v757_v14, 2  ;;  %v895_v55 = vrot.slane %v757_v14, 1 }
  0x97   : > { %720 = vst.msk [vmem:[#allocation2 + $0x121] sm:$0xff] %vm256_vm1, %v646_v15 }
  0x9c   : > { %v638_v16 = vpop.permute.xlu0 %637  ;;  %v755_v17 = vld [vmem:[#allocation2 + $0xc8] sm:$0xff]  ;;  %v756_v19 = vld [vmem:[#allocation2 + $0xd0] sm:$0x3]  ;;  %v640_v21 = vpop.permute.xlu1 %639 }
  0x9d   : > { %716 = vst.msk [vmem:[#allocation2 + $0xf1] sm:$0xff] %vm256_vm1, %v638_v16  ;;  %v8371_v23 = vpack.c.bf16 %v755_v17, %v754_v13  ;;  %v891_v24 = vrot.slane %v755_v17, 1  ;;  %v1303_v25 = vrot.slane %v755_v17, 2  ;;  %v893_v26 = vrot.slane %v756_v19, 1  ;;  %v758_v27 = vld [vmem:[#allocation2 + $0xe0] sm:$0xff]  ;;  %v616_v44 = vpop.permute.xlu2 %615 }
  0x9e   : > { %v1305_v29 = vrot.slane %v756_v19, 2  ;;  %717 = vst.msk [vmem:[#allocation2 + $0xf9] sm:$0xff] %vm256_vm1, %v640_v21  ;;  %v1308_v32 = vrot.slane %v758_v27, 2  ;;  %v759_v33 = vld [vmem:[#allocation2 + $0xe8] sm:$0x3]  ;;  %v896_v56 = vrot.slane %v758_v27, 1  ;;  %v8406_v2 = vpack.c.bf16 %v758_v27, %v757_v14 }
  0x9f   : > { %12591 = vst [vmem:[#allocation7_spill] sm:$0xff] %v8371_v23  ;;  %7368 = vmatmul.msk.bf16.vlgmr.msra.gmra.mxu3 %vm256_vm1, %v8371_v23  ;;  %v892_v34 = vsel %vm849_vm3, %v890_v18, %v891_v24  ;;  %v894_v35 = vsel %vm849_vm3, %v891_v24, %v893_v26  ;;  %v1310_v36 = vrot.slane %v759_v33, 2  ;;  %v1304_v39 = vsel %vm1261_vm4, %v1302_v28, %v1303_v25  ;;  %v8426_v19 = vld [vmem:[#allocation2 + $0x118] sm:$0x3] }
  0xa0   : > { %v8378_v37 = vpack.c.bf16 %v894_v35, %v892_v34  ;;  %v1306_v40 = vsel %vm1261_vm4, %v1303_v25, %v1305_v29  ;;  %v1309_v42 = vsel %vm1261_vm4, %v1307_v22, %v1308_v32  ;;  %705 = vst.msk [vmem:[#allocation2 + $0x69] sm:$0xff] %vm256_vm1, %v616_v44  ;;  %v898_v57 = vrot.slane %v759_v33, 1 }
  0xa1   : > { %v8382_v41 = vpack.c.bf16 %v1306_v40, %v1304_v39  ;;  %v1311_v43 = vsel %vm1261_vm4, %v1308_v32, %v1310_v36  ;;  %12594 = vst [vmem:[#allocation10_spill] sm:$0xff] %v8406_v2  ;;  %v897_v4 = vsel %vm849_vm3, %v895_v55, %v896_v56  ;;  %v1320_v24 = vrot.slane %v8426_v19, 2 }
  0xa2   : > { %12592 = vst [vmem:[#allocation8_spill] sm:$0xff] %v8378_v37  ;;  %7352 = vmatmul.msk.bf16.vlgmr.msra.gmra.mxu2 %vm256_vm1, %v8378_v37  ;;  %v8388_v45 = vpack.c.bf16 %v1311_v43, %v1309_v42  ;;  %v899_v5 = vsel %vm849_vm3, %v896_v56, %v898_v57 }
  0xa3   : > { %12593 = vst [vmem:[#allocation9_spill] sm:$0xff] %v8382_v41  ;;  %v8430_v22 = vpack.c.bf16 %v899_v5, %v897_v4 }
  0xa4   : > { %v608_v46 = vpop.permute.xlu0 %607  ;;  %v642_v47 = vpop.permute.xlu1 %641  ;;  %v8391_v48 = vld [vmem:[#allocation2 + $0xf0] sm:$0xff] }
  0xa5   : > { %701 = vst.msk [vmem:[#allocation2 + $0x39] sm:$0xff] %vm256_vm1, %v608_v46  ;;  %v8394_v49 = vld [vmem:[#allocation2 + $0xf8] sm:$0xff]  ;;  %v1312_v50 = vrot.slane %v8391_v48, 2  ;;  %v8397_v51 = vld [vmem:[#allocation2 + $0x100] sm:$0x3]  ;;  %v618_v28 = vpop.permute.xlu2 %617  ;;  %v900_v43 = vrot.slane %v8391_v48, 1 }
  0xa6   : > { %718 = vst.msk [vmem:[#allocation2 + $0x109] sm:$0xff] %vm256_vm1, %v642_v47  ;;  %v1313_v52 = vrot.slane %v8394_v49, 2  ;;  %v1315_v53 = vrot.slane %v8397_v51, 2  ;;  %v901_v46 = vrot.slane %v8394_v49, 1 }
  0xa7   : > { %12595 = vst [vmem:[#allocation11_spill] sm:$0xff] %v8430_v22 }
  0xa8   : > { %v1314_v58 = vsel %vm1261_vm4, %v1312_v50, %v1313_v52  ;;  %v1316_v60 = vsel %vm1261_vm4, %v1313_v52, %v1315_v53  ;;  %706 = vst.msk [vmem:[#allocation2 + $0x79] sm:$0xff] %vm256_vm1, %v618_v28  ;;  %v903_v50 = vrot.slane %v8397_v51, 1  ;;  %v744_v28 = vld [vmem:[#allocation2 + $0x70] sm:$0x3] }
  0xa9   : > { %v8404_v61 = vpack.c.bf16 %v1316_v60, %v1314_v58  ;;  %v8455_v58 = vpack.c.bf16 %v8394_v49, %v8391_v48  ;;  %v902_v60 = vsel %vm849_vm3, %v900_v43, %v901_v46 }
  0xac   : > { %v737_v63 = vld [vmem:[#allocation2 + $0x38] sm:$0xff]  ;;  %v738_v3 = vld [vmem:[#allocation2 + $0x40] sm:$0x3]  ;;  %v612_v6 = vpop.permute.xlu1 %611  ;;  %v610_v7 = vpop.permute.xlu0 %609 }
  0xad   : > { %v8410_v8 = vpack.c.bf16 %v737_v63, %v736_v54  ;;  %v861_v9 = vrot.slane %v737_v63, 1  ;;  %v1273_v11 = vrot.slane %v737_v63, 2  ;;  %v863_v12 = vrot.slane %v738_v3, 1  ;;  %703 = vst.msk [vmem:[#allocation2 + $0x51] sm:$0xff] %vm256_vm1, %v612_v6  ;;  %v8413_v13 = vld [vmem:[#allocation2 + $0x108] sm:$0xff]  ;;  %v8415_v15 = vld [vmem:[#allocation2 + $0x110] sm:$0xff] }
  0xae   : > { %702 = vst.msk [vmem:[#allocation2 + $0x49] sm:$0xff] %vm256_vm1, %v610_v7  ;;  %v1317_v14 = vrot.slane %v8413_v13, 2  ;;  %v1318_v18 = vrot.slane %v8415_v15, 2  ;;  %v1275_v26 = vrot.slane %v738_v3, 2  ;;  %v904_v3 = vsel %vm849_vm3, %v901_v46, %v903_v50  ;;  %v8466_v6 = vld [vmem:[#allocation2 + $0x120] sm:$0xff] }
  0xaf   : > { %7362 = vmatmul.msk.bf16.gmra.mxu1 %vm256_vm1, %v8410_v8  ;;  %7369 = vmatmul.msk.bf16.gmra.mxu3 %vm256_vm1, %v8406_v2  ;;  %v862_v16 = vsel %vm849_vm3, %v860_v62, %v861_v9  ;;  %v864_v17 = vsel %vm849_vm3, %v861_v9, %v863_v12  ;;  %v1274_v25 = vsel %vm1261_vm4, %v1272_v0, %v1273_v11  ;;  %v908_v46 = vrot.slane %v8426_v19, 1 }
  0xb0   : > { %v8428_v21 = vpack.c.bf16 %v864_v17, %v862_v16  ;;  %v1319_v27 = vsel %vm1261_vm4, %v1317_v14, %v1318_v18  ;;  %v1321_v29 = vsel %vm1261_vm4, %v1318_v18, %v1320_v24  ;;  %v1276_v32 = vsel %vm1261_vm4, %v1273_v11, %v1275_v26  ;;  %v656_v16 = vpop.permute.xlu2 %655 }
  0xb1   : > { %v8442_v33 = vpack.c.bf16 %v1321_v29, %v1319_v27  ;;  %v8444_v39 = vpack.c.bf16 %v1276_v32, %v1274_v25  ;;  %v8472_v7 = vpack.c.bf16 %v904_v3, %v902_v60  ;;  %v1322_v11 = vrot.slane %v8466_v6, 2  ;;  %725 = vst.msk [vmem:[#allocation2 + $0x159] sm:$0xff] %vm256_vm1, %v656_v16 }
  0xb2   : > { %7346 = vmatmul.msk.bf16.gmra.mxu0 %vm256_vm1, %v8428_v21  ;;  %7353 = vmatmul.msk.bf16.gmra.mxu2 %vm256_vm1, %v8430_v22 }
  0xb3   : > { %12596 = vst [vmem:[#allocation12_spill] sm:$0xff] %v8442_v33 }
  0xb4   : > { %v741_v34 = vld [vmem:[#allocation2 + $0x58] sm:$0x3]  ;;  %v614_v35 = vpop.permute.xlu1 %613  ;;  %v648_v36 = vpop.permute.xlu0 %647  ;;  %12597 = vst [vmem:[#allocation13_spill] sm:$0xff] %v8472_v7 }
  0xb5   : > { %v739_v40 = vld [vmem:[#allocation2 + $0x48] sm:$0xff]  ;;  %v740_v42 = vld [vmem:[#allocation2 + $0x50] sm:$0xff]  ;;  %704 = vst.msk [vmem:[#allocation2 + $0x61] sm:$0xff] %vm256_vm1, %v614_v35  ;;  %v868_v47 = vrot.slane %v741_v34, 1  ;;  %v1280_v55 = vrot.slane %v741_v34, 2  ;;  %v905_v35 = vrot.slane %v8413_v13, 1 }
  0xb6   : > { %v1277_v44 = vrot.slane %v739_v40, 2  ;;  %721 = vst.msk [vmem:[#allocation2 + $0x129] sm:$0xff] %vm256_vm1, %v648_v36  ;;  %v865_v52 = vrot.slane %v739_v40, 1  ;;  %v866_v53 = vrot.slane %v740_v42, 1  ;;  %v1278_v54 = vrot.slane %v740_v42, 2 }
  0xb7   : > { %v8460_v63 = vpack.c.bf16 %v740_v42, %v739_v40  ;;  %v906_v36 = vrot.slane %v8415_v15, 1  ;;  %v1285_v40 = vrot.slane %v744_v28, 2 }
  0xb8   : > { %v1279_v56 = vsel %vm1261_vm4, %v1277_v44, %v1278_v54  ;;  %v1281_v57 = vsel %vm1261_vm4, %v1278_v54, %v1280_v55  ;;  %v867_v51 = vsel %vm849_vm3, %v865_v52, %v866_v53  ;;  %v869_v0 = vsel %vm849_vm3, %v866_v53, %v868_v47  ;;  %v658_v55 = vpop.permute.xlu2 %657 }
  0xb9   : > { %v8458_v62 = vpack.c.bf16 %v1281_v57, %v1279_v56  ;;  %v8470_v49 = vpack.c.bf16 %v869_v0, %v867_v51  ;;  %v873_v44 = vrot.slane %v744_v28, 1  ;;  %v8504_v53 = vpack.c.bf16 %v8415_v15, %v8413_v13  ;;  %726 = vst.msk [vmem:[#allocation2 + $0x169] sm:$0xff] %vm256_vm1, %v658_v55 }
  0xba   : > { %v907_v54 = vsel %vm849_vm3, %v905_v35, %v906_v36  ;;  %v909_v19 = vsel %vm849_vm3, %v906_v36, %v908_v46  ;;  %v910_v36 = vrot.slane %v8466_v6, 1 }
  0xbb   : > { %12599 = vst [vmem:[#allocation15_spill] sm:$0xff] %v8504_v53 }
  0xbc   : > { %v650_v4 = vpop.permute.xlu0 %649  ;;  %v652_v5 = vpop.permute.xlu1 %651  ;;  %v742_v18 = vld [vmem:[#allocation2 + $0x60] sm:$0xff]  ;;  %v743_v24 = vld [vmem:[#allocation2 + $0x68] sm:$0xff] }
  0xbd   : > { %722 = vst.msk [vmem:[#allocation2 + $0x139] sm:$0xff] %vm256_vm1, %v650_v4  ;;  %v8468_v48 = vld [vmem:[#allocation2 + $0x128] sm:$0xff]  ;;  %v8475_v9 = vld [vmem:[#allocation2 + $0x130] sm:$0x3]  ;;  %v1282_v26 = vrot.slane %v742_v18, 2  ;;  %v1283_v27 = vrot.slane %v743_v24, 2  ;;  %v8507_v56 = vpack.c.bf16 %v743_v24, %v742_v18  ;;  %v8520_v4 = vpack.c.bf16 %v909_v19, %v907_v54 }
  0xbe   : > { %723 = vst.msk [vmem:[#allocation2 + $0x141] sm:$0xff] %vm256_vm1, %v652_v5  ;;  %v1323_v12 = vrot.slane %v8468_v48, 2  ;;  %v1325_v14 = vrot.slane %v8475_v9, 2  ;;  %v870_v42 = vrot.slane %v742_v18, 1  ;;  %v871_v43 = vrot.slane %v743_v24, 1  ;;  %v745_v24 = vld [vmem:[#allocation2 + $0x78] sm:$0xff] }
  0xbf   : > { %7363 = vmatmul.msk.bf16.gmra.mxu1 %vm256_vm1, %v8460_v63  ;;  %7370 = vmatmul.msk.bf16.gmra.mxu3 %vm256_vm1, %v8455_v58  ;;  %v1284_v47 = vsel %vm1261_vm4, %v1282_v26, %v1283_v27  ;;  %v1286_v50 = vsel %vm1261_vm4, %v1283_v27, %v1285_v40  ;;  %12600 = vst [vmem:[#allocation16_spill] sm:$0xff] %v8507_v56  ;;  %v1287_v28 = vrot.slane %v745_v24, 2  ;;  %v911_v40 = vrot.slane %v8468_v48, 1 }
  0xc0   : > { %v1324_v17 = vsel %vm1261_vm4, %v1322_v11, %v1323_v12  ;;  %v1326_v25 = vsel %vm1261_vm4, %v1323_v12, %v1325_v14  ;;  %v8500_v52 = vpack.c.bf16 %v1286_v50, %v1284_v47  ;;  %v872_v57 = vsel %vm849_vm3, %v870_v42, %v871_v43  ;;  %12602 = vst [vmem:[#allocation18_spill] sm:$0xff] %v8520_v4 }
  0xc1   : > { %v8491_v34 = vpack.c.bf16 %v1326_v25, %v1324_v17  ;;  %v874_v60 = vsel %vm849_vm3, %v871_v43, %v873_v44  ;;  %v628_v17 = vpop.permute.xlu2 %627  ;;  %v875_v42 = vrot.slane %v745_v24, 1  ;;  %v913_v46 = vrot.slane %v8475_v9, 1 }
  0xc2   : > { %7347 = vmatmul.msk.bf16.gmra.mxu0 %vm256_vm1, %v8470_v49  ;;  %7354 = vmatmul.msk.bf16.gmra.mxu2 %vm256_vm1, %v8472_v7  ;;  %v8518_v15 = vpack.c.bf16 %v874_v60, %v872_v57  ;;  %711 = vst.msk [vmem:[#allocation2 + $0xb1] sm:$0xff] %vm256_vm1, %v628_v17  ;;  %v8551_v55 = vpack.c.bf16 %v8468_v48, %v8466_v6  ;;  %v8568_v48 = vld [vmem:[#allocation2 + $0x160] sm:$0x3] }
  0xc3   : > { %12598 = vst [vmem:[#allocation14_spill] sm:$0xff] %v8491_v34  ;;  %v912_v57 = vsel %vm849_vm3, %v910_v36, %v911_v40  ;;  %v914_v9 = vsel %vm849_vm3, %v911_v40, %v913_v46  ;;  %v1335_v17 = vrot.slane %v8568_v48, 2 }
  0xc4   : > { %v620_v29 = vpop.permute.xlu0 %619  ;;  %v654_v32 = vpop.permute.xlu1 %653  ;;  %v8514_v3 = vld [vmem:[#allocation2 + $0x138] sm:$0xff]  ;;  %12601 = vst [vmem:[#allocation17_spill] sm:$0xff] %v8518_v15 }
  0xc5   : > { %707 = vst.msk [vmem:[#allocation2 + $0x81] sm:$0xff] %vm256_vm1, %v620_v29  ;;  %v8516_v13 = vld [vmem:[#allocation2 + $0x140] sm:$0xff]  ;;  %v8523_v5 = vld [vmem:[#allocation2 + $0x148] sm:$0x3]  ;;  %v1327_v11 = vrot.slane %v8514_v3, 2 }
  0xc6   : > { %724 = vst.msk [vmem:[#allocation2 + $0x151] sm:$0xff] %vm256_vm1, %v654_v32  ;;  %v1328_v12 = vrot.slane %v8516_v13, 2  ;;  %v1330_v14 = vrot.slane %v8523_v5, 2 }
  0xc7   : > { %12605 = vst [vmem:[#allocation21_spill] sm:$0xff] %v8551_v55 }
  0xc8   : > { %v1329_v16 = vsel %vm1261_vm4, %v1327_v11, %v1328_v12  ;;  %v1331_v18 = vsel %vm1261_vm4, %v1328_v12, %v1330_v14  ;;  %v8565_v14 = vpack.c.bf16 %v914_v9, %v912_v57 }
  0xc9   : > { %v8539_v27 = vpack.c.bf16 %v1331_v18, %v1329_v16 }
  0xca   : > { %12608 = vst [vmem:[#allocation24_spill] sm:$0xff] %v8565_v14 }
  0xcb   : > { %12603 = vst [vmem:[#allocation19_spill] sm:$0xff] %v8539_v27 }
  0xcc   : > { %v624_v51 = vpop.permute.xlu1 %623  ;;  %v622_v0 = vpop.permute.xlu0 %621  ;;  %v746_v25 = vld [vmem:[#allocation2 + $0x80] sm:$0xff]  ;;  %v747_v26 = vld [vmem:[#allocation2 + $0x88] sm:$0x3] }
  0xcd   : > { %709 = vst.msk [vmem:[#allocation2 + $0x99] sm:$0xff] %vm256_vm1, %v624_v51  ;;  %v1288_v29 = vrot.slane %v746_v25, 2  ;;  %v1290_v32 = vrot.slane %v747_v26, 2  ;;  %v876_v43 = vrot.slane %v746_v25, 1  ;;  %v878_v44 = vrot.slane %v747_v26, 1  ;;  %v8561_v11 = vld [vmem:[#allocation2 + $0x158] sm:$0xff] }
  0xce   : > { %708 = vst.msk [vmem:[#allocation2 + $0x91] sm:$0xff] %vm256_vm1, %v622_v0  ;;  %v8554_v60 = vpack.c.bf16 %v746_v25, %v745_v24  ;;  %v8559_v0 = vld [vmem:[#allocation2 + $0x150] sm:$0xff]  ;;  %v1333_v16 = vrot.slane %v8561_v11, 2 }
  0xcf   : > { %7364 = vmatmul.msk.bf16.gmra.mxu1 %vm256_vm1, %v8507_v56  ;;  %7371 = vmatmul.msk.bf16.gmra.mxu3 %vm256_vm1, %v8504_v53  ;;  %v1289_v47 = vsel %vm1261_vm4, %v1287_v28, %v1288_v29  ;;  %v1291_v50 = vsel %vm1261_vm4, %v1288_v29, %v1290_v32  ;;  %v877_v19 = vsel %vm849_vm3, %v875_v42, %v876_v43  ;;  %v1332_v6 = vrot.slane %v8559_v0, 2 }
  0xd0   : > { %v8547_v54 = vpack.c.bf16 %v1291_v50, %v1289_v47  ;;  %12606 = vst [vmem:[#allocation22_spill] sm:$0xff] %v8554_v60  ;;  %v879_v51 = vsel %vm849_vm3, %v876_v43, %v878_v44  ;;  %v1336_v25 = vsel %vm1261_vm4, %v1333_v16, %v1335_v17  ;;  %v915_v42 = vrot.slane %v8514_v3, 1 }
  0xd1   : > { %v8563_v12 = vpack.c.bf16 %v879_v51, %v877_v19  ;;  %v1334_v18 = vsel %vm1261_vm4, %v1332_v6, %v1333_v16  ;;  %v916_v43 = vrot.slane %v8516_v13, 1  ;;  %v918_v44 = vrot.slane %v8523_v5, 1 }
  0xd2   : > { %7348 = vmatmul.msk.bf16.gmra.mxu0 %vm256_vm1, %v8518_v15  ;;  %7355 = vmatmul.msk.bf16.gmra.mxu2 %vm256_vm1, %v8520_v4  ;;  %12604 = vst [vmem:[#allocation20_spill] sm:$0xff] %v8547_v54  ;;  %v8583_v32 = vpack.c.bf16 %v1336_v25, %v1334_v18  ;;  %v8598_v17 = vpack.c.bf16 %v8516_v13, %v8514_v3 }
  0xd3   : > { %12607 = vst [vmem:[#allocation23_spill] sm:$0xff] %v8563_v12  ;;  %v917_v9 = vsel %vm849_vm3, %v915_v42, %v916_v43  ;;  %v919_v6 = vsel %vm849_vm3, %v916_v43, %v918_v44  ;;  %v1181_v42 = vpop.f32.mrf.mxu1  ;;  %v1041_v43 = vpop.f32.mrf.mxu0 }
  0xd4   : > { %v626_v35 = vpop.permute.xlu1 %625  ;;  %v660_v24 = vpop.permute.xlu0 %659  ;;  %v750_v29 = vld [vmem:[#allocation2 + $0xa0] sm:$0x3]  ;;  %12609 = vst [vmem:[#allocation25_spill] sm:$0xff] %v8583_v32 }
  0xd5   : > { %710 = vst.msk [vmem:[#allocation2 + $0xa9] sm:$0xff] %vm256_vm1, %v626_v35  ;;  %v748_v26 = vld [vmem:[#allocation2 + $0x90] sm:$0xff]  ;;  %v749_v28 = vld [vmem:[#allocation2 + $0x98] sm:$0xff]  ;;  %v1295_v40 = vrot.slane %v750_v29, 2  ;;  %v883_v50 = vrot.slane %v750_v29, 1  ;;  %v8606_v29 = vpack.c.bf16 %v919_v6, %v917_v9 }
  0xd6   : > { %727 = vst.msk [vmem:[#allocation2 + $0x171] sm:$0xff] %vm256_vm1, %v660_v24  ;;  %v1292_v35 = vrot.slane %v748_v26, 2  ;;  %v1293_v36 = vrot.slane %v749_v28, 2  ;;  %v880_v46 = vrot.slane %v748_v26, 1  ;;  %v881_v47 = vrot.slane %v749_v28, 1  ;;  %v8602_v24 = vld [vmem:[#allocation2 + $0x168] sm:$0xff] }
  0xd7   : > { %v8594_v16 = vpack.c.bf16 %v749_v28, %v748_v26  ;;  %12612 = vst [vmem:[#allocation28_spill] sm:$0xff] %v8598_v17  ;;  %v1337_v26 = vrot.slane %v8602_v24, 2 }
  0xd8   : > { %v1294_v57 = vsel %vm1261_vm4, %v1292_v35, %v1293_v36  ;;  %v1296_v19 = vsel %vm1261_vm4, %v1293_v36, %v1295_v40  ;;  %v882_v5 = vsel %vm849_vm3, %v880_v46, %v881_v47  ;;  %v884_v18 = vsel %vm849_vm3, %v881_v47, %v883_v50  ;;  %12613 = vst [vmem:[#allocation29_spill] sm:$0xff] %v8606_v29 }
  0xd9   : > { %v8590_v51 = vpack.c.bf16 %v1296_v19, %v1294_v57  ;;  %12611 = vst [vmem:[#allocation27_spill] sm:$0xff] %v8594_v16  ;;  %v8610_v36 = vpack.c.bf16 %v884_v18, %v882_v5  ;;  %v8627_v47 = vadd.f32 %v1181_v42, %v1041_v43  ;;  %v753_v57 = vld [vmem:[#allocation2 + $0xb8] sm:$0x3]  ;;  %v8636_v42 = vpack.c.bf16 %v8561_v11, %v8559_v0 }
  0xda   : > { %v1300_v18 = vrot.slane %v753_v57, 2 }
  0xdb   : > { %12610 = vst [vmem:[#allocation26_spill] sm:$0xff] %v8590_v51 }
  0xdc   : > { %12614 = vst [vmem:[#allocation30_spill] sm:$0xff] %v8610_v36  ;;  %v751_v46 = vld [vmem:[#allocation2 + $0xa8] sm:$0xff]  ;;  %v752_v50 = vld [vmem:[#allocation2 + $0xb0] sm:$0xff] }
  0xdd   : > { %v8604_v25 = vld [vmem:[#allocation2 + $0x170] sm:$0xff]  ;;  %v8608_v35 = vld [vmem:[#allocation2 + $0x178] sm:$0x3]  ;;  %v885_v19 = vrot.slane %v751_v46, 1  ;;  %v886_v9 = vrot.slane %v752_v50, 1  ;;  %v1297_v6 = vrot.slane %v751_v46, 2 }
  0xde   : > { %v1338_v28 = vrot.slane %v8604_v25, 2  ;;  %v1340_v3 = vrot.slane %v8608_v35, 2  ;;  %v1298_v5 = vrot.slane %v752_v50, 2  ;;  %12617 = vst [vmem:[#allocation33_spill] sm:$0xff] %v8636_v42 }
  0xdf   : > { %7365 = vmatmul.msk.bf16.gmra.mxu1 %vm256_vm1, %v8554_v60  ;;  %7372 = vmatmul.msk.bf16.gmra.mxu3 %vm256_vm1, %v8551_v55  ;;  %v887_v43 = vsel %vm849_vm3, %v885_v19, %v886_v9  ;;  %v8657_v19 = vpop.f32.mrf.mxu1 }
  0xe0   : > { %v1339_v13 = vsel %vm1261_vm4, %v1337_v26, %v1338_v28  ;;  %v1341_v40 = vsel %vm1261_vm4, %v1338_v28, %v1340_v3  ;;  %v920_v26 = vrot.slane %v8559_v0, 1  ;;  %v921_v28 = vrot.slane %v8561_v11, 1 }
  0xe1   : > { %v8621_v44 = vpack.c.bf16 %v1341_v40, %v1339_v13  ;;  %v888_v3 = vrot.slane %v753_v57, 1  ;;  %v923_v13 = vrot.slane %v8568_v48, 1  ;;  %v8632_v40 = vpack.c.bf16 %v752_v50, %v751_v46 }
  0xe2   : > { %7349 = vmatmul.msk.bf16.gmra.mxu0 %vm256_vm1, %v8563_v12  ;;  %7356 = vmatmul.msk.bf16.gmra.mxu2 %vm256_vm1, %v8565_v14  ;;  %v1299_v20 = vsel %vm1261_vm4, %v1297_v6, %v1298_v5  ;;  %v1262_v48 = vrot.slane %v8280_v30, 2  ;;  %v1263_v46 = vrot.slane %v8282_v31, 2  ;;  %v1265_v0 = vrot.slane %v8295_v38, 2  ;;  %v7444_v38 = vld [vmem:[%s12408_s1 + $0x18] sm:$0xf] }
  0xe3   : > { %12615 = vst [vmem:[#allocation31_spill] sm:$0xff] %v8621_v44  ;;  %v1301_v44 = vsel %vm1261_vm4, %v1298_v5, %v1300_v18  ;;  %v889_v32 = vsel %vm849_vm3, %v886_v9, %v888_v3  ;;  %v924_v57 = vsel %vm849_vm3, %v921_v28, %v923_v13  ;;  %v925_v6 = vrot.slane %v8602_v24, 1 }
  0xe4   : > { %12616 = vst [vmem:[#allocation32_spill] sm:$0xff] %v8632_v40  ;;  %v8649_v11 = vpack.c.bf16 %v889_v32, %v887_v43  ;;  %v1264_v30 = vsel %vm1261_vm4, %v1262_v48, %v1263_v46  ;;  %v1266_v31 = vsel %vm1261_vm4, %v1263_v46, %v1265_v0  ;;  %v7461_v32 = vld [vmem:[%s12408_s1 + $0x1c] sm:$0xf]  ;;  %v926_v5 = vrot.slane %v8604_v25, 1  ;;  %v7478_v48 = vld [vmem:[%s12408_s1 + $0x20] sm:$0xf] }
  0xe5   : > { %v2118_v9 = vsel %vm1028_vm0, %v7461_v32, 0  ;;  %v928_v18 = vrot.slane %v8608_v35, 1  ;;  %v8682_v13 = vpack.c.bf16 %v8604_v25, %v8602_v24  ;;  %v2255_v46 = vsel %vm1028_vm0, %v7478_v48, 0  ;;  %v7495_v35 = vld [vmem:[%s12410_s3 + $0x2] sm:$0x3] }
  0xe6   : > { %12619 = vst [vmem:[#allocation35_spill] sm:$0xff] %v8649_v11  ;;  %2127 = vmatpush.bf16.msra.mxu3 %v2118_v9  ;;  %v927_v43 = vsel %vm849_vm3, %v925_v6, %v926_v5  ;;  %2264 = vmatpush.bf16.msra.mxu0 %v2255_v46  ;;  %v3167_v24 = vsel %vm3165_vm5, %v7495_v35, 0 }
  0xe7   : > { %12621 = vst [vmem:[#allocation37_spill] sm:$0xff] %v8682_v13  ;;  %3176 = vmatpush.bf16.msra.mxu1 %v3167_v24 }
  0xef   : > { %7366 = vmatmul.msk.bf16.gmra.mxu1 %vm256_vm1, %v8594_v16  ;;  %7373 = vmatmul.msk.bf16.gmra.mxu3 %vm256_vm1, %v8598_v17  ;;  %v922_v17 = vsel %vm849_vm3, %v920_v26, %v921_v28 }
  0xf0   : > { %v8651_v50 = vpack.c.bf16 %v924_v57, %v922_v17  ;;  %v1978_v17 = vsel %vm1028_vm0, %v7444_v38, 0  ;;  %v929_v57 = vsel %vm849_vm3, %v926_v5, %v928_v18 }
  0xf1   : > { %1987 = vmatpush.bf16.msra.mxu2 %v1978_v17  ;;  %v8690_v0 = vpack.c.bf16 %v929_v57, %v927_v43 }
  0xf2   : > { %7350 = vmatmul.msk.bf16.gmra.mxu0 %vm256_vm1, %v8610_v36  ;;  %7357 = vmatmul.msk.bf16.gmra.mxu2 %vm256_vm1, %v8606_v29  ;;  %v8644_v29 = vpack.c.bf16 %v1301_v44, %v1299_v20  ;;  %12620 = vst [vmem:[#allocation36_spill] sm:$0xff] %v8651_v50  ;;  %v8659_v20 = vpop.f32.mrf.mxu0  ;;  %v1374_v44 = vpack.c.bf16 %v1266_v31, %v1264_v30 }
  0xf3   : > { %12622 = vst [vmem:[#allocation38_spill] sm:$0xff] %v8690_v0 }
  0xf4   : > { %12618 = vst [vmem:[#allocation34_spill] sm:$0xff] %v8644_v29 }
  0xff   : > { %7367 = vmatmul.msk.bf16.gmra.mxu1 %vm256_vm1, %v8632_v40  ;;  %7374 = vmatmul.msk.bf16.gmra.mxu3 %vm256_vm1, %v8636_v42 }
 0x102   : > { %7351 = vmatmul.msk.bf16.gmra.mxu0 %vm256_vm1, %v8649_v11  ;;  %7358 = vmatmul.msk.bf16.gmra.mxu2 %vm256_vm1, %v8651_v50 }
 0x105   : > { %v1186_v26 = vpop.f32.mrf.mxu1 }
 0x108   : > { %v1046_v28 = vpop.f32.mrf.mxu0 }
 0x109   : > { %v8678_v3 = vadd.f32 %v1186_v26, %v1046_v28 }
 0x10d   : > { %v8711_v30 = vpop.f32.mrf.mxu1 }
 0x10f   : > { %7375 = vmatmul.msk.bf16.gmra.mxu3 %vm256_vm1, %v8682_v13  ;;  %7428 = vmatmul.msk.bf16.vlgmr.msrb.gmra.mxu1 %vm256_vm1, %v8365_v10 }
 0x110   : > { %v8713_v38 = vpop.f32.mrf.mxu0 }
 0x112   : > { %7359 = vmatmul.msk.bf16.gmra.mxu2 %vm256_vm1, %v8690_v0  ;;  %7411 = vmatmul.msk.bf16.vlgmr.msrb.gmra.mxu0 %vm256_vm1, %v8356_v1 }
 0x11f   : > { %7394 = vmatmul.msk.bf16.vlgmr.msrb.gmra.mxu3 %vm256_vm1, %v8348_v59  ;;  %7429 = vmatmul.msk.bf16.gmra.mxu1 %vm256_vm1, %v8444_v39 }
 0x122   : > { %v1221_v25 = vpop.f32.mrf.mxu3  ;;  %7377 = vmatmul.msk.bf16.vlgmr.msrb.gmra.mxu2 %vm256_vm1, %v1374_v44  ;;  %7412 = vmatmul.msk.bf16.gmra.mxu0 %vm256_vm1, %v8428_v21 }
 0x125   : > { %v1081_v31 = vpop.f32.mrf.mxu2 }
 0x126   : > { %v8715_v32 = vadd.f32 %v1221_v25, %v1081_v31 }
 0x12a   : > { %v1223_v1 = vpop.f32.mrf.mxu3 }
 0x12c   : > { %v1191_v17 = vpop.f32.mrf.mxu1 }
 0x12d   : > { %v1083_v9 = vpop.f32.mrf.mxu2 }
 0x12e   : > { %v8717_v59 = vadd.f32 %v1223_v1, %v1083_v9 }
 0x12f   : > { %v1051_v6 = vpop.f32.mrf.mxu0  ;;  %7395 = vmatmul.msk.bf16.gmra.mxu3 %vm256_vm1, %v8410_v8  ;;  %7430 = vmatmul.msk.bf16.gmra.mxu1 %vm256_vm1, %v8458_v62 }
 0x130   : > { %v8723_v44 = vadd.f32 %v1191_v17, %v1051_v6 }
 0x132   : > { %v1226_v5 = vpop.f32.mrf.mxu3  ;;  %7378 = vmatmul.msk.bf16.gmra.mxu2 %vm256_vm1, %v8365_v10  ;;  %7413 = vmatmul.msk.bf16.gmra.mxu0 %vm256_vm1, %v8470_v49 }
 0x134   : > { %v1193_v18 = vpop.f32.mrf.mxu1 }
 0x135   : > { %v1086_v26 = vpop.f32.mrf.mxu2 }
 0x136   : > { %v8729_v28 = vadd.f32 %v1226_v5, %v1086_v26 }
 0x137   : > { %v1053_v43 = vpop.f32.mrf.mxu0 }
 0x138   : > { %v8731_v57 = vadd.f32 %v1193_v18, %v1053_v43 }
 0x13a   : > { %v1228_v48 = vpop.f32.mrf.mxu3 }
 0x13c   : > { %v1196_v46 = vpop.f32.mrf.mxu1 }
 0x13d   : > { %v1088_v35 = vpop.f32.mrf.mxu2 }
 0x13e   : > { %v8733_v24 = vadd.f32 %v1228_v48, %v1088_v35 }
 0x13f   : > { %v1056_v25 = vpop.f32.mrf.mxu0  ;;  %7396 = vmatmul.msk.bf16.gmra.mxu3 %vm256_vm1, %v8460_v63  ;;  %7431 = vmatmul.msk.bf16.gmra.mxu1 %vm256_vm1, %v8500_v52 }
 0x140   : > { %v8739_v10 = vadd.f32 %v1196_v46, %v1056_v25 }
 0x142   : > { %v1231_v31 = vpop.f32.mrf.mxu3  ;;  %7379 = vmatmul.msk.bf16.gmra.mxu2 %vm256_vm1, %v8444_v39  ;;  %7414 = vmatmul.msk.bf16.gmra.mxu0 %vm256_vm1, %v8518_v15 }
 0x144   : > { %v1198_v1 = vpop.f32.mrf.mxu1 }
 0x145   : > { %v1091_v17 = vpop.f32.mrf.mxu2 }
 0x146   : > { %v8745_v9 = vadd.f32 %v1231_v31, %v1091_v17 }
 0x147   : > { %v1058_v6 = vpop.f32.mrf.mxu0 }
 0x148   : > { %12623 = vst [vmem:[#allocation39_spill] sm:$0xff] %v8745_v9  ;;  %v8747_v5 = vadd.f32 %v1198_v1, %v1058_v6 }
 0x14a   : > { %v1233_v18 = vpop.f32.mrf.mxu3 }
 0x14c   : > { %v1201_v26 = vpop.f32.mrf.mxu1 }
 0x14d   : > { %v1093_v43 = vpop.f32.mrf.mxu2 }
 0x14e   : > { %v8749_v48 = vadd.f32 %v1233_v18, %v1093_v43 }
 0x14f   : > { %v1061_v46 = vpop.f32.mrf.mxu0  ;;  %7397 = vmatmul.msk.bf16.gmra.mxu3 %vm256_vm1, %v8507_v56  ;;  %7432 = vmatmul.msk.bf16.gmra.mxu1 %vm256_vm1, %v8547_v54 }
 0x150   : > { %12624 = vst [vmem:[#allocation40_spill] sm:$0xff] %v8749_v48  ;;  %v8755_v35 = vadd.f32 %v1201_v26, %v1061_v46  ;;  %v8768_v26 = vld [vmem:[%s8138_s9 + $0xf8] sm:$0xff]  ;;  %v567_v46 = vld [vmem:[%s8138_s9 + $0xf0] sm:$0xff] }
 0x151   : > { %663 = vrot.lane.b32.xlu1 %v8768_v26, %s8048_s10  ;;  %661 = vrot.lane.b32.xlu0 %v567_v46, %s8048_s10  ;;  %s8050_s10 = smov 112  }
 0x152   : > { %v1236_v25 = vpop.f32.mrf.mxu3  ;;  %7380 = vmatmul.msk.bf16.gmra.mxu2 %vm256_vm1, %v8458_v62  ;;  %7415 = vmatmul.msk.bf16.gmra.mxu0 %vm256_vm1, %v8563_v12 }
 0x154   : > { %v1203_v31 = vpop.f32.mrf.mxu1 }
 0x155   : > { %v1096_v1 = vpop.f32.mrf.mxu2 }
 0x156   : > { %v8761_v17 = vadd.f32 %v1236_v25, %v1096_v1 }
 0x157   : > { %v1063_v6 = vpop.f32.mrf.mxu0 }
 0x158   : > { %12625 = vst [vmem:[#allocation41_spill] sm:$0xff] %v8761_v17  ;;  %v8763_v18 = vadd.f32 %v1203_v31, %v1063_v6 }
 0x15a   : > { %v1238_v43 = vpop.f32.mrf.mxu3 }
 0x15c   : > { %v1206_v48 = vpop.f32.mrf.mxu1 }
 0x15d   : > { %v1098_v9 = vpop.f32.mrf.mxu2 }
 0x15e   : > { %v8765_v56 = vadd.f32 %v1238_v43, %v1098_v9 }
 0x15f   : > { %v1066_v15 = vpop.f32.mrf.mxu0  ;;  %7398 = vmatmul.msk.bf16.gmra.mxu3 %vm256_vm1, %v8554_v60  ;;  %7433 = vmatmul.msk.bf16.gmra.mxu1 %vm256_vm1, %v8590_v51 }
 0x160   : > { %12626 = vst [vmem:[#allocation42_spill] sm:$0xff] %v8765_v56  ;;  %v8775_v25 = vadd.f32 %v1206_v48, %v1066_v15 }
 0x162   : > { %v1241_v31 = vpop.f32.mrf.mxu3  ;;  %7381 = vmatmul.msk.bf16.gmra.mxu2 %vm256_vm1, %v8500_v52  ;;  %7416 = vmatmul.msk.bf16.gmra.mxu0 %vm256_vm1, %v8610_v36 }
 0x164   : > { %v1208_v9 = vpop.f32.mrf.mxu1 }
 0x165   : > { %v1101_v1 = vpop.f32.mrf.mxu2 }
 0x166   : > { %v8784_v6 = vadd.f32 %v1241_v31, %v1101_v1 }
 0x167   : > { %v1068_v43 = vpop.f32.mrf.mxu0 }
 0x168   : > { %12627 = vst [vmem:[#allocation43_spill] sm:$0xff] %v8784_v6  ;;  %v8786_v56 = vadd.f32 %v1208_v9, %v1068_v43 }
 0x16a   : > { %v1243_v15 = vpop.f32.mrf.mxu3 }
 0x16c   : > { %v1211_v48 = vpop.f32.mrf.mxu1 }
 0x16d   : > { %v1103_v17 = vpop.f32.mrf.mxu2 }
 0x16e   : > { %v8788_v60 = vadd.f32 %v1243_v15, %v1103_v17 }
 0x16f   : > { %v1071_v46 = vpop.f32.mrf.mxu0  ;;  %7399 = vmatmul.msk.bf16.gmra.mxu3 %vm256_vm1, %v8594_v16  ;;  %7434 = vmatmul.msk.bf16.gmra.mxu1 %vm256_vm1, %v8644_v29 }
 0x170   : > { %12628 = vst [vmem:[#allocation44_spill] sm:$0xff] %v8788_v60  ;;  %v8794_v36 = vadd.f32 %v1211_v48, %v1071_v46 }
 0x172   : > { %v1246_v12 = vpop.f32.mrf.mxu3  ;;  %7382 = vmatmul.msk.bf16.gmra.mxu2 %vm256_vm1, %v8547_v54  ;;  %7417 = vmatmul.msk.bf16.gmra.mxu0 %vm256_vm1, %v8649_v11 }
 0x174   : > { %v1213_v31 = vpop.f32.mrf.mxu1 }
 0x175   : > { %v1106_v9 = vpop.f32.mrf.mxu2 }
 0x176   : > { %v8800_v17 = vadd.f32 %v1246_v12, %v1106_v9 }
 0x177   : > { %v1073_v1 = vpop.f32.mrf.mxu0 }
 0x178   : > { %12629 = vst [vmem:[#allocation45_spill] sm:$0xff] %v8800_v17  ;;  %v8802_v43 = vadd.f32 %v1213_v31, %v1073_v1 }
 0x17a   : > { %v1248_v15 = vpop.f32.mrf.mxu3 }
 0x17c   : > { %v1216_v60 = vpop.f32.mrf.mxu1 }
 0x17d   : > { %v1108_v6 = vpop.f32.mrf.mxu2 }
 0x17e   : > { %v8804_v16 = vadd.f32 %v1248_v15, %v1108_v6 }
 0x17f   : > { %v1076_v48 = vpop.f32.mrf.mxu0  ;;  %7400 = vmatmul.msk.bf16.gmra.mxu3 %vm256_vm1, %v8632_v40  ;;  %7435 = vmatmul.msk.bf16.gmra.mxu1 %vm256_vm1, %v8382_v41 }
 0x180   : > { %12630 = vst [vmem:[#allocation46_spill] sm:$0xff] %v8804_v16  ;;  %v8810_v46 = vadd.f32 %v1216_v60, %v1076_v48 }
 0x182   : > { %v1251_v12 = vpop.f32.mrf.mxu3  ;;  %7383 = vmatmul.msk.bf16.gmra.mxu2 %vm256_vm1, %v8590_v51  ;;  %7418 = vmatmul.msk.bf16.gmra.mxu0 %vm256_vm1, %v8378_v37  ;;  %v8827_v37 = vld [vmem:[%s8138_s9 + $0x8] sm:$0xff] }
 0x183   : > { %12633 = vst [vmem:[#allocation49_spill] sm:$0xff] %v8827_v37  ;;  %2735 = vrot.lane.b32.xlu0 %v8827_v37, %s8050_s10 }
 0x184   : > { %v1218_v31 = vpop.f32.mrf.mxu1 }
 0x185   : > { %v1111_v6 = vpop.f32.mrf.mxu2 }
 0x186   : > { %v8816_v9 = vadd.f32 %v1251_v12, %v1111_v6 }
 0x187   : > { %v1078_v1 = vpop.f32.mrf.mxu0 }
 0x188   : > { %12631 = vst [vmem:[#allocation47_spill] sm:$0xff] %v8816_v9  ;;  %v8818_v15 = vadd.f32 %v1218_v31, %v1078_v1 }
 0x18a   : > { %v1253_v16 = vpop.f32.mrf.mxu3 }
 0x18c   : > { %v1859_v17 = vpop.f32.mrf.mxu1 }
 0x18d   : > { %v1113_v40 = vpop.f32.mrf.mxu2 }
 0x18e   : > { %v8820_v60 = vadd.f32 %v1253_v16, %v1113_v40 }
 0x18f   : > { %7401 = vmatmul.msk.bf16.gmra.mxu3 %vm256_vm1, %v8371_v23  ;;  %v1722_v48 = vpop.f32.mrf.mxu0  ;;  %7436 = vmatmul.msk.bf16.gmra.mxu1 %vm256_vm1, %v8388_v45 }
 0x190   : > { %12632 = vst [vmem:[#allocation48_spill] sm:$0xff] %v8820_v60 }
 0x192   : > { %v1256_v12 = vpop.f32.mrf.mxu3  ;;  %7384 = vmatmul.msk.bf16.gmra.mxu2 %vm256_vm1, %v8644_v29  ;;  %7419 = vmatmul.msk.bf16.gmra.mxu0 %vm256_vm1, %v8430_v22  ;;  %v8844_v29 = vld [vmem:[%s8138_s9 + $0x10] sm:$0xff] }
 0x193   : > { %12636 = vst [vmem:[#allocation52_spill] sm:$0xff] %v8844_v29  ;;  %2737 = vrot.lane.b32.xlu1 %v8844_v29, %s8050_s10 }
 0x194   : > { %v1861_v16 = vpop.f32.mrf.mxu1 }
 0x195   : > { %v1116_v40 = vpop.f32.mrf.mxu2 }
 0x196   : > { %v8835_v31 = vadd.f32 %v1256_v12, %v1116_v40 }
 0x197   : > { %v1724_v6 = vpop.f32.mrf.mxu0 }
 0x198   : > { %12634 = vst [vmem:[#allocation50_spill] sm:$0xff] %v8835_v31  ;;  %v8854_v31 = vld [vmem:[%s8138_s9] sm:$0xff] }
 0x199   : > { %2733 = vrot.lane.b32.xlu2 %v8854_v31, %s8050_s10 }
 0x19a   : > { %v1258_v1 = vpop.f32.mrf.mxu3 }
 0x19c   : > { %v1864_v60 = vpop.f32.mrf.mxu1 }
 0x19d   : > { %v1118_v9 = vpop.f32.mrf.mxu2 }
 0x19e   : > { %v8837_v23 = vadd.f32 %v1258_v1, %v1118_v9 }
 0x19f   : > { %7402 = vmatmul.msk.bf16.gmra.mxu3 %vm256_vm1, %v8406_v2  ;;  %v1727_v11 = vpop.f32.mrf.mxu0  ;;  %7437 = vmatmul.msk.bf16.gmra.mxu1 %vm256_vm1, %v8404_v61 }
 0x1a0   : > { %12635 = vst [vmem:[#allocation51_spill] sm:$0xff] %v8837_v23 }
 0x1a2   : > { %7385 = vmatmul.msk.bf16.gmra.mxu2 %vm256_vm1, %v8382_v41  ;;  %v1582_v12 = vpop.f32.mrf.mxu3  ;;  %7420 = vmatmul.msk.bf16.gmra.mxu0 %vm256_vm1, %v8472_v7  ;;  %v1184_v41 = vadd.f32 %v8657_v19, %v8659_v20 }
 0x1a4   : > { %v1866_v9 = vpop.f32.mrf.mxu1 }
 0x1a5   : > { %v1452_v40 = vpop.f32.mrf.mxu2 }
 0x1a6   : > { %v1532_v1 = vadd.f32 %v1452_v40, %v8627_v47  ;;  %v8870_v40 = vld [vmem:[%s8138_s9 + $0x20] sm:$0xff] }
 0x1a7   : > { %v1729_v23 = vpop.f32.mrf.mxu0  ;;  %2741 = vrot.lane.b32.xlu0 %v8870_v40, %s8050_s10 }
 0x1a8   : > { %v1662_v2 = vadd.f32 %v1582_v12, %v1532_v1  ;;  %v8867_v12 = vld [vmem:[%s8138_s9 + $0x28] sm:$0xff] }
 0x1a9   : > { %2743 = vrot.lane.b32.xlu1 %v8867_v12, %s8050_s10 }
 0x1aa   : > { %v1584_v22 = vpop.f32.mrf.mxu3  ;;  %v1802_v51 = vadd.f32 %v1722_v48, %v1662_v2 }
 0x1ac   : > { %v1869_v37 = vpop.f32.mrf.mxu1  ;;  %v8860_v7 = vadd.f32 %v1859_v17, %v1802_v51  ;;  %v8884_v17 = vld [vmem:[%s8138_s9 + $0x18] sm:$0xff] }
 0x1ad   : > { %v1454_v54 = vpop.f32.mrf.mxu2  ;;  %2739 = vrot.lane.b32.xlu2 %v8884_v17, %s8050_s10 }
 0x1ae   : > { %12637 = vst [vmem:[#allocation53_spill] sm:$0xff] %v8860_v7  ;;  %v1533_v29 = vadd.f32 %v1454_v54, %v1184_v41 }
 0x1af   : > { %7403 = vmatmul.msk.bf16.gmra.mxu3 %vm256_vm1, %v8455_v58  ;;  %v1732_v47 = vpop.f32.mrf.mxu0  ;;  %7438 = vmatmul.msk.bf16.gmra.mxu1 %vm256_vm1, %v8442_v33 }
 0x1b0   : > { %v1663_v2 = vadd.f32 %v1584_v22, %v1533_v29 }
 0x1b2   : > { %7386 = vmatmul.msk.bf16.gmra.mxu2 %vm256_vm1, %v8388_v45  ;;  %v1587_v41 = vpop.f32.mrf.mxu3  ;;  %7421 = vmatmul.msk.bf16.gmra.mxu0 %vm256_vm1, %v8520_v4  ;;  %v1803_v54 = vadd.f32 %v1724_v6, %v1663_v2  ;;  %v1189_v4 = vadd.f32 %v8711_v30, %v8713_v38 }
 0x1b4   : > { %v1871_v51 = vpop.f32.mrf.mxu1  ;;  %v8880_v19 = vadd.f32 %v1861_v16, %v1803_v54 }
 0x1b5   : > { %v1457_v20 = vpop.f32.mrf.mxu2 }
 0x1b6   : > { %12638 = vst [vmem:[#allocation54_spill] sm:$0xff] %v8880_v19  ;;  %v1534_v22 = vadd.f32 %v1457_v20, %v8678_v3 }
 0x1b7   : > { %v1734_v29 = vpop.f32.mrf.mxu0 }
 0x1b8   : > { %v1664_v48 = vadd.f32 %v1587_v41, %v1534_v22  ;;  %v8897_v41 = vld [vmem:[%s8138_s9 + $0x38] sm:$0xff] }
 0x1b9   : > { %2747 = vrot.lane.b32.xlu0 %v8897_v41, %s8050_s10 }
 0x1ba   : > { %v1589_v1 = vpop.f32.mrf.mxu3  ;;  %v1804_v7 = vadd.f32 %v1727_v11, %v1664_v48 }
 0x1bc   : > { %v1874_v6 = vpop.f32.mrf.mxu1  ;;  %v8890_v2 = vadd.f32 %v1864_v60, %v1804_v7 }
 0x1bd   : > { %v1459_v16 = vpop.f32.mrf.mxu2 }
 0x1be   : > { %12639 = vst [vmem:[#allocation55_spill] sm:$0xff] %v8890_v2  ;;  %v1535_v54 = vadd.f32 %v1459_v16, %v1189_v4 }
 0x1bf   : > { %7404 = vmatmul.msk.bf16.gmra.mxu3 %vm256_vm1, %v8504_v53  ;;  %v1737_v3 = vpop.f32.mrf.mxu0  ;;  %7439 = vmatmul.msk.bf16.gmra.mxu1 %vm256_vm1, %v8491_v34 }
 0x1c0   : > { %v1665_v20 = vadd.f32 %v1589_v1, %v1535_v54 }
 0x1c2   : > { %7387 = vmatmul.msk.bf16.gmra.mxu2 %vm256_vm1, %v8404_v61  ;;  %v1592_v7 = vpop.f32.mrf.mxu3  ;;  %7422 = vmatmul.msk.bf16.gmra.mxu0 %vm256_vm1, %v8565_v14  ;;  %v1805_v4 = vadd.f32 %v1729_v23, %v1665_v20 }
 0x1c3   : > { %v662_v20 = vpop.permute.xlu0 %661 }
 0x1c4   : > { %v1876_v11 = vpop.f32.mrf.mxu1  ;;  %v8905_v30 = vadd.f32 %v1866_v9, %v1805_v4  ;;  %v8918_v9 = vld [vmem:[%s8138_s9 + $0x40] sm:$0xff]  ;;  %728 = vst.msk [vmem:[#allocation2 + $0x181] sm:$0xff] %vm256_vm1, %v662_v20  ;;  %v12645_v20 = vld [vmem:[#allocation28_spill] sm:$0xff] }
 0x1c5   : > { %v1462_v38 = vpop.f32.mrf.mxu2  ;;  %2749 = vrot.lane.b32.xlu1 %v8918_v9, %s8050_s10 }
 0x1c6   : > { %12640 = vst [vmem:[#allocation56_spill] sm:$0xff] %v8905_v30  ;;  %v1536_v60 = vadd.f32 %v1462_v38, %v8723_v44 }
 0x1c7   : > { %v1739_v22 = vpop.f32.mrf.mxu0 }
 0x1c8   : > { %v1666_v48 = vadd.f32 %v1592_v7, %v1536_v60 }
 0x1ca   : > { %v1594_v1 = vpop.f32.mrf.mxu3  ;;  %v1806_v16 = vadd.f32 %v1732_v47, %v1666_v48  ;;  %v12642_v47 = vld [vmem:[#allocation29_spill] sm:$0xff]  ;;  %v8936_v48 = vld [vmem:[%s8138_s9 + $0x30] sm:$0xff] }
 0x1cb   : > { %2745 = vrot.lane.b32.xlu2 %v8936_v48, %s8050_s10 }
 0x1cc   : > { %v8908_v54 = vpop.f32.mrf.mxu1  ;;  %v8910_v2 = vadd.f32 %v1869_v37, %v1806_v16 }
 0x1cd   : > { %v1464_v53 = vpop.f32.mrf.mxu2 }
 0x1ce   : > { %12641 = vst [vmem:[#allocation57_spill] sm:$0xff] %v8910_v2  ;;  %v1537_v19 = vadd.f32 %v1464_v53, %v8731_v57  ;;  %v664_v53 = vpop.permute.xlu1 %663 }
 0x1cf   : > { %7405 = vmatmul.msk.bf16.gmra.mxu3 %vm256_vm1, %v8551_v55  ;;  %v1742_v23 = vpop.f32.mrf.mxu0  ;;  %7440 = vmatmul.msk.bf16.gmra.mxu1 %vm256_vm1, %v8539_v27  ;;  %729 = vst.msk [vmem:[#allocation2 + $0x189] sm:$0xff] %vm256_vm1, %v664_v53 }
 0x1d0   : > { %v1667_v44 = vadd.f32 %v1594_v1, %v1537_v19 }
 0x1d2   : > { %7388 = vmatmul.msk.bf16.gmra.mxu2 %vm256_vm1, %v8442_v33  ;;  %v1597_v37 = vpop.f32.mrf.mxu3  ;;  %7423 = vmatmul.msk.bf16.gmra.mxu0 %vm256_vm1, %v12642_v47  ;;  %v1807_v57 = vadd.f32 %v1734_v29, %v1667_v44 }
 0x1d4   : > { %v8927_v7 = vpop.f32.mrf.mxu1  ;;  %v8930_v19 = vadd.f32 %v1871_v51, %v1807_v57 }
 0x1d5   : > { %v1467_v4 = vpop.f32.mrf.mxu2 }
 0x1d6   : > { %12643 = vst [vmem:[#allocation58_spill] sm:$0xff] %v8930_v19  ;;  %v1538_v38 = vadd.f32 %v1467_v4, %v8739_v10  ;;  %v12646_v4 = vld [vmem:[#allocation25_spill] sm:$0xff] }
 0x1d7   : > { %v8933_v60 = vpop.f32.mrf.mxu0 }
 0x1d8   : > { %v1668_v1 = vadd.f32 %v1597_v37, %v1538_v38  ;;  %v8952_v37 = vld [vmem:[%s8138_s9 + $0x58] sm:$0xff]  ;;  %v8955_v38 = vld [vmem:[%s8138_s9 + $0x50] sm:$0xff] }
 0x1d9   : > { %2755 = vrot.lane.b32.xlu1 %v8952_v37, %s8050_s10  ;;  %2753 = vrot.lane.b32.xlu0 %v8955_v38, %s8050_s10 }
 0x1da   : > { %v1599_v29 = vpop.f32.mrf.mxu3  ;;  %v1808_v16 = vadd.f32 %v1737_v3, %v1668_v1  ;;  %v12647_v1 = vmov 0.0  }
 0x1db   : > { %2608 = vst.msk [vmem:[#allocation3] sm:$0xff] %vm2607_vm6, %v12647_v1 }
 0x1dc   : > { %v8940_v44 = vpop.f32.mrf.mxu1  ;;  %v8942_v53 = vadd.f32 %v1874_v6, %v1808_v16  ;;  %2609 = vst.msk [vmem:[#allocation3 + $0x8] sm:$0xff] %vm2607_vm6, %v12647_v1 }
 0x1dd   : > { %v1469_v51 = vpop.f32.mrf.mxu2  ;;  %2611 = vst.msk [vmem:[#allocation3 + $0x10] sm:$0xf] %vm2610_vm7, %v12647_v1 }
 0x1de   : > { %12644 = vst [vmem:[#allocation59_spill] sm:$0xff] %v8942_v53  ;;  %v1539_v57 = vadd.f32 %v1469_v51, %v8747_v5 }
 0x1df   : > { %7406 = vmatmul.msk.bf16.gmra.mxu3 %vm256_vm1, %v12645_v20  ;;  %v8947_v10 = vpop.f32.mrf.mxu0  ;;  %7441 = vmatmul.msk.bf16.gmra.mxu1 %vm256_vm1, %v12646_v4  ;;  %2612 = vst.msk [vmem:[#allocation3 + $0x18] sm:$0xff] %vm2607_vm6, %v12647_v1 }
 0x1e0   : > { %v1669_v3 = vadd.f32 %v1599_v29, %v1539_v57  ;;  %2613 = vst.msk [vmem:[#allocation3 + $0x20] sm:$0xff] %vm2607_vm6, %v12647_v1 }
 0x1e1   : > { %2614 = vst.msk [vmem:[#allocation3 + $0x28] sm:$0xf] %vm2610_vm7, %v12647_v1 }
 0x1e2   : > { %7389 = vmatmul.msk.bf16.gmra.mxu2 %vm256_vm1, %v8491_v34  ;;  %v1602_v5 = vpop.f32.mrf.mxu3  ;;  %7424 = vmatmul.msk.bf16.gmra.mxu0 %vm256_vm1, %v8651_v50  ;;  %v1809_v6 = vadd.f32 %v1739_v22, %v1669_v3  ;;  %v8981_v3 = vld [vmem:[%s8138_s9 + $0x48] sm:$0xff]  ;;  %2615 = vst.msk [vmem:[#allocation3 + $0x30] sm:$0xff] %vm2607_vm6, %v12647_v1 }
 0x1e3   : > { %2751 = vrot.lane.b32.xlu2 %v8981_v3, %s8050_s10  ;;  %2616 = vst.msk [vmem:[#allocation3 + $0x38] sm:$0xff] %vm2607_vm6, %v12647_v1 }
 0x1e4   : > { %v8967_v29 = vpop.f32.mrf.mxu1  ;;  %v8971_v16 = vadd.f32 %v1876_v11, %v1809_v6  ;;  %2617 = vst.msk [vmem:[#allocation3 + $0x40] sm:$0xf] %vm2610_vm7, %v12647_v1 }
 0x1e5   : > { %v1472_v51 = vpop.f32.mrf.mxu2  ;;  %2618 = vst.msk [vmem:[#allocation3 + $0x48] sm:$0xff] %vm2607_vm6, %v12647_v1 }
 0x1e6   : > { %12648 = vst [vmem:[#allocation60_spill] sm:$0xff] %v8971_v16  ;;  %v1540_v57 = vadd.f32 %v1472_v51, %v8755_v35  ;;  %v9014_v16 = vld [vmem:[%s8138_s9 + $0x68] sm:$0xff] }
 0x1e7   : > { %v8978_v22 = vpop.f32.mrf.mxu0  ;;  %2619 = vst.msk [vmem:[#allocation3 + $0x50] sm:$0xff] %vm2607_vm6, %v12647_v1  ;;  %2759 = vrot.lane.b32.xlu0 %v9014_v16, %s8050_s10 }
 0x1e8   : > { %v1670_v50 = vadd.f32 %v1602_v5, %v1540_v57  ;;  %2620 = vst.msk [vmem:[#allocation3 + $0x58] sm:$0xf] %vm2610_vm7, %v12647_v1 }
 0x1e9   : > { %2621 = vst.msk [vmem:[#allocation3 + $0x60] sm:$0xff] %vm2607_vm6, %v12647_v1 }
 0x1ea   : > { %v1604_v35 = vpop.f32.mrf.mxu3  ;;  %v1810_v11 = vadd.f32 %v1742_v23, %v1670_v50  ;;  %v12650_v23 = vld [vmem:[#allocation31_spill] sm:$0xff]  ;;  %2622 = vst.msk [vmem:[#allocation3 + $0x68] sm:$0xff] %vm2607_vm6, %v12647_v1 }
 0x1eb   : > { %2623 = vst.msk [vmem:[#allocation3 + $0x70] sm:$0xf] %vm2610_vm7, %v12647_v1 }
 0x1ec   : > { %v8995_v6 = vpop.f32.mrf.mxu1  ;;  %v9000_v5 = vadd.f32 %v8908_v54, %v1810_v11  ;;  %v9024_v11 = vld [vmem:[#allocation2 + $0x188] sm:$0xff]  ;;  %2624 = vst.msk [vmem:[#allocation3 + $0x78] sm:$0xff] %vm2607_vm6, %v12647_v1 }
 0x1ed   : > { %v1474_v51 = vpop.f32.mrf.mxu2  ;;  %2625 = vst.msk [vmem:[#allocation3 + $0x80] sm:$0xff] %vm2607_vm6, %v12647_v1  ;;  %v1835_v53 = vrot.slane %v9024_v11, 2  ;;  %v1698_v2 = vrot.slane %v9024_v11, 1 }
 0x1ee   : > { %12649 = vst [vmem:[#allocation61_spill] sm:$0xff] %v9000_v5  ;;  %v1541_v57 = vadd.f32 %v1474_v51, %v8763_v18  ;;  %v9022_v18 = vld [vmem:[#allocation2 + $0x180] sm:$0xff]  ;;  %v780_v51 = vld [vmem:[#allocation2 + $0x190] sm:$0x3] }
 0x1ef   : > { %7407 = vmatmul.msk.bf16.gmra.mxu3 %vm256_vm1, %v8636_v42  ;;  %v9009_v50 = vpop.f32.mrf.mxu0  ;;  %7442 = vmatmul.msk.bf16.gmra.mxu1 %vm256_vm1, %v12650_v23  ;;  %v1834_v42 = vrot.slane %v9022_v18, 2  ;;  %v1837_v20 = vrot.slane %v780_v51, 2  ;;  %2626 = vst.msk [vmem:[#allocation3 + $0x88] sm:$0xf] %vm2610_vm7, %v12647_v1  ;;  %v1697_v19 = vrot.slane %v9022_v18, 1 }
 0x1f0   : > { %v1671_v54 = vadd.f32 %v1604_v35, %v1541_v57  ;;  %2627 = vst.msk [vmem:[#allocation3 + $0x90] sm:$0xff] %vm2607_vm6, %v12647_v1 }
 0x1f1   : > { %2628 = vst.msk [vmem:[#allocation3 + $0x98] sm:$0xff] %vm2607_vm6, %v12647_v1 }
 0x1f2   : > { %7390 = vmatmul.msk.bf16.gmra.mxu2 %vm256_vm1, %v8539_v27  ;;  %v1607_v5 = vpop.f32.mrf.mxu3  ;;  %7425 = vmatmul.msk.bf16.gmra.mxu0 %vm256_vm1, %v8690_v0  ;;  %v1811_v35 = vadd.f32 %v8933_v60, %v1671_v54  ;;  %v1700_v27 = vrot.slane %v780_v51, 1  ;;  %2629 = vst.msk [vmem:[#allocation3 + $0xa0] sm:$0xf] %vm2610_vm7, %v12647_v1 }
 0x1f3   : > { %2630 = vst.msk [vmem:[#allocation3 + $0xa8] sm:$0xff] %vm2607_vm6, %v12647_v1 }
 0x1f4   : > { %v9037_v57 = vpop.f32.mrf.mxu1  ;;  %v9044_v0 = vadd.f32 %v8927_v7, %v1811_v35  ;;  %v1836_v35 = vsel %vm1261_vm4, %v1834_v42, %v1835_v53  ;;  %2631 = vst.msk [vmem:[#allocation3 + $0xb0] sm:$0xff] %vm2607_vm6, %v12647_v1  ;;  %v1701_v42 = vsel %vm849_vm3, %v1698_v2, %v1700_v27 }
 0x1f5   : > { %v1477_v47 = vpop.f32.mrf.mxu2  ;;  %2632 = vst.msk [vmem:[#allocation3 + $0xb8] sm:$0xf] %vm2610_vm7, %v12647_v1 }
 0x1f6   : > { %12651 = vst [vmem:[#allocation62_spill] sm:$0xff] %v9044_v0  ;;  %v1542_v60 = vadd.f32 %v1477_v47, %v8775_v25  ;;  %v1838_v0 = vsel %vm1261_vm4, %v1835_v53, %v1837_v20 }
 0x1f7   : > { %v9051_v54 = vpop.f32.mrf.mxu0  ;;  %v9066_v51 = vpack.c.bf16 %v1838_v0, %v1836_v35  ;;  %2633 = vst.msk [vmem:[#allocation3 + $0xc0] sm:$0xff] %vm2607_vm6, %v12647_v1 }
 0x1f8   : > { %v1672_v7 = vadd.f32 %v1607_v5, %v1542_v60  ;;  %v1699_v5 = vsel %vm849_vm3, %v1697_v19, %v1698_v2  ;;  %2634 = vst.msk [vmem:[#allocation3 + $0xc8] sm:$0xff] %vm2607_vm6, %v12647_v1  ;;  %v9095_v2 = vld [vmem:[%s8138_s9 + $0x70] sm:$0xff] }
 0x1f9   : > { %12652 = vst [vmem:[#allocation63_spill] sm:$0xff] %v9066_v51  ;;  %v9082_v19 = vpack.c.bf16 %v1701_v42, %v1699_v5  ;;  %2761 = vrot.lane.b32.xlu1 %v9095_v2, %s8050_s10 }
 0x1fa   : > { %v1609_v25 = vpop.f32.mrf.mxu3  ;;  %v1812_v47 = vadd.f32 %v8947_v10, %v1672_v7  ;;  %2635 = vst.msk [vmem:[#allocation3 + $0xd0] sm:$0xf] %vm2610_vm7, %v12647_v1  ;;  %v2863_v10 = vld [vmem:[#allocation3 + $0x8] sm:$0xff]  ;;  %v2864_v7 = vld [vmem:[#allocation3 + $0x10] sm:$0xf] }
 0x1fb   : > { %12654 = vst [vmem:[#allocation65_spill] sm:$0xff] %v9082_v19 }
 0x1fc   : > { %v9072_v53 = vpop.f32.mrf.mxu1  ;;  %v9077_v20 = vadd.f32 %v8940_v44, %v1812_v47  ;;  %2636 = vst.msk [vmem:[#allocation3 + $0xd8] sm:$0xff] %vm2607_vm6, %v12647_v1 }
 0x1fd   : > { %v1479_v60 = vpop.f32.mrf.mxu2  ;;  %2637 = vst.msk [vmem:[#allocation3 + $0xe0] sm:$0xff] %vm2607_vm6, %v12647_v1 }
 0x1fe   : > { %12653 = vst [vmem:[#allocation64_spill] sm:$0xff] %v9077_v20  ;;  %v1543_v0 = vadd.f32 %v1479_v60, %v8786_v56  ;;  %v2862_v56 = vld [vmem:[#allocation3] sm:$0xff]  ;;  %v7528_v20 = vld [vmem:[%s12410_s3 + $0x4] sm:$0x3] }
 0x1ff   : > { %7408 = vmatmul.msk.bf16.gmra.mxu3 %vm256_vm1, %v8682_v13  ;;  %v9088_v27 = vpop.f32.mrf.mxu0  ;;  %7443 = vmatmul.msk.bf16.gmra.mxu1 %vm256_vm1, %v9066_v51  ;;  %2638 = vst.msk [vmem:[#allocation3 + $0xe8] sm:$0xf] %vm2610_vm7, %v12647_v1  ;;  %v2987_v60 = vrot.slane %v2862_v56, 1 }
 0x200   : > { %v1673_v44 = vadd.f32 %v1609_v25, %v1543_v0  ;;  %2639 = vst.msk [vmem:[#allocation3 + $0xf0] sm:$0xff] %vm2607_vm6, %v12647_v1  ;;  %v2938_v25 = vld [vmem:[%s12410_s3] sm:$0x3]  ;;  %v2988_v0 = vrot.slane %v2863_v10, 1 }
 0x201   : > { %2640 = vst.msk [vmem:[#allocation3 + $0xf8] sm:$0xff] %vm2607_vm6, %v12647_v1  ;;  %v3307_v5 = vsel %vm3165_vm5, %v2938_v25, 0  ;;  %v3577_v25 = vsel %vm3165_vm5, %v7528_v20, 0 }
 0x202   : > { %7391 = vmatmul.msk.bf16.gmra.mxu2 %vm256_vm1, %v12646_v4  ;;  %v1612_v35 = vpop.f32.mrf.mxu3  ;;  %7426 = vmatmul.msk.bf16.gmra.mxu0 %vm256_vm1, %v9082_v19  ;;  %v1813_v47 = vadd.f32 %v8978_v22, %v1673_v44  ;;  %2641 = vst.msk [vmem:[#allocation3 + $0x100] sm:$0xf] %vm2610_vm7, %v12647_v1  ;;  %v2990_v19 = vrot.slane %v2864_v7, 1  ;;  %v9137_v7 = vld [vmem:[%s8138_s9 + $0x60] sm:$0xff] }
 0x203   : > { %2642 = vst.msk [vmem:[#allocation3 + $0x108] sm:$0xff] %vm2607_vm6, %v12647_v1  ;;  %3316 = vmatpush.bf16.msrb.mxu2 %v3307_v5  ;;  %3586 = vmatpush.bf16.msrb.mxu3 %v3577_v25 }
 0x204   : > { %v9116_v42 = vpop.f32.mrf.mxu1  ;;  %v9124_v22 = vadd.f32 %v8967_v29, %v1813_v47  ;;  %2643 = vst.msk [vmem:[#allocation3 + $0x110] sm:$0xff] %vm2607_vm6, %v12647_v1  ;;  %v2989_v47 = vsel %vm849_vm3, %v2987_v60, %v2988_v0  ;;  %v2991_v5 = vsel %vm849_vm3, %v2988_v0, %v2990_v19  ;;  %2757 = vrot.lane.b32.xlu2 %v9137_v7, %s8050_s10  ;;  %v7545_v0 = vld [vmem:[%s12410_s3 + $0x6] sm:$0x3] }
 0x205   : > { %v1482_v44 = vpop.f32.mrf.mxu2  ;;  %2644 = vst.msk [vmem:[#allocation3 + $0x118] sm:$0xf] %vm2610_vm7, %v12647_v1  ;;  %v3099_v19 = vpack.c.bf16 %v2991_v5, %v2989_v47  ;;  %v2865_v47 = vld [vmem:[#allocation3 + $0x18] sm:$0xff]  ;;  %v2866_v5 = vld [vmem:[#allocation3 + $0x20] sm:$0xff] }
 0x206   : > { %12655 = vst [vmem:[#allocation66_spill] sm:$0xff] %v9124_v22  ;;  %v1544_v56 = vadd.f32 %v1482_v44, %v8794_v36 }
 0x207   : > { %v9132_v10 = vpop.f32.mrf.mxu0  ;;  %2645 = vst.msk [vmem:[#allocation3 + $0x120] sm:$0xff] %vm2607_vm6, %v12647_v1 }
 0x208   : > { %v1674_v29 = vadd.f32 %v1612_v35, %v1544_v56  ;;  %2646 = vst.msk [vmem:[#allocation3 + $0x128] sm:$0xff] %vm2607_vm6, %v12647_v1  ;;  %v9152_v35 = vpack.c.bf16 %v9024_v11, %v9022_v18  ;;  %v3880_v11 = vsel %vm3165_vm5, %v7545_v0, 0  ;;  %v9183_v56 = vld [vmem:[%s8138_s9 + $0x80] sm:$0xff] }
 0x209   : > { %2647 = vst.msk [vmem:[#allocation3 + $0x130] sm:$0xf] %vm2610_vm7, %v12647_v1  ;;  %3889 = vmatpush.bf16.msrb.mxu0 %v3880_v11  ;;  %2765 = vrot.lane.b32.xlu0 %v9183_v56, %s8050_s10  ;;  %v2992_v11 = vrot.slane %v2865_v47, 1  ;;  %v2734_v47 = vpop.permute.xlu2 %2733 }
 0x20a   : > { %v1614_v36 = vpop.f32.mrf.mxu3  ;;  %2648 = vst.msk [vmem:[#allocation3 + $0x138] sm:$0xff] %vm2607_vm6, %v12647_v1  ;;  %v1814_v20 = vadd.f32 %v9009_v50, %v1674_v29 }
 0x20b   : > { %12656 = vst [vmem:[#allocation67_spill] sm:$0xff] %v9152_v35 }
 0x20c   : > { %2649 = vst.msk [vmem:[#allocation3 + $0x140] sm:$0xff] %vm2607_vm6, %v12647_v1  ;;  %v9156_v60 = vpop.f32.mrf.mxu1  ;;  %v9164_v50 = vadd.f32 %v8995_v6, %v1814_v20  ;;  %v9180_v6 = vld [vmem:[%s8138_s9 + $0x88] sm:$0xff]  ;;  %v2867_v20 = vld [vmem:[#allocation3 + $0x28] sm:$0xf] }
 0x20d   : > { %2650 = vst.msk [vmem:[#allocation3 + $0x148] sm:$0xf] %vm2610_vm7, %v12647_v1  ;;  %v1484_v18 = vpop.f32.mrf.mxu2  ;;  %2767 = vrot.lane.b32.xlu1 %v9180_v6, %s8050_s10 }
 0x20e   : > { %12657 = vst [vmem:[#allocation68_spill] sm:$0xff] %v9164_v50  ;;  %v1545_v44 = vadd.f32 %v1484_v18, %v8802_v43  ;;  %v7562_v43 = vld [vmem:[%s12410_s3 + $0x8] sm:$0x3] }
 0x20f   : > { %2651 = vst.msk [vmem:[#allocation3 + $0x150] sm:$0xff] %vm2607_vm6, %v12647_v1  ;;  %7409 = vmatmul.msk.bf16.gmra.mxu3 %vm256_vm1, %v9152_v35  ;;  %v9174_v25 = vpop.f32.mrf.mxu0  ;;  %7496 = vmatmul.msk.bf16.vlgmr.msra.gmra.mxu1 %vm2607_vm6, %v3099_v19  ;;  %v9301_v35 = vld [vmem:[%s8138_s9 + $0xb8] sm:$0xff] }
 0x210   : > { %2652 = vst.msk [vmem:[#allocation3 + $0x158] sm:$0xff] %vm2607_vm6, %v12647_v1  ;;  %v1675_v29 = vadd.f32 %v1614_v36, %v1545_v44  ;;  %v4182_v36 = vsel %vm3165_vm5, %v7562_v43, 0  ;;  %v2993_v44 = vrot.slane %v2866_v5, 1  ;;  %v2995_v43 = vrot.slane %v2867_v20, 1  ;;  %v9223_v5 = vld [vmem:[%s8138_s9 + $0x78] sm:$0xff] }
 0x211   : > { %2653 = vst.msk [vmem:[#allocation3 + $0x160] sm:$0xf] %vm2610_vm7, %v12647_v1  ;;  %4191 = vmatpush.bf16.msrb.mxu1 %v4182_v36  ;;  %2763 = vrot.lane.b32.xlu2 %v9223_v5, %s8050_s10 }
 0x212   : > { %2654 = vst.msk [vmem:[#allocation3 + $0x168] sm:$0xff] %vm2607_vm6, %v12647_v1  ;;  %7392 = vmatmul.msk.bf16.gmra.mxu2 %vm256_vm1, %v12650_v23  ;;  %v1617_v19 = vpop.f32.mrf.mxu3  ;;  %7479 = vmatmul.msk.bf16.vlgmr.msra.gmra.mxu0 %vm256_vm1, %v8444_v39  ;;  %v1815_v0 = vadd.f32 %v9051_v54, %v1675_v29  ;;  %v2994_v20 = vsel %vm849_vm3, %v2992_v11, %v2993_v44 }
 0x213   : > { %2655 = vst.msk [vmem:[#allocation3 + $0x170] sm:$0xff] %vm2607_vm6, %v12647_v1  ;;  %v2996_v36 = vsel %vm849_vm3, %v2993_v44, %v2995_v43  ;;  %v2736_v43 = vpop.permute.xlu0 %2735 }
 0x214   : > { %2656 = vst.msk [vmem:[#allocation3 + $0x178] sm:$0xf] %vm2610_vm7, %v12647_v1  ;;  %v9208_v18 = vpop.f32.mrf.mxu1  ;;  %v9211_v50 = vadd.f32 %v9037_v57, %v1815_v0  ;;  %v9243_v44 = vpack.c.bf16 %v2996_v36, %v2994_v20 }
 0x215   : > { %2657 = vst.msk [vmem:[#allocation3 + $0x180] sm:$0xff] %vm2607_vm6, %v12647_v1  ;;  %v1487_v39 = vpop.f32.mrf.mxu2 }
 0x216   : > { %2658 = vst.msk [vmem:[#allocation3 + $0x188] sm:$0xff] %vm2607_vm6, %v12647_v1  ;;  %v1546_v54 = vadd.f32 %v1487_v39, %v8810_v46  ;;  %v9232_v46 = vld [vmem:[%s8138_s9 + $0x98] sm:$0xff] }
 0x217   : > { %12658 = vst [vmem:[#allocation69_spill] sm:$0xff] %v9211_v50  ;;  %v9220_v29 = vpop.f32.mrf.mxu0  ;;  %2771 = vrot.lane.b32.xlu0 %v9232_v46, %s8050_s10 }
 0x218   : > { %2659 = vst.msk [vmem:[#allocation3 + $0x190] sm:$0xf] %vm2610_vm7, %v12647_v1  ;;  %v1676_v57 = vadd.f32 %v1617_v19, %v1546_v54  ;;  %v2738_v19 = vpop.permute.xlu1 %2737 }
 0x219   : > { %2660 = vst.msk [vmem:[#allocation3 + $0x198] sm:$0xff] %vm2607_vm6, %v12647_v1 }
 0x21a   : > { %2661 = vst.msk [vmem:[#allocation3 + $0x1a0] sm:$0xff] %vm2607_vm6, %v12647_v1  ;;  %v1619_v0 = vpop.f32.mrf.mxu3  ;;  %v1816_v11 = vadd.f32 %v9088_v27, %v1676_v57 }
 0x21b   : > { %2662 = vst.msk [vmem:[#allocation3 + $0x1a8] sm:$0xf] %vm2610_vm7, %v12647_v1 }
 0x21c   : > { %2663 = vst.msk [vmem:[#allocation3 + $0x1b0] sm:$0xff] %vm2607_vm6, %v12647_v1  ;;  %v9247_v39 = vpop.f32.mrf.mxu1  ;;  %v9250_v54 = vadd.f32 %v9072_v53, %v1816_v11  ;;  %v2740_v53 = vpop.permute.xlu2 %2739  ;;  %v9266_v11 = vld [vmem:[%s8138_s9 + $0xa0] sm:$0xff] }
 0x21d   : > { %2664 = vst.msk [vmem:[#allocation3 + $0x1b8] sm:$0xff] %vm2607_vm6, %v12647_v1  ;;  %v1489_v27 = vpop.f32.mrf.mxu2  ;;  %2773 = vrot.lane.b32.xlu1 %v9266_v11, %s8050_s10 }
 0x21e   : > { %2665 = vst.msk [vmem:[#allocation3 + $0x1c0] sm:$0xf] %vm2610_vm7, %v12647_v1  ;;  %v1547_v57 = vadd.f32 %v1489_v27, %v8818_v15 }
 0x21f   : > { %12659 = vst [vmem:[#allocation70_spill] sm:$0xff] %v9243_v44  ;;  %v9257_v20 = vpop.f32.mrf.mxu0  ;;  %7462 = vmatmul.msk.bf16.vlgmr.msra.gmra.mxu3 %vm256_vm1, %v8428_v21  ;;  %7497 = vmatmul.msk.bf16.gmra.mxu1 %vm2607_vm6, %v9243_v44 }
 0x220   : > { %2666 = vst.msk [vmem:[#allocation3 + $0x1c8] sm:$0xff] %vm2607_vm6, %v12647_v1  ;;  %v1677_v36 = vadd.f32 %v1619_v0, %v1547_v57  ;;  %v2744_v15 = vpop.permute.xlu1 %2743  ;;  %v2742_v0 = vpop.permute.xlu0 %2741 }
 0x221   : > { %12660 = vst [vmem:[#allocation71_spill] sm:$0xff] %v9250_v54  ;;  %v9269_v54 = vld [vmem:[%s8138_s9 + $0xb0] sm:$0xff] }
 0x222   : > { %2667 = vst.msk [vmem:[#allocation3 + $0x1d0] sm:$0xff] %vm2607_vm6, %v12647_v1  ;;  %2777 = vrot.lane.b32.xlu0 %v9269_v54, %s8050_s10  ;;  %v1622_v21 = vpop.f32.mrf.mxu3  ;;  %7445 = vmatmul.msk.bf16.vlgmr.msra.gmra.mxu2 %vm256_vm1, %v8410_v8 }
 0x223   : > { %2668 = vst.msk [vmem:[#allocation3 + $0x1d8] sm:$0xf] %vm2610_vm7, %v12647_v1  ;;  %v9272_v1 = vld [vmem:[%s8138_s9 + $0x90] sm:$0xff]  ;;  %7480 = vmatmul.msk.bf16.gmra.mxu0 %vm256_vm1, %v8458_v62 }
 0x224   : > { %2831 = vst.msk [vmem:[#allocation3 + $0x3a] sm:$0xff] %vm2607_vm6, %v2736_v43  ;;  %2769 = vrot.lane.b32.xlu2 %v9272_v1, %s8050_s10 }
 0x225   : > { %2830 = vst.msk [vmem:[#allocation3 + $0x32] sm:$0xff] %vm2607_vm6, %v2734_v47  ;;  %v1817_v47 = vadd.f32 %v9132_v10, %v1677_v36  ;;  %v1492_v62 = vpop.f32.mrf.mxu2  ;;  %2779 = vrot.lane.b32.xlu1 %v9301_v35, %s8050_s10 }
 0x226   : > { %2832 = vst.msk [vmem:[#allocation3 + $0x4a] sm:$0xff] %vm2607_vm6, %v2738_v19  ;;  %v9288_v19 = vpop.f32.mrf.mxu1  ;;  %v1548_v43 = vadd.f32 %v1492_v62, %v8715_v32  ;;  %v9311_v32 = vld [vmem:[%s8138_s9 + $0xa8] sm:$0xff] }
 0x227   : > { %2833 = vst.msk [vmem:[#allocation3 + $0x52] sm:$0xff] %vm2607_vm6, %v2740_v53  ;;  %v9292_v8 = vadd.f32 %v9116_v42, %v1817_v47  ;;  %v9297_v27 = vpop.f32.mrf.mxu0 }
 0x228   : > { %2835 = vst.msk [vmem:[#allocation3 + $0x6a] sm:$0xff] %vm2607_vm6, %v2744_v15  ;;  %v1678_v15 = vadd.f32 %v1622_v21, %v1548_v43 }
 0x229   : > { %2834 = vst.msk [vmem:[#allocation3 + $0x62] sm:$0xff] %vm2607_vm6, %v2742_v0  ;;  %v9304_v0 = vld [vmem:[%s8138_s9 + $0xc8] sm:$0xff] }
 0x22a   : > { %12661 = vst [vmem:[#allocation72_spill] sm:$0xff] %v9292_v8  ;;  %2783 = vrot.lane.b32.xlu0 %v9304_v0, %s8050_s10  ;;  %v1624_v42 = vpop.f32.mrf.mxu3  ;;  %v1818_v43 = vadd.f32 %v9174_v25, %v1678_v15 }
 0x22b   : > { %v9295_v10 = vld [vmem:[#allocation3 + $0x40] sm:$0xf]  ;;  %v2748_v14 = vpop.permute.xlu0 %2747 }
 0x22c   : > { %v2868_v57 = vld [vmem:[#allocation3 + $0x30] sm:$0xff]  ;;  %v2869_v53 = vld [vmem:[#allocation3 + $0x38] sm:$0xff]  ;;  %v3000_v36 = vrot.slane %v9295_v10, 1  ;;  %2775 = vrot.lane.b32.xlu2 %v9311_v32, %s8050_s10  ;;  %v9323_v51 = vadd.f32 %v9156_v60, %v1818_v43  ;;  %2837 = vst.msk [vmem:[#allocation3 + $0x82] sm:$0xff] %vm2607_vm6, %v2748_v14 }
 0x22d   : > { %v2997_v44 = vrot.slane %v2868_v57, 1  ;;  %v2998_v50 = vrot.slane %v2869_v53, 1  ;;  %v1494_v22 = vpop.f32.mrf.mxu2  ;;  %v4013_v13 = vrot.slane %v2868_v57, 4  ;;  %v9333_v25 = vld [vmem:[#allocation3 + $0x48] sm:$0xff]  ;;  %v3711_v15 = vrot.slane %v2868_v57, 3 }
 0x22e   : > { %v9320_v8 = vpop.f32.mrf.mxu1  ;;  %12663 = vst [vmem:[#allocation74_spill] sm:$0xff] %v9323_v51  ;;  %v9337_v51 = vld [vmem:[%s8138_s9 + $0xd0] sm:$0xff]  ;;  %v3408_v4 = vrot.slane %v2868_v57, 2  ;;  %v9347_v55 = vld [vmem:[#allocation3 + $0x50] sm:$0xff]  ;;  %v9365_v33 = vpack.c.bf16 %v2869_v53, %v2868_v57 }
 0x22f   : > { %v2999_v47 = vsel %vm849_vm3, %v2997_v44, %v2998_v50  ;;  %v3001_v62 = vsel %vm849_vm3, %v2998_v50, %v3000_v36  ;;  %v4014_v44 = vrot.slane %v2869_v53, 4  ;;  %v1549_v50 = vadd.f32 %v1494_v22, %v8717_v59  ;;  %7463 = vmatmul.msk.bf16.gmra.mxu3 %vm256_vm1, %v8470_v49  ;;  %v9340_v59 = vld [vmem:[%s8138_s9 + $0xe0] sm:$0xff]  ;;  %2785 = vrot.lane.b32.xlu1 %v9337_v51, %s8050_s10 }
 0x230   : > { %v9315_v21 = vpack.c.bf16 %v3001_v62, %v2999_v47  ;;  %v4016_v36 = vrot.slane %v9295_v10, 4  ;;  %v9327_v47 = vpop.f32.mrf.mxu0  ;;  %v3712_v62 = vrot.slane %v2869_v53, 3  ;;  %v9343_v22 = vld [vmem:[%s8138_s9 + $0xc0] sm:$0xff]  ;;  %v3714_v49 = vrot.slane %v9295_v10, 3  ;;  %12665 = vst [vmem:[#allocation76_spill] sm:$0xff] %v9365_v33 }
 0x231   : > { %v4015_v60 = vsel %vm1028_vm0, %v4013_v13, %v4014_v44  ;;  %v1679_v43 = vadd.f32 %v1624_v42, %v1549_v50  ;;  %v3409_v50 = vrot.slane %v2869_v53, 2  ;;  %v3003_v57 = vrot.slane %v9347_v55, 1 }
 0x232   : > { %12662 = vst [vmem:[#allocation73_spill] sm:$0xff] %v9315_v21  ;;  %7498 = vmatmul.msk.bf16.gmra.mxu1 %vm2607_vm6, %v9315_v21  ;;  %v4017_v23 = vsel %vm1028_vm0, %v4014_v44, %v4016_v36  ;;  %v9349_v21 = vld [vmem:[#allocation3 + $0x58] sm:$0xf]  ;;  %2789 = vrot.lane.b32.xlu0 %v9340_v59, %s8050_s10  ;;  %v3713_v42 = vsel %vm3700_vm8, %v3711_v15, %v3712_v62  ;;  %v3411_v44 = vrot.slane %v9295_v10, 2  ;;  %v1627_v36 = vpop.f32.mrf.mxu3  ;;  %v2746_v10 = vpop.permute.xlu2 %2745 }
 0x233   : > { %v9355_v13 = vpack.c.bf16 %v4017_v23, %v4015_v60  ;;  %7446 = vmatmul.msk.bf16.gmra.mxu2 %vm256_vm1, %v8460_v63  ;;  %7481 = vmatmul.msk.bf16.gmra.mxu0 %vm256_vm1, %v8500_v52  ;;  %v1819_v30 = vadd.f32 %v9220_v29, %v1679_v43  ;;  %v3715_v34 = vsel %vm3700_vm8, %v3712_v62, %v3714_v49  ;;  %v3002_v23 = vrot.slane %v9333_v25, 1 }
 0x234   : > { %2781 = vrot.lane.b32.xlu2 %v9343_v22, %s8050_s10  ;;  %v9371_v63 = vpack.c.bf16 %v3715_v34, %v3713_v42  ;;  %v3410_v52 = vsel %vm1261_vm4, %v3408_v4, %v3409_v50  ;;  %v3412_v29 = vsel %vm1261_vm4, %v3409_v50, %v3411_v44  ;;  %v3005_v53 = vrot.slane %v9349_v21, 1  ;;  %2836 = vst.msk [vmem:[#allocation3 + $0x7a] sm:$0xff] %vm2607_vm6, %v2746_v10  ;;  %v9391_v50 = vld [vmem:[%s8138_s9 + $0xe8] sm:$0xff]  ;;  %v9394_v44 = vld [vmem:[%s8138_s9 + $0xd8] sm:$0xff] }
 0x235   : > { %12664 = vst [vmem:[#allocation75_spill] sm:$0xff] %v9355_v13  ;;  %v9381_v15 = vadd.f32 %v9208_v18, %v1819_v30  ;;  %v9383_v14 = vpack.c.bf16 %v3412_v29, %v3410_v52  ;;  %v1497_v34 = vpop.f32.mrf.mxu2  ;;  %v3004_v49 = vsel %vm849_vm3, %v3002_v23, %v3003_v57  ;;  %v4018_v18 = vrot.slane %v9333_v25, 4  ;;  %v12670_v13 = vld [vmem:[#allocation17_spill] sm:$0xff] }
 0x236   : > { %12666 = vst [vmem:[#allocation77_spill] sm:$0xff] %v9371_v63  ;;  %v9375_v60 = vpop.f32.mrf.mxu1  ;;  %v1550_v62 = vadd.f32 %v1497_v34, %v8729_v28  ;;  %v3006_v42 = vsel %vm849_vm3, %v3003_v57, %v3005_v53  ;;  %v4021_v23 = vrot.slane %v9349_v21, 4  ;;  %v3716_v52 = vrot.slane %v9333_v25, 3 }
 0x237   : > { %12667 = vst [vmem:[#allocation78_spill] sm:$0xff] %v9383_v14  ;;  %2791 = vrot.lane.b32.xlu1 %v9391_v50, %s8050_s10  ;;  %v9404_v10 = vpack.c.bf16 %v3006_v42, %v3004_v49  ;;  %v3717_v29 = vrot.slane %v9347_v55, 3  ;;  %v3413_v42 = vrot.slane %v9333_v25, 2 }
 0x238   : > { %v9386_v43 = vpop.f32.mrf.mxu0  ;;  %v1680_v4 = vadd.f32 %v1627_v36, %v1550_v62  ;;  %v4019_v36 = vrot.slane %v9347_v55, 4 }
 0x239   : > { %12668 = vst [vmem:[#allocation79_spill] sm:$0xff] %v9404_v10 }
 0x23a   : > { %2795 = vrot.lane.b32.xlu0 %v8768_v26, %s8050_s10  ;;  %v1629_v30 = vpop.f32.mrf.mxu3  ;;  %v1820_v28 = vadd.f32 %v9257_v20, %v1680_v4  ;;  %v3719_v26 = vrot.slane %v9349_v21, 3  ;;  %v4020_v53 = vsel %vm1028_vm0, %v4018_v18, %v4019_v36  ;;  %v4022_v62 = vsel %vm1028_vm0, %v4019_v36, %v4021_v23  ;;  %v9438_v23 = vld [vmem:[#allocation3 + $0x60] sm:$0xff] }
 0x23b   : > { %v3718_v4 = vsel %vm3700_vm8, %v3716_v52, %v3717_v29  ;;  %v9422_v14 = vpack.c.bf16 %v4022_v62, %v4020_v53  ;;  %v3416_v18 = vrot.slane %v9349_v21, 2  ;;  %v9440_v52 = vld [vmem:[#allocation3 + $0x68] sm:$0xff]  ;;  %v7976_v62 = vld [vmem:[%s8138_s9 + $0xf0] sm:$0xff] }
 0x23c   : > { %2787 = vrot.lane.b32.xlu2 %v9394_v44, %s8050_s10  ;;  %v9414_v20 = vadd.f32 %v9247_v39, %v1820_v28  ;;  %v3720_v49 = vsel %vm3700_vm8, %v3717_v29, %v3719_v26  ;;  %v3414_v28 = vrot.slane %v9347_v55, 2  ;;  %v12673_v29 = vld [vmem:[#allocation52_spill] sm:$0xff]  ;;  %v2750_v26 = vpop.permute.xlu1 %2749 }
 0x23d   : > { %v1499_v34 = vpop.f32.mrf.mxu2  ;;  %12669 = vst [vmem:[#allocation80_spill] sm:$0xff] %v9422_v14  ;;  %v9430_v39 = vpack.c.bf16 %v3720_v49, %v3718_v4  ;;  %v3007_v49 = vrot.slane %v9438_v23, 1 }
 0x23e   : > { %v9411_v57 = vpop.f32.mrf.mxu1  ;;  %v1551_v33 = vadd.f32 %v1499_v34, %v8733_v24  ;;  %v9436_v24 = vpack.c.bf16 %v9347_v55, %v9333_v25  ;;  %v3417_v21 = vsel %vm1261_vm4, %v3414_v28, %v3416_v18  ;;  %v12674_v55 = vld [vmem:[#allocation16_spill] sm:$0xff]  ;;  %2838 = vst.msk [vmem:[#allocation3 + $0x92] sm:$0xff] %vm2607_vm6, %v2750_v26 }
 0x23f   : > { %7464 = vmatmul.msk.bf16.gmra.mxu3 %vm256_vm1, %v12670_v13  ;;  %12671 = vst [vmem:[#allocation17_spill] sm:$0xff] %v9430_v39  ;;  %v9442_v13 = vld [vmem:[#allocation3 + $0x70] sm:$0xf]  ;;  %353 = vrot.lane.b32.xlu1 %v8854_v31, %s8051_s11  ;;  %v12675_v25 = vld [vmem:[#allocation20_spill] sm:$0xff]  ;;  %v2752_v31 = vpop.permute.xlu2 %2751 }
 0x240   : > { %v9424_v63 = vpop.f32.mrf.mxu0  ;;  %v1681_v36 = vadd.f32 %v1629_v30, %v1551_v33  ;;  %12672 = vst [vmem:[#allocation81_spill] sm:$0xff] %v9436_v24  ;;  %v3415_v33 = vsel %vm1261_vm4, %v3413_v42, %v3414_v28  ;;  %v3008_v42 = vrot.slane %v9440_v52, 1  ;;  %v3010_v28 = vrot.slane %v9442_v13, 1 }
 0x241   : > { %v9455_v34 = vpack.c.bf16 %v3417_v21, %v3415_v33  ;;  %2839 = vst.msk [vmem:[#allocation3 + $0x9a] sm:$0xff] %vm2607_vm6, %v2752_v31  ;;  %v4026_v31 = vrot.slane %v9442_v13, 4 }
 0x242   : > { %7499 = vmatmul.msk.bf16.gmra.mxu1 %vm2607_vm6, %v9404_v10  ;;  %357 = vrot.lane.b32.xlu0 %v12673_v29, %s8051_s11  ;;  %v1632_v30 = vpop.f32.mrf.mxu3  ;;  %v1821_v53 = vadd.f32 %v9297_v27, %v1681_v36  ;;  %v12677_v36 = vld [vmem:[#allocation39_spill] sm:$0xff] }
 0x243   : > { %7447 = vmatmul.msk.bf16.gmra.mxu2 %vm256_vm1, %v12674_v55  ;;  %7482 = vmatmul.msk.bf16.gmra.mxu0 %vm256_vm1, %v12675_v25  ;;  %12676 = vst [vmem:[#allocation52_spill] sm:$0xff] %v9455_v34  ;;  %v3009_v55 = vsel %vm849_vm3, %v3007_v49, %v3008_v42  ;;  %v3011_v25 = vsel %vm849_vm3, %v3008_v42, %v3010_v28  ;;  %v12679_v49 = vld [vmem:[#allocation49_spill] sm:$0xff]  ;;  %v3721_v42 = vrot.slane %v9438_v23, 3  ;;  %v12683_v34 = vld [vmem:[#allocation23_spill] sm:$0xff] }
 0x244   : > { %2793 = vrot.lane.b32.xlu2 %v7976_v62, %s8050_s10  ;;  %v9467_v27 = vadd.f32 %v9288_v19, %v1821_v53  ;;  %v4023_v53 = vrot.slane %v9438_v23, 4  ;;  %v4024_v62 = vrot.slane %v9440_v52, 4  ;;  %s8052_s10 = smov 8  }
 0x245   : > { %v1502_v18 = vpop.f32.mrf.mxu2 }
 0x246   : > { %v9460_v4 = vpop.f32.mrf.mxu1  ;;  %v1552_v29 = vadd.f32 %v1502_v18, %v12677_v36  ;;  %v4025_v18 = vsel %vm1028_vm0, %v4023_v53, %v4024_v62  ;;  %v3421_v53 = vrot.slane %v9442_v13, 2 }
 0x247   : > { %359 = vrot.lane.b32.xlu1 %v8884_v17, %s8051_s11  ;;  %v9490_v17 = vpack.c.bf16 %v9440_v52, %v9438_v23 }
 0x248   : > { %v9470_v33 = vpop.f32.mrf.mxu0  ;;  %v1682_v21 = vadd.f32 %v1632_v30, %v1552_v29  ;;  %v9482_v30 = vpack.c.bf16 %v3011_v25, %v3009_v55  ;;  %v4027_v29 = vsel %vm1028_vm0, %v4024_v62, %v4026_v31  ;;  %v3724_v55 = vrot.slane %v9442_v13, 3  ;;  %v9516_v31 = vld [vmem:[#allocation3 + $0x78] sm:$0xff] }
 0x249   : > { %12680 = vst [vmem:[#allocation20_spill] sm:$0xff] %v9490_v17  ;;  %v3418_v25 = vrot.slane %v9438_v23, 2  ;;  %v9503_v24 = vpack.c.bf16 %v4027_v29, %v4025_v18  ;;  %v9520_v18 = vld [vmem:[#allocation3 + $0x88] sm:$0xf] }
 0x24a   : > { %363 = vrot.lane.b32.xlu0 %v8867_v12, %s8051_s11  ;;  %v1634_v26 = vpop.f32.mrf.mxu3  ;;  %v1822_v19 = vadd.f32 %v9327_v47, %v1682_v21  ;;  %12678 = vst [vmem:[#allocation16_spill] sm:$0xff] %v9482_v30  ;;  %v3722_v12 = vrot.slane %v9440_v52, 3 }
 0x24b   : > { %12682 = vst [vmem:[#allocation39_spill] sm:$0xff] %v9503_v24 }
 0x24c   : > { %355 = vrot.lane.b32.xlu2 %v12679_v49, %s8051_s11  ;;  %v9495_v28 = vadd.f32 %v9320_v8, %v1822_v19  ;;  %v3723_v21 = vsel %vm3700_vm8, %v3721_v42, %v3722_v12  ;;  %v12681_v49 = vld [vmem:[#allocation40_spill] sm:$0xff]  ;;  %v3725_v8 = vsel %vm3700_vm8, %v3722_v12, %v3724_v55  ;;  %v3419_v19 = vrot.slane %v9440_v52, 2  ;;  %v9518_v42 = vld [vmem:[#allocation3 + $0x80] sm:$0xff]  ;;  %v2756_v12 = vpop.permute.xlu1 %2755 }
 0x24d   : > { %v1504_v36 = vpop.f32.mrf.mxu2  ;;  %v9514_v23 = vpack.c.bf16 %v3725_v8, %v3723_v21  ;;  %2841 = vst.msk [vmem:[#allocation3 + $0xb2] sm:$0xff] %vm2607_vm6, %v2756_v12  ;;  %v3012_v21 = vrot.slane %v9516_v31, 1  ;;  %v3013_v55 = vrot.slane %v9518_v42, 1  ;;  %v12688_v8 = vld [vmem:[#allocation41_spill] sm:$0xff]  ;;  %v4031_v12 = vrot.slane %v9520_v18, 4 }
 0x24e   : > { %v9492_v47 = vpop.f32.mrf.mxu1  ;;  %v1553_v10 = vadd.f32 %v1504_v36, %v12681_v49  ;;  %v3422_v52 = vsel %vm1261_vm4, %v3419_v19, %v3421_v53 }
 0x24f   : > { %7465 = vmatmul.msk.bf16.gmra.mxu3 %vm256_vm1, %v12683_v34  ;;  %12684 = vst [vmem:[#allocation49_spill] sm:$0xff] %v9514_v23  ;;  %365 = vrot.lane.b32.xlu1 %v8936_v48, %s8051_s11  ;;  %v3420_v34 = vsel %vm1261_vm4, %v3418_v25, %v3419_v19  ;;  %v3015_v25 = vrot.slane %v9520_v18, 1 }
 0x250   : > { %v9505_v17 = vpop.f32.mrf.mxu0  ;;  %v1683_v62 = vadd.f32 %v1634_v26, %v1553_v10  ;;  %v12685_v10 = vld [vmem:[#allocation22_spill] sm:$0xff]  ;;  %v9533_v29 = vpack.c.bf16 %v3422_v52, %v3420_v34 }
 0x251   : > { %v12686_v26 = vld [vmem:[#allocation26_spill] sm:$0xff]  ;;  %v3016_v34 = vsel %vm849_vm3, %v3013_v55, %v3015_v25 }
 0x252   : > { %7500 = vmatmul.msk.bf16.gmra.mxu1 %vm2607_vm6, %v9482_v30  ;;  %369 = vrot.lane.b32.xlu0 %v8918_v9, %s8051_s11  ;;  %v1637_v13 = vpop.f32.mrf.mxu3  ;;  %v1823_v36 = vadd.f32 %v9386_v43, %v1683_v62  ;;  %12687 = vst [vmem:[#allocation40_spill] sm:$0xff] %v9533_v29  ;;  %v2754_v9 = vpop.permute.xlu0 %2753  ;;  %v3014_v62 = vsel %vm849_vm3, %v3012_v21, %v3013_v55  ;;  %v12692_v30 = vld [vmem:[#allocation30_spill] sm:$0xff] }
 0x253   : > { %7448 = vmatmul.msk.bf16.gmra.mxu2 %vm256_vm1, %v12685_v10  ;;  %7483 = vmatmul.msk.bf16.gmra.mxu0 %vm256_vm1, %v12686_v26  ;;  %2840 = vst.msk [vmem:[#allocation3 + $0xaa] sm:$0xff] %vm2607_vm6, %v2754_v9  ;;  %v4028_v10 = vrot.slane %v9516_v31, 4  ;;  %v4029_v26 = vrot.slane %v9518_v42, 4 }
 0x254   : > { %361 = vrot.lane.b32.xlu2 %v8870_v40, %s8051_s11  ;;  %v9545_v43 = vadd.f32 %v9375_v60, %v1823_v36  ;;  %v3726_v36 = vrot.slane %v9516_v31, 3 }
 0x255   : > { %v1507_v49 = vpop.f32.mrf.mxu2  ;;  %v4030_v21 = vsel %vm1028_vm0, %v4028_v10, %v4029_v26  ;;  %v4032_v25 = vsel %vm1028_vm0, %v4029_v26, %v4031_v12  ;;  %v3426_v10 = vrot.slane %v9520_v18, 2  ;;  %v9592_v12 = vpack.c.bf16 %v9518_v42, %v9516_v31 }
 0x256   : > { %v9538_v48 = vpop.f32.mrf.mxu1  ;;  %v1554_v19 = vadd.f32 %v1507_v49, %v12688_v8  ;;  %v3423_v8 = vrot.slane %v9516_v31, 2  ;;  %v12695_v31 = vld [vmem:[#allocation34_spill] sm:$0xff] }
 0x257   : > { %371 = vrot.lane.b32.xlu1 %v8981_v3, %s8051_s11  ;;  %v3729_v3 = vrot.slane %v9520_v18, 3 }
 0x258   : > { %v9548_v40 = vpop.f32.mrf.mxu0  ;;  %v1684_v53 = vadd.f32 %v1637_v13, %v1554_v19  ;;  %v9560_v13 = vpack.c.bf16 %v3016_v34, %v3014_v62  ;;  %v12690_v19 = vld [vmem:[#allocation42_spill] sm:$0xff]  ;;  %v9578_v62 = vpack.c.bf16 %v4032_v25, %v4030_v21  ;;  %v12694_v21 = vld [vmem:[#allocation27_spill] sm:$0xff] }
 0x25a   : > { %375 = vrot.lane.b32.xlu0 %v8952_v37, %s8051_s11  ;;  %v1639_v52 = vpop.f32.mrf.mxu3  ;;  %v1824_v60 = vadd.f32 %v9424_v63, %v1684_v53  ;;  %12689 = vst [vmem:[#allocation23_spill] sm:$0xff] %v9560_v13  ;;  %v3727_v37 = vrot.slane %v9518_v42, 3 }
 0x25b   : > { %12691 = vst [vmem:[#allocation22_spill] sm:$0xff] %v9578_v62 }
 0x25c   : > { %367 = vrot.lane.b32.xlu2 %v8897_v41, %s8051_s11  ;;  %v9570_v63 = vadd.f32 %v9411_v57, %v1824_v60  ;;  %v3728_v49 = vsel %vm3700_vm8, %v3726_v36, %v3727_v37  ;;  %v3730_v41 = vsel %vm3700_vm8, %v3727_v37, %v3729_v3  ;;  %v3424_v60 = vrot.slane %v9518_v42, 2  ;;  %v9594_v36 = vld [vmem:[#allocation3 + $0x90] sm:$0xff]  ;;  %v9596_v37 = vld [vmem:[#allocation3 + $0x98] sm:$0xff]  ;;  %v9598_v3 = vld [vmem:[#allocation3 + $0xa0] sm:$0xf]  ;;  %v2760_v42 = vpop.permute.xlu0 %2759 }
 0x25d   : > { %v1509_v55 = vpop.f32.mrf.mxu2  ;;  %v9586_v57 = vpack.c.bf16 %v3730_v41, %v3728_v49  ;;  %2843 = vst.msk [vmem:[#allocation3 + $0xca] sm:$0xff] %vm2607_vm6, %v2760_v42  ;;  %v3017_v49 = vrot.slane %v9594_v36, 1  ;;  %v3018_v41 = vrot.slane %v9596_v37, 1  ;;  %v4036_v42 = vrot.slane %v9598_v3, 4 }
 0x25e   : > { %v9567_v9 = vpop.f32.mrf.mxu1  ;;  %v1555_v53 = vadd.f32 %v1509_v55, %v12690_v19  ;;  %v3427_v18 = vsel %vm1261_vm4, %v3424_v60, %v3426_v10 }
 0x25f   : > { %7466 = vmatmul.msk.bf16.gmra.mxu3 %vm256_vm1, %v12692_v30  ;;  %12693 = vst [vmem:[#allocation26_spill] sm:$0xff] %v9586_v57  ;;  %377 = vrot.lane.b32.xlu1 %v9137_v7, %s8051_s11  ;;  %v3425_v30 = vsel %vm1261_vm4, %v3423_v8, %v3424_v60  ;;  %v3020_v8 = vrot.slane %v9598_v3, 1 }
 0x260   : > { %v9580_v34 = vpop.f32.mrf.mxu0  ;;  %v1685_v26 = vadd.f32 %v1639_v52, %v1555_v53  ;;  %v9611_v25 = vpack.c.bf16 %v3427_v18, %v3425_v30  ;;  %v12697_v53 = vld [vmem:[#allocation43_spill] sm:$0xff] }
 0x261   : > { %v3021_v30 = vsel %vm849_vm3, %v3018_v41, %v3020_v8 }
 0x262   : > { %7501 = vmatmul.msk.bf16.gmra.mxu1 %vm2607_vm6, %v9560_v13  ;;  %381 = vrot.lane.b32.xlu0 %v9095_v2, %s8051_s11  ;;  %v1642_v52 = vpop.f32.mrf.mxu3  ;;  %v1825_v55 = vadd.f32 %v9470_v33, %v1685_v26  ;;  %12696 = vst [vmem:[#allocation41_spill] sm:$0xff] %v9611_v25  ;;  %v2758_v2 = vpop.permute.xlu2 %2757  ;;  %v3019_v26 = vsel %vm849_vm3, %v3017_v49, %v3018_v41  ;;  %v12701_v13 = vld [vmem:[#allocation35_spill] sm:$0xff] }
 0x263   : > { %7449 = vmatmul.msk.bf16.gmra.mxu2 %vm256_vm1, %v12694_v21  ;;  %7484 = vmatmul.msk.bf16.gmra.mxu0 %vm256_vm1, %v12695_v31  ;;  %2842 = vst.msk [vmem:[#allocation3 + $0xc2] sm:$0xff] %vm2607_vm6, %v2758_v2  ;;  %v4033_v21 = vrot.slane %v9594_v36, 4  ;;  %v4034_v31 = vrot.slane %v9596_v37, 4 }
 0x264   : > { %373 = vrot.lane.b32.xlu2 %v8955_v38, %s8051_s11  ;;  %v9623_v33 = vadd.f32 %v9460_v4, %v1825_v55  ;;  %v3731_v55 = vrot.slane %v9594_v36, 3 }
 0x265   : > { %v1512_v19 = vpop.f32.mrf.mxu2  ;;  %v4035_v49 = vsel %vm1028_vm0, %v4033_v21, %v4034_v31  ;;  %v4037_v8 = vsel %vm1028_vm0, %v4034_v31, %v4036_v42  ;;  %v3431_v21 = vrot.slane %v9598_v3, 2  ;;  %v9670_v42 = vpack.c.bf16 %v9596_v37, %v9594_v36 }
 0x266   : > { %v9616_v7 = vpop.f32.mrf.mxu1  ;;  %v1556_v60 = vadd.f32 %v1512_v19, %v12697_v53  ;;  %v3428_v53 = vrot.slane %v9594_v36, 2  ;;  %v12704_v36 = vld [vmem:[#allocation9_spill] sm:$0xff] }
 0x267   : > { %383 = vrot.lane.b32.xlu1 %v9223_v5, %s8051_s11  ;;  %v3734_v5 = vrot.slane %v9598_v3, 3 }
 0x268   : > { %v9626_v38 = vpop.f32.mrf.mxu0  ;;  %v1686_v10 = vadd.f32 %v1642_v52, %v1556_v60  ;;  %v9638_v52 = vpack.c.bf16 %v3021_v30, %v3019_v26  ;;  %v12699_v60 = vld [vmem:[#allocation44_spill] sm:$0xff]  ;;  %v9656_v26 = vpack.c.bf16 %v4037_v8, %v4035_v49 }
 0x269   : > { %v12703_v49 = vld [vmem:[#allocation32_spill] sm:$0xff] }
 0x26a   : > { %387 = vrot.lane.b32.xlu0 %v9180_v6, %s8051_s11  ;;  %v1644_v18 = vpop.f32.mrf.mxu3  ;;  %v1826_v4 = vadd.f32 %v9505_v17, %v1686_v10  ;;  %12698 = vst [vmem:[#allocation42_spill] sm:$0xff] %v9638_v52  ;;  %v3732_v6 = vrot.slane %v9596_v37, 3 }
 0x26b   : > { %12700 = vst [vmem:[#allocation30_spill] sm:$0xff] %v9656_v26 }
 0x26c   : > { %379 = vrot.lane.b32.xlu2 %v9014_v16, %s8051_s11  ;;  %v9648_v17 = vadd.f32 %v9492_v47, %v1826_v4  ;;  %v3733_v19 = vsel %vm3700_vm8, %v3731_v55, %v3732_v6  ;;  %v3735_v16 = vsel %vm3700_vm8, %v3732_v6, %v3734_v5  ;;  %v3429_v4 = vrot.slane %v9596_v37, 2  ;;  %v9672_v55 = vld [vmem:[#allocation3 + $0xa8] sm:$0xff]  ;;  %v9674_v6 = vld [vmem:[#allocation3 + $0xb0] sm:$0xff]  ;;  %v9676_v5 = vld [vmem:[#allocation3 + $0xb8] sm:$0xf]  ;;  %v2762_v37 = vpop.permute.xlu1 %2761 }
 0x26d   : > { %v1514_v41 = vpop.f32.mrf.mxu2  ;;  %v9664_v47 = vpack.c.bf16 %v3735_v16, %v3733_v19  ;;  %2844 = vst.msk [vmem:[#allocation3 + $0xda] sm:$0xff] %vm2607_vm6, %v2762_v37  ;;  %v3022_v19 = vrot.slane %v9672_v55, 1  ;;  %v3023_v16 = vrot.slane %v9674_v6, 1  ;;  %v4041_v37 = vrot.slane %v9676_v5, 4 }
 0x26e   : > { %v9645_v2 = vpop.f32.mrf.mxu1  ;;  %v1557_v10 = vadd.f32 %v1514_v41, %v12699_v60  ;;  %v3432_v3 = vsel %vm1261_vm4, %v3429_v4, %v3431_v21 }
 0x26f   : > { %7467 = vmatmul.msk.bf16.gmra.mxu3 %vm256_vm1, %v12701_v13  ;;  %12702 = vst [vmem:[#allocation27_spill] sm:$0xff] %v9664_v47  ;;  %389 = vrot.lane.b32.xlu1 %v9272_v1, %s8051_s11  ;;  %v3430_v13 = vsel %vm1261_vm4, %v3428_v53, %v3429_v4  ;;  %v3025_v53 = vrot.slane %v9676_v5, 1 }
 0x270   : > { %v9658_v30 = vpop.f32.mrf.mxu0  ;;  %v1687_v31 = vadd.f32 %v1644_v18, %v1557_v10  ;;  %v9689_v8 = vpack.c.bf16 %v3432_v3, %v3430_v13  ;;  %v12706_v10 = vld [vmem:[#allocation45_spill] sm:$0xff] }
 0x271   : > { %v3026_v13 = vsel %vm849_vm3, %v3023_v16, %v3025_v53 }
 0x272   : > { %7502 = vmatmul.msk.bf16.gmra.mxu1 %vm2607_vm6, %v9638_v52  ;;  %393 = vrot.lane.b32.xlu0 %v9266_v11, %s8051_s11  ;;  %v1647_v18 = vpop.f32.mrf.mxu3  ;;  %v1827_v41 = vadd.f32 %v9548_v40, %v1687_v31  ;;  %12705 = vst [vmem:[#allocation34_spill] sm:$0xff] %v9689_v8  ;;  %v2764_v11 = vpop.permute.xlu2 %2763  ;;  %v3024_v31 = vsel %vm849_vm3, %v3022_v19, %v3023_v16  ;;  %v12732_v52 = vld [vmem:[#allocation51_spill] sm:$0xff] }
 0x273   : > { %7450 = vmatmul.msk.bf16.gmra.mxu2 %vm256_vm1, %v12703_v49  ;;  %7485 = vmatmul.msk.bf16.gmra.mxu0 %vm256_vm1, %v12704_v36  ;;  %2845 = vst.msk [vmem:[#allocation3 + $0xe2] sm:$0xff] %vm2607_vm6, %v2764_v11  ;;  %v4038_v49 = vrot.slane %v9672_v55, 4  ;;  %v4039_v36 = vrot.slane %v9674_v6, 4 }
 0x274   : > { %385 = vrot.lane.b32.xlu2 %v9183_v56, %s8051_s11  ;;  %v9701_v40 = vadd.f32 %v9538_v48, %v1827_v41  ;;  %v3736_v41 = vrot.slane %v9672_v55, 3 }
 0x275   : > { %v1517_v60 = vpop.f32.mrf.mxu2  ;;  %v4040_v19 = vsel %vm1028_vm0, %v4038_v49, %v4039_v36 }
 0x276   : > { %v9694_v1 = vpop.f32.mrf.mxu1  ;;  %v1558_v4 = vadd.f32 %v1517_v60, %v12706_v10  ;;  %v4042_v60 = vsel %vm1028_vm0, %v4039_v36, %v4041_v37  ;;  %v3739_v10 = vrot.slane %v9676_v5, 3  ;;  %v3434_v36 = vrot.slane %v9674_v6, 2 }
 0x277   : > { %395 = vrot.lane.b32.xlu1 %v9311_v32, %s8051_s11  ;;  %v9724_v32 = vpack.c.bf16 %v9674_v6, %v9672_v55 }
 0x278   : > { %v9704_v56 = vpop.f32.mrf.mxu0  ;;  %v1688_v21 = vadd.f32 %v1647_v18, %v1558_v4  ;;  %v9716_v18 = vpack.c.bf16 %v3026_v13, %v3024_v31  ;;  %v3433_v4 = vrot.slane %v9672_v55, 2  ;;  %v9738_v13 = vpack.c.bf16 %v4042_v60, %v4040_v19  ;;  %v9753_v19 = vld [vmem:[#allocation3 + $0xc8] sm:$0xff] }
 0x279   : > { %12708 = vst [vmem:[#allocation44_spill] sm:$0xff] %v9724_v32  ;;  %v3436_v55 = vrot.slane %v9676_v5, 2 }
 0x27a   : > { %399 = vrot.lane.b32.xlu0 %v9301_v35, %s8051_s11  ;;  %v1649_v3 = vpop.f32.mrf.mxu3  ;;  %v1828_v48 = vadd.f32 %v9580_v34, %v1688_v21  ;;  %12707 = vst [vmem:[#allocation43_spill] sm:$0xff] %v9716_v18  ;;  %v3737_v35 = vrot.slane %v9674_v6, 3  ;;  %v12709_v21 = vld [vmem:[#allocation46_spill] sm:$0xff] }
 0x27b   : > { %12710 = vst [vmem:[#allocation35_spill] sm:$0xff] %v9738_v13  ;;  %v3437_v6 = vsel %vm1261_vm4, %v3434_v36, %v3436_v55 }
 0x27c   : > { %391 = vrot.lane.b32.xlu2 %v9232_v46, %s8051_s11  ;;  %v9729_v11 = vadd.f32 %v9567_v9, %v1828_v48  ;;  %v3738_v46 = vsel %vm3700_vm8, %v3736_v41, %v3737_v35  ;;  %v12711_v48 = vld [vmem:[#allocation8_spill] sm:$0xff]  ;;  %v3740_v49 = vsel %vm3700_vm8, %v3737_v35, %v3739_v10  ;;  %v3435_v35 = vsel %vm1261_vm4, %v3433_v4, %v3434_v36 }
 0x27d   : > { %v1519_v16 = vpop.f32.mrf.mxu2  ;;  %v9749_v41 = vpack.c.bf16 %v3740_v49, %v3738_v46  ;;  %v9768_v10 = vpack.c.bf16 %v3437_v6, %v3435_v35 }
 0x27e   : > { %v9726_v34 = vpop.f32.mrf.mxu1  ;;  %v2770_v53 = vpop.permute.xlu2 %2769  ;;  %v1559_v31 = vadd.f32 %v1519_v16, %v12709_v21  ;;  %v9751_v16 = vld [vmem:[#allocation3 + $0xc0] sm:$0xff]  ;;  %v3028_v21 = vrot.slane %v9753_v19, 1 }
 0x27f   : > { %2848 = vst.msk [vmem:[#allocation3 + $0x10a] sm:$0xff] %vm2607_vm6, %v2770_v53  ;;  %7468 = vmatmul.msk.bf16.gmra.mxu3 %vm256_vm1, %v12711_v48  ;;  %v9755_v53 = vld [vmem:[#allocation3 + $0xd0] sm:$0xf]  ;;  %401 = vrot.lane.b32.xlu1 %v9343_v22, %s8051_s11  ;;  %v2768_v60 = vpop.permute.xlu1 %2767  ;;  %v3027_v4 = vrot.slane %v9751_v16, 1 }
 0x280   : > { %v9740_v9 = vpop.f32.mrf.mxu0  ;;  %v1689_v37 = vadd.f32 %v1649_v3, %v1559_v31  ;;  %12712 = vst [vmem:[#allocation32_spill] sm:$0xff] %v9749_v41  ;;  %v12713_v3 = vld [vmem:[#allocation7_spill] sm:$0xff] }
 0x281   : > { %12714 = vst [vmem:[#allocation9_spill] sm:$0xff] %v9768_v10 }
 0x282   : > { %7503 = vmatmul.msk.bf16.gmra.mxu1 %vm2607_vm6, %v9716_v18  ;;  %405 = vrot.lane.b32.xlu0 %v9337_v51, %s8051_s11  ;;  %v1652_v5 = vpop.f32.mrf.mxu3  ;;  %v1829_v46 = vadd.f32 %v9626_v38, %v1689_v37  ;;  %2847 = vst.msk [vmem:[#allocation3 + $0xfa] sm:$0xff] %vm2607_vm6, %v2768_v60  ;;  %v2766_v51 = vpop.permute.xlu0 %2765  ;;  %v3029_v37 = vsel %vm849_vm3, %v3027_v4, %v3028_v21  ;;  %v4044_v60 = vrot.slane %v9753_v19, 4 }
 0x283   : > { %7451 = vmatmul.msk.bf16.gmra.mxu2 %vm256_vm1, %v12713_v3  ;;  %7486 = vmatmul.msk.bf16.gmra.mxu0 %vm256_vm1, %v8388_v45  ;;  %v3030_v45 = vrot.slane %v9755_v53, 1  ;;  %2846 = vst.msk [vmem:[#allocation3 + $0xf2] sm:$0xff] %vm2607_vm6, %v2766_v51  ;;  %v4043_v3 = vrot.slane %v9751_v16, 4  ;;  %v3741_v51 = vrot.slane %v9751_v16, 3 }
 0x284   : > { %397 = vrot.lane.b32.xlu2 %v9269_v54, %s8051_s11  ;;  %v9780_v38 = vadd.f32 %v9616_v7, %v1829_v46  ;;  %v12715_v54 = vld [vmem:[#allocation47_spill] sm:$0xff] }
 0x285   : > { %v1522_v31 = vpop.f32.mrf.mxu2  ;;  %v3031_v35 = vsel %vm849_vm3, %v3028_v21, %v3030_v45  ;;  %v4045_v21 = vsel %vm1028_vm0, %v4043_v3, %v4044_v60 }
 0x286   : > { %v9773_v22 = vpop.f32.mrf.mxu1  ;;  %v2776_v48 = vpop.permute.xlu2 %2775  ;;  %v1560_v49 = vadd.f32 %v1522_v31, %v12715_v54  ;;  %v9797_v46 = vpack.c.bf16 %v3031_v35, %v3029_v37  ;;  %v3744_v54 = vrot.slane %v9755_v53, 3  ;;  %v12721_v35 = vld [vmem:[#allocation11_spill] sm:$0xff] }
 0x287   : > { %2851 = vst.msk [vmem:[#allocation3 + $0x12a] sm:$0xff] %vm2607_vm6, %v2776_v48  ;;  %407 = vrot.lane.b32.xlu1 %v9394_v44, %s8051_s11  ;;  %v9804_v44 = vpack.c.bf16 %v9753_v19, %v9751_v16  ;;  %v3742_v48 = vrot.slane %v9753_v19, 3 }
 0x288   : > { %v9784_v36 = vpop.f32.mrf.mxu0  ;;  %v1690_v55 = vadd.f32 %v1652_v5, %v1560_v49  ;;  %v4046_v5 = vrot.slane %v9755_v53, 4  ;;  %12716 = vst [vmem:[#allocation45_spill] sm:$0xff] %v9797_v46  ;;  %v3438_v49 = vrot.slane %v9751_v16, 2  ;;  %v3439_v16 = vrot.slane %v9753_v19, 2 }
 0x289   : > { %12717 = vst [vmem:[#allocation46_spill] sm:$0xff] %v9804_v44  ;;  %v3743_v3 = vsel %vm3700_vm8, %v3741_v51, %v3742_v48  ;;  %v12723_v51 = vld [vmem:[#allocation10_spill] sm:$0xff] }
 0x28a   : > { %411 = vrot.lane.b32.xlu0 %v9391_v50, %s8051_s11  ;;  %v1654_v7 = vpop.f32.mrf.mxu3  ;;  %v1830_v6 = vadd.f32 %v9658_v30, %v1690_v55  ;;  %v2772_v50 = vpop.permute.xlu0 %2771  ;;  %v12719_v55 = vld [vmem:[#allocation48_spill] sm:$0xff]  ;;  %v3440_v19 = vsel %vm1261_vm4, %v3438_v49, %v3439_v16 }
 0x28b   : > { %2849 = vst.msk [vmem:[#allocation3 + $0x112] sm:$0xff] %vm2607_vm6, %v2772_v50  ;;  %v319_v50 = vld [vmem:[%s8138_s9 + $0xf0] sm:$0xff] }
 0x28c   : > { %403 = vrot.lane.b32.xlu2 %v9304_v0, %s8051_s11  ;;  %v9810_v30 = vadd.f32 %v9645_v2, %v1830_v6  ;;  %v4047_v0 = vsel %vm1028_vm0, %v4044_v60, %v4046_v5  ;;  %v3745_v60 = vsel %vm3700_vm8, %v3742_v48, %v3744_v54  ;;  %287 = vst.msk [vmem:[%s9843_s14 + $0xf0] sm:$0xff] %vm256_vm1, %v319_v50 }
 0x28d   : > { %v1524_v45 = vpop.f32.mrf.mxu2  ;;  %v9821_v2 = vpack.c.bf16 %v4047_v0, %v4045_v21  ;;  %v3441_v21 = vrot.slane %v9755_v53, 2  ;;  %v9838_v0 = vld [vmem:[#allocation3 + $0xe0] sm:$0xff] }
 0x28e   : > { %v9806_v4 = vpop.f32.mrf.mxu1  ;;  %v2782_v31 = vpop.permute.xlu2 %2781  ;;  %v1561_v37 = vadd.f32 %v1524_v45, %v12719_v55  ;;  %v9833_v45 = vpack.c.bf16 %v3745_v60, %v3743_v3  ;;  %v9840_v55 = vld [vmem:[#allocation3 + $0xe8] sm:$0xf]  ;;  %v3033_v60 = vrot.slane %v9838_v0, 1 }
 0x28f   : > { %12718 = vst [vmem:[#allocation8_spill] sm:$0xff] %v9806_v4  ;;  %7469 = vmatmul.msk.bf16.gmra.mxu3 %vm256_vm1, %v12721_v35  ;;  %413 = vrot.lane.b32.xlu1 %v319_v50, %s8051_s11  ;;  %v3442_v48 = vsel %vm1261_vm4, %v3439_v16, %v3441_v21  ;;  %v2774_v54 = vpop.permute.xlu1 %2773  ;;  %v3749_v18 = vrot.slane %v9840_v55, 3  ;;  %v12745_v4 = vld [vmem:[#allocation54_spill] sm:$0xff] }
 0x290   : > { %2854 = vst.msk [vmem:[#allocation3 + $0x152] sm:$0xff] %vm2607_vm6, %v2782_v31  ;;  %v9825_v6 = vpop.f32.mrf.mxu0  ;;  %v1691_v5 = vadd.f32 %v1654_v7, %v1561_v37  ;;  %v9836_v31 = vld [vmem:[#allocation3 + $0xd8] sm:$0xff]  ;;  %v9856_v35 = vpack.c.bf16 %v3442_v48, %v3440_v19 }
 0x291   : > { %12720 = vst [vmem:[#allocation7_spill] sm:$0xff] %v9821_v2  ;;  %v3032_v3 = vrot.slane %v9836_v31, 1 }
 0x292   : > { %7504 = vmatmul.msk.bf16.gmra.mxu1 %vm2607_vm6, %v9797_v46  ;;  %12722 = vst [vmem:[#allocation47_spill] sm:$0xff] %v9833_v45  ;;  %v1657_v7 = vpop.f32.mrf.mxu3  ;;  %v1831_v53 = vadd.f32 %v9704_v56, %v1691_v5  ;;  %v12727_v5 = vld [vmem:[#allocation50_spill] sm:$0xff]  ;;  %v320_v46 = vld [vmem:[%s8138_s9 + $0xf8] sm:$0xff] }
 0x293   : > { %7452 = vmatmul.msk.bf16.gmra.mxu2 %vm256_vm1, %v12723_v51  ;;  %7487 = vmatmul.msk.bf16.gmra.mxu0 %vm256_vm1, %v8404_v61  ;;  %12724 = vst [vmem:[#allocation48_spill] sm:$0xff] %v9856_v35  ;;  %v3035_v61 = vrot.slane %v9840_v55, 1  ;;  %v3034_v51 = vsel %vm849_vm3, %v3032_v3, %v3033_v60  ;;  %v10388_v35 = vld [vmem:[#allocation2 + $0x1a0] sm:$0xff] }
 0x294   : > { %409 = vrot.lane.b32.xlu2 %v9340_v59, %s8051_s11  ;;  %v2778_v37 = vpop.permute.xlu0 %2777  ;;  %2850 = vst.msk [vmem:[#allocation3 + $0x122] sm:$0xff] %vm2607_vm6, %v2774_v54  ;;  %v9865_v56 = vadd.f32 %v9694_v1, %v1831_v53  ;;  %v4048_v54 = vrot.slane %v9836_v31, 4 }
 0x295   : > { %v1527_v59 = vpop.f32.mrf.mxu2  ;;  %2852 = vst.msk [vmem:[#allocation3 + $0x13a] sm:$0xff] %vm2607_vm6, %v2778_v37  ;;  %v3036_v48 = vsel %vm849_vm3, %v3033_v60, %v3035_v61  ;;  %v4049_v37 = vrot.slane %v9838_v0, 4  ;;  %v4051_v60 = vrot.slane %v9840_v55, 4 }
 0x296   : > { %v9858_v49 = vpop.f32.mrf.mxu1  ;;  %12726 = vst [vmem:[#allocation10_spill] sm:$0xff] %v9865_v56  ;;  %v2788_v16 = vpop.permute.xlu2 %2787  ;;  %v1562_v50 = vadd.f32 %v1527_v59, %v12727_v5  ;;  %v9882_v59 = vpack.c.bf16 %v9838_v0, %v9836_v31 }
 0x297   : > { %12725 = vst [vmem:[#allocation11_spill] sm:$0xff] %v9858_v49  ;;  %v4050_v5 = vsel %vm1028_vm0, %v4048_v54, %v4049_v37  ;;  %v12734_v54 = vld [vmem:[#allocation13_spill] sm:$0xff] }
 0x298   : > { %2857 = vst.msk [vmem:[#allocation3 + $0x172] sm:$0xff] %vm2607_vm6, %v2788_v16  ;;  %v9870_v21 = vpop.f32.mrf.mxu0  ;;  %v1692_v19 = vadd.f32 %v1657_v7, %v1562_v50  ;;  %v9884_v16 = vpack.c.bf16 %v3036_v48, %v3034_v51  ;;  %v2780_v7 = vpop.permute.xlu1 %2779  ;;  %v3746_v50 = vrot.slane %v9836_v31, 3  ;;  %v4052_v48 = vsel %vm1028_vm0, %v4049_v37, %v4051_v60 }
 0x299   : > { %288 = vst.msk [vmem:[%s9843_s14 + $0xf8] sm:$0xff] %vm256_vm1, %v320_v46  ;;  %v3446_v60 = vrot.slane %v9840_v55, 2  ;;  %v225_v55 = vld [vmem:[%s8138_s9 + $0x8] sm:$0xff] }
 0x29a   : > { %v1659_v1 = vpop.f32.mrf.mxu3  ;;  %v1832_v53 = vadd.f32 %v9740_v9, %v1692_v19  ;;  %12728 = vst [vmem:[#allocation50_spill] sm:$0xff] %v9882_v59  ;;  %v3747_v19 = vrot.slane %v9838_v0, 3 }
 0x29b   : > { %12729 = vst [vmem:[#allocation82_spill] sm:$0xff] %v9884_v16 }
 0x29c   : > { %415 = vrot.lane.b32.xlu2 %v320_v46, %s8051_s11  ;;  %v2784_v3 = vpop.permute.xlu0 %2783  ;;  %2853 = vst.msk [vmem:[#allocation3 + $0x142] sm:$0xff] %vm2607_vm6, %v2780_v7  ;;  %v9892_v9 = vadd.f32 %v9726_v34, %v1832_v53  ;;  %v9902_v34 = vpack.c.bf16 %v4052_v48, %v4050_v5  ;;  %v3748_v53 = vsel %vm3700_vm8, %v3746_v50, %v3747_v19  ;;  %v9921_v48 = vld [vmem:[#allocation3 + $0x100] sm:$0xf]  ;;  %s7270_s11 = scalar_lea.hbm %s12412_s5, %s7925_s6 }
 0x29d   : > { %v1529_v51 = vpop.f32.mrf.mxu2  ;;  %2855 = vst.msk [vmem:[#allocation3 + $0x15a] sm:$0xff] %vm2607_vm6, %v2784_v3  ;;  %v3750_v37 = vsel %vm3700_vm8, %v3747_v19, %v3749_v18  ;;  %v3443_v3 = vrot.slane %v9836_v31, 2  ;;  %s7273_s15 = sshll.u32 %s7270_s11, 4  ;;  %s7274_s15 = int_to_ptr.hbm [resolvable:$true] %s7273_s15 }
 0x29e   : > { %v9888_v61 = vpop.f32.mrf.mxu1  ;;  %12731 = vst [vmem:[#allocation84_spill] sm:$0xff] %v9892_v9  ;;  %v2794_v46 = vpop.permute.xlu2 %2793  ;;  %v9915_v50 = vpack.c.bf16 %v3750_v37, %v3748_v53 }
 0x29f   : > { %12730 = vst [vmem:[#allocation83_spill] sm:$0xff] %v9888_v61  ;;  %v1563_v61 = vadd.f32 %v1529_v51, %v12732_v52  ;;  %7470 = vmatmul.msk.bf16.gmra.mxu3 %vm256_vm1, %v12734_v54  ;;  %v3444_v52 = vrot.slane %v9838_v0, 2  ;;  %v9917_v51 = vld [vmem:[#allocation3 + $0xf0] sm:$0xff]  ;;  %v12736_v0 = vld [vmem:[#allocation12_spill] sm:$0xff] }
 0x2a0   : > { %2860 = vst.msk [vmem:[#allocation3 + $0x19a] sm:$0xff] %vm2607_vm6, %v2794_v46  ;;  %v9907_v7 = vpop.f32.mrf.mxu0  ;;  %v9919_v46 = vld [vmem:[#allocation3 + $0xf8] sm:$0xff] }
 0x2a1   : > { %12733 = vst [vmem:[#allocation51_spill] sm:$0xff] %v9902_v34  ;;  %v1693_v5 = vadd.f32 %v1659_v1, %v1563_v61  ;;  %v3445_v54 = vsel %vm1261_vm4, %v3443_v3, %v3444_v52  ;;  %v3447_v18 = vsel %vm1261_vm4, %v3444_v52, %v3446_v60  ;;  %v2786_v19 = vpop.permute.xlu1 %2785  ;;  %v3037_v3 = vrot.slane %v9917_v51, 1 }
 0x2a2   : > { %7505 = vmatmul.msk.bf16.gmra.mxu1 %vm2607_vm6, %v9884_v16  ;;  %12735 = vst [vmem:[#allocation13_spill] sm:$0xff] %v9915_v50  ;;  %v2129_v31 = vpop.f32.mrf.mxu3  ;;  %v9931_v61 = vpack.c.bf16 %v3447_v18, %v3445_v54  ;;  %v3040_v52 = vrot.slane %v9921_v48, 1  ;;  %v12740_v54 = vld [vmem:[#allocation53_spill] sm:$0xff]  ;;  %v3752_v49 = vrot.slane %v9919_v46, 3 }
 0x2a3   : > { %7453 = vmatmul.msk.bf16.gmra.mxu2 %vm256_vm1, %v8455_v58  ;;  %7488 = vmatmul.msk.bf16.gmra.mxu0 %vm256_vm1, %v12736_v0  ;;  %v1833_v1 = vadd.f32 %v9784_v36, %v1693_v5  ;;  %258 = vst.msk [vmem:[%s9843_s14 + $0x8] sm:$0xff] %vm256_vm1, %v225_v55  ;;  %v3038_v58 = vrot.slane %v9919_v46, 1 }
 0x2a4   : > { %12737 = vst [vmem:[#allocation12_spill] sm:$0xff] %v9931_v61  ;;  %v2790_v53 = vpop.permute.xlu0 %2789 }
 0x2a5   : > { %2856 = vst.msk [vmem:[#allocation3 + $0x16a] sm:$0xff] %vm2607_vm6, %v2786_v19  ;;  %v9942_v36 = vadd.f32 %v9773_v22, %v1833_v1  ;;  %v1989_v60 = vpop.f32.mrf.mxu2  ;;  %v3039_v16 = vsel %vm849_vm3, %v3037_v3, %v3038_v58  ;;  %v3041_v19 = vsel %vm849_vm3, %v3038_v58, %v3040_v52  ;;  %v9955_v22 = vld [vmem:[%s12409_s2] ss:$0 sm:$0xff]  ;;  %v3751_v58 = vrot.slane %v9917_v51, 3 }
 0x2a6   : > { %v9935_v37 = vpop.f32.mrf.mxu1  ;;  %2858 = vst.msk [vmem:[#allocation3 + $0x182] sm:$0xff] %vm2607_vm6, %v2790_v53  ;;  %v356_v5 = vpop.permute.xlu2 %355  ;;  %v2069_v18 = vadd.f32 %v1989_v60, %v12740_v54  ;;  %v4053_v60 = vrot.slane %v9917_v51, 4  ;;  %v4056_v54 = vrot.slane %v9921_v48, 4 }
 0x2a7   : > { %12738 = vst [vmem:[#allocation85_spill] sm:$0xff] %v9935_v37  ;;  %v228_v37 = vld [vmem:[%s8138_s9 + $0x20] sm:$0xff] }
 0x2a8   : > { %12739 = vst [vmem:[#allocation86_spill] sm:$0xff] %v9942_v36  ;;  %v9948_v0 = vpop.f32.mrf.mxu0  ;;  %v2209_v55 = vadd.f32 %v2129_v31, %v2069_v18  ;;  %v9962_v31 = vpack.c.bf16 %v3041_v19, %v3039_v16 }
 0x2a9   : > { %451 = vst.msk [vmem:[%s9843_s14 + $0x8] sm:$0xff] %vm449_vm9, %v356_v5  ;;  %v4054_v5 = vrot.slane %v9919_v46, 4  ;;  %v2792_v3 = vpop.permute.xlu1 %2791 }
 0x2aa   : > { %v2346_v1 = vadd.f32 %v9825_v6, %v2209_v55  ;;  %v2131_v53 = vpop.f32.mrf.mxu3  ;;  %12741 = vst [vmem:[#allocation53_spill] sm:$0xff] %v9962_v31  ;;  %v9969_v6 = vpack.c.bf16 %v9919_v46, %v9917_v51 }
 0x2ab   : > { %261 = vst.msk [vmem:[%s9843_s14 + $0x20] sm:$0xff] %vm256_vm1, %v228_v37  ;;  %v4055_v16 = vsel %vm1028_vm0, %v4053_v60, %v4054_v5  ;;  %v4057_v19 = vsel %vm1028_vm0, %v4054_v5, %v4056_v54  ;;  %v12746_v60 = vld [vmem:[#allocation18_spill] sm:$0xff]  ;;  %v3753_v54 = vsel %vm3700_vm8, %v3751_v58, %v3752_v49 }
 0x2ac   : > { %v2796_v18 = vpop.permute.xlu0 %2795  ;;  %12742 = vst [vmem:[#allocation87_spill] sm:$0xff] %v9969_v6  ;;  %v2382_v55 = vadd.f32 %v9955_v22, %v2346_v1  ;;  %v9978_v61 = vpack.c.bf16 %v4057_v19, %v4055_v16  ;;  %v3754_v6 = vrot.slane %v9921_v48, 3  ;;  %v3448_v1 = vrot.slane %v9917_v51, 2  ;;  %v10001_v16 = vld [vmem:[#allocation3 + $0x110] sm:$0xff]  ;;  %v10003_v58 = vld [vmem:[#allocation3 + $0x118] sm:$0xf] }
 0x2ad   : > { %2859 = vst.msk [vmem:[#allocation3 + $0x18a] sm:$0xff] %vm2607_vm6, %v2792_v3  ;;  %v1991_v59 = vpop.f32.mrf.mxu2 }
 0x2ae   : > { %2861 = vst.msk [vmem:[#allocation3 + $0x1a2] sm:$0xff] %vm2607_vm6, %v2796_v18  ;;  %v362_v37 = vpop.permute.xlu2 %361  ;;  %v2414_v50 = vmax.f32 %v2382_v55, 0.0  ;;  %v3755_v3 = vsel %vm3700_vm8, %v3752_v49, %v3754_v6  ;;  %v3451_v18 = vrot.slane %v9921_v48, 2  ;;  %v9999_v55 = vld [vmem:[#allocation3 + $0x108] sm:$0xff]  ;;  %v226_v48 = vld [vmem:[%s8138_s9 + $0x10] sm:$0xff] }
 0x2af   : > { %v9971_v52 = vpop.f32.mrf.mxu1  ;;  %12744 = vst [vmem:[#allocation89_spill] sm:$0xff] %v9978_v61  ;;  %7471 = vmatmul.msk.bf16.gmra.mxu3 %vm256_vm1, %v12746_v60  ;;  %v9996_v51 = vpack.c.bf16 %v3755_v3, %v3753_v54  ;;  %v3042_v3 = vrot.slane %v9999_v55, 1 }
 0x2b0   : > { %12743 = vst [vmem:[#allocation88_spill] sm:$0xff] %v9971_v52  ;;  %v2070_v52 = vadd.f32 %v1991_v59, %v12745_v4  ;;  %v9988_v5 = vpop.f32.mrf.mxu0  ;;  %v3449_v4 = vrot.slane %v9919_v46, 2  ;;  %2478 = vrot.lane.b32.xlu0 %v2414_v50, %s8052_s10  ;;  %v12748_v46 = vld [vmem:[#allocation15_spill] sm:$0xff] }
 0x2b1   : > { %454 = vst.msk [vmem:[%s9843_s14 + $0x20] sm:$0xff] %vm449_vm9, %v362_v37 }
 0x2b2   : > { %7506 = vmatmul.msk.bf16.gmra.mxu1 %vm2607_vm6, %v9962_v31  ;;  %v2210_v59 = vadd.f32 %v2131_v53, %v2070_v52  ;;  %12747 = vst [vmem:[#allocation54_spill] sm:$0xff] %v9996_v51  ;;  %v3450_v49 = vsel %vm1261_vm4, %v3448_v1, %v3449_v4  ;;  %v2134_v50 = vpop.f32.mrf.mxu3  ;;  %v12749_v53 = vld [vmem:[#allocation14_spill] sm:$0xff]  ;;  %v231_v52 = vld [vmem:[%s8138_s9 + $0x38] sm:$0xff]  ;;  %v3452_v19 = vsel %vm1261_vm4, %v3449_v4, %v3451_v18  ;;  %v354_v1 = vpop.permute.xlu1 %353  ;;  %v224_v4 = vld [vmem:[%s8138_s9] sm:$0xff]  ;;  %v3757_v51 = vrot.slane %v10001_v16, 3 }
 0x2b3   : > { %7454 = vmatmul.msk.bf16.gmra.mxu2 %vm256_vm1, %v12748_v46  ;;  %7489 = vmatmul.msk.bf16.gmra.mxu0 %vm256_vm1, %v12749_v53  ;;  %259 = vst.msk [vmem:[%s9843_s14 + $0x10] sm:$0xff] %vm256_vm1, %v226_v48  ;;  %v3045_v46 = vrot.slane %v10003_v58, 1 }
 0x2b4   : > { %v2347_v6 = vadd.f32 %v9870_v21, %v2210_v59  ;;  %v358_v37 = vpop.permute.xlu0 %357  ;;  %v10016_v21 = vpack.c.bf16 %v3452_v19, %v3450_v49  ;;  %v3043_v59 = vrot.slane %v10001_v16, 1  ;;  %264 = vst.msk [vmem:[%s9843_s14 + $0x38] sm:$0xff] %vm256_vm1, %v231_v52  ;;  %v12752_v49 = vld [vmem:[#allocation55_spill] sm:$0xff] }
 0x2b5   : > { %452 = vst.msk [vmem:[%s9843_s14 + $0x10] sm:$0xff] %vm449_vm9, %v358_v37 }
 0x2b6   : > { %12750 = vst [vmem:[#allocation18_spill] sm:$0xff] %v10016_v21  ;;  %v2383_v54 = vadd.f32 %v9955_v22, %v2347_v6  ;;  %v1994_v18 = vpop.f32.mrf.mxu2  ;;  %v368_v53 = vpop.permute.xlu2 %367  ;;  %v3044_v37 = vsel %vm849_vm3, %v3042_v3, %v3043_v59 }
 0x2b7   : > { %v10018_v60 = vpop.f32.mrf.mxu1  ;;  %v2071_v48 = vadd.f32 %v1994_v18, %v12752_v49  ;;  %457 = vst.msk [vmem:[%s9843_s14 + $0x38] sm:$0xff] %vm449_vm9, %v368_v53  ;;  %v229_v18 = vld [vmem:[%s8138_s9 + $0x28] sm:$0xff]  ;;  %v234_v53 = vld [vmem:[%s8138_s9 + $0x50] sm:$0xff]  ;;  %v4058_v49 = vrot.slane %v9999_v55, 4 }
 0x2b8   : > { %12751 = vst [vmem:[#allocation15_spill] sm:$0xff] %v10018_v60  ;;  %v2415_v19 = vmax.f32 %v2383_v54, 0.0  ;;  %v10032_v6 = vpop.f32.mrf.mxu0  ;;  %v3046_v60 = vsel %vm849_vm3, %v3043_v59, %v3045_v46 }
 0x2b9   : > { %257 = vst.msk [vmem:[%s9843_s14] sm:$0xff] %vm256_vm1, %v224_v4  ;;  %v2211_v31 = vadd.f32 %v2134_v50, %v2071_v48  ;;  %v4059_v50 = vrot.slane %v10001_v16, 4  ;;  %v4061_v4 = vrot.slane %v10003_v58, 4  ;;  %v10047_v48 = vpack.c.bf16 %v3046_v60, %v3044_v37  ;;  %v227_v60 = vld [vmem:[%s8138_s9 + $0x18] sm:$0xff] }
 0x2ba   : > { %2480 = vrot.lane.b32.xlu1 %v2415_v19, %s8052_s10  ;;  %450 = vst.msk [vmem:[%s9843_s14] sm:$0xff] %vm449_vm9, %v354_v1  ;;  %v2136_v54 = vpop.f32.mrf.mxu3  ;;  %v360_v1 = vpop.permute.xlu1 %359 }
 0x2bb   : > { %v2348_v52 = vadd.f32 %v9907_v7, %v2211_v31  ;;  %12753 = vst [vmem:[#allocation14_spill] sm:$0xff] %v10047_v48  ;;  %v3756_v7 = vrot.slane %v9999_v55, 3  ;;  %v10054_v31 = vpack.c.bf16 %v10001_v16, %v9999_v55  ;;  %v4062_v21 = vsel %vm1028_vm0, %v4059_v50, %v4061_v4  ;;  %v10083_v4 = vld [vmem:[#allocation3 + $0x120] sm:$0xff] }
 0x2bc   : > { %v364_v3 = vpop.permute.xlu0 %363  ;;  %262 = vst.msk [vmem:[%s9843_s14 + $0x28] sm:$0xff] %vm256_vm1, %v229_v18  ;;  %v4060_v18 = vsel %vm1028_vm0, %v4058_v49, %v4059_v50 }
 0x2bd   : > { %12754 = vst [vmem:[#allocation55_spill] sm:$0xff] %v10054_v31  ;;  %v2384_v46 = vadd.f32 %v9955_v22, %v2348_v52  ;;  %v3759_v31 = vrot.slane %v10003_v58, 3  ;;  %v3758_v49 = vsel %vm3700_vm8, %v3756_v7, %v3757_v51 }
 0x2be   : > { %455 = vst.msk [vmem:[%s9843_s14 + $0x28] sm:$0xff] %vm449_vm9, %v364_v3  ;;  %v1996_v19 = vpop.f32.mrf.mxu2  ;;  %v374_v37 = vpop.permute.xlu2 %373  ;;  %v12757_v3 = vld [vmem:[#allocation24_spill] sm:$0xff] }
 0x2bf   : > { %v10056_v59 = vpop.f32.mrf.mxu1  ;;  %267 = vst.msk [vmem:[%s9843_s14 + $0x50] sm:$0xff] %vm256_vm1, %v234_v53  ;;  %v2416_v52 = vmax.f32 %v2384_v46, 0.0  ;;  %7472 = vmatmul.msk.bf16.gmra.mxu3 %vm256_vm1, %v12757_v3  ;;  %v10079_v53 = vpack.c.bf16 %v4062_v21, %v4060_v18  ;;  %v3453_v46 = vrot.slane %v9999_v55, 2  ;;  %v10090_v21 = vld [vmem:[#allocation3 + $0x128] sm:$0xff]  ;;  %v232_v55 = vld [vmem:[%s8138_s9 + $0x40] sm:$0xff]  ;;  %v3047_v18 = vrot.slane %v10083_v4, 1 }
 0x2c0   : > { %12755 = vst [vmem:[#allocation90_spill] sm:$0xff] %v10056_v59  ;;  %v12756_v59 = vld [vmem:[#allocation56_spill] sm:$0xff]  ;;  %v10073_v44 = vpop.f32.mrf.mxu0 }
 0x2c1   : > { %v2072_v61 = vadd.f32 %v1996_v19, %v12756_v59  ;;  %460 = vst.msk [vmem:[%s9843_s14 + $0x50] sm:$0xff] %vm449_vm9, %v374_v37  ;;  %2482 = vrot.lane.b32.xlu2 %v2416_v52, %s8052_s10  ;;  %v3760_v59 = vsel %vm3700_vm8, %v3757_v51, %v3759_v31  ;;  %v10092_v19 = vld [vmem:[#allocation3 + $0x130] sm:$0xf] }
 0x2c2   : > { %7507 = vmatmul.msk.bf16.gmra.mxu1 %vm2607_vm6, %v10047_v48  ;;  %260 = vst.msk [vmem:[%s9843_s14 + $0x18] sm:$0xff] %vm256_vm1, %v227_v60  ;;  %v3454_v60 = vrot.slane %v10001_v16, 2  ;;  %v10094_v7 = vpack.c.bf16 %v3760_v59, %v3758_v49  ;;  %v12760_v37 = vld [vmem:[#allocation21_spill] sm:$0xff]  ;;  %v2139_v51 = vpop.f32.mrf.mxu3  ;;  %v237_v16 = vld [vmem:[%s8138_s9 + $0x68] sm:$0xff]  ;;  %v3050_v59 = vrot.slane %v10092_v19, 1 }
 0x2c3   : > { %12758 = vst [vmem:[#allocation56_spill] sm:$0xff] %v10079_v53  ;;  %v2212_v50 = vadd.f32 %v2136_v54, %v2072_v61  ;;  %v3456_v61 = vrot.slane %v10003_v58, 2  ;;  %7455 = vmatmul.msk.bf16.gmra.mxu2 %vm256_vm1, %v12760_v37 }
 0x2c4   : > { %453 = vst.msk [vmem:[%s9843_s14 + $0x18] sm:$0xff] %vm449_vm9, %v360_v1  ;;  %v12761_v1 = vld [vmem:[#allocation19_spill] sm:$0xff]  ;;  %v3455_v31 = vsel %vm1261_vm4, %v3453_v46, %v3454_v60  ;;  %v370_v52 = vpop.permute.xlu0 %369 }
 0x2c5   : > { %12759 = vst [vmem:[#allocation24_spill] sm:$0xff] %v10094_v7  ;;  %v2349_v54 = vadd.f32 %v9948_v0, %v2212_v50  ;;  %7490 = vmatmul.msk.bf16.gmra.mxu0 %vm256_vm1, %v12761_v1  ;;  %v366_v0 = vpop.permute.xlu1 %365  ;;  %v3457_v58 = vsel %vm1261_vm4, %v3454_v60, %v3456_v61  ;;  %v3048_v50 = vrot.slane %v10090_v21, 1  ;;  %v230_v46 = vld [vmem:[%s8138_s9 + $0x30] sm:$0xff]  ;;  %v12764_v60 = vld [vmem:[#allocation57_spill] sm:$0xff] }
 0x2c6   : > { %265 = vst.msk [vmem:[%s9843_s14 + $0x40] sm:$0xff] %vm256_vm1, %v232_v55  ;;  %v10117_v37 = vpack.c.bf16 %v3457_v58, %v3455_v31  ;;  %v1999_v1 = vpop.f32.mrf.mxu2  ;;  %v380_v55 = vpop.permute.xlu2 %379 }
 0x2c7   : > { %v10109_v3 = vpop.f32.mrf.mxu1  ;;  %v2385_v49 = vadd.f32 %v9955_v22, %v2349_v54  ;;  %458 = vst.msk [vmem:[%s9843_s14 + $0x40] sm:$0xff] %vm449_vm9, %v370_v52  ;;  %v2073_v61 = vadd.f32 %v1999_v1, %v12764_v60  ;;  %v3049_v31 = vsel %vm849_vm3, %v3047_v18, %v3048_v50  ;;  %v3051_v58 = vsel %vm849_vm3, %v3048_v50, %v3050_v59  ;;  %v235_v1 = vld [vmem:[%s8138_s9 + $0x58] sm:$0xff] }
 0x2c8   : > { %12762 = vst [vmem:[#allocation21_spill] sm:$0xff] %v10109_v3  ;;  %v10124_v54 = vpop.f32.mrf.mxu0  ;;  %v4063_v60 = vrot.slane %v10083_v4, 4  ;;  %v10146_v50 = vpack.c.bf16 %v10090_v21, %v10083_v4 }
 0x2c9   : > { %12763 = vst [vmem:[#allocation19_spill] sm:$0xff] %v10117_v37  ;;  %v2417_v48 = vmax.f32 %v2385_v49, 0.0  ;;  %v2213_v52 = vadd.f32 %v2139_v51, %v2073_v61  ;;  %v4064_v51 = vrot.slane %v10090_v21, 4  ;;  %v3762_v37 = vrot.slane %v10090_v21, 3 }
 0x2ca   : > { %270 = vst.msk [vmem:[%s9843_s14 + $0x68] sm:$0xff] %vm256_vm1, %v237_v16  ;;  %v2141_v49 = vpop.f32.mrf.mxu3 }
 0x2cb   : > { %463 = vst.msk [vmem:[%s9843_s14 + $0x68] sm:$0xff] %vm449_vm9, %v380_v55  ;;  %2484 = vrot.lane.b32.xlu0 %v2417_v48, %s8052_s10  ;;  %v2350_v16 = vadd.f32 %v9988_v5, %v2213_v52  ;;  %v240_v55 = vld [vmem:[%s8138_s9 + $0x80] sm:$0xff]  ;;  %v4066_v48 = vrot.slane %v10092_v19, 4  ;;  %v3761_v5 = vrot.slane %v10083_v4, 3  ;;  %v233_v52 = vld [vmem:[%s8138_s9 + $0x48] sm:$0xff] }
 0x2cc   : > { %263 = vst.msk [vmem:[%s9843_s14 + $0x30] sm:$0xff] %vm256_vm1, %v230_v46  ;;  %v10139_v46 = vpack.c.bf16 %v3051_v58, %v3049_v31  ;;  %v376_v18 = vpop.permute.xlu0 %375 }
 0x2cd   : > { %456 = vst.msk [vmem:[%s9843_s14 + $0x30] sm:$0xff] %vm449_vm9, %v366_v0  ;;  %v372_v0 = vpop.permute.xlu1 %371  ;;  %v2386_v61 = vadd.f32 %v9955_v22, %v2350_v16  ;;  %v4067_v3 = vsel %vm1028_vm0, %v4064_v51, %v4066_v48  ;;  %v10175_v48 = vld [vmem:[#allocation3 + $0x138] sm:$0xff] }
 0x2ce   : > { %12765 = vst [vmem:[#allocation57_spill] sm:$0xff] %v10139_v46  ;;  %v2001_v31 = vpop.f32.mrf.mxu2  ;;  %v386_v58 = vpop.permute.xlu2 %385 }
 0x2cf   : > { %268 = vst.msk [vmem:[%s9843_s14 + $0x58] sm:$0xff] %vm256_vm1, %v235_v1  ;;  %v10148_v59 = vpop.f32.mrf.mxu1  ;;  %v4065_v1 = vsel %vm1028_vm0, %v4063_v60, %v4064_v51  ;;  %v2418_v16 = vmax.f32 %v2386_v61, 0.0  ;;  %v3763_v60 = vsel %vm3700_vm8, %v3761_v5, %v3762_v37  ;;  %v3458_v61 = vrot.slane %v10083_v4, 2  ;;  %v238_v4 = vld [vmem:[%s8138_s9 + $0x70] sm:$0xff] }
 0x2d0   : > { %12766 = vst [vmem:[#allocation91_spill] sm:$0xff] %v10146_v50  ;;  %v3764_v50 = vrot.slane %v10092_v19, 3  ;;  %v10165_v53 = vpop.f32.mrf.mxu0 }
 0x2d1   : > { %12767 = vst [vmem:[#allocation92_spill] sm:$0xff] %v10148_v59  ;;  %v12768_v59 = vld [vmem:[#allocation58_spill] sm:$0xff]  ;;  %2486 = vrot.lane.b32.xlu1 %v2418_v16, %s8052_s10 }
 0x2d2   : > { %461 = vst.msk [vmem:[%s9843_s14 + $0x58] sm:$0xff] %vm449_vm9, %v376_v18  ;;  %v2074_v7 = vadd.f32 %v2001_v31, %v12768_v59  ;;  %v12769_v18 = vld [vmem:[#allocation29_spill] sm:$0xff]  ;;  %7508 = vmatmul.msk.bf16.gmra.mxu1 %vm2607_vm6, %v10139_v46  ;;  %v3765_v59 = vsel %vm3700_vm8, %v3762_v37, %v3764_v50  ;;  %v10184_v31 = vld [vmem:[#allocation3 + $0x148] sm:$0xf]  ;;  %v2144_v37 = vpop.f32.mrf.mxu3 }
 0x2d3   : > { %273 = vst.msk [vmem:[%s9843_s14 + $0x80] sm:$0xff] %vm256_vm1, %v240_v55  ;;  %7473 = vmatmul.msk.bf16.gmra.mxu3 %vm256_vm1, %v12769_v18  ;;  %v10171_v55 = vpack.c.bf16 %v4067_v3, %v4065_v1  ;;  %v10182_v3 = vld [vmem:[#allocation3 + $0x140] sm:$0xff]  ;;  %v10186_v5 = vpack.c.bf16 %v3765_v59, %v3763_v60  ;;  %v3052_v1 = vrot.slane %v10175_v48, 1  ;;  %v3055_v59 = vrot.slane %v10184_v31, 1 }
 0x2d4   : > { %466 = vst.msk [vmem:[%s9843_s14 + $0x80] sm:$0xff] %vm449_vm9, %v386_v58  ;;  %v2214_v51 = vadd.f32 %v2141_v49, %v2074_v7  ;;  %v3461_v7 = vrot.slane %v10092_v19, 2  ;;  %v12772_v58 = vld [vmem:[#allocation28_spill] sm:$0xff]  ;;  %v382_v16 = vpop.permute.xlu0 %381 }
 0x2d5   : > { %266 = vst.msk [vmem:[%s9843_s14 + $0x48] sm:$0xff] %vm256_vm1, %v233_v52  ;;  %v3459_v52 = vrot.slane %v10090_v21, 2  ;;  %7456 = vmatmul.msk.bf16.gmra.mxu2 %vm256_vm1, %v12772_v58  ;;  %v243_v21 = vld [vmem:[%s8138_s9 + $0x98] sm:$0xff] }
 0x2d6   : > { %12770 = vst [vmem:[#allocation58_spill] sm:$0xff] %v10171_v55  ;;  %v2351_v49 = vadd.f32 %v10032_v6, %v2214_v51  ;;  %v378_v6 = vpop.permute.xlu1 %377  ;;  %v3053_v51 = vrot.slane %v10182_v3, 1 }
 0x2d7   : > { %459 = vst.msk [vmem:[%s9843_s14 + $0x48] sm:$0xff] %vm449_vm9, %v372_v0  ;;  %v12773_v0 = vld [vmem:[#allocation25_spill] sm:$0xff]  ;;  %v3460_v50 = vsel %vm1261_vm4, %v3458_v61, %v3459_v52  ;;  %v3462_v19 = vsel %vm1261_vm4, %v3459_v52, %v3461_v7  ;;  %v10201_v18 = vpop.f32.mrf.mxu1  ;;  %v12776_v52 = vld [vmem:[#allocation59_spill] sm:$0xff] }
 0x2d8   : > { %12771 = vst [vmem:[#allocation29_spill] sm:$0xff] %v10186_v5  ;;  %7491 = vmatmul.msk.bf16.gmra.mxu0 %vm256_vm1, %v12773_v0  ;;  %v2387_v60 = vadd.f32 %v9955_v22, %v2351_v49  ;;  %v236_v61 = vld [vmem:[%s8138_s9 + $0x60] sm:$0xff]  ;;  %v10209_v58 = vpack.c.bf16 %v3462_v19, %v3460_v50  ;;  %v2004_v0 = vpop.f32.mrf.mxu2  ;;  %v10216_v49 = vpop.f32.mrf.mxu0  ;;  %v3054_v50 = vsel %vm849_vm3, %v3052_v1, %v3053_v51 }
 0x2d9   : > { %271 = vst.msk [vmem:[%s9843_s14 + $0x70] sm:$0xff] %vm256_vm1, %v238_v4  ;;  %v392_v4 = vpop.permute.xlu2 %391  ;;  %v2075_v7 = vadd.f32 %v2004_v0, %v12776_v52  ;;  %v3056_v19 = vsel %vm849_vm3, %v3053_v51, %v3055_v59  ;;  %v241_v0 = vld [vmem:[%s8138_s9 + $0x88] sm:$0xff]  ;;  %v4068_v52 = vrot.slane %v10175_v48, 4 }
 0x2da   : > { %12774 = vst [vmem:[#allocation28_spill] sm:$0xff] %v10201_v18  ;;  %v2419_v46 = vmax.f32 %v2387_v60, 0.0  ;;  %v2146_v60 = vpop.f32.mrf.mxu3 }
 0x2db   : > { %464 = vst.msk [vmem:[%s9843_s14 + $0x70] sm:$0xff] %vm449_vm9, %v382_v16  ;;  %v2215_v16 = vadd.f32 %v2144_v37, %v2075_v7  ;;  %v4069_v37 = vrot.slane %v10182_v3, 4  ;;  %v239_v7 = vld [vmem:[%s8138_s9 + $0x78] sm:$0xff] }
 0x2dc   : > { %12775 = vst [vmem:[#allocation25_spill] sm:$0xff] %v10209_v58  ;;  %2488 = vrot.lane.b32.xlu2 %v2419_v46, %s8052_s10  ;;  %v4071_v46 = vrot.slane %v10184_v31, 4  ;;  %v388_v1 = vpop.permute.xlu0 %387 }
 0x2dd   : > { %276 = vst.msk [vmem:[%s9843_s14 + $0x98] sm:$0xff] %vm256_vm1, %v243_v21  ;;  %v2352_v21 = vadd.f32 %v10073_v44, %v2215_v16  ;;  %v10237_v44 = vpack.c.bf16 %v10182_v3, %v10175_v48  ;;  %v3766_v16 = vrot.slane %v10175_v48, 3 }
 0x2de   : > { %469 = vst.msk [vmem:[%s9843_s14 + $0x98] sm:$0xff] %vm449_vm9, %v392_v4  ;;  %v246_v4 = vld [vmem:[%s8138_s9 + $0xb0] sm:$0xff]  ;;  %v4072_v18 = vsel %vm1028_vm0, %v4069_v37, %v4071_v46 }
 0x2df   : > { %269 = vst.msk [vmem:[%s9843_s14 + $0x60] sm:$0xff] %vm256_vm1, %v236_v61  ;;  %v10231_v61 = vpack.c.bf16 %v3056_v19, %v3054_v50  ;;  %v10239_v51 = vpop.f32.mrf.mxu1  ;;  %v2388_v59 = vadd.f32 %v9955_v22, %v2352_v21 }
 0x2e0   : > { %462 = vst.msk [vmem:[%s9843_s14 + $0x60] sm:$0xff] %vm449_vm9, %v378_v6  ;;  %v384_v6 = vpop.permute.xlu1 %383  ;;  %v2006_v50 = vpop.f32.mrf.mxu2 }
 0x2e1   : > { %12777 = vst [vmem:[#allocation59_spill] sm:$0xff] %v10231_v61  ;;  %v398_v19 = vpop.permute.xlu2 %397  ;;  %v2420_v21 = vmax.f32 %v2388_v59, 0.0  ;;  %v10256_v5 = vpop.f32.mrf.mxu0  ;;  %v10271_v59 = vld [vmem:[#allocation3 + $0x158] sm:$0xff] }
 0x2e2   : > { %274 = vst.msk [vmem:[%s9843_s14 + $0x88] sm:$0xff] %vm256_vm1, %v241_v0  ;;  %v4070_v0 = vsel %vm1028_vm0, %v4068_v52, %v4069_v37  ;;  %7509 = vmatmul.msk.bf16.gmra.mxu1 %vm2607_vm6, %v10231_v61  ;;  %v10263_v52 = vld [vmem:[#allocation3 + $0x150] sm:$0xff] }
 0x2e3   : > { %12778 = vst [vmem:[#allocation93_spill] sm:$0xff] %v10237_v44  ;;  %v3767_v44 = vrot.slane %v10182_v3, 3  ;;  %2490 = vrot.lane.b32.xlu0 %v2420_v21, %s8052_s10  ;;  %v10267_v37 = vpack.c.bf16 %v4072_v18, %v4070_v0  ;;  %v2149_v18 = vpop.f32.mrf.mxu3  ;;  %v249_v0 = vld [vmem:[%s8138_s9 + $0xc8] sm:$0xff] }
 0x2e4   : > { %12779 = vst [vmem:[#allocation94_spill] sm:$0xff] %v10239_v51  ;;  %v12780_v51 = vld [vmem:[#allocation60_spill] sm:$0xff] }
 0x2e5   : > { %467 = vst.msk [vmem:[%s9843_s14 + $0x88] sm:$0xff] %vm449_vm9, %v388_v1  ;;  %v2076_v58 = vadd.f32 %v2006_v50, %v12780_v51  ;;  %v12781_v1 = vld [vmem:[#allocation36_spill] sm:$0xff]  ;;  %v3768_v46 = vsel %vm3700_vm8, %v3766_v16, %v3767_v44  ;;  %v3769_v51 = vrot.slane %v10184_v31, 3  ;;  %v10273_v50 = vld [vmem:[#allocation3 + $0x160] sm:$0xf]  ;;  %v244_v16 = vld [vmem:[%s8138_s9 + $0xa0] sm:$0xff] }
 0x2e6   : > { %279 = vst.msk [vmem:[%s9843_s14 + $0xb0] sm:$0xff] %vm256_vm1, %v246_v4  ;;  %7474 = vmatmul.msk.bf16.gmra.mxu3 %vm256_vm1, %v12781_v1  ;;  %v3466_v1 = vrot.slane %v10184_v31, 2  ;;  %v3060_v31 = vrot.slane %v10273_v50, 1 }
 0x2e7   : > { %472 = vst.msk [vmem:[%s9843_s14 + $0xb0] sm:$0xff] %vm449_vm9, %v398_v19  ;;  %v2216_v4 = vadd.f32 %v2146_v60, %v2076_v58  ;;  %v3463_v58 = vrot.slane %v10175_v48, 2  ;;  %v3464_v60 = vrot.slane %v10182_v3, 2  ;;  %v12783_v19 = vld [vmem:[#allocation33_spill] sm:$0xff]  ;;  %v3770_v21 = vsel %vm3700_vm8, %v3767_v44, %v3769_v51  ;;  %v394_v3 = vpop.permute.xlu0 %393  ;;  %v242_v51 = vld [vmem:[%s8138_s9 + $0x90] sm:$0xff] }
 0x2e8   : > { %272 = vst.msk [vmem:[%s9843_s14 + $0x78] sm:$0xff] %vm256_vm1, %v239_v7  ;;  %7457 = vmatmul.msk.bf16.gmra.mxu2 %vm256_vm1, %v12783_v19  ;;  %v3057_v48 = vrot.slane %v10263_v52, 1  ;;  %v3058_v44 = vrot.slane %v10271_v59, 1 }
 0x2e9   : > { %465 = vst.msk [vmem:[%s9843_s14 + $0x78] sm:$0xff] %vm449_vm9, %v384_v6  ;;  %v2353_v7 = vadd.f32 %v10124_v54, %v2216_v4  ;;  %v12784_v6 = vld [vmem:[#allocation31_spill] sm:$0xff]  ;;  %v390_v54 = vpop.permute.xlu1 %389  ;;  %v10289_v4 = vpack.c.bf16 %v3770_v21, %v3768_v46  ;;  %v3465_v19 = vsel %vm1261_vm4, %v3463_v58, %v3464_v60  ;;  %v404_v46 = vpop.permute.xlu2 %403  ;;  %v12788_v21 = vld [vmem:[#allocation61_spill] sm:$0xff] }
 0x2ea   : > { %12782 = vst [vmem:[#allocation60_spill] sm:$0xff] %v10267_v37  ;;  %7492 = vmatmul.msk.bf16.gmra.mxu0 %vm256_vm1, %v12784_v6  ;;  %v10292_v6 = vpop.f32.mrf.mxu1  ;;  %v2009_v37 = vpop.f32.mrf.mxu2 }
 0x2eb   : > { %277 = vst.msk [vmem:[%s9843_s14 + $0xa0] sm:$0xff] %vm256_vm1, %v244_v16  ;;  %v2389_v61 = vadd.f32 %v9955_v22, %v2353_v7  ;;  %v3467_v16 = vsel %vm1261_vm4, %v3464_v60, %v3466_v1  ;;  %v2077_v7 = vadd.f32 %v2009_v37, %v12788_v21  ;;  %v3059_v60 = vsel %vm849_vm3, %v3057_v48, %v3058_v44  ;;  %v2151_v37 = vpop.f32.mrf.mxu3  ;;  %v247_v1 = vld [vmem:[%s8138_s9 + $0xb8] sm:$0xff] }
 0x2ec   : > { %12785 = vst [vmem:[#allocation36_spill] sm:$0xff] %v10289_v4  ;;  %v10303_v58 = vpack.c.bf16 %v3467_v16, %v3465_v19  ;;  %v10308_v4 = vpop.f32.mrf.mxu0  ;;  %v252_v19 = vld [vmem:[%s8138_s9 + $0xe0] sm:$0xff]  ;;  %v4073_v16 = vrot.slane %v10263_v52, 4 }
 0x2ed   : > { %12786 = vst [vmem:[#allocation33_spill] sm:$0xff] %v10292_v6  ;;  %v2421_v6 = vmax.f32 %v2389_v61, 0.0 }
 0x2ee   : > { %470 = vst.msk [vmem:[%s9843_s14 + $0xa0] sm:$0xff] %vm449_vm9, %v394_v3  ;;  %v2217_v3 = vadd.f32 %v2149_v18, %v2077_v7  ;;  %v4074_v18 = vrot.slane %v10271_v59, 4 }
 0x2ef   : > { %282 = vst.msk [vmem:[%s9843_s14 + $0xc8] sm:$0xff] %vm256_vm1, %v249_v0  ;;  %2492 = vrot.lane.b32.xlu1 %v2421_v6, %s8052_s10  ;;  %v3061_v0 = vsel %vm849_vm3, %v3058_v44, %v3060_v31  ;;  %v4076_v6 = vrot.slane %v10273_v50, 4  ;;  %v400_v48 = vpop.permute.xlu0 %399  ;;  %v245_v31 = vld [vmem:[%s8138_s9 + $0xa8] sm:$0xff] }
 0x2f0   : > { %12787 = vst [vmem:[#allocation31_spill] sm:$0xff] %v10303_v58  ;;  %v2354_v61 = vadd.f32 %v10165_v53, %v2217_v3  ;;  %v10338_v58 = vld [vmem:[#allocation3 + $0x168] sm:$0xff] }
 0x2f1   : > { %475 = vst.msk [vmem:[%s9843_s14 + $0xc8] sm:$0xff] %vm449_vm9, %v404_v46  ;;  %v396_v44 = vpop.permute.xlu1 %395  ;;  %v4075_v46 = vsel %vm1028_vm0, %v4073_v16, %v4074_v18  ;;  %v410_v7 = vpop.permute.xlu2 %409  ;;  %v4077_v3 = vsel %vm1028_vm0, %v4074_v18, %v4076_v6 }
 0x2f2   : > { %275 = vst.msk [vmem:[%s9843_s14 + $0x90] sm:$0xff] %vm256_vm1, %v242_v51  ;;  %v10323_v51 = vpack.c.bf16 %v3061_v0, %v3059_v60  ;;  %v2390_v53 = vadd.f32 %v9955_v22, %v2354_v61  ;;  %v2011_v21 = vpop.f32.mrf.mxu2  ;;  %v12791_v60 = vld [vmem:[#allocation62_spill] sm:$0xff]  ;;  %v3771_v61 = vrot.slane %v10263_v52, 3  ;;  %v10356_v6 = vpack.c.bf16 %v4077_v3, %v4075_v46  ;;  %v250_v46 = vld [vmem:[%s8138_s9 + $0xd0] sm:$0xff]  ;;  %v248_v3 = vld [vmem:[%s8138_s9 + $0xc0] sm:$0xff] }
 0x2f3   : > { %468 = vst.msk [vmem:[%s9843_s14 + $0x90] sm:$0xff] %vm449_vm9, %v390_v54  ;;  %v10327_v54 = vpop.f32.mrf.mxu1  ;;  %v2078_v0 = vadd.f32 %v2011_v21, %v12791_v60  ;;  %v10359_v21 = vld [vmem:[#allocation3 + $0x178] sm:$0xf]  ;;  %v3774_v60 = vrot.slane %v10273_v50, 3 }
 0x2f4   : > { %12789 = vst [vmem:[#allocation61_spill] sm:$0xff] %v10323_v51  ;;  %v10345_v16 = vpop.f32.mrf.mxu0  ;;  %7510 = vmatmul.msk.bf16.gmra.mxu1 %vm2607_vm6, %v10323_v51  ;;  %v12794_v51 = vld [vmem:[#allocation37_spill] sm:$0xff]  ;;  %v3065_v34 = vrot.slane %v10359_v21, 1 }
 0x2f5   : > { %280 = vst.msk [vmem:[%s9843_s14 + $0xb8] sm:$0xff] %vm256_vm1, %v247_v1  ;;  %v2422_v1 = vmax.f32 %v2390_v53, 0.0  ;;  %v2218_v18 = vadd.f32 %v2151_v37, %v2078_v0  ;;  %v3772_v53 = vrot.slane %v10271_v59, 3  ;;  %v2154_v37 = vpop.f32.mrf.mxu3 }
 0x2f6   : > { %12790 = vst [vmem:[#allocation95_spill] sm:$0xff] %v10327_v54 }
 0x2f7   : > { %473 = vst.msk [vmem:[%s9843_s14 + $0xb8] sm:$0xff] %vm449_vm9, %v400_v48  ;;  %v12792_v48 = vld [vmem:[#allocation38_spill] sm:$0xff]  ;;  %2494 = vrot.lane.b32.xlu2 %v2422_v1, %s8052_s10  ;;  %v3773_v0 = vsel %vm3700_vm8, %v3771_v61, %v3772_v53  ;;  %v3468_v1 = vrot.slane %v10263_v52, 2  ;;  %v406_v54 = vpop.permute.xlu0 %405 }
 0x2f8   : > { %285 = vst.msk [vmem:[%s9843_s14 + $0xe0] sm:$0xff] %vm256_vm1, %v252_v19  ;;  %7475 = vmatmul.msk.bf16.gmra.mxu3 %vm256_vm1, %v12792_v48  ;;  %v10349_v19 = vld [vmem:[#allocation3 + $0x170] sm:$0xff]  ;;  %v2355_v48 = vadd.f32 %v10216_v49, %v2218_v18  ;;  %7458 = vmatmul.msk.bf16.gmra.mxu2 %vm256_vm1, %v12794_v51  ;;  %v3775_v51 = vsel %vm3700_vm8, %v3772_v53, %v3774_v60  ;;  %v3469_v18 = vrot.slane %v10271_v59, 2  ;;  %v10390_v53 = vld [vmem:[#allocation2 + $0x1a8] sm:$0x3] }
 0x2f9   : > { %478 = vst.msk [vmem:[%s9843_s14 + $0xe0] sm:$0xff] %vm449_vm9, %v410_v7  ;;  %v3062_v7 = vrot.slane %v10338_v58, 1  ;;  %v402_v49 = vpop.permute.xlu1 %401 }
 0x2fa   : > { %278 = vst.msk [vmem:[%s9843_s14 + $0xa8] sm:$0xff] %vm256_vm1, %v245_v31  ;;  %v12795_v31 = vld [vmem:[#allocation63_spill] sm:$0xff]  ;;  %v2391_v61 = vadd.f32 %v9955_v22, %v2355_v48  ;;  %v3470_v60 = vsel %vm1261_vm4, %v3468_v1, %v3469_v18 }
 0x2fb   : > { %471 = vst.msk [vmem:[%s9843_s14 + $0xa8] sm:$0xff] %vm449_vm9, %v396_v44  ;;  %7493 = vmatmul.msk.bf16.gmra.mxu0 %vm256_vm1, %v12795_v31  ;;  %v3063_v44 = vrot.slane %v10349_v19, 1  ;;  %v3471_v31 = vrot.slane %v10273_v50, 2  ;;  %v10382_v55 = vpop.f32.mrf.mxu1  ;;  %v10394_v50 = vpack.c.bf16 %v3775_v51, %v3773_v0  ;;  %v2242_v0 = vrot.slane %v10388_v35, 2 }
 0x2fc   : > { %12793 = vst [vmem:[#allocation62_spill] sm:$0xff] %v10356_v6  ;;  %v10380_v6 = vpack.c.bf16 %v10271_v59, %v10263_v52  ;;  %v2014_v52 = vpop.f32.mrf.mxu2  ;;  %v416_v59 = vpop.permute.xlu2 %415  ;;  %v2423_v36 = vmax.f32 %v2391_v61, 0.0  ;;  %v253_v61 = vld [vmem:[%s8138_s9 + $0xe8] sm:$0xff] }
 0x2fd   : > { %283 = vst.msk [vmem:[%s9843_s14 + $0xd0] sm:$0xff] %vm256_vm1, %v250_v46  ;;  %v10386_v46 = vld [vmem:[#allocation2 + $0x198] sm:$0xff]  ;;  %v3472_v48 = vsel %vm1261_vm4, %v3469_v18, %v3471_v31  ;;  %v10405_v45 = vpop.f32.mrf.mxu0  ;;  %v3066_v51 = vsel %vm849_vm3, %v3063_v44, %v3065_v34  ;;  %v2156_v31 = vpop.f32.mrf.mxu3 }
 0x2fe   : > { %12796 = vst [vmem:[#allocation38_spill] sm:$0xff] %v10380_v6  ;;  %v10403_v9 = vpack.c.bf16 %v3472_v48, %v3470_v60  ;;  %2496 = vrot.lane.b32.xlu0 %v2423_v36, %s8052_s10 }
 0x2ff   : > { %12797 = vst [vmem:[#allocation37_spill] sm:$0xff] %v10382_v55  ;;  %v12799_v55 = vld [vmem:[#allocation64_spill] sm:$0xff] }
 0x300   : > { %476 = vst.msk [vmem:[%s9843_s14 + $0xd0] sm:$0xff] %vm449_vm9, %v406_v54  ;;  %v2079_v6 = vadd.f32 %v2014_v52, %v12799_v55  ;;  %v2241_v54 = vrot.slane %v10386_v46, 2  ;;  %v3064_v55 = vsel %vm849_vm3, %v3062_v7, %v3063_v44  ;;  %v4078_v52 = vrot.slane %v10338_v58, 4  ;;  %v412_v7 = vpop.permute.xlu0 %411 }
 0x301   : > { %12798 = vst [vmem:[#allocation63_spill] sm:$0xff] %v10394_v50  ;;  %v10419_v60 = vpack.c.bf16 %v3066_v51, %v3064_v55  ;;  %v408_v34 = vpop.permute.xlu1 %407  ;;  %v3776_v51 = vrot.slane %v10338_v58, 3 }
 0x302   : > { %281 = vst.msk [vmem:[%s9843_s14 + $0xc0] sm:$0xff] %vm256_vm1, %v248_v3  ;;  %v2244_v3 = vrot.slane %v10390_v53, 2  ;;  %v2219_v1 = vadd.f32 %v2154_v37, %v2079_v6  ;;  %v2243_v6 = vsel %vm1261_vm4, %v2241_v54, %v2242_v0  ;;  %v251_v37 = vld [vmem:[%s8138_s9 + $0xd8] sm:$0xff]  ;;  %v4081_v54 = vrot.slane %v10359_v21, 4  ;;  %s7998_s9 = sshra.s32 %s7274_s15, 4  ;;  %s7999_s9 = int_to_ptr.hbm [resolvable:$true] %s7998_s9 }
 0x303   : > { %481 = vst.msk [vmem:[%s9843_s14 + $0xf8] sm:$0xff] %vm449_vm9, %v416_v59  ;;  %v4079_v59 = vrot.slane %v10349_v19, 4  ;;  %s8000_s17 = scalar_lea.hbm %s7999_s9, 256  ;;  %p8005_p0 = scmp.lt.s32.totalorder %s7999_s9, %s12412_s5 }
 0x304   : > { %12800 = vst [vmem:[#allocation64_spill] sm:$0xff] %v10403_v9  ;;  %v2356_v18 = vadd.f32 %v10256_v5, %v2219_v1  ;;  %v2245_v36 = vsel %vm1261_vm4, %v2242_v0, %v2244_v3  ;;  %v10426_v5 = vpop.f32.mrf.mxu1  ;;  %v2016_v48 = vpop.f32.mrf.mxu2  ;;  %v12803_v1 = vld [vmem:[#allocation66_spill] sm:$0xff]  ;;  %7511 = vmatmul.msk.bf16.gmra.mxu1 %vm2607_vm6, %v10419_v60  ;;  %p8001_p11 = scmp.ne.s32.totalorder %s7999_s9, %s8000_s17  ;;  %p8006_p1 = scmp.lt.s32.totalorder %s8004_s25, %s8000_s17 }
 0x305   : > { %474 = vst.msk [vmem:[%s9843_s14 + $0xc0] sm:$0xff] %vm449_vm9, %v402_v49  ;;  %v4080_v49 = vsel %vm1028_vm0, %v4078_v52, %v4079_v59  ;;  %v2080_v0 = vadd.f32 %v2016_v48, %v12803_v1  ;;  %v2248_v55 = vpack.c.bf16 %v2245_v36, %v2243_v6  ;;  %v3777_v6 = vrot.slane %v10349_v19, 3 }
 0x306   : > { %12801 = vst [vmem:[#allocation96_spill] sm:$0xff] %v10419_v60  ;;  %v2392_v44 = vadd.f32 %v9955_v22, %v2356_v18  ;;  %v10441_v18 = vpop.f32.mrf.mxu0  ;;  %v2105_v36 = vrot.slane %v10388_v35, 1  ;;  %p8002_p12 = pnand %p8001_p11, %p8123_p5  ;;  %p8007_p2 = por %p8006_p1, %p8005_p0 }
 0x307   : > { %286 = vst.msk [vmem:[%s9843_s14 + $0xe8] sm:$0xff] %vm256_vm1, %v253_v61  ;;  %v12804_v61 = vld [vmem:[#allocation65_spill] sm:$0xff]  ;;  %v2220_v52 = vadd.f32 %v2156_v31, %v2080_v0  ;;  %v12806_v0 = vld [vmem:[#allocation67_spill] sm:$0xff] }
 0x308   : > { %12802 = vst [vmem:[#allocation97_spill] sm:$0xff] %v10426_v5  ;;  %v2424_v3 = vmax.f32 %v2392_v44, 0.0  ;;  %7476 = vmatmul.msk.bf16.gmra.mxu3 %vm256_vm1, %v12804_v61  ;;  %v10451_v44 = vld [vmem:[#allocation3] sm:$0xff]  ;;  %7459 = vmatmul.msk.bf16.gmra.mxu2 %vm256_vm1, %v12806_v0  ;;  %v3779_v61 = vrot.slane %v10359_v21, 3  ;;  %v3476_v0 = vrot.slane %v10359_v21, 2  ;;  %v10486_v21 = vpack.c.bf16 %v10349_v19, %v10338_v58  ;;  %p8003_p13 = pneg %p8002_p12 }
 0x309   : > { %479 = vst.msk [vmem:[%s9843_s14 + $0xe8] sm:$0xff] %vm449_vm9, %v412_v7  ;;  %v2104_v7 = vrot.slane %v10386_v46, 1  ;;  %v4003_v48 = vrot.slane %v10451_v44, 4  ;;  %v2357_v31 = vadd.f32 %v10308_v4, %v2220_v52  ;;  %v414_v52 = vpop.permute.xlu1 %413 }
 0x30a   : > { %284 = vst.msk [vmem:[%s9843_s14 + $0xd8] sm:$0xff] %vm256_vm1, %v251_v37  ;;  %2498 = vrot.lane.b32.xlu1 %v2424_v3, %s8052_s10  ;;  %v4082_v37 = vsel %vm1028_vm0, %v4079_v59, %v4081_v54  ;;  %v2159_v3 = vpop.f32.mrf.mxu3  ;;  %v10460_v59 = vld [vmem:[#allocation3 + $0x8] sm:$0xff]  ;;  %p8008_p3 = pnand %p8007_p2, %p8003_p13 }
 0x30b   : > { %477 = vst.msk [vmem:[%s9843_s14 + $0xd8] sm:$0xff] %vm449_vm9, %v408_v34  ;;  %v2107_v34 = vrot.slane %v10390_v53, 1  ;;  %v10454_v1 = vpack.c.bf16 %v4082_v37, %v4080_v49  ;;  %7494 = vmatmul.msk.bf16.gmra.mxu0 %vm256_vm1, %v2248_v55  ;;  %v4004_v54 = vrot.slane %v10460_v59, 4  ;;  %v7579_v53 = vld [vmem:[%s12410_s3 + $0xa] sm:$0x3]  ;;  %v3778_v49 = vsel %vm3700_vm8, %v3776_v51, %v3777_v6 }
 0x30c   : > { %v4312_v4 = vsel %vm3165_vm5, %v7579_v53, 0  ;;  %v3473_v37 = vrot.slane %v10338_v58, 2  ;;  %v3474_v55 = vrot.slane %v10349_v19, 2  ;;  %v10472_v60 = vpop.f32.mrf.mxu1  ;;  %v2393_v5 = vadd.f32 %v9955_v22, %v2357_v31  ;;  %480 = vst.msk [vmem:[%s9843_s14 + $0xf0] sm:$0xff] %vm449_vm9, %v414_v52  ;;  %v7596_v51 = vld [vmem:[%s12410_s3 + $0xc] sm:$0x3] }
 0x30d   : > { %12805 = vst [vmem:[#allocation66_spill] sm:$0xff] %v10454_v1  ;;  %v10475_v1 = vld [vmem:[#allocation3 + $0x10] sm:$0xf]  ;;  %4321 = vmatpush.bf16.msra.mxu2 %v4312_v4  ;;  %v3780_v53 = vsel %vm3700_vm8, %v3777_v6, %v3779_v61  ;;  %v4452_v31 = vsel %vm3165_vm5, %v7596_v51, 0  ;;  %v12810_v52 = vld [vmem:[#allocation68_spill] sm:$0xff]  ;;  %v2106_v58 = vsel %vm849_vm3, %v2104_v7, %v2105_v36  ;;  %v3701_v19 = vrot.slane %v10451_v44, 3 }
 0x30e   : > { %12807 = vst [vmem:[#allocation65_spill] sm:$0xff] %v10472_v60  ;;  %v4006_v9 = vrot.slane %v10475_v1, 4  ;;  %v2019_v60 = vpop.f32.mrf.mxu2  ;;  %v10489_v50 = vpack.c.bf16 %v3780_v53, %v3778_v49  ;;  %v3475_v32 = vsel %vm1261_vm4, %v3473_v37, %v3474_v55  ;;  %v3477_v4 = vsel %vm1261_vm4, %v3474_v55, %v3476_v0  ;;  %4461 = vmatpush.bf16.msra.mxu3 %v4452_v31  ;;  %v10496_v6 = vpop.f32.mrf.mxu0 }
 0x30f   : > { %12808 = vst [vmem:[#allocation67_spill] sm:$0xff] %v10486_v21  ;;  %v2081_v2 = vadd.f32 %v2019_v60, %v12810_v52  ;;  %v2425_v10 = vmax.f32 %v2393_v5, 0.0  ;;  %v10494_v56 = vpack.c.bf16 %v3477_v4, %v3475_v32  ;;  %v3702_v61 = vrot.slane %v10460_v59, 3 }
 0x310   : > { %12809 = vst [vmem:[#allocation98_spill] sm:$0xff] %v10489_v50  ;;  %v3704_v49 = vrot.slane %v10475_v1, 3  ;;  %v2108_v37 = vsel %vm849_vm3, %v2105_v36, %v2107_v34  ;;  %v4005_v60 = vsel %vm1028_vm0, %v4003_v48, %v4004_v54  ;;  %v4007_v32 = vsel %vm1028_vm0, %v4004_v54, %v4006_v9  ;;  %v12812_v34 = vld [vmem:[#allocation69_spill] sm:$0xff] }
 0x311   : > { %12811 = vst [vmem:[#allocation68_spill] sm:$0xff] %v10494_v56  ;;  %v2221_v51 = vadd.f32 %v2159_v3, %v2081_v2  ;;  %2500 = vrot.lane.b32.xlu2 %v2425_v10, %s8052_s10  ;;  %v2111_v0 = vpack.c.bf16 %v2108_v37, %v2106_v58  ;;  %v4115_v7 = vpack.c.bf16 %v4007_v32, %v4005_v60  ;;  %v7613_v10 = vld [vmem:[%s12410_s3 + $0xe] sm:$0x3] }
 0x312   : > { %v2161_v55 = vpop.f32.mrf.mxu3  ;;  %v3703_v53 = vsel %vm3700_vm8, %v3701_v19, %v3702_v61  ;;  %v3705_v31 = vsel %vm3700_vm8, %v3702_v61, %v3704_v49  ;;  %v4589_v9 = vsel %vm3165_vm5, %v7613_v10, 0  ;;  %v1971_v3 = vpack.c.bf16 %v10388_v35, %v10386_v46  ;;  %v7630_v35 = vld [vmem:[%s12410_s3 + $0x10] sm:$0x3]  ;;  %v10537_v32 = vld [vmem:[#allocation3 + $0x18] sm:$0xff] }
 0x313   : > { %v2358_v5 = vadd.f32 %v10345_v16, %v2221_v51  ;;  %v3813_v54 = vpack.c.bf16 %v3705_v31, %v3703_v53  ;;  %4598 = vmatpush.bf16.msra.mxu0 %v4589_v9  ;;  %v3398_v46 = vrot.slane %v10451_v44, 2  ;;  %v3399_v49 = vrot.slane %v10460_v59, 2 }
 0x314   : > { %v10509_v4 = vpop.f32.mrf.mxu1  ;;  %7563 = vmatmul.msk.bf16.vlgmr.msrb.gmra.mxu1 %vm2607_vm6, %v4115_v7  ;;  %v3401_v51 = vrot.slane %v10475_v1, 2  ;;  %v4726_v37 = vsel %vm3165_vm5, %v7630_v35, 0  ;;  %v7982_v7 = vld [vmem:[#allocation3 + $0x28] sm:$0xf]  ;;  %v3706_v9 = vrot.slane %v10537_v32, 3 }
 0x315   : > { %v2394_v2 = vadd.f32 %v9955_v22, %v2358_v5  ;;  %v4008_v5 = vrot.slane %v10537_v32, 4  ;;  %v4011_v53 = vrot.slane %v7982_v7, 4  ;;  %4735 = vmatpush.bf16.msra.mxu1 %v4726_v37 }
 0x316   : > { %v2021_v36 = vpop.f32.mrf.mxu2  ;;  %v10520_v52 = vpop.f32.mrf.mxu0 }
 0x317   : > { %v2082_v16 = vadd.f32 %v2021_v36, %v12812_v34  ;;  %v2426_v48 = vmax.f32 %v2394_v2, 0.0  ;;  %v12813_v2 = vld [vmem:[#allocation71_spill] sm:$0xff] }
 0x318   : > { %7477 = vmatmul.msk.bf16.gmra.mxu3 %vm256_vm1, %v2111_v0  ;;  %7460 = vmatmul.msk.bf16.gmra.mxu2 %vm256_vm1, %v1971_v3  ;;  %v3402_v3 = vsel %vm1261_vm4, %v3399_v49, %v3401_v51 }
 0x319   : > { %v2222_v58 = vadd.f32 %v2161_v55, %v2082_v16  ;;  %2502 = vrot.lane.b32.xlu0 %v2426_v48, %s8052_s10  ;;  %v10540_v55 = vld [vmem:[#allocation3 + $0x20] sm:$0xff]  ;;  %v3709_v16 = vrot.slane %v7982_v7, 3 }
 0x31a   : > { %v2164_v61 = vpop.f32.mrf.mxu3  ;;  %v4009_v0 = vrot.slane %v10540_v55, 4  ;;  %v3707_v34 = vrot.slane %v10540_v55, 3 }
 0x31b   : > { %v2359_v19 = vadd.f32 %v10405_v45, %v2222_v58  ;;  %7546 = vmatmul.msk.bf16.vlgmr.msrb.gmra.mxu0 %vm2607_vm6, %v3813_v54  ;;  %v2483_v37 = vpop.permute.xlu2 %2482 }
 0x31c   : > { %v10534_v60 = vpop.f32.mrf.mxu1  ;;  %v4010_v54 = vsel %vm1028_vm0, %v4008_v5, %v4009_v0  ;;  %v4012_v58 = vsel %vm1028_vm0, %v4009_v0, %v4011_v53  ;;  %2577 = vst.msk [vmem:[%s9843_s14 + $0x10] sm:$0xff] %vm2574_vm10, %v2483_v37  ;;  %v12815_v5 = vld [vmem:[#allocation72_spill] sm:$0xff] }
 0x31d   : > { %v2395_v45 = vadd.f32 %v9955_v22, %v2359_v19  ;;  %v3400_v22 = vsel %vm1261_vm4, %v3398_v46, %v3399_v49  ;;  %v10565_v49 = vld [vmem:[%s12409_s2] ss:$0 sm:$0xff] }
 0x31e   : > { %v2024_v31 = vpop.f32.mrf.mxu2  ;;  %v10544_v36 = vpop.f32.mrf.mxu0  ;;  %v3510_v46 = vpack.c.bf16 %v3402_v3, %v3400_v22  ;;  %v3403_v3 = vrot.slane %v10537_v32, 2 }
 0x31f   : > { %v2083_v1 = vadd.f32 %v2024_v31, %v12813_v2  ;;  %v2427_v10 = vmax.f32 %v2395_v45, 0.0  ;;  %v10556_v45 = vpack.c.bf16 %v4012_v58, %v4010_v54  ;;  %v3708_v31 = vsel %vm3700_vm8, %v3706_v9, %v3707_v34 }
 0x320   : > { %v3404_v54 = vrot.slane %v10540_v55, 2  ;;  %v3406_v58 = vrot.slane %v7982_v7, 2 }
 0x321   : > { %v2223_v48 = vadd.f32 %v2164_v61, %v2083_v1  ;;  %2504 = vrot.lane.b32.xlu1 %v2427_v10, %s8052_s10  ;;  %12814 = vst [vmem:[#allocation69_spill] sm:$0xff] %v10556_v45  ;;  %v3710_v61 = vsel %vm3700_vm8, %v3707_v34, %v3709_v16  ;;  %v2922_v1 = vpack.c.bf16 %v10460_v59, %v10451_v44 }
 0x322   : > { %v2166_v35 = vpop.f32.mrf.mxu3  ;;  %v10571_v10 = vpack.c.bf16 %v3710_v61, %v3708_v31  ;;  %v2479_v44 = vpop.permute.xlu0 %2478  ;;  %v3405_v61 = vsel %vm1261_vm4, %v3403_v3, %v3404_v54 }
 0x323   : > { %v2360_v19 = vadd.f32 %v10441_v18, %v2223_v48  ;;  %2575 = vst.msk [vmem:[%s9843_s14] sm:$0xff] %vm2574_vm10, %v2479_v44  ;;  %v10603_v44 = vpack.c.bf16 %v10540_v55, %v10537_v32 }
 0x324   : > { %v10560_v2 = vpop.f32.mrf.mxu1  ;;  %7564 = vmatmul.msk.bf16.gmra.mxu1 %vm2607_vm6, %v10556_v45 }
 0x325   : > { %v2396_v18 = vadd.f32 %v10565_v49, %v2360_v19  ;;  %v12816_v19 = vld [vmem:[#allocation74_spill] sm:$0xff] }
 0x326   : > { %v2026_v51 = vpop.f32.mrf.mxu2  ;;  %v2311_v22 = vpop.f32.mrf.mxu0 }
 0x327   : > { %v2084_v0 = vadd.f32 %v2026_v51, %v12815_v5  ;;  %v2428_v53 = vmax.f32 %v2396_v18, 0.0  ;;  %v3407_v18 = vsel %vm1261_vm4, %v3404_v54, %v3406_v58 }
 0x328   : > { %7529 = vmatmul.msk.bf16.vlgmr.msrb.gmra.mxu3 %vm2607_vm6, %v3510_v46  ;;  %7512 = vmatmul.msk.bf16.vlgmr.msrb.gmra.mxu2 %vm2607_vm6, %v2922_v1 }
 0x329   : > { %v2224_v9 = vadd.f32 %v2166_v35, %v2084_v0  ;;  %2506 = vrot.lane.b32.xlu2 %v2428_v53, %s8052_s10  ;;  %v10595_v53 = vpack.c.bf16 %v3407_v18, %v3405_v61 }
 0x32a   : > { %v2169_v16 = vpop.f32.mrf.mxu3 }
 0x32b   : > { %v2361_v34 = vadd.f32 %v10496_v6, %v2224_v9  ;;  %7547 = vmatmul.msk.bf16.gmra.mxu0 %vm2607_vm6, %v10571_v10 }
 0x32c   : > { %v10583_v59 = vpop.f32.mrf.mxu1  ;;  %v2481_v0 = vpop.permute.xlu1 %2480 }
 0x32d   : > { %v2397_v48 = vadd.f32 %v10565_v49, %v2361_v34  ;;  %2576 = vst.msk [vmem:[%s9843_s14 + $0x8] sm:$0xff] %vm2574_vm10, %v2481_v0 }
 0x32e   : > { %v2029_v6 = vpop.f32.mrf.mxu2  ;;  %v2313_v46 = vpop.f32.mrf.mxu0 }
 0x32f   : > { %v2085_v35 = vadd.f32 %v2029_v6, %v12816_v19  ;;  %v2429_v37 = vmax.f32 %v2397_v48, 0.0  ;;  %v12817_v48 = vld [vmem:[#allocation75_spill] sm:$0xff] }
 0x331   : > { %v2225_v31 = vadd.f32 %v2169_v16, %v2085_v35  ;;  %2508 = vrot.lane.b32.xlu0 %v2429_v37, %s8052_s10 }
 0x332   : > { %v2171_v5 = vpop.f32.mrf.mxu3 }
 0x333   : > { %v2362_v51 = vadd.f32 %v10520_v52, %v2225_v31 }
 0x334   : > { %v10597_v7 = vpop.f32.mrf.mxu1  ;;  %7565 = vmatmul.msk.bf16.gmra.mxu1 %vm2607_vm6, %v12817_v48  ;;  %v12833_v48 = vld [vmem:[#allocation86_spill] sm:$0xff] }
 0x335   : > { %v2398_v1 = vadd.f32 %v10565_v49, %v2362_v51 }
 0x336   : > { %v2031_v9 = vpop.f32.mrf.mxu2  ;;  %v2316_v52 = vpop.f32.mrf.mxu0 }
 0x337   : > { %v2086_v34 = vadd.f32 %v2031_v9, %v9381_v15  ;;  %v2430_v16 = vmax.f32 %v2398_v1, 0.0  ;;  %v12818_v15 = vld [vmem:[#allocation77_spill] sm:$0xff]  ;;  %v2489_v32 = vpop.permute.xlu2 %2488 }
 0x338   : > { %7530 = vmatmul.msk.bf16.gmra.mxu3 %vm2607_vm6, %v10595_v53  ;;  %7513 = vmatmul.msk.bf16.gmra.mxu2 %vm2607_vm6, %v10603_v44  ;;  %2580 = vst.msk [vmem:[%s9843_s14 + $0x28] sm:$0xff] %vm2574_vm10, %v2489_v32 }
 0x339   : > { %v2226_v3 = vadd.f32 %v2171_v5, %v2086_v34  ;;  %2510 = vrot.lane.b32.xlu1 %v2430_v16, %s8052_s10  ;;  %v12819_v16 = vld [vmem:[#allocation78_spill] sm:$0xff] }
 0x33a   : > { %v2174_v58 = vpop.f32.mrf.mxu3 }
 0x33b   : > { %v2363_v54 = vadd.f32 %v10544_v36, %v2226_v3  ;;  %7548 = vmatmul.msk.bf16.gmra.mxu0 %vm2607_vm6, %v12818_v15 }
 0x33c   : > { %v10617_v55 = vpop.f32.mrf.mxu1 }
 0x33d   : > { %v2399_v6 = vadd.f32 %v10565_v49, %v2363_v54  ;;  %v2485_v51 = vpop.permute.xlu0 %2484 }
 0x33e   : > { %v2034_v19 = vpop.f32.mrf.mxu2  ;;  %v2318_v36 = vpop.f32.mrf.mxu0  ;;  %2578 = vst.msk [vmem:[%s9843_s14 + $0x18] sm:$0xff] %vm2574_vm10, %v2485_v51 }
 0x33f   : > { %v2087_v35 = vadd.f32 %v2034_v19, %v9414_v20  ;;  %v2431_v37 = vmax.f32 %v2399_v6, 0.0 }
 0x341   : > { %v2227_v31 = vadd.f32 %v2174_v58, %v2087_v35  ;;  %2512 = vrot.lane.b32.xlu2 %v2431_v37, %s8052_s10  ;;  %v12820_v58 = vld [vmem:[#allocation76_spill] sm:$0xff] }
 0x342   : > { %v2176_v18 = vpop.f32.mrf.mxu3 }
 0x343   : > { %v2364_v61 = vadd.f32 %v2311_v22, %v2227_v31 }
 0x344   : > { %v10624_v5 = vpop.f32.mrf.mxu1  ;;  %7566 = vmatmul.msk.bf16.gmra.mxu1 %vm2607_vm6, %v9422_v14 }
 0x345   : > { %v2400_v0 = vadd.f32 %v10565_v49, %v2364_v61 }
 0x346   : > { %v2036_v1 = vpop.f32.mrf.mxu2  ;;  %v2321_v20 = vpop.f32.mrf.mxu0 }
 0x347   : > { %v2088_v9 = vadd.f32 %v2036_v1, %v9467_v27  ;;  %v2432_v34 = vmax.f32 %v2400_v0, 0.0  ;;  %v2487_v27 = vpop.permute.xlu1 %2486 }
 0x348   : > { %7531 = vmatmul.msk.bf16.gmra.mxu3 %vm2607_vm6, %v12819_v16  ;;  %7514 = vmatmul.msk.bf16.gmra.mxu2 %vm2607_vm6, %v12820_v58  ;;  %2579 = vst.msk [vmem:[%s9843_s14 + $0x20] sm:$0xff] %vm2574_vm10, %v2487_v27 }
 0x349   : > { %v2228_v22 = vadd.f32 %v2176_v18, %v2088_v9  ;;  %2514 = vrot.lane.b32.xlu0 %v2432_v34, %s8052_s10 }
 0x34a   : > { %v2179_v54 = vpop.f32.mrf.mxu3 }
 0x34b   : > { %v2365_v3 = vadd.f32 %v2313_v46, %v2228_v22  ;;  %7549 = vmatmul.msk.bf16.gmra.mxu0 %vm2607_vm6, %v9430_v39 }
 0x34c   : > { %v10639_v32 = vpop.f32.mrf.mxu1 }
 0x34d   : > { %v2401_v6 = vadd.f32 %v10565_v49, %v2365_v3  ;;  %v12821_v3 = vld [vmem:[#allocation52_spill] sm:$0xff] }
 0x34e   : > { %v2039_v19 = vpop.f32.mrf.mxu2  ;;  %v2323_v46 = vpop.f32.mrf.mxu0 }
 0x34f   : > { %v2089_v35 = vadd.f32 %v2039_v19, %v9495_v28  ;;  %v2433_v37 = vmax.f32 %v2401_v6, 0.0  ;;  %v12822_v6 = vld [vmem:[#allocation81_spill] sm:$0xff] }
 0x351   : > { %v2229_v31 = vadd.f32 %v2179_v54, %v2089_v35  ;;  %2516 = vrot.lane.b32.xlu1 %v2433_v37, %s8052_s10  ;;  %v2495_v51 = vpop.permute.xlu2 %2494 }
 0x352   : > { %v2181_v18 = vpop.f32.mrf.mxu3  ;;  %2583 = vst.msk [vmem:[%s9843_s14 + $0x40] sm:$0xff] %vm2574_vm10, %v2495_v51 }
 0x353   : > { %v2366_v61 = vadd.f32 %v2316_v52, %v2229_v31 }
 0x354   : > { %v10646_v0 = vpop.f32.mrf.mxu1  ;;  %7567 = vmatmul.msk.bf16.gmra.mxu1 %vm2607_vm6, %v9503_v24 }
 0x355   : > { %v2402_v1 = vadd.f32 %v10565_v49, %v2366_v61 }
 0x356   : > { %v2041_v9 = vpop.f32.mrf.mxu2  ;;  %v2326_v28 = vpop.f32.mrf.mxu0 }
 0x357   : > { %v2090_v34 = vadd.f32 %v2041_v9, %v9545_v43  ;;  %v2434_v22 = vmax.f32 %v2402_v1, 0.0  ;;  %v2491_v43 = vpop.permute.xlu0 %2490 }
 0x358   : > { %7532 = vmatmul.msk.bf16.gmra.mxu3 %vm2607_vm6, %v12821_v3  ;;  %7515 = vmatmul.msk.bf16.gmra.mxu2 %vm2607_vm6, %v12822_v6  ;;  %2581 = vst.msk [vmem:[%s9843_s14 + $0x30] sm:$0xff] %vm2574_vm10, %v2491_v43 }
 0x359   : > { %v2230_v52 = vadd.f32 %v2181_v18, %v2090_v34  ;;  %2518 = vrot.lane.b32.xlu2 %v2434_v22, %s8052_s10 }
 0x35a   : > { %v2184_v27 = vpop.f32.mrf.mxu3 }
 0x35b   : > { %v2367_v54 = vadd.f32 %v2318_v36, %v2230_v52  ;;  %7550 = vmatmul.msk.bf16.gmra.mxu0 %vm2607_vm6, %v9514_v23 }
 0x35c   : > { %v10661_v19 = vpop.f32.mrf.mxu1 }
 0x35d   : > { %v2403_v35 = vadd.f32 %v10565_v49, %v2367_v54 }
 0x35e   : > { %v2044_v37 = vpop.f32.mrf.mxu2  ;;  %v2328_v36 = vpop.f32.mrf.mxu0 }
 0x35f   : > { %v2091_v31 = vadd.f32 %v2044_v37, %v9570_v63  ;;  %v2435_v61 = vmax.f32 %v2403_v35, 0.0  ;;  %v12823_v37 = vld [vmem:[#allocation20_spill] sm:$0xff] }
 0x361   : > { %v2231_v18 = vadd.f32 %v2184_v27, %v2091_v31  ;;  %2520 = vrot.lane.b32.xlu0 %v2435_v61, %s8052_s10  ;;  %v2493_v9 = vpop.permute.xlu1 %2492 }
 0x362   : > { %v2186_v1 = vpop.f32.mrf.mxu3  ;;  %2582 = vst.msk [vmem:[%s9843_s14 + $0x38] sm:$0xff] %vm2574_vm10, %v2493_v9 }
 0x363   : > { %v2368_v51 = vadd.f32 %v2321_v20, %v2231_v18 }
 0x364   : > { %v10668_v34 = vpop.f32.mrf.mxu1  ;;  %7568 = vmatmul.msk.bf16.gmra.mxu1 %vm2607_vm6, %v9578_v62 }
 0x365   : > { %v2404_v22 = vadd.f32 %v10565_v49, %v2368_v51 }
 0x366   : > { %v2046_v52 = vpop.f32.mrf.mxu2 }
 0x367   : > { %v2092_v54 = vadd.f32 %v2046_v52, %v9623_v33  ;;  %v2436_v43 = vmax.f32 %v2404_v22, 0.0  ;;  %v2331_v63 = vpop.f32.mrf.mxu0 }
 0x368   : > { %7533 = vmatmul.msk.bf16.gmra.mxu3 %vm2607_vm6, %v9533_v29  ;;  %7516 = vmatmul.msk.bf16.gmra.mxu2 %vm2607_vm6, %v12823_v37 }
 0x369   : > { %v2232_v20 = vadd.f32 %v2186_v1, %v2092_v54  ;;  %2522 = vrot.lane.b32.xlu1 %v2436_v43, %s8052_s10 }
 0x36a   : > { %v2189_v35 = vpop.f32.mrf.mxu3 }
 0x36b   : > { %v2369_v27 = vadd.f32 %v2323_v46, %v2232_v20  ;;  %7551 = vmatmul.msk.bf16.gmra.mxu0 %vm2607_vm6, %v9586_v57  ;;  %v2501_v33 = vpop.permute.xlu2 %2500 }
 0x36c   : > { %2586 = vst.msk [vmem:[%s9843_s14 + $0x58] sm:$0xff] %vm2574_vm10, %v2501_v33  ;;  %v10683_v31 = vpop.f32.mrf.mxu1 }
 0x36d   : > { %v2405_v61 = vadd.f32 %v10565_v49, %v2369_v27 }
 0x36e   : > { %v2049_v18 = vpop.f32.mrf.mxu2 }
 0x36f   : > { %v2093_v51 = vadd.f32 %v2049_v18, %v9648_v17  ;;  %v2437_v1 = vmax.f32 %v2405_v61, 0.0  ;;  %v2333_v46 = vpop.f32.mrf.mxu0 }
 0x370   : > { %v2497_v54 = vpop.permute.xlu0 %2496 }
 0x371   : > { %v2233_v9 = vadd.f32 %v2189_v35, %v2093_v51  ;;  %2524 = vrot.lane.b32.xlu2 %v2437_v1, %s8052_s10  ;;  %2584 = vst.msk [vmem:[%s9843_s14 + $0x48] sm:$0xff] %vm2574_vm10, %v2497_v54 }
 0x372   : > { %v2191_v52 = vpop.f32.mrf.mxu3 }
 0x373   : > { %v2370_v22 = vadd.f32 %v2326_v28, %v2233_v9 }
 0x374   : > { %v10690_v43 = vpop.f32.mrf.mxu1  ;;  %7569 = vmatmul.msk.bf16.gmra.mxu1 %vm2607_vm6, %v9656_v26  ;;  %v12828_v26 = vld [vmem:[#allocation9_spill] sm:$0xff] }
 0x375   : > { %v2406_v20 = vadd.f32 %v10565_v49, %v2370_v22 }
 0x376   : > { %v2051_v33 = vpop.f32.mrf.mxu2 }
 0x377   : > { %v2094_v27 = vadd.f32 %v2051_v33, %v9701_v40  ;;  %v2438_v62 = vmax.f32 %v2406_v20, 0.0 }
 0x378   : > { %v2336_v17 = vpop.f32.mrf.mxu0  ;;  %7534 = vmatmul.msk.bf16.gmra.mxu3 %vm2607_vm6, %v9611_v25  ;;  %7517 = vmatmul.msk.bf16.gmra.mxu2 %vm2607_vm6, %v9592_v12 }
 0x379   : > { %v2234_v28 = vadd.f32 %v2191_v52, %v2094_v27  ;;  %2526 = vrot.lane.b32.xlu0 %v2438_v62, %s8052_s10 }
 0x37b   : > { %v2371_v35 = vadd.f32 %v2328_v36, %v2234_v28  ;;  %v2194_v61 = vpop.f32.mrf.mxu3  ;;  %7552 = vmatmul.msk.bf16.gmra.mxu0 %vm2607_vm6, %v9664_v47 }
 0x37c   : > { %v2499_v40 = vpop.permute.xlu1 %2498  ;;  %v10705_v18 = vpop.f32.mrf.mxu1 }
 0x37d   : > { %2585 = vst.msk [vmem:[%s9843_s14 + $0x50] sm:$0xff] %vm2574_vm10, %v2499_v40  ;;  %v2407_v51 = vadd.f32 %v10565_v49, %v2371_v35 }
 0x37e   : > { %12824 = vst [vmem:[#allocation71_spill] sm:$0xff] %v10705_v18  ;;  %v2054_v1 = vpop.f32.mrf.mxu2  ;;  %v12849_v18 = vld [vmem:[#allocation18_spill] sm:$0xff] }
 0x37f   : > { %v2095_v9 = vadd.f32 %v2054_v1, %v9729_v11  ;;  %v2439_v62 = vmax.f32 %v2407_v51, 0.0 }
 0x380   : > { %v2338_v36 = vpop.f32.mrf.mxu0 }
 0x381   : > { %v2235_v22 = vadd.f32 %v2194_v61, %v2095_v9  ;;  %2528 = vrot.lane.b32.xlu1 %v2439_v62, %s8052_s10 }
 0x383   : > { %v2372_v52 = vadd.f32 %v2331_v63, %v2235_v22  ;;  %v2196_v54 = vpop.f32.mrf.mxu3  ;;  %v2507_v20 = vpop.permute.xlu2 %2506 }
 0x384   : > { %2589 = vst.msk [vmem:[%s9843_s14 + $0x70] sm:$0xff] %vm2574_vm10, %v2507_v20  ;;  %v10712_v33 = vpop.f32.mrf.mxu1  ;;  %7570 = vmatmul.msk.bf16.gmra.mxu1 %vm2607_vm6, %v9738_v13 }
 0x385   : > { %12825 = vst [vmem:[#allocation72_spill] sm:$0xff] %v10712_v33  ;;  %v2408_v27 = vadd.f32 %v10565_v49, %v2372_v52 }
 0x386   : > { %v2056_v28 = vpop.f32.mrf.mxu2 }
 0x387   : > { %v2096_v35 = vadd.f32 %v2056_v28, %v9780_v38  ;;  %v2440_v40 = vmax.f32 %v2408_v27, 0.0 }
 0x388   : > { %v2341_v11 = vpop.f32.mrf.mxu0  ;;  %7535 = vmatmul.msk.bf16.gmra.mxu3 %vm2607_vm6, %v9689_v8  ;;  %7518 = vmatmul.msk.bf16.gmra.mxu2 %vm2607_vm6, %v9670_v42 }
 0x389   : > { %v2236_v63 = vadd.f32 %v2196_v54, %v2096_v35  ;;  %2530 = vrot.lane.b32.xlu2 %v2440_v40, %s8052_s10 }
 0x38b   : > { %v2373_v61 = vadd.f32 %v2333_v46, %v2236_v63  ;;  %v2199_v51 = vpop.f32.mrf.mxu3  ;;  %7553 = vmatmul.msk.bf16.gmra.mxu0 %vm2607_vm6, %v9749_v41  ;;  %v2503_v38 = vpop.permute.xlu0 %2502 }
 0x38c   : > { %2587 = vst.msk [vmem:[%s9843_s14 + $0x60] sm:$0xff] %vm2574_vm10, %v2503_v38  ;;  %v10727_v1 = vpop.f32.mrf.mxu1  ;;  %v12827_v38 = vld [vmem:[#allocation10_spill] sm:$0xff] }
 0x38d   : > { %12826 = vst [vmem:[#allocation74_spill] sm:$0xff] %v10727_v1  ;;  %v2409_v9 = vadd.f32 %v10565_v49, %v2373_v61  ;;  %v12834_v1 = vld [vmem:[#allocation48_spill] sm:$0xff] }
 0x38e   : > { %v2059_v62 = vpop.f32.mrf.mxu2 }
 0x38f   : > { %v2097_v22 = vadd.f32 %v2059_v62, %v9810_v30  ;;  %v2441_v52 = vmax.f32 %v2409_v9, 0.0 }
 0x390   : > { %v2343_v46 = vpop.f32.mrf.mxu0 }
 0x391   : > { %v2237_v54 = vadd.f32 %v2199_v51, %v2097_v22  ;;  %2532 = vrot.lane.b32.xlu0 %v2441_v52, %s8052_s10  ;;  %v12829_v51 = vld [vmem:[#allocation7_spill] sm:$0xff]  ;;  %v12830_v22 = vld [vmem:[#allocation44_spill] sm:$0xff] }
 0x392   : > { %v12831_v52 = vld [vmem:[#allocation47_spill] sm:$0xff] }
 0x393   : > { %v2374_v20 = vadd.f32 %v2336_v17, %v2237_v54  ;;  %v2201_v27 = vpop.f32.mrf.mxu3  ;;  %v2505_v28 = vpop.permute.xlu1 %2504 }
 0x394   : > { %2588 = vst.msk [vmem:[%s9843_s14 + $0x68] sm:$0xff] %vm2574_vm10, %v2505_v28  ;;  %v4193_v35 = vpop.f32.mrf.mxu1  ;;  %7571 = vmatmul.msk.bf16.gmra.mxu1 %vm2607_vm6, %v12829_v51 }
 0x395   : > { %v2410_v40 = vadd.f32 %v10565_v49, %v2374_v20 }
 0x396   : > { %v2061_v63 = vpop.f32.mrf.mxu2 }
 0x397   : > { %v2098_v61 = vadd.f32 %v2061_v63, %v12827_v38  ;;  %v2442_v13 = vmax.f32 %v2410_v40, 0.0  ;;  %v12832_v63 = vld [vmem:[#allocation84_spill] sm:$0xff] }
 0x398   : > { %7536 = vmatmul.msk.bf16.gmra.mxu3 %vm2607_vm6, %v12828_v26  ;;  %v3891_v30 = vpop.f32.mrf.mxu0  ;;  %7519 = vmatmul.msk.bf16.gmra.mxu2 %vm2607_vm6, %v12830_v22 }
 0x399   : > { %v2238_v17 = vadd.f32 %v2201_v27, %v2098_v61  ;;  %2534 = vrot.lane.b32.xlu1 %v2442_v13, %s8052_s10 }
 0x39b   : > { %v2375_v9 = vadd.f32 %v2338_v36, %v2238_v17  ;;  %v2204_v62 = vpop.f32.mrf.mxu3  ;;  %7554 = vmatmul.msk.bf16.gmra.mxu0 %vm2607_vm6, %v12831_v52  ;;  %v2513_v54 = vpop.permute.xlu2 %2512 }
 0x39c   : > { %2592 = vst.msk [vmem:[%s9843_s14 + $0x88] sm:$0xff] %vm2574_vm10, %v2513_v54  ;;  %v4195_v20 = vpop.f32.mrf.mxu1 }
 0x39d   : > { %v2411_v28 = vadd.f32 %v10565_v49, %v2375_v9 }
 0x39e   : > { %v2064_v40 = vpop.f32.mrf.mxu2 }
 0x39f   : > { %v2099_v27 = vadd.f32 %v2064_v40, %v12832_v63  ;;  %v2443_v38 = vmax.f32 %v2411_v28, 0.0 }
 0x3a0   : > { %v3893_v13 = vpop.f32.mrf.mxu0 }
 0x3a1   : > { %v2239_v36 = vadd.f32 %v2204_v62, %v2099_v27  ;;  %2536 = vrot.lane.b32.xlu2 %v2443_v38, %s8052_s10  ;;  %v12835_v62 = vld [vmem:[#allocation51_spill] sm:$0xff]  ;;  %v12837_v27 = vld [vmem:[#allocation13_spill] sm:$0xff] }
 0x3a3   : > { %v2376_v61 = vadd.f32 %v2341_v11, %v2239_v36  ;;  %v2206_v17 = vpop.f32.mrf.mxu3  ;;  %v2509_v51 = vpop.permute.xlu0 %2508 }
 0x3a4   : > { %2590 = vst.msk [vmem:[%s9843_s14 + $0x78] sm:$0xff] %vm2574_vm10, %v2509_v51  ;;  %v4198_v24 = vpop.f32.mrf.mxu1  ;;  %7572 = vmatmul.msk.bf16.gmra.mxu1 %vm2607_vm6, %v12835_v62  ;;  %v12836_v51 = vld [vmem:[#allocation46_spill] sm:$0xff] }
 0x3a5   : > { %v2412_v54 = vadd.f32 %v10565_v49, %v2376_v61  ;;  %v12838_v61 = vld [vmem:[#allocation8_spill] sm:$0xff] }
 0x3a6   : > { %v2066_v14 = vpop.f32.mrf.mxu2 }
 0x3a7   : > { %v2100_v9 = vadd.f32 %v2066_v14, %v12833_v48  ;;  %v2444_v45 = vmax.f32 %v2412_v54, 0.0 }
 0x3a8   : > { %7537 = vmatmul.msk.bf16.gmra.mxu3 %vm2607_vm6, %v12834_v1  ;;  %v3896_v28 = vpop.f32.mrf.mxu0  ;;  %7520 = vmatmul.msk.bf16.gmra.mxu2 %vm2607_vm6, %v12836_v51 }
 0x3a9   : > { %v2240_v11 = vadd.f32 %v2206_v17, %v2100_v9  ;;  %2538 = vrot.lane.b32.xlu0 %v2444_v45, %s8052_s10 }
 0x3ab   : > { %v2377_v40 = vadd.f32 %v2343_v46, %v2240_v11  ;;  %v3588_v63 = vpop.f32.mrf.mxu3  ;;  %7555 = vmatmul.msk.bf16.gmra.mxu0 %vm2607_vm6, %v12837_v27  ;;  %v2511_v14 = vpop.permute.xlu1 %2510  ;;  %v12840_v27 = vld [vmem:[#allocation11_spill] sm:$0xff] }
 0x3ac   : > { %2591 = vst.msk [vmem:[%s9843_s14 + $0x80] sm:$0xff] %vm2574_vm10, %v2511_v14  ;;  %v4200_v48 = vpop.f32.mrf.mxu1 }
 0x3ad   : > { %v2413_v38 = vadd.f32 %v10565_v49, %v2377_v40  ;;  %v12841_v40 = vld [vmem:[#allocation12_spill] sm:$0xff] }
 0x3ae   : > { %v3318_v36 = vpop.f32.mrf.mxu2 }
 0x3af   : > { %v3319_v17 = vadd.f32 %v3318_v36, %v12838_v61  ;;  %v2445_v54 = vmax.f32 %v2413_v38, 0.0  ;;  %v12842_v36 = vld [vmem:[#allocation89_spill] sm:$0xff]  ;;  %v12843_v61 = vld [vmem:[#allocation50_spill] sm:$0xff] }
 0x3b0   : > { %v3898_v45 = vpop.f32.mrf.mxu0 }
 0x3b1   : > { %v3668_v46 = vadd.f32 %v3588_v63, %v3319_v17  ;;  %2540 = vrot.lane.b32.xlu1 %v2445_v54, %s8052_s10  ;;  %v12844_v17 = vld [vmem:[#allocation54_spill] sm:$0xff] }
 0x3b3   : > { %v3590_v9 = vpop.f32.mrf.mxu3  ;;  %v2519_v11 = vpop.permute.xlu2 %2518  ;;  %v3971_v62 = vadd.f32 %v3891_v30, %v3668_v46 }
 0x3b4   : > { %2595 = vst.msk [vmem:[%s9843_s14 + $0xa0] sm:$0xff] %vm2574_vm10, %v2519_v11  ;;  %v4203_v33 = vpop.f32.mrf.mxu1  ;;  %7573 = vmatmul.msk.bf16.gmra.mxu1 %vm2607_vm6, %v12842_v36  ;;  %v12846_v11 = vld [vmem:[#allocation83_spill] sm:$0xff] }
 0x3b5   : > { %v10770_v51 = vadd.f32 %v4193_v35, %v3971_v62 }
 0x3b6   : > { %v3320_v14 = vpop.f32.mrf.mxu2 }
 0x3b7   : > { %12839 = vst [vmem:[#allocation78_spill] sm:$0xff] %v10770_v51  ;;  %v3321_v49 = vadd.f32 %v3320_v14, %v12840_v27 }
 0x3b8   : > { %7538 = vmatmul.msk.bf16.gmra.mxu3 %vm2607_vm6, %v12841_v40  ;;  %v3901_v38 = vpop.f32.mrf.mxu0  ;;  %7521 = vmatmul.msk.bf16.gmra.mxu2 %vm2607_vm6, %v12843_v61 }
 0x3b9   : > { %v3669_v63 = vadd.f32 %v3590_v9, %v3321_v49 }
 0x3bb   : > { %v3593_v30 = vpop.f32.mrf.mxu3  ;;  %7556 = vmatmul.msk.bf16.gmra.mxu0 %vm2607_vm6, %v12844_v17  ;;  %v2515_v35 = vpop.permute.xlu0 %2514  ;;  %v3972_v62 = vadd.f32 %v3893_v13, %v3669_v63  ;;  %v12848_v63 = vld [vmem:[#allocation85_spill] sm:$0xff] }
 0x3bc   : > { %2593 = vst.msk [vmem:[%s9843_s14 + $0x90] sm:$0xff] %vm2574_vm10, %v2515_v35  ;;  %v4205_v27 = vpop.f32.mrf.mxu1 }
 0x3bd   : > { %v10783_v54 = vadd.f32 %v4195_v20, %v3972_v62  ;;  %v12850_v62 = vld [vmem:[#allocation56_spill] sm:$0xff] }
 0x3be   : > { %v3323_v46 = vpop.f32.mrf.mxu2 }
 0x3bf   : > { %12845 = vst [vmem:[#allocation76_spill] sm:$0xff] %v10783_v54  ;;  %v3324_v14 = vadd.f32 %v3323_v46, %v12846_v11  ;;  %v12851_v46 = vld [vmem:[#allocation87_spill] sm:$0xff] }
 0x3c0   : > { %v3903_v36 = vpop.f32.mrf.mxu0 }
 0x3c1   : > { %v3670_v9 = vadd.f32 %v3593_v30, %v3324_v14 }
 0x3c3   : > { %v3595_v49 = vpop.f32.mrf.mxu3  ;;  %v2517_v51 = vpop.permute.xlu1 %2516  ;;  %v3973_v61 = vadd.f32 %v3896_v28, %v3670_v9 }
 0x3c4   : > { %2594 = vst.msk [vmem:[%s9843_s14 + $0x98] sm:$0xff] %vm2574_vm10, %v2517_v51  ;;  %v4208_v40 = vpop.f32.mrf.mxu1  ;;  %7574 = vmatmul.msk.bf16.gmra.mxu1 %vm2607_vm6, %v12850_v62  ;;  %v12852_v51 = vld [vmem:[#allocation24_spill] sm:$0xff] }
 0x3c5   : > { %v10788_v17 = vadd.f32 %v4198_v24, %v3973_v61 }
 0x3c6   : > { %v3325_v13 = vpop.f32.mrf.mxu2 }
 0x3c7   : > { %12847 = vst [vmem:[#allocation81_spill] sm:$0xff] %v10788_v17  ;;  %v3326_v35 = vadd.f32 %v3325_v13, %v12848_v63  ;;  %v12854_v13 = vld [vmem:[#allocation88_spill] sm:$0xff] }
 0x3c8   : > { %7539 = vmatmul.msk.bf16.gmra.mxu3 %vm2607_vm6, %v12849_v18  ;;  %v3906_v20 = vpop.f32.mrf.mxu0  ;;  %7522 = vmatmul.msk.bf16.gmra.mxu2 %vm2607_vm6, %v12851_v46  ;;  %v12857_v18 = vld [vmem:[#allocation19_spill] sm:$0xff] }
 0x3c9   : > { %v3671_v30 = vadd.f32 %v3595_v49, %v3326_v35 }
 0x3cb   : > { %v3598_v28 = vpop.f32.mrf.mxu3  ;;  %7557 = vmatmul.msk.bf16.gmra.mxu0 %vm2607_vm6, %v12852_v51  ;;  %v2525_v24 = vpop.permute.xlu2 %2524  ;;  %v3974_v61 = vadd.f32 %v3898_v45, %v3671_v30  ;;  %v12856_v30 = vld [vmem:[#allocation15_spill] sm:$0xff] }
 0x3cc   : > { %2598 = vst.msk [vmem:[%s9843_s14 + $0xb8] sm:$0xff] %vm2574_vm10, %v2525_v24  ;;  %v4210_v11 = vpop.f32.mrf.mxu1 }
 0x3cd   : > { %v10801_v14 = vadd.f32 %v4200_v48, %v3974_v61  ;;  %v12858_v61 = vld [vmem:[#allocation58_spill] sm:$0xff] }
 0x3ce   : > { %v3328_v9 = vpop.f32.mrf.mxu2 }
 0x3cf   : > { %12853 = vst [vmem:[#allocation20_spill] sm:$0xff] %v10801_v14  ;;  %v3329_v63 = vadd.f32 %v3328_v9, %v12854_v13  ;;  %v12859_v9 = vld [vmem:[#allocation55_spill] sm:$0xff] }
 0x3d0   : > { %v3908_v62 = vpop.f32.mrf.mxu0 }
 0x3d1   : > { %v3672_v49 = vadd.f32 %v3598_v28, %v3329_v63 }
 0x3d3   : > { %v3600_v35 = vpop.f32.mrf.mxu3  ;;  %v2521_v17 = vpop.permute.xlu0 %2520  ;;  %v3975_v46 = vadd.f32 %v3901_v38, %v3672_v49 }
 0x3d4   : > { %2596 = vst.msk [vmem:[%s9843_s14 + $0xa8] sm:$0xff] %vm2574_vm10, %v2521_v17  ;;  %v4213_v54 = vpop.f32.mrf.mxu1  ;;  %7575 = vmatmul.msk.bf16.gmra.mxu1 %vm2607_vm6, %v12858_v61  ;;  %v12860_v17 = vld [vmem:[#allocation29_spill] sm:$0xff] }
 0x3d5   : > { %v10806_v51 = vadd.f32 %v4203_v33, %v3975_v46 }
 0x3d6   : > { %v3330_v45 = vpop.f32.mrf.mxu2 }
 0x3d7   : > { %12855 = vst [vmem:[#allocation10_spill] sm:$0xff] %v10806_v51  ;;  %v3331_v24 = vadd.f32 %v3330_v45, %v12856_v30  ;;  %v12862_v45 = vld [vmem:[#allocation90_spill] sm:$0xff] }
 0x3d8   : > { %7540 = vmatmul.msk.bf16.gmra.mxu3 %vm2607_vm6, %v12857_v18  ;;  %v3911_v48 = vpop.f32.mrf.mxu0  ;;  %7523 = vmatmul.msk.bf16.gmra.mxu2 %vm2607_vm6, %v12859_v9  ;;  %v12865_v18 = vld [vmem:[#allocation25_spill] sm:$0xff] }
 0x3d9   : > { %v3673_v28 = vadd.f32 %v3600_v35, %v3331_v24 }
 0x3db   : > { %v3603_v38 = vpop.f32.mrf.mxu3  ;;  %7558 = vmatmul.msk.bf16.gmra.mxu0 %vm2607_vm6, %v12860_v17  ;;  %v2523_v33 = vpop.permute.xlu1 %2522  ;;  %v3976_v46 = vadd.f32 %v3903_v36, %v3673_v28  ;;  %v12864_v28 = vld [vmem:[#allocation21_spill] sm:$0xff] }
 0x3dc   : > { %2597 = vst.msk [vmem:[%s9843_s14 + $0xb0] sm:$0xff] %vm2574_vm10, %v2523_v33  ;;  %v4215_v13 = vpop.f32.mrf.mxu1 }
 0x3dd   : > { %v10819_v63 = vadd.f32 %v4205_v27, %v3976_v46  ;;  %v12866_v46 = vld [vmem:[#allocation60_spill] sm:$0xff] }
 0x3de   : > { %v3333_v49 = vpop.f32.mrf.mxu2 }
 0x3df   : > { %12861 = vst [vmem:[#allocation44_spill] sm:$0xff] %v10819_v63  ;;  %v3334_v30 = vadd.f32 %v3333_v49, %v12862_v45  ;;  %v12867_v49 = vld [vmem:[#allocation91_spill] sm:$0xff] }
 0x3e0   : > { %v3913_v61 = vpop.f32.mrf.mxu0 }
 0x3e1   : > { %v3674_v35 = vadd.f32 %v3603_v38, %v3334_v30 }
 0x3e3   : > { %v3605_v24 = vpop.f32.mrf.mxu3  ;;  %v2531_v51 = vpop.permute.xlu2 %2530  ;;  %v3977_v9 = vadd.f32 %v3906_v20, %v3674_v35 }
 0x3e4   : > { %2601 = vst.msk [vmem:[%s9843_s14 + $0xd0] sm:$0xff] %vm2574_vm10, %v2531_v51  ;;  %v4218_v14 = vpop.f32.mrf.mxu1  ;;  %7576 = vmatmul.msk.bf16.gmra.mxu1 %vm2607_vm6, %v12866_v46  ;;  %v12868_v51 = vld [vmem:[#allocation36_spill] sm:$0xff] }
 0x3e5   : > { %v10824_v17 = vadd.f32 %v4208_v40, %v3977_v9 }
 0x3e6   : > { %v3335_v36 = vpop.f32.mrf.mxu2 }
 0x3e7   : > { %12863 = vst [vmem:[#allocation84_spill] sm:$0xff] %v10824_v17  ;;  %v3336_v33 = vadd.f32 %v3335_v36, %v12864_v28  ;;  %v12870_v36 = vld [vmem:[#allocation92_spill] sm:$0xff] }
 0x3e8   : > { %7541 = vmatmul.msk.bf16.gmra.mxu3 %vm2607_vm6, %v12865_v18  ;;  %v3916_v27 = vpop.f32.mrf.mxu0  ;;  %7524 = vmatmul.msk.bf16.gmra.mxu2 %vm2607_vm6, %v12867_v49  ;;  %v12873_v18 = vld [vmem:[#allocation31_spill] sm:$0xff] }
 0x3e9   : > { %v3675_v38 = vadd.f32 %v3605_v24, %v3336_v33 }
 0x3eb   : > { %v3608_v20 = vpop.f32.mrf.mxu3  ;;  %7559 = vmatmul.msk.bf16.gmra.mxu0 %vm2607_vm6, %v12868_v51  ;;  %v2527_v40 = vpop.permute.xlu0 %2526  ;;  %v3978_v9 = vadd.f32 %v3908_v62, %v3675_v38  ;;  %v12872_v38 = vld [vmem:[#allocation28_spill] sm:$0xff] }
 0x3ec   : > { %2599 = vst.msk [vmem:[%s9843_s14 + $0xc0] sm:$0xff] %vm2574_vm10, %v2527_v40  ;;  %v4220_v45 = vpop.f32.mrf.mxu1 }
 0x3ed   : > { %v10837_v30 = vadd.f32 %v4210_v11, %v3978_v9  ;;  %v12874_v9 = vld [vmem:[#allocation62_spill] sm:$0xff] }
 0x3ee   : > { %v3338_v35 = vpop.f32.mrf.mxu2 }
 0x3ef   : > { %12869 = vst [vmem:[#allocation86_spill] sm:$0xff] %v10837_v30  ;;  %v3339_v28 = vadd.f32 %v3338_v35, %v12870_v36  ;;  %v12875_v35 = vld [vmem:[#allocation93_spill] sm:$0xff] }
 0x3f0   : > { %v3918_v46 = vpop.f32.mrf.mxu0 }
 0x3f1   : > { %v3676_v24 = vadd.f32 %v3608_v20, %v3339_v28 }
 0x3f3   : > { %v3610_v33 = vpop.f32.mrf.mxu3  ;;  %v2529_v17 = vpop.permute.xlu1 %2528  ;;  %v3979_v49 = vadd.f32 %v3911_v48, %v3676_v24 }
 0x3f4   : > { %2600 = vst.msk [vmem:[%s9843_s14 + $0xc8] sm:$0xff] %vm2574_vm10, %v2529_v17  ;;  %v4223_v63 = vpop.f32.mrf.mxu1  ;;  %7577 = vmatmul.msk.bf16.gmra.mxu1 %vm2607_vm6, %v12874_v9  ;;  %v12876_v17 = vld [vmem:[#allocation63_spill] sm:$0xff] }
 0x3f5   : > { %v10842_v51 = vadd.f32 %v4213_v54, %v3979_v49 }
 0x3f6   : > { %v3340_v62 = vpop.f32.mrf.mxu2 }
 0x3f7   : > { %12871 = vst [vmem:[#allocation8_spill] sm:$0xff] %v10842_v51  ;;  %v3341_v40 = vadd.f32 %v3340_v62, %v12872_v38  ;;  %v12877_v62 = vld [vmem:[#allocation94_spill] sm:$0xff] }
 0x3f8   : > { %7542 = vmatmul.msk.bf16.gmra.mxu3 %vm2607_vm6, %v12873_v18  ;;  %v3921_v11 = vpop.f32.mrf.mxu0  ;;  %7525 = vmatmul.msk.bf16.gmra.mxu2 %vm2607_vm6, %v12875_v35  ;;  %v12880_v18 = vld [vmem:[#allocation64_spill] sm:$0xff] }
 0x3f9   : > { %v3677_v20 = vadd.f32 %v3610_v33, %v3341_v40 }
 0x3fb   : > { %v3613_v48 = vpop.f32.mrf.mxu3  ;;  %7560 = vmatmul.msk.bf16.gmra.mxu0 %vm2607_vm6, %v12876_v17  ;;  %v2537_v54 = vpop.permute.xlu2 %2536  ;;  %v3980_v49 = vadd.f32 %v3913_v61, %v3677_v20  ;;  %v12879_v20 = vld [vmem:[#allocation33_spill] sm:$0xff] }
 0x3fc   : > { %2604 = vst.msk [vmem:[%s9843_s14 + $0xe8] sm:$0xff] %vm2574_vm10, %v2537_v54  ;;  %v4225_v36 = vpop.f32.mrf.mxu1 }
 0x3fd   : > { %v10855_v28 = vadd.f32 %v4215_v13, %v3980_v49  ;;  %v12881_v49 = vld [vmem:[#allocation66_spill] sm:$0xff] }
 0x3fe   : > { %v3343_v24 = vpop.f32.mrf.mxu2 }
 0x3ff   : > { %v3344_v38 = vadd.f32 %v3343_v24, %v12877_v62  ;;  %v12882_v24 = vld [vmem:[#allocation38_spill] sm:$0xff] }
 0x400   : > { %v3923_v9 = vpop.f32.mrf.mxu0 }
 0x401   : > { %v3678_v33 = vadd.f32 %v3613_v48, %v3344_v38 }
 0x403   : > { %v3615_v40 = vpop.f32.mrf.mxu3  ;;  %v2533_v51 = vpop.permute.xlu0 %2532  ;;  %v3981_v30 = vadd.f32 %v3916_v27, %v3678_v33  ;;  %v7664_v33 = vld [vmem:[%s12410_s3 + $0x14] sm:$0x3] }
 0x404   : > { %2602 = vst.msk [vmem:[%s9843_s14 + $0xd8] sm:$0xff] %vm2574_vm10, %v2533_v51  ;;  %v4228_v35 = vpop.f32.mrf.mxu1  ;;  %7578 = vmatmul.msk.bf16.gmra.mxu1 %vm2607_vm6, %v12881_v49  ;;  %v7647_v51 = vld [vmem:[%s12410_s3 + $0x12] sm:$0x3] }
 0x405   : > { %v10860_v17 = vadd.f32 %v4218_v14, %v3981_v30  ;;  %v4863_v62 = vsel %vm3165_vm5, %v7647_v51, 0  ;;  %v7681_v51 = vld [vmem:[%s12410_s3 + $0x16] sm:$0x3] }
 0x406   : > { %v3345_v61 = vpop.f32.mrf.mxu2  ;;  %4872 = vmatpush.bf16.msrb.mxu2 %v4863_v62 }
 0x407   : > { %12878 = vst [vmem:[#allocation11_spill] sm:$0xff] %v10860_v17  ;;  %v3346_v54 = vadd.f32 %v3345_v61, %v12879_v20  ;;  %v4993_v20 = vsel %vm3165_vm5, %v7664_v33, 0 }
 0x408   : > { %7543 = vmatmul.msk.bf16.gmra.mxu3 %vm2607_vm6, %v12880_v18  ;;  %v3926_v13 = vpop.f32.mrf.mxu0  ;;  %7526 = vmatmul.msk.bf16.gmra.mxu2 %vm2607_vm6, %v12882_v24 }
 0x409   : > { %v3679_v48 = vadd.f32 %v3615_v40, %v3346_v54  ;;  %v12884_v54 = vld [vmem:[#allocation95_spill] sm:$0xff]  ;;  %5002 = vmatpush.bf16.msrb.mxu3 %v4993_v20 }
 0x40b   : > { %v3618_v27 = vpop.f32.mrf.mxu3  ;;  %7561 = vmatmul.msk.bf16.gmra.mxu0 %vm2607_vm6, %v10489_v50  ;;  %v2535_v14 = vpop.permute.xlu1 %2534  ;;  %v3982_v30 = vadd.f32 %v3918_v46, %v3679_v48 }
 0x40c   : > { %2603 = vst.msk [vmem:[%s9843_s14 + $0xe0] sm:$0xff] %vm2574_vm10, %v2535_v14  ;;  %v4230_v38 = vpop.f32.mrf.mxu1 }
 0x40d   : > { %v10880_v40 = vadd.f32 %v4220_v45, %v3982_v30  ;;  %v5133_v30 = vsel %vm3165_vm5, %v7681_v51, 0 }
 0x40e   : > { %v3348_v61 = vpop.f32.mrf.mxu2  ;;  %5142 = vmatpush.bf16.msrb.mxu0 %v5133_v30 }
 0x40f   : > { %12883 = vst [vmem:[#allocation83_spill] sm:$0xff] %v10880_v40  ;;  %v3349_v49 = vadd.f32 %v3348_v61, %v12884_v54  ;;  %v12886_v40 = vld [vmem:[#allocation37_spill] sm:$0xff] }
 0x410   : > { %v3928_v17 = vpop.f32.mrf.mxu0 }
 0x411   : > { %v3680_v46 = vadd.f32 %v3618_v27, %v3349_v49 }
 0x413   : > { %v3620_v48 = vpop.f32.mrf.mxu3  ;;  %v3983_v14 = vadd.f32 %v3921_v11, %v3680_v46 }
 0x414   : > { %v4233_v24 = vpop.f32.mrf.mxu1  ;;  %7631 = vmatmul.msk.bf16.vlgmr.msra.gmra.mxu1 %vm2607_vm6, %v10571_v10 }
 0x415   : > { %v10887_v62 = vadd.f32 %v4223_v63, %v3983_v14  ;;  %v7698_v63 = vld [vmem:[%s12410_s3 + $0x18] sm:$0x3] }
 0x416   : > { %v3350_v45 = vpop.f32.mrf.mxu2  ;;  %v5270_v27 = vsel %vm3165_vm5, %v7698_v63, 0 }
 0x417   : > { %12885 = vst [vmem:[#allocation85_spill] sm:$0xff] %v10887_v62  ;;  %v3351_v33 = vadd.f32 %v3350_v45, %v12886_v40  ;;  %5279 = vmatpush.bf16.msrb.mxu1 %v5270_v27 }
 0x418   : > { %7544 = vmatmul.msk.bf16.gmra.mxu3 %vm2607_vm6, %v10494_v56  ;;  %v3931_v49 = vpop.f32.mrf.mxu0  ;;  %7527 = vmatmul.msk.bf16.gmra.mxu2 %vm2607_vm6, %v10486_v21  ;;  %v12889_v21 = vld [vmem:[#allocation70_spill] sm:$0xff] }
 0x419   : > { %v3681_v11 = vadd.f32 %v3620_v48, %v3351_v33  ;;  %v12887_v48 = vld [vmem:[#allocation97_spill] sm:$0xff] }
 0x41b   : > { %v3623_v40 = vpop.f32.mrf.mxu3  ;;  %7614 = vmatmul.msk.bf16.vlgmr.msra.gmra.mxu0 %vm2607_vm6, %v10595_v53  ;;  %v2539_v61 = vpop.permute.xlu0 %2538  ;;  %v3984_v20 = vadd.f32 %v3923_v9, %v3681_v11  ;;  %v12888_v11 = vld [vmem:[#allocation65_spill] sm:$0xff] }
 0x41c   : > { %2605 = vst.msk [vmem:[%s9843_s14 + $0xf0] sm:$0xff] %vm2574_vm10, %v2539_v61  ;;  %v4235_v10 = vpop.f32.mrf.mxu1 }
 0x41d   : > { %v10905_v54 = vadd.f32 %v4225_v36, %v3984_v20 }
 0x41e   : > { %v3353_v46 = vpop.f32.mrf.mxu2 }
 0x41f   : > { %v3354_v14 = vadd.f32 %v3353_v46, %v12887_v48 }
 0x420   : > { %v3933_v51 = vpop.f32.mrf.mxu0 }
 0x421   : > { %v3682_v45 = vadd.f32 %v3623_v40, %v3354_v14 }
 0x423   : > { %v3625_v30 = vpop.f32.mrf.mxu3  ;;  %v2541_v33 = vpop.permute.xlu1 %2540  ;;  %v3985_v63 = vadd.f32 %v3926_v13, %v3682_v45 }
 0x424   : > { %2606 = vst.msk [vmem:[%s9843_s14 + $0xf8] sm:$0xff] %vm2574_vm10, %v2541_v33  ;;  %v4238_v62 = vpop.f32.mrf.mxu1  ;;  %7632 = vmatmul.msk.bf16.gmra.mxu1 %vm2607_vm6, %v12818_v15 }
 0x425   : > { %v10910_v53 = vadd.f32 %v4228_v35, %v3985_v63 }
 0x426   : > { %v3355_v9 = vpop.f32.mrf.mxu2 }
 0x427   : > { %v3356_v61 = vadd.f32 %v3355_v9, %v12888_v11 }
 0x428   : > { %v3936_v27 = vpop.f32.mrf.mxu0  ;;  %7597 = vmatmul.msk.bf16.vlgmr.msra.gmra.mxu3 %vm2607_vm6, %v12889_v21  ;;  %7580 = vmatmul.msk.bf16.vlgmr.msra.gmra.mxu2 %vm2607_vm6, %v10603_v44 }
 0x429   : > { %v3683_v36 = vadd.f32 %v3625_v30, %v3356_v61  ;;  %v12890_v61 = vld [vmem:[#allocation73_spill] sm:$0xff] }
 0x42b   : > { %v3628_v40 = vpop.f32.mrf.mxu3  ;;  %7615 = vmatmul.msk.bf16.gmra.mxu0 %vm2607_vm6, %v12819_v16  ;;  %v3986_v35 = vadd.f32 %v3928_v17, %v3683_v36 }
 0x42c   : > { %v4240_v13 = vpop.f32.mrf.mxu1 }
 0x42d   : > { %v10921_v20 = vadd.f32 %v4230_v38, %v3986_v35 }
 0x42e   : > { %v3358_v46 = vpop.f32.mrf.mxu2 }
 0x42f   : > { %v3359_v48 = vadd.f32 %v3358_v46, %v10509_v4 }
 0x430   : > { %v3938_v14 = vpop.f32.mrf.mxu0 }
 0x431   : > { %v3684_v21 = vadd.f32 %v3628_v40, %v3359_v48 }
 0x433   : > { %v3630_v45 = vpop.f32.mrf.mxu3  ;;  %v3987_v33 = vadd.f32 %v3931_v49, %v3684_v21 }
 0x434   : > { %v4243_v63 = vpop.f32.mrf.mxu1  ;;  %7633 = vmatmul.msk.bf16.gmra.mxu1 %vm2607_vm6, %v9430_v39  ;;  %v12891_v39 = vld [vmem:[#allocation79_spill] sm:$0xff] }
 0x435   : > { %v10924_v30 = vadd.f32 %v4233_v24, %v3987_v33 }
 0x436   : > { %v3360_v9 = vpop.f32.mrf.mxu2 }
 0x437   : > { %v3361_v44 = vadd.f32 %v3360_v9, %v10534_v60 }
 0x438   : > { %v3941_v11 = vpop.f32.mrf.mxu0  ;;  %7598 = vmatmul.msk.bf16.gmra.mxu3 %vm2607_vm6, %v12890_v61  ;;  %7581 = vmatmul.msk.bf16.gmra.mxu2 %vm2607_vm6, %v12820_v58 }
 0x439   : > { %v3685_v17 = vadd.f32 %v3630_v45, %v3361_v44 }
 0x43b   : > { %v3633_v38 = vpop.f32.mrf.mxu3  ;;  %7616 = vmatmul.msk.bf16.gmra.mxu0 %vm2607_vm6, %v12821_v3  ;;  %v3988_v4 = vadd.f32 %v3933_v51, %v3685_v17 }
 0x43c   : > { %v4245_v24 = vpop.f32.mrf.mxu1 }
 0x43d   : > { %v10935_v49 = vadd.f32 %v4235_v10, %v3988_v4 }
 0x43e   : > { %v3363_v60 = vpop.f32.mrf.mxu2 }
 0x43f   : > { %v3364_v36 = vadd.f32 %v3363_v60, %v10560_v2 }
 0x440   : > { %v3943_v40 = vpop.f32.mrf.mxu0 }
 0x441   : > { %v3686_v35 = vadd.f32 %v3633_v38, %v3364_v36 }
 0x443   : > { %v3635_v46 = vpop.f32.mrf.mxu3  ;;  %v3989_v48 = vadd.f32 %v3936_v27, %v3686_v35 }
 0x444   : > { %v4248_v21 = vpop.f32.mrf.mxu1  ;;  %7634 = vmatmul.msk.bf16.gmra.mxu1 %vm2607_vm6, %v9514_v23  ;;  %v12892_v23 = vld [vmem:[#allocation16_spill] sm:$0xff] }
 0x445   : > { %v10938_v45 = vadd.f32 %v4238_v62, %v3989_v48 }
 0x446   : > { %v3365_v33 = vpop.f32.mrf.mxu2 }
 0x447   : > { %v3366_v9 = vadd.f32 %v3365_v33, %v10583_v59 }
 0x448   : > { %v3946_v44 = vpop.f32.mrf.mxu0  ;;  %7599 = vmatmul.msk.bf16.gmra.mxu3 %vm2607_vm6, %v12891_v39  ;;  %7582 = vmatmul.msk.bf16.gmra.mxu2 %vm2607_vm6, %v12822_v6 }
 0x449   : > { %v3687_v10 = vadd.f32 %v3635_v46, %v3366_v9 }
 0x44b   : > { %v3638_v51 = vpop.f32.mrf.mxu3  ;;  %7617 = vmatmul.msk.bf16.gmra.mxu0 %vm2607_vm6, %v9533_v29  ;;  %v3990_v2 = vadd.f32 %v3938_v14, %v3687_v10 }
 0x44c   : > { %v4250_v62 = vpop.f32.mrf.mxu1 }
 0x44d   : > { %v10949_v27 = vadd.f32 %v4240_v13, %v3990_v2 }
 0x44e   : > { %v3368_v59 = vpop.f32.mrf.mxu2 }
 0x44f   : > { %v3369_v17 = vadd.f32 %v3368_v59, %v10597_v7 }
 0x450   : > { %v3948_v38 = vpop.f32.mrf.mxu0 }
 0x451   : > { %v3688_v4 = vadd.f32 %v3638_v51, %v3369_v17 }
 0x453   : > { %v3640_v60 = vpop.f32.mrf.mxu3  ;;  %v3991_v36 = vadd.f32 %v3941_v11, %v3688_v4 }
 0x454   : > { %v4253_v35 = vpop.f32.mrf.mxu1  ;;  %7635 = vmatmul.msk.bf16.gmra.mxu1 %vm2607_vm6, %v9586_v57  ;;  %v12893_v57 = vld [vmem:[#allocation23_spill] sm:$0xff] }
 0x455   : > { %v10952_v46 = vadd.f32 %v4243_v63, %v3991_v36 }
 0x456   : > { %v3370_v48 = vpop.f32.mrf.mxu2 }
 0x457   : > { %v3371_v33 = vadd.f32 %v3370_v48, %v10617_v55 }
 0x458   : > { %v3951_v9 = vpop.f32.mrf.mxu0  ;;  %7600 = vmatmul.msk.bf16.gmra.mxu3 %vm2607_vm6, %v12892_v23  ;;  %7583 = vmatmul.msk.bf16.gmra.mxu2 %vm2607_vm6, %v12823_v37 }
 0x459   : > { %v3689_v13 = vadd.f32 %v3640_v60, %v3371_v33 }
 0x45b   : > { %v3643_v14 = vpop.f32.mrf.mxu3  ;;  %7618 = vmatmul.msk.bf16.gmra.mxu0 %vm2607_vm6, %v9611_v25  ;;  %v3992_v7 = vadd.f32 %v3943_v40, %v3689_v13 }
 0x45c   : > { %v4255_v63 = vpop.f32.mrf.mxu1 }
 0x45d   : > { %v10963_v11 = vadd.f32 %v4245_v24, %v3992_v7 }
 0x45e   : > { %v3373_v55 = vpop.f32.mrf.mxu2 }
 0x45f   : > { %v3374_v10 = vadd.f32 %v3373_v55, %v10624_v5 }
 0x460   : > { %v3953_v51 = vpop.f32.mrf.mxu0 }
 0x461   : > { %v3690_v2 = vadd.f32 %v3643_v14, %v3374_v10 }
 0x463   : > { %v3645_v59 = vpop.f32.mrf.mxu3  ;;  %v3993_v17 = vadd.f32 %v3946_v44, %v3690_v2 }
 0x464   : > { %v4258_v4 = vpop.f32.mrf.mxu1  ;;  %7636 = vmatmul.msk.bf16.gmra.mxu1 %vm2607_vm6, %v9664_v47  ;;  %v12894_v47 = vld [vmem:[#allocation42_spill] sm:$0xff] }
 0x465   : > { %v10966_v60 = vadd.f32 %v4248_v21, %v3993_v17 }
 0x466   : > { %v3375_v36 = vpop.f32.mrf.mxu2 }
 0x467   : > { %v3376_v48 = vadd.f32 %v3375_v36, %v10639_v32 }
 0x468   : > { %v3956_v33 = vpop.f32.mrf.mxu0  ;;  %7601 = vmatmul.msk.bf16.gmra.mxu3 %vm2607_vm6, %v12893_v57  ;;  %7584 = vmatmul.msk.bf16.gmra.mxu2 %vm2607_vm6, %v9592_v12 }
 0x469   : > { %v3691_v24 = vadd.f32 %v3645_v59, %v3376_v48 }
 0x46b   : > { %v3648_v40 = vpop.f32.mrf.mxu3  ;;  %7619 = vmatmul.msk.bf16.gmra.mxu0 %vm2607_vm6, %v9689_v8  ;;  %v3994_v5 = vadd.f32 %v3948_v38, %v3691_v24 }
 0x46c   : > { %v4260_v21 = vpop.f32.mrf.mxu1 }
 0x46d   : > { %v10977_v44 = vadd.f32 %v4250_v62, %v3994_v5 }
 0x46e   : > { %v3378_v32 = vpop.f32.mrf.mxu2 }
 0x46f   : > { %v3379_v13 = vadd.f32 %v3378_v32, %v10646_v0 }
 0x470   : > { %v3958_v14 = vpop.f32.mrf.mxu0 }
 0x471   : > { %v3692_v7 = vadd.f32 %v3648_v40, %v3379_v13 }
 0x473   : > { %v3650_v55 = vpop.f32.mrf.mxu3  ;;  %v3995_v10 = vadd.f32 %v3951_v9, %v3692_v7 }
 0x474   : > { %v4263_v2 = vpop.f32.mrf.mxu1  ;;  %7637 = vmatmul.msk.bf16.gmra.mxu1 %vm2607_vm6, %v9749_v41  ;;  %v12896_v41 = vld [vmem:[#allocation43_spill] sm:$0xff] }
 0x475   : > { %v10980_v59 = vadd.f32 %v4253_v35, %v3995_v10 }
 0x476   : > { %v3380_v17 = vpop.f32.mrf.mxu2 }
 0x477   : > { %v3381_v36 = vadd.f32 %v3380_v17, %v10661_v19 }
 0x478   : > { %v3961_v48 = vpop.f32.mrf.mxu0  ;;  %7602 = vmatmul.msk.bf16.gmra.mxu3 %vm2607_vm6, %v12894_v47  ;;  %7585 = vmatmul.msk.bf16.gmra.mxu2 %vm2607_vm6, %v9670_v42 }
 0x479   : > { %v3693_v62 = vadd.f32 %v3650_v55, %v3381_v36 }
 0x47b   : > { %v3653_v38 = vpop.f32.mrf.mxu3  ;;  %7620 = vmatmul.msk.bf16.gmra.mxu0 %vm2607_vm6, %v12828_v26  ;;  %v3996_v0 = vadd.f32 %v3953_v51, %v3693_v62 }
 0x47c   : > { %v4265_v35 = vpop.f32.mrf.mxu1 }
 0x47d   : > { %v10991_v9 = vadd.f32 %v4255_v63, %v3996_v0 }
 0x47e   : > { %v3383_v19 = vpop.f32.mrf.mxu2 }
 0x47f   : > { %v3384_v24 = vadd.f32 %v3383_v19, %v10668_v34 }
 0x480   : > { %v3963_v40 = vpop.f32.mrf.mxu0 }
 0x481   : > { %v3694_v5 = vadd.f32 %v3653_v38, %v3384_v24 }
 0x483   : > { %v3655_v32 = vpop.f32.mrf.mxu3  ;;  %v3997_v13 = vadd.f32 %v3956_v33, %v3694_v5 }
 0x484   : > { %v4268_v7 = vpop.f32.mrf.mxu1  ;;  %7638 = vmatmul.msk.bf16.gmra.mxu1 %vm2607_vm6, %v12831_v52  ;;  %v12900_v52 = vld [vmem:[#allocation45_spill] sm:$0xff] }
 0x485   : > { %v10994_v55 = vadd.f32 %v4258_v4, %v3997_v13 }
 0x486   : > { %v3385_v10 = vpop.f32.mrf.mxu2 }
 0x487   : > { %12895 = vst [vmem:[#allocation88_spill] sm:$0xff] %v10994_v55  ;;  %v3386_v17 = vadd.f32 %v3385_v10, %v10683_v31  ;;  %v12899_v10 = vld [vmem:[#allocation71_spill] sm:$0xff]  ;;  %v12908_v55 = vld [vmem:[#allocation82_spill] sm:$0xff] }
 0x488   : > { %v3966_v36 = vpop.f32.mrf.mxu0  ;;  %7603 = vmatmul.msk.bf16.gmra.mxu3 %vm2607_vm6, %v12896_v41  ;;  %7586 = vmatmul.msk.bf16.gmra.mxu2 %vm2607_vm6, %v12830_v22 }
 0x489   : > { %v3695_v63 = vadd.f32 %v3655_v32, %v3386_v17 }
 0x48b   : > { %v3658_v51 = vpop.f32.mrf.mxu3  ;;  %7621 = vmatmul.msk.bf16.gmra.mxu0 %vm2607_vm6, %v12834_v1  ;;  %v3998_v34 = vadd.f32 %v3958_v14, %v3695_v63  ;;  %v12901_v63 = vld [vmem:[#allocation13_spill] sm:$0xff] }
 0x48c   : > { %v4270_v4 = vpop.f32.mrf.mxu1 }
 0x48d   : > { %v11005_v33 = vadd.f32 %v4260_v21, %v3998_v34 }
 0x48e   : > { %v3388_v31 = vpop.f32.mrf.mxu2 }
 0x48f   : > { %12897 = vst [vmem:[#allocation15_spill] sm:$0xff] %v11005_v33  ;;  %v3389_v62 = vadd.f32 %v3388_v31, %v10690_v43  ;;  %v12902_v43 = vld [vmem:[#allocation46_spill] sm:$0xff] }
 0x490   : > { %v3968_v38 = vpop.f32.mrf.mxu0  ;;  %v12907_v33 = vld [vmem:[#allocation74_spill] sm:$0xff] }
 0x491   : > { %v3696_v0 = vadd.f32 %v3658_v51, %v3389_v62  ;;  %v12903_v51 = vld [vmem:[#allocation12_spill] sm:$0xff] }
 0x493   : > { %v3660_v19 = vpop.f32.mrf.mxu3  ;;  %v3999_v24 = vadd.f32 %v3961_v48, %v3696_v0  ;;  %v12905_v0 = vld [vmem:[#allocation72_spill] sm:$0xff] }
 0x494   : > { %v4737_v5 = vpop.f32.mrf.mxu1  ;;  %7639 = vmatmul.msk.bf16.gmra.mxu1 %vm2607_vm6, %v12901_v63 }
 0x495   : > { %v11008_v32 = vadd.f32 %v4263_v2, %v3999_v24 }
 0x496   : > { %v3390_v13 = vpop.f32.mrf.mxu2 }
 0x497   : > { %12898 = vst [vmem:[#allocation90_spill] sm:$0xff] %v11008_v32  ;;  %v3391_v17 = vadd.f32 %v3390_v13, %v12899_v10 }
 0x498   : > { %7604 = vmatmul.msk.bf16.gmra.mxu3 %vm2607_vm6, %v12900_v52  ;;  %v4600_v14 = vpop.f32.mrf.mxu0  ;;  %7587 = vmatmul.msk.bf16.gmra.mxu2 %vm2607_vm6, %v12902_v43 }
 0x499   : > { %v3697_v21 = vadd.f32 %v3660_v19, %v3391_v17 }
 0x49b   : > { %v3663_v34 = vpop.f32.mrf.mxu3  ;;  %7622 = vmatmul.msk.bf16.gmra.mxu0 %vm2607_vm6, %v12903_v51  ;;  %v4000_v2 = vadd.f32 %v3963_v40, %v3697_v21  ;;  %v12909_v21 = vld [vmem:[#allocation54_spill] sm:$0xff]  ;;  %v12916_v51 = vld [vmem:[#allocation53_spill] sm:$0xff] }
 0x49c   : > { %v4739_v48 = vpop.f32.mrf.mxu1 }
 0x49d   : > { %v11019_v31 = vadd.f32 %v4265_v35, %v4000_v2  ;;  %v12910_v2 = vld [vmem:[#allocation50_spill] sm:$0xff] }
 0x49e   : > { %v3393_v62 = vpop.f32.mrf.mxu2 }
 0x49f   : > { %12904 = vst [vmem:[#allocation21_spill] sm:$0xff] %v11019_v31  ;;  %v3394_v24 = vadd.f32 %v3393_v62, %v12905_v0  ;;  %v12911_v62 = vld [vmem:[#allocation18_spill] sm:$0xff] }
 0x4a0   : > { %v4602_v13 = vpop.f32.mrf.mxu0  ;;  %v12913_v0 = vld [vmem:[#allocation78_spill] sm:$0xff] }
 0x4a1   : > { %v3698_v10 = vadd.f32 %v3663_v34, %v3394_v24 }
 0x4a3   : > { %v3665_v15 = vpop.f32.mrf.mxu3  ;;  %v4001_v32 = vadd.f32 %v3966_v36, %v3698_v10 }
 0x4a4   : > { %v4742_v63 = vpop.f32.mrf.mxu1  ;;  %7640 = vmatmul.msk.bf16.gmra.mxu1 %vm2607_vm6, %v12909_v21 }
 0x4a5   : > { %v11022_v19 = vadd.f32 %v4268_v7, %v4001_v32 }
 0x4a6   : > { %v3395_v17 = vpop.f32.mrf.mxu2 }
 0x4a7   : > { %12906 = vst [vmem:[#allocation92_spill] sm:$0xff] %v11022_v19  ;;  %v3396_v43 = vadd.f32 %v3395_v17, %v12907_v33 }
 0x4a8   : > { %7605 = vmatmul.msk.bf16.gmra.mxu3 %vm2607_vm6, %v12908_v55  ;;  %v4605_v40 = vpop.f32.mrf.mxu0  ;;  %7588 = vmatmul.msk.bf16.gmra.mxu2 %vm2607_vm6, %v12910_v2  ;;  %v12915_v2 = vld [vmem:[#allocation76_spill] sm:$0xff] }
 0x4a9   : > { %v3699_v35 = vadd.f32 %v3665_v15, %v3396_v43 }
 0x4ab   : > { %v4463_v34 = vpop.f32.mrf.mxu3  ;;  %7623 = vmatmul.msk.bf16.gmra.mxu0 %vm2607_vm6, %v12911_v62  ;;  %v4002_v7 = vadd.f32 %v3968_v38, %v3699_v35  ;;  %v12917_v35 = vld [vmem:[#allocation24_spill] sm:$0xff]  ;;  %v12924_v62 = vld [vmem:[#allocation14_spill] sm:$0xff] }
 0x4ac   : > { %v4744_v36 = vpop.f32.mrf.mxu1 }
 0x4ad   : > { %v11033_v32 = vadd.f32 %v4270_v4, %v4002_v7  ;;  %v12918_v7 = vld [vmem:[#allocation87_spill] sm:$0xff] }
 0x4ae   : > { %v4323_v33 = vpop.f32.mrf.mxu2 }
 0x4af   : > { %12912 = vst [vmem:[#allocation28_spill] sm:$0xff] %v11033_v32  ;;  %v4403_v24 = vadd.f32 %v4323_v33, %v12913_v0  ;;  %v12919_v33 = vld [vmem:[#allocation19_spill] sm:$0xff]  ;;  %v12921_v0 = vld [vmem:[#allocation81_spill] sm:$0xff] }
 0x4b0   : > { %v4607_v10 = vpop.f32.mrf.mxu0 }
 0x4b1   : > { %v4543_v17 = vadd.f32 %v4463_v34, %v4403_v24 }
 0x4b3   : > { %v4465_v19 = vpop.f32.mrf.mxu3  ;;  %v4680_v31 = vadd.f32 %v4600_v14, %v4543_v17 }
 0x4b4   : > { %v4747_v21 = vpop.f32.mrf.mxu1  ;;  %7641 = vmatmul.msk.bf16.gmra.mxu1 %vm2607_vm6, %v12917_v35 }
 0x4b5   : > { %v11036_v15 = vadd.f32 %v4737_v5, %v4680_v31 }
 0x4b6   : > { %v4325_v43 = vpop.f32.mrf.mxu2 }
 0x4b7   : > { %12914 = vst [vmem:[#allocation94_spill] sm:$0xff] %v11036_v15  ;;  %v4404_v55 = vadd.f32 %v4325_v43, %v12915_v2 }
 0x4b8   : > { %7606 = vmatmul.msk.bf16.gmra.mxu3 %vm2607_vm6, %v12916_v51  ;;  %v4610_v38 = vpop.f32.mrf.mxu0  ;;  %7589 = vmatmul.msk.bf16.gmra.mxu2 %vm2607_vm6, %v12918_v7  ;;  %v12923_v7 = vld [vmem:[#allocation20_spill] sm:$0xff] }
 0x4b9   : > { %v4544_v4 = vadd.f32 %v4465_v19, %v4404_v55 }
 0x4bb   : > { %v4468_v34 = vpop.f32.mrf.mxu3  ;;  %7624 = vmatmul.msk.bf16.gmra.mxu0 %vm2607_vm6, %v12919_v33  ;;  %v4681_v5 = vadd.f32 %v4602_v13, %v4544_v4  ;;  %v12925_v4 = vld [vmem:[#allocation29_spill] sm:$0xff] }
 0x4bc   : > { %v4749_v14 = vpop.f32.mrf.mxu1  ;;  %v12932_v33 = vld [vmem:[#allocation57_spill] sm:$0xff] }
 0x4bd   : > { %v11047_v31 = vadd.f32 %v4739_v48, %v4681_v5  ;;  %v12926_v5 = vld [vmem:[#allocation55_spill] sm:$0xff] }
 0x4be   : > { %v4328_v2 = vpop.f32.mrf.mxu2 }
 0x4bf   : > { %12920 = vst [vmem:[#allocation33_spill] sm:$0xff] %v11047_v31  ;;  %v4405_v24 = vadd.f32 %v4328_v2, %v12921_v0  ;;  %v12927_v2 = vld [vmem:[#allocation25_spill] sm:$0xff]  ;;  %v12929_v0 = vld [vmem:[#allocation10_spill] sm:$0xff] }
 0x4c0   : > { %v4612_v17 = vpop.f32.mrf.mxu0 }
 0x4c1   : > { %v4545_v43 = vadd.f32 %v4468_v34, %v4405_v24 }
 0x4c3   : > { %v4470_v15 = vpop.f32.mrf.mxu3  ;;  %v4682_v32 = vadd.f32 %v4605_v40, %v4545_v43 }
 0x4c4   : > { %v4752_v35 = vpop.f32.mrf.mxu1  ;;  %7642 = vmatmul.msk.bf16.gmra.mxu1 %vm2607_vm6, %v12925_v4 }
 0x4c5   : > { %v11050_v55 = vadd.f32 %v4742_v63, %v4682_v32 }
 0x4c6   : > { %v4330_v19 = vpop.f32.mrf.mxu2 }
 0x4c7   : > { %12922 = vst [vmem:[#allocation95_spill] sm:$0xff] %v11050_v55  ;;  %v4406_v51 = vadd.f32 %v4330_v19, %v12923_v7 }
 0x4c8   : > { %7607 = vmatmul.msk.bf16.gmra.mxu3 %vm2607_vm6, %v12924_v62  ;;  %v4615_v13 = vpop.f32.mrf.mxu0  ;;  %7590 = vmatmul.msk.bf16.gmra.mxu2 %vm2607_vm6, %v12926_v5  ;;  %v12931_v5 = vld [vmem:[#allocation44_spill] sm:$0xff] }
 0x4c9   : > { %v4546_v48 = vadd.f32 %v4470_v15, %v4406_v51 }
 0x4cb   : > { %v4473_v34 = vpop.f32.mrf.mxu3  ;;  %7625 = vmatmul.msk.bf16.gmra.mxu0 %vm2607_vm6, %v12927_v2  ;;  %v4683_v63 = vadd.f32 %v4607_v10, %v4546_v48  ;;  %v12933_v48 = vld [vmem:[#allocation36_spill] sm:$0xff]  ;;  %v12940_v2 = vld [vmem:[#allocation59_spill] sm:$0xff] }
 0x4cc   : > { %v4754_v40 = vpop.f32.mrf.mxu1 }
 0x4cd   : > { %v11061_v32 = vadd.f32 %v4744_v36, %v4683_v63  ;;  %v12934_v63 = vld [vmem:[#allocation91_spill] sm:$0xff] }
 0x4ce   : > { %v4333_v7 = vpop.f32.mrf.mxu2 }
 0x4cf   : > { %12928 = vst [vmem:[#allocation37_spill] sm:$0xff] %v11061_v32  ;;  %v4407_v24 = vadd.f32 %v4333_v7, %v12929_v0  ;;  %v12935_v7 = vld [vmem:[#allocation31_spill] sm:$0xff]  ;;  %v12937_v0 = vld [vmem:[#allocation84_spill] sm:$0xff] }
 0x4d0   : > { %v4617_v43 = vpop.f32.mrf.mxu0 }
 0x4d1   : > { %v4547_v19 = vadd.f32 %v4473_v34, %v4407_v24 }
 0x4d3   : > { %v4475_v55 = vpop.f32.mrf.mxu3  ;;  %v4684_v31 = vadd.f32 %v4610_v38, %v4547_v19 }
 0x4d4   : > { %v4757_v4 = vpop.f32.mrf.mxu1  ;;  %7643 = vmatmul.msk.bf16.gmra.mxu1 %vm2607_vm6, %v12933_v48 }
 0x4d5   : > { %v11064_v51 = vadd.f32 %v4747_v21, %v4684_v31 }
 0x4d6   : > { %v4335_v15 = vpop.f32.mrf.mxu2 }
 0x4d7   : > { %12930 = vst [vmem:[#allocation97_spill] sm:$0xff] %v11064_v51  ;;  %v4408_v62 = vadd.f32 %v4335_v15, %v12931_v5 }
 0x4d8   : > { %7608 = vmatmul.msk.bf16.gmra.mxu3 %vm2607_vm6, %v12932_v33  ;;  %v4620_v10 = vpop.f32.mrf.mxu0  ;;  %7591 = vmatmul.msk.bf16.gmra.mxu2 %vm2607_vm6, %v12934_v63  ;;  %v12939_v63 = vld [vmem:[#allocation86_spill] sm:$0xff] }
 0x4d9   : > { %v4548_v36 = vadd.f32 %v4475_v55, %v4408_v62 }
 0x4db   : > { %v4478_v34 = vpop.f32.mrf.mxu3  ;;  %7626 = vmatmul.msk.bf16.gmra.mxu0 %vm2607_vm6, %v12935_v7  ;;  %v4685_v21 = vadd.f32 %v4612_v17, %v4548_v36  ;;  %v12941_v36 = vld [vmem:[#allocation63_spill] sm:$0xff] }
 0x4dc   : > { %v4759_v38 = vpop.f32.mrf.mxu1 }
 0x4dd   : > { %v11075_v31 = vadd.f32 %v4749_v14, %v4685_v21  ;;  %v12942_v21 = vld [vmem:[#allocation93_spill] sm:$0xff] }
 0x4de   : > { %v4338_v5 = vpop.f32.mrf.mxu2 }
 0x4df   : > { %12936 = vst [vmem:[#allocation65_spill] sm:$0xff] %v11075_v31  ;;  %v4409_v24 = vadd.f32 %v4338_v5, %v12937_v0  ;;  %v12944_v5 = vld [vmem:[#allocation8_spill] sm:$0xff] }
 0x4e0   : > { %v4622_v19 = vpop.f32.mrf.mxu0 }
 0x4e1   : > { %v4549_v15 = vadd.f32 %v4478_v34, %v4409_v24 }
 0x4e3   : > { %v4480_v51 = vpop.f32.mrf.mxu3  ;;  %v4686_v32 = vadd.f32 %v4615_v13, %v4549_v15 }
 0x4e4   : > { %v4762_v48 = vpop.f32.mrf.mxu1  ;;  %7644 = vmatmul.msk.bf16.gmra.mxu1 %vm2607_vm6, %v12941_v36 }
 0x4e5   : > { %v11078_v62 = vadd.f32 %v4752_v35, %v4686_v32 }
 0x4e6   : > { %v4340_v55 = vpop.f32.mrf.mxu2 }
 0x4e7   : > { %12938 = vst [vmem:[#allocation70_spill] sm:$0xff] %v11078_v62  ;;  %v4410_v33 = vadd.f32 %v4340_v55, %v12939_v63 }
 0x4e8   : > { %7609 = vmatmul.msk.bf16.gmra.mxu3 %vm2607_vm6, %v12940_v2  ;;  %v4625_v17 = vpop.f32.mrf.mxu0  ;;  %7592 = vmatmul.msk.bf16.gmra.mxu2 %vm2607_vm6, %v12942_v21 }
 0x4e9   : > { %v4550_v14 = vadd.f32 %v4480_v51, %v4410_v33 }
 0x4eb   : > { %v4483_v34 = vpop.f32.mrf.mxu3  ;;  %7627 = vmatmul.msk.bf16.gmra.mxu0 %vm2607_vm6, %v12880_v18  ;;  %v4687_v35 = vadd.f32 %v4617_v43, %v4550_v14  ;;  %v12946_v18 = vld [vmem:[#allocation61_spill] sm:$0xff]  ;;  %v11107_v14 = vld [vmem:[#allocation3 + $0x188] sm:$0xff] }
 0x4ec   : > { %v11089_v13 = vpop.f32.mrf.mxu1 }
 0x4ed   : > { %v11091_v32 = vadd.f32 %v4754_v40, %v4687_v35  ;;  %v11105_v40 = vld [vmem:[#allocation3 + $0x180] sm:$0xff] }
 0x4ee   : > { %v4343_v63 = vpop.f32.mrf.mxu2 }
 0x4ef   : > { %12943 = vst [vmem:[#allocation73_spill] sm:$0xff] %v11091_v32  ;;  %v4411_v0 = vadd.f32 %v4343_v63, %v12944_v5 }
 0x4f0   : > { %v4627_v24 = vpop.f32.mrf.mxu0 }
 0x4f1   : > { %v4551_v15 = vadd.f32 %v4483_v34, %v4411_v0  ;;  %v2912_v34 = vld [vmem:[#allocation3 + $0x190] sm:$0xf]  ;;  %v4712_v0 = vrot.slane %v11105_v40, 3 }
 0x4f2   : > { %v4852_v35 = vrot.slane %v2912_v34, 4 }
 0x4f3   : > { %v4485_v55 = vpop.f32.mrf.mxu3  ;;  %v4688_v36 = vadd.f32 %v4620_v10, %v4551_v15 }
 0x4f4   : > { %v11094_v33 = vpop.f32.mrf.mxu1  ;;  %7645 = vmatmul.msk.bf16.gmra.mxu1 %vm2607_vm6, %v10489_v50  ;;  %v4715_v50 = vrot.slane %v2912_v34, 3 }
 0x4f5   : > { %v11096_v51 = vadd.f32 %v4757_v4, %v4688_v36  ;;  %v4849_v4 = vrot.slane %v11105_v40, 4  ;;  %v4850_v36 = vrot.slane %v11107_v14, 4 }
 0x4f6   : > { %v4345_v62 = vpop.f32.mrf.mxu2 }
 0x4f7   : > { %12945 = vst [vmem:[#allocation79_spill] sm:$0xff] %v11096_v51  ;;  %v4412_v21 = vadd.f32 %v4345_v62, %v10855_v28  ;;  %v12947_v28 = vld [vmem:[#allocation38_spill] sm:$0xff]  ;;  %v4851_v5 = vsel %vm1028_vm0, %v4849_v4, %v4850_v36  ;;  %v4578_v4 = vrot.slane %v2912_v34, 2 }
 0x4f8   : > { %7610 = vmatmul.msk.bf16.gmra.mxu3 %vm2607_vm6, %v12946_v18  ;;  %v11101_v43 = vpop.f32.mrf.mxu0  ;;  %7593 = vmatmul.msk.bf16.gmra.mxu2 %vm2607_vm6, %v12947_v28  ;;  %v12950_v18 = vld [vmem:[#allocation11_spill] sm:$0xff] }
 0x4f9   : > { %v4552_v10 = vadd.f32 %v4485_v55, %v4412_v21  ;;  %v4853_v21 = vsel %vm1028_vm0, %v4850_v36, %v4852_v35  ;;  %v4713_v55 = vrot.slane %v11107_v14, 3 }
 0x4fa   : > { %v11123_v32 = vpack.c.bf16 %v4853_v21, %v4851_v5 }
 0x4fb   : > { %v4488_v62 = vpop.f32.mrf.mxu3  ;;  %7628 = vmatmul.msk.bf16.gmra.mxu0 %vm2607_vm6, %v10494_v56  ;;  %v4689_v63 = vadd.f32 %v4622_v19, %v4552_v10  ;;  %v4575_v19 = vrot.slane %v11105_v40, 2  ;;  %v4576_v10 = vrot.slane %v11107_v14, 2  ;;  %v4714_v36 = vsel %vm3700_vm8, %v4712_v0, %v4713_v55 }
 0x4fc   : > { %v11118_v15 = vpop.f32.mrf.mxu1  ;;  %12949 = vst [vmem:[#allocation72_spill] sm:$0xff] %v11123_v32  ;;  %v4716_v35 = vsel %vm3700_vm8, %v4713_v55, %v4715_v50  ;;  %v12952_v32 = vld [vmem:[#allocation83_spill] sm:$0xff]  ;;  %v4438_v55 = vrot.slane %v11105_v40, 1 }
 0x4fd   : > { %v11121_v51 = vadd.f32 %v4759_v38, %v4689_v63  ;;  %v11130_v38 = vpack.c.bf16 %v4716_v35, %v4714_v36  ;;  %v4577_v63 = vsel %vm1261_vm4, %v4575_v19, %v4576_v10  ;;  %v4579_v5 = vsel %vm1261_vm4, %v4576_v10, %v4578_v4 }
 0x4fe   : > { %v4348_v28 = vpop.f32.mrf.mxu2  ;;  %v11137_v1 = vpack.c.bf16 %v4579_v5, %v4577_v63  ;;  %v4439_v19 = vrot.slane %v11107_v14, 1 }
 0x4ff   : > { %12948 = vst [vmem:[#allocation71_spill] sm:$0xff] %v11121_v51  ;;  %v4413_v31 = vadd.f32 %v4348_v28, %v12950_v18 }
 0x500   : > { %v4632_v56 = vpop.f32.mrf.mxu0  ;;  %12951 = vst [vmem:[#allocation74_spill] sm:$0xff] %v11130_v38 }
 0x501   : > { %v4553_v2 = vadd.f32 %v4488_v62, %v4413_v31  ;;  %12953 = vst [vmem:[#allocation78_spill] sm:$0xff] %v11137_v1  ;;  %v12954_v31 = vld [vmem:[#allocation96_spill] sm:$0xff] }
 0x503   : > { %v4490_v7 = vpop.f32.mrf.mxu3  ;;  %v4690_v52 = vadd.f32 %v4625_v17, %v4553_v2  ;;  %v12955_v17 = vld [vmem:[#allocation67_spill] sm:$0xff] }
 0x504   : > { %v4772_v18 = vpop.f32.mrf.mxu1  ;;  %7646 = vmatmul.msk.bf16.gmra.mxu1 %vm2607_vm6, %v11130_v38 }
 0x505   : > { %v11134_v28 = vadd.f32 %v4762_v48, %v4690_v52  ;;  %v7715_v52 = vld [vmem:[%s12410_s3 + $0x1a] sm:$0x3] }
 0x506   : > { %v4350_v21 = vpop.f32.mrf.mxu2 }
 0x507   : > { %v4414_v51 = vadd.f32 %v4350_v21, %v12952_v32  ;;  %v5407_v32 = vsel %vm3165_vm5, %v7715_v52, 0  ;;  %v4440_v21 = vsel %vm849_vm3, %v4438_v55, %v4439_v19 }
 0x508   : > { %7611 = vmatmul.msk.bf16.gmra.mxu3 %vm2607_vm6, %v12954_v31  ;;  %v4635_v50 = vpop.f32.mrf.mxu0  ;;  %7594 = vmatmul.msk.bf16.gmra.mxu2 %vm2607_vm6, %v12955_v17 }
 0x509   : > { %v4554_v2 = vadd.f32 %v4490_v7, %v4414_v51  ;;  %v4441_v7 = vrot.slane %v2912_v34, 1  ;;  %5416 = vmatpush.bf16.msra.mxu2 %v5407_v32  ;;  %v7732_v51 = vld [vmem:[%s12410_s3 + $0x1c] sm:$0x3] }
 0x50a   : > { %v5544_v36 = vsel %vm3165_vm5, %v7732_v51, 0 }
 0x50b   : > { %v4493_v62 = vpop.f32.mrf.mxu3  ;;  %7629 = vmatmul.msk.bf16.gmra.mxu0 %vm2607_vm6, %v11137_v1  ;;  %v4691_v48 = vadd.f32 %v4627_v24, %v4554_v2  ;;  %v12956_v24 = vld [vmem:[#allocation85_spill] sm:$0xff]  ;;  %5553 = vmatpush.bf16.msra.mxu3 %v5544_v36  ;;  %v4442_v34 = vsel %vm849_vm3, %v4439_v19, %v4441_v7  ;;  %v11176_v19 = vpack.c.bf16 %v11107_v14, %v11105_v40 }
 0x50c   : > { %v4774_v0 = vpop.f32.mrf.mxu1  ;;  %v11164_v32 = vpack.c.bf16 %v4442_v34, %v4440_v21 }
 0x50d   : > { %v11157_v10 = vadd.f32 %v11089_v13, %v4691_v48  ;;  %v7749_v13 = vld [vmem:[%s12410_s3 + $0x1e] sm:$0x3]  ;;  %12958 = vst [vmem:[#allocation81_spill] sm:$0xff] %v11176_v19 }
 0x50e   : > { %v4353_v4 = vpop.f32.mrf.mxu2  ;;  %12957 = vst [vmem:[#allocation76_spill] sm:$0xff] %v11164_v32 }
 0x50f   : > { %v4415_v35 = vadd.f32 %v4353_v4, %v12956_v24 }
 0x510   : > { %v4637_v63 = vpop.f32.mrf.mxu0 }
 0x511   : > { %v4555_v5 = vadd.f32 %v4493_v62, %v4415_v35  ;;  %v5674_v62 = vsel %vm3165_vm5, %v7749_v13, 0 }
 0x512   : > { %5683 = vmatpush.bf16.msra.mxu0 %v5674_v62 }
 0x513   : > { %v4495_v2 = vpop.f32.mrf.mxu3  ;;  %v4692_v52 = vadd.f32 %v11101_v43, %v4555_v5 }
 0x514   : > { %v4777_v38 = vpop.f32.mrf.mxu1  ;;  %7699 = vmatmul.msk.bf16.vlgmr.msrb.gmra.mxu1 %vm2607_vm6, %v12819_v16 }
 0x515   : > { %v11170_v48 = vadd.f32 %v11094_v33, %v4692_v52  ;;  %v7766_v33 = vld [vmem:[%s12410_s3 + $0x20] sm:$0x3] }
 0x516   : > { %v4355_v51 = vpop.f32.mrf.mxu2  ;;  %v5814_v4 = vsel %vm3165_vm5, %v7766_v33, 0 }
 0x517   : > { %v4416_v55 = vadd.f32 %v4355_v51, %v10905_v54  ;;  %5823 = vmatpush.bf16.msra.mxu1 %v5814_v4 }
 0x518   : > { %7612 = vmatmul.msk.bf16.gmra.mxu3 %vm2607_vm6, %v11164_v32  ;;  %v4640_v43 = vpop.f32.mrf.mxu0  ;;  %7595 = vmatmul.msk.bf16.gmra.mxu2 %vm2607_vm6, %v11176_v19 }
 0x519   : > { %v4556_v7 = vadd.f32 %v4495_v2, %v4416_v55 }
 0x51b   : > { %v4498_v54 = vpop.f32.mrf.mxu3  ;;  %7682 = vmatmul.msk.bf16.vlgmr.msrb.gmra.mxu0 %vm2607_vm6, %v12890_v61  ;;  %v4693_v40 = vadd.f32 %v4632_v56, %v4556_v7 }
 0x51c   : > { %v4779_v14 = vpop.f32.mrf.mxu1 }
 0x51d   : > { %v11191_v36 = vadd.f32 %v11118_v15, %v4693_v40 }
 0x51e   : > { %v4358_v16 = vpop.f32.mrf.mxu2 }
 0x51f   : > { %v4417_v24 = vadd.f32 %v4358_v16, %v10910_v53  ;;  %v12959_v53 = vld [vmem:[#allocation69_spill] sm:$0xff] }
 0x520   : > { %v4642_v35 = vpop.f32.mrf.mxu0 }
 0x521   : > { %v4557_v5 = vadd.f32 %v4498_v54, %v4417_v24 }
 0x523   : > { %v4500_v21 = vpop.f32.mrf.mxu3  ;;  %v4694_v34 = vadd.f32 %v4635_v50, %v4557_v5 }
 0x524   : > { %v4782_v2 = vpop.f32.mrf.mxu1  ;;  %7700 = vmatmul.msk.bf16.gmra.mxu1 %vm2607_vm6, %v12821_v3 }
 0x525   : > { %v11194_v52 = vadd.f32 %v4772_v18, %v4694_v34 }
 0x526   : > { %v4360_v13 = vpop.f32.mrf.mxu2 }
 0x527   : > { %v4418_v51 = vadd.f32 %v4360_v13, %v10921_v20 }
 0x528   : > { %v4645_v61 = vpop.f32.mrf.mxu0  ;;  %7665 = vmatmul.msk.bf16.vlgmr.msrb.gmra.mxu3 %vm2607_vm6, %v12820_v58  ;;  %7648 = vmatmul.msk.bf16.vlgmr.msrb.gmra.mxu2 %vm2607_vm6, %v12959_v53 }
 0x529   : > { %v4558_v56 = vadd.f32 %v4500_v21, %v4418_v51 }
 0x52b   : > { %v4503_v15 = vpop.f32.mrf.mxu3  ;;  %7683 = vmatmul.msk.bf16.gmra.mxu0 %vm2607_vm6, %v12891_v39  ;;  %v4695_v18 = vadd.f32 %v4637_v63, %v4558_v56 }
 0x52c   : > { %v4784_v50 = vpop.f32.mrf.mxu1 }
 0x52d   : > { %v11205_v62 = vadd.f32 %v4774_v0, %v4695_v18 }
 0x52e   : > { %v4363_v20 = vpop.f32.mrf.mxu2 }
 0x52f   : > { %v4419_v55 = vadd.f32 %v4363_v20, %v10924_v30  ;;  %v12960_v30 = vld [vmem:[#allocation75_spill] sm:$0xff] }
 0x530   : > { %v4647_v7 = vpop.f32.mrf.mxu0 }
 0x531   : > { %v4559_v58 = vadd.f32 %v4503_v15, %v4419_v55 }
 0x533   : > { %v4505_v33 = vpop.f32.mrf.mxu3  ;;  %v4696_v4 = vadd.f32 %v4640_v43, %v4559_v58 }
 0x534   : > { %v4787_v54 = vpop.f32.mrf.mxu1  ;;  %7701 = vmatmul.msk.bf16.gmra.mxu1 %vm2607_vm6, %v9533_v29  ;;  %v12972_v29 = vld [vmem:[#allocation46_spill] sm:$0xff] }
 0x535   : > { %v11208_v40 = vadd.f32 %v4777_v38, %v4696_v4 }
 0x536   : > { %v4365_v16 = vpop.f32.mrf.mxu2 }
 0x537   : > { %v4420_v24 = vadd.f32 %v4365_v16, %v10935_v49 }
 0x538   : > { %v4650_v5 = vpop.f32.mrf.mxu0  ;;  %7666 = vmatmul.msk.bf16.gmra.mxu3 %vm2607_vm6, %v12822_v6  ;;  %7649 = vmatmul.msk.bf16.gmra.mxu2 %vm2607_vm6, %v12960_v30 }
 0x539   : > { %v4560_v0 = vadd.f32 %v4505_v33, %v4420_v24 }
 0x53b   : > { %v4508_v63 = vpop.f32.mrf.mxu3  ;;  %7684 = vmatmul.msk.bf16.gmra.mxu0 %vm2607_vm6, %v12892_v23  ;;  %v4697_v38 = vadd.f32 %v4642_v35, %v4560_v0 }
 0x53c   : > { %v4789_v43 = vpop.f32.mrf.mxu1 }
 0x53d   : > { %v11219_v21 = vadd.f32 %v4779_v14, %v4697_v38 }
 0x53e   : > { %v4368_v49 = vpop.f32.mrf.mxu2 }
 0x53f   : > { %v4421_v34 = vadd.f32 %v4368_v49, %v10938_v45  ;;  %v12961_v45 = vld [vmem:[#allocation80_spill] sm:$0xff] }
 0x540   : > { %v4652_v13 = vpop.f32.mrf.mxu0 }
 0x541   : > { %v4561_v51 = vadd.f32 %v4508_v63, %v4421_v34 }
 0x543   : > { %v4510_v56 = vpop.f32.mrf.mxu3  ;;  %v4698_v15 = vadd.f32 %v4645_v61, %v4561_v51 }
 0x544   : > { %v4792_v53 = vpop.f32.mrf.mxu1  ;;  %7702 = vmatmul.msk.bf16.gmra.mxu1 %vm2607_vm6, %v9611_v25 }
 0x545   : > { %v11222_v18 = vadd.f32 %v4782_v2, %v4698_v15 }
 0x546   : > { %v4370_v20 = vpop.f32.mrf.mxu2 }
 0x547   : > { %v4422_v55 = vadd.f32 %v4370_v20, %v10949_v27 }
 0x548   : > { %v4655_v58 = vpop.f32.mrf.mxu0  ;;  %7667 = vmatmul.msk.bf16.gmra.mxu3 %vm2607_vm6, %v12823_v37  ;;  %7650 = vmatmul.msk.bf16.gmra.mxu2 %vm2607_vm6, %v12961_v45 }
 0x549   : > { %v4562_v14 = vadd.f32 %v4510_v56, %v4422_v55 }
 0x54b   : > { %v4513_v35 = vpop.f32.mrf.mxu3  ;;  %7685 = vmatmul.msk.bf16.gmra.mxu0 %vm2607_vm6, %v12893_v57  ;;  %v4699_v2 = vadd.f32 %v4647_v7, %v4562_v14 }
 0x54c   : > { %v4794_v61 = vpop.f32.mrf.mxu1 }
 0x54d   : > { %v11233_v33 = vadd.f32 %v4784_v50, %v4699_v2 }
 0x54e   : > { %v4373_v27 = vpop.f32.mrf.mxu2 }
 0x54f   : > { %v4423_v4 = vadd.f32 %v4373_v27, %v10952_v46  ;;  %v12962_v46 = vld [vmem:[#allocation39_spill] sm:$0xff] }
 0x550   : > { %v4657_v16 = vpop.f32.mrf.mxu0 }
 0x551   : > { %v4563_v24 = vadd.f32 %v4513_v35, %v4423_v4 }
 0x553   : > { %v4515_v0 = vpop.f32.mrf.mxu3  ;;  %v4700_v63 = vadd.f32 %v4650_v5, %v4563_v24 }
 0x554   : > { %v4797_v38 = vpop.f32.mrf.mxu1  ;;  %7703 = vmatmul.msk.bf16.gmra.mxu1 %vm2607_vm6, %v9689_v8 }
 0x555   : > { %v11236_v49 = vadd.f32 %v4787_v54, %v4700_v63 }
 0x556   : > { %v4375_v34 = vpop.f32.mrf.mxu2 }
 0x557   : > { %v4424_v51 = vadd.f32 %v4375_v34, %v10963_v11 }
 0x558   : > { %v4660_v56 = vpop.f32.mrf.mxu0  ;;  %7668 = vmatmul.msk.bf16.gmra.mxu3 %vm2607_vm6, %v9592_v12  ;;  %7651 = vmatmul.msk.bf16.gmra.mxu2 %vm2607_vm6, %v12962_v46 }
 0x559   : > { %v4564_v50 = vadd.f32 %v4515_v0, %v4424_v51 }
 0x55b   : > { %v4518_v7 = vpop.f32.mrf.mxu3  ;;  %7686 = vmatmul.msk.bf16.gmra.mxu0 %vm2607_vm6, %v12894_v47  ;;  %v4701_v54 = vadd.f32 %v4652_v13, %v4564_v50 }
 0x55c   : > { %v4799_v5 = vpop.f32.mrf.mxu1 }
 0x55d   : > { %v11247_v15 = vadd.f32 %v4789_v43, %v4701_v54 }
 0x55e   : > { %v4378_v11 = vpop.f32.mrf.mxu2 }
 0x55f   : > { %v4425_v20 = vadd.f32 %v4378_v11, %v10966_v60  ;;  %v12963_v60 = vld [vmem:[#allocation22_spill] sm:$0xff] }
 0x560   : > { %v4662_v55 = vpop.f32.mrf.mxu0 }
 0x561   : > { %v4565_v14 = vadd.f32 %v4518_v7, %v4425_v20 }
 0x563   : > { %v4520_v35 = vpop.f32.mrf.mxu3  ;;  %v4702_v2 = vadd.f32 %v4655_v58, %v4565_v14 }
 0x564   : > { %v4802_v27 = vpop.f32.mrf.mxu1  ;;  %7704 = vmatmul.msk.bf16.gmra.mxu1 %vm2607_vm6, %v12828_v26  ;;  %v12971_v26 = vld [vmem:[#allocation15_spill] sm:$0xff] }
 0x565   : > { %v11250_v4 = vadd.f32 %v4792_v53, %v4702_v2 }
 0x566   : > { %v4380_v24 = vpop.f32.mrf.mxu2 }
 0x567   : > { %v4426_v0 = vadd.f32 %v4380_v24, %v10977_v44 }
 0x568   : > { %v4665_v63 = vpop.f32.mrf.mxu0  ;;  %7669 = vmatmul.msk.bf16.gmra.mxu3 %vm2607_vm6, %v9670_v42  ;;  %7652 = vmatmul.msk.bf16.gmra.mxu2 %vm2607_vm6, %v12963_v60 }
 0x569   : > { %v4566_v43 = vadd.f32 %v4520_v35, %v4426_v0 }
 0x56b   : > { %v4523_v13 = vpop.f32.mrf.mxu3  ;;  %7687 = vmatmul.msk.bf16.gmra.mxu0 %vm2607_vm6, %v12896_v41  ;;  %v4703_v53 = vadd.f32 %v4657_v16, %v4566_v43  ;;  %v12965_v16 = vld [vmem:[#allocation48_spill] sm:$0xff]  ;;  %v12967_v43 = vld [vmem:[#allocation45_spill] sm:$0xff] }
 0x56c   : > { %v4804_v58 = vpop.f32.mrf.mxu1 }
 0x56d   : > { %v11261_v34 = vadd.f32 %v4794_v61, %v4703_v53  ;;  %v12969_v53 = vld [vmem:[#allocation88_spill] sm:$0xff] }
 0x56e   : > { %v4383_v44 = vpop.f32.mrf.mxu2 }
 0x56f   : > { %v4427_v51 = vadd.f32 %v4383_v44, %v10980_v59  ;;  %v12966_v59 = vld [vmem:[#allocation30_spill] sm:$0xff] }
 0x570   : > { %v4667_v50 = vpop.f32.mrf.mxu0 }
 0x571   : > { %v4567_v7 = vadd.f32 %v4523_v13, %v4427_v51 }
 0x573   : > { %v4525_v54 = vpop.f32.mrf.mxu3  ;;  %v4704_v11 = vadd.f32 %v4660_v56, %v4567_v7 }
 0x574   : > { %v4807_v20 = vpop.f32.mrf.mxu1  ;;  %7705 = vmatmul.msk.bf16.gmra.mxu1 %vm2607_vm6, %v12965_v16 }
 0x575   : > { %v11264_v14 = vadd.f32 %v4797_v38, %v4704_v11 }
 0x576   : > { %v4385_v35 = vpop.f32.mrf.mxu2 }
 0x577   : > { %12964 = vst [vmem:[#allocation20_spill] sm:$0xff] %v11264_v14  ;;  %v4428_v2 = vadd.f32 %v4385_v35, %v10991_v9 }
 0x578   : > { %v4670_v24 = vpop.f32.mrf.mxu0  ;;  %7670 = vmatmul.msk.bf16.gmra.mxu3 %vm2607_vm6, %v12830_v22  ;;  %7653 = vmatmul.msk.bf16.gmra.mxu2 %vm2607_vm6, %v12966_v59 }
 0x579   : > { %v4568_v61 = vadd.f32 %v4525_v54, %v4428_v2 }
 0x57b   : > { %v4528_v0 = vpop.f32.mrf.mxu3  ;;  %7688 = vmatmul.msk.bf16.gmra.mxu0 %vm2607_vm6, %v12967_v43  ;;  %v4705_v38 = vadd.f32 %v4662_v55, %v4568_v61  ;;  %v12973_v55 = vld [vmem:[#allocation12_spill] sm:$0xff] }
 0x57c   : > { %v4809_v56 = vpop.f32.mrf.mxu1 }
 0x57d   : > { %v11275_v13 = vadd.f32 %v4799_v5, %v4705_v38  ;;  %v12974_v38 = vld [vmem:[#allocation35_spill] sm:$0xff] }
 0x57e   : > { %v4388_v9 = vpop.f32.mrf.mxu2 }
 0x57f   : > { %12968 = vst [vmem:[#allocation10_spill] sm:$0xff] %v11275_v13  ;;  %v4429_v44 = vadd.f32 %v4388_v9, %v12969_v53  ;;  %v12977_v53 = vld [vmem:[#allocation90_spill] sm:$0xff] }
 0x580   : > { %v4672_v51 = vpop.f32.mrf.mxu0  ;;  %v12980_v13 = vld [vmem:[#allocation50_spill] sm:$0xff] }
 0x581   : > { %v4569_v7 = vadd.f32 %v4528_v0, %v4429_v44  ;;  %v12975_v0 = vld [vmem:[#allocation82_spill] sm:$0xff] }
 0x583   : > { %v4530_v11 = vpop.f32.mrf.mxu3  ;;  %v4706_v35 = vadd.f32 %v4665_v63, %v4569_v7 }
 0x584   : > { %v4812_v16 = vpop.f32.mrf.mxu1  ;;  %7706 = vmatmul.msk.bf16.gmra.mxu1 %vm2607_vm6, %v12973_v55 }
 0x585   : > { %v11278_v54 = vadd.f32 %v4802_v27, %v4706_v35 }
 0x586   : > { %v4390_v2 = vpop.f32.mrf.mxu2 }
 0x587   : > { %12970 = vst [vmem:[#allocation44_spill] sm:$0xff] %v11278_v54  ;;  %v4430_v8 = vadd.f32 %v4390_v2, %v12971_v26  ;;  %v12979_v54 = vld [vmem:[#allocation21_spill] sm:$0xff] }
 0x588   : > { %v4675_v25 = vpop.f32.mrf.mxu0  ;;  %7671 = vmatmul.msk.bf16.gmra.mxu3 %vm2607_vm6, %v12972_v29  ;;  %7654 = vmatmul.msk.bf16.gmra.mxu2 %vm2607_vm6, %v12974_v38 }
 0x589   : > { %v4570_v5 = vadd.f32 %v4530_v11, %v4430_v8 }
 0x58b   : > { %v4533_v61 = vpop.f32.mrf.mxu3  ;;  %7689 = vmatmul.msk.bf16.gmra.mxu0 %vm2607_vm6, %v12975_v0  ;;  %v4707_v27 = vadd.f32 %v4667_v50, %v4570_v5  ;;  %v12981_v5 = vld [vmem:[#allocation18_spill] sm:$0xff]  ;;  %v12988_v0 = vld [vmem:[#allocation87_spill] sm:$0xff] }
 0x58c   : > { %v4814_v63 = vpop.f32.mrf.mxu1 }
 0x58d   : > { %v11289_v9 = vadd.f32 %v4804_v58, %v4707_v27 }
 0x58e   : > { %v4393_v26 = vpop.f32.mrf.mxu2 }
 0x58f   : > { %12976 = vst [vmem:[#allocation84_spill] sm:$0xff] %v11289_v9  ;;  %v4431_v44 = vadd.f32 %v4393_v26, %v12977_v53  ;;  %v12982_v26 = vld [vmem:[#allocation7_spill] sm:$0xff]  ;;  %v12985_v53 = vld [vmem:[#allocation92_spill] sm:$0xff] }
 0x590   : > { %v4677_v7 = vpop.f32.mrf.mxu0 }
 0x591   : > { %v4571_v35 = vadd.f32 %v4533_v61, %v4431_v44  ;;  %v12983_v61 = vld [vmem:[#allocation53_spill] sm:$0xff] }
 0x593   : > { %v4535_v2 = vpop.f32.mrf.mxu3  ;;  %v4708_v3 = vadd.f32 %v4670_v24, %v4571_v35 }
 0x594   : > { %v5281_v55 = vpop.f32.mrf.mxu1  ;;  %7707 = vmatmul.msk.bf16.gmra.mxu1 %vm2607_vm6, %v12981_v5 }
 0x595   : > { %v11292_v8 = vadd.f32 %v4807_v20, %v4708_v3 }
 0x596   : > { %v4395_v11 = vpop.f32.mrf.mxu2 }
 0x597   : > { %12978 = vst [vmem:[#allocation86_spill] sm:$0xff] %v11292_v8  ;;  %v4432_v38 = vadd.f32 %v4395_v11, %v12979_v54 }
 0x598   : > { %7672 = vmatmul.msk.bf16.gmra.mxu3 %vm2607_vm6, %v12980_v13  ;;  %v5144_v50 = vpop.f32.mrf.mxu0  ;;  %7655 = vmatmul.msk.bf16.gmra.mxu2 %vm2607_vm6, %v12982_v26  ;;  %v12987_v13 = vld [vmem:[#allocation28_spill] sm:$0xff] }
 0x599   : > { %v4572_v58 = vadd.f32 %v4535_v2, %v4432_v38 }
 0x59b   : > { %v4538_v27 = vpop.f32.mrf.mxu3  ;;  %7690 = vmatmul.msk.bf16.gmra.mxu0 %vm2607_vm6, %v12983_v61  ;;  %v4709_v3 = vadd.f32 %v4672_v51, %v4572_v58  ;;  %v12989_v58 = vld [vmem:[#allocation19_spill] sm:$0xff] }
 0x59c   : > { %v5283_v20 = vpop.f32.mrf.mxu1  ;;  %v12996_v61 = vld [vmem:[#allocation55_spill] sm:$0xff] }
 0x59d   : > { %v11303_v24 = vadd.f32 %v4809_v56, %v4709_v3  ;;  %v12990_v3 = vld [vmem:[#allocation51_spill] sm:$0xff] }
 0x59e   : > { %v4398_v54 = vpop.f32.mrf.mxu2 }
 0x59f   : > { %12984 = vst [vmem:[#allocation8_spill] sm:$0xff] %v11303_v24  ;;  %v4433_v44 = vadd.f32 %v4398_v54, %v12985_v53  ;;  %v12991_v54 = vld [vmem:[#allocation14_spill] sm:$0xff] }
 0x5a0   : > { %v5146_v35 = vpop.f32.mrf.mxu0  ;;  %v12993_v53 = vld [vmem:[#allocation94_spill] sm:$0xff] }
 0x5a1   : > { %v4573_v11 = vadd.f32 %v4538_v27, %v4433_v44 }
 0x5a3   : > { %v4540_v8 = vpop.f32.mrf.mxu3  ;;  %v4710_v9 = vadd.f32 %v4675_v25, %v4573_v11 }
 0x5a4   : > { %v5286_v5 = vpop.f32.mrf.mxu1  ;;  %7708 = vmatmul.msk.bf16.gmra.mxu1 %vm2607_vm6, %v12989_v58 }
 0x5a5   : > { %v11306_v38 = vadd.f32 %v4812_v16, %v4710_v9 }
 0x5a6   : > { %v4400_v2 = vpop.f32.mrf.mxu2 }
 0x5a7   : > { %12986 = vst [vmem:[#allocation11_spill] sm:$0xff] %v11306_v38  ;;  %v4434_v26 = vadd.f32 %v4400_v2, %v12987_v13 }
 0x5a8   : > { %7673 = vmatmul.msk.bf16.gmra.mxu3 %vm2607_vm6, %v12988_v0  ;;  %v5149_v51 = vpop.f32.mrf.mxu0  ;;  %7656 = vmatmul.msk.bf16.gmra.mxu2 %vm2607_vm6, %v12990_v3  ;;  %v12995_v3 = vld [vmem:[#allocation33_spill] sm:$0xff] }
 0x5a9   : > { %v4574_v56 = vadd.f32 %v4540_v8, %v4434_v26 }
 0x5ab   : > { %v5004_v27 = vpop.f32.mrf.mxu3  ;;  %7691 = vmatmul.msk.bf16.gmra.mxu0 %vm2607_vm6, %v12991_v54  ;;  %v4711_v25 = vadd.f32 %v4677_v7, %v4574_v56  ;;  %v12997_v56 = vld [vmem:[#allocation25_spill] sm:$0xff]  ;;  %v13004_v54 = vld [vmem:[#allocation91_spill] sm:$0xff] }
 0x5ac   : > { %v5288_v16 = vpop.f32.mrf.mxu1 }
 0x5ad   : > { %v11317_v9 = vadd.f32 %v4814_v63, %v4711_v25  ;;  %v12998_v25 = vld [vmem:[#allocation89_spill] sm:$0xff] }
 0x5ae   : > { %v4874_v13 = vpop.f32.mrf.mxu2 }
 0x5af   : > { %12992 = vst [vmem:[#allocation83_spill] sm:$0xff] %v11317_v9  ;;  %v4954_v44 = vadd.f32 %v4874_v13, %v12993_v53  ;;  %v12999_v13 = vld [vmem:[#allocation57_spill] sm:$0xff]  ;;  %v13001_v53 = vld [vmem:[#allocation95_spill] sm:$0xff] }
 0x5b0   : > { %v5151_v11 = vpop.f32.mrf.mxu0 }
 0x5b1   : > { %v5084_v2 = vadd.f32 %v5004_v27, %v4954_v44 }
 0x5b3   : > { %v5006_v38 = vpop.f32.mrf.mxu3  ;;  %v5224_v24 = vadd.f32 %v5144_v50, %v5084_v2 }
 0x5b4   : > { %v5291_v58 = vpop.f32.mrf.mxu1  ;;  %7709 = vmatmul.msk.bf16.gmra.mxu1 %vm2607_vm6, %v12997_v56 }
 0x5b5   : > { %v11320_v8 = vadd.f32 %v5281_v55, %v5224_v24 }
 0x5b6   : > { %v4876_v26 = vpop.f32.mrf.mxu2 }
 0x5b7   : > { %12994 = vst [vmem:[#allocation85_spill] sm:$0xff] %v11320_v8  ;;  %v4955_v0 = vadd.f32 %v4876_v26, %v12995_v3 }
 0x5b8   : > { %7674 = vmatmul.msk.bf16.gmra.mxu3 %vm2607_vm6, %v12996_v61  ;;  %v5154_v7 = vpop.f32.mrf.mxu0  ;;  %7657 = vmatmul.msk.bf16.gmra.mxu2 %vm2607_vm6, %v12998_v25  ;;  %v13003_v25 = vld [vmem:[#allocation37_spill] sm:$0xff] }
 0x5b9   : > { %v5085_v63 = vadd.f32 %v5006_v38, %v4955_v0 }
 0x5bb   : > { %v5009_v27 = vpop.f32.mrf.mxu3  ;;  %7692 = vmatmul.msk.bf16.gmra.mxu0 %vm2607_vm6, %v12999_v13  ;;  %v5225_v55 = vadd.f32 %v5146_v35, %v5085_v63  ;;  %v13005_v63 = vld [vmem:[#allocation31_spill] sm:$0xff]  ;;  %v13012_v13 = vld [vmem:[#allocation93_spill] sm:$0xff] }
 0x5bc   : > { %v5293_v50 = vpop.f32.mrf.mxu1 }
 0x5bd   : > { %v11331_v24 = vadd.f32 %v5283_v20, %v5225_v55  ;;  %v13006_v55 = vld [vmem:[#allocation56_spill] sm:$0xff] }
 0x5be   : > { %v4879_v3 = vpop.f32.mrf.mxu2 }
 0x5bf   : > { %13000 = vst [vmem:[#allocation69_spill] sm:$0xff] %v11331_v24  ;;  %v4956_v44 = vadd.f32 %v4879_v3, %v13001_v53  ;;  %v13007_v3 = vld [vmem:[#allocation59_spill] sm:$0xff]  ;;  %v13009_v53 = vld [vmem:[#allocation97_spill] sm:$0xff] }
 0x5c0   : > { %v5156_v2 = vpop.f32.mrf.mxu0 }
 0x5c1   : > { %v5086_v26 = vadd.f32 %v5009_v27, %v4956_v44 }
 0x5c3   : > { %v5011_v8 = vpop.f32.mrf.mxu3  ;;  %v5226_v9 = vadd.f32 %v5149_v51, %v5086_v26 }
 0x5c4   : > { %v5296_v56 = vpop.f32.mrf.mxu1  ;;  %7710 = vmatmul.msk.bf16.gmra.mxu1 %vm2607_vm6, %v13005_v63 }
 0x5c5   : > { %v11334_v0 = vadd.f32 %v5286_v5, %v5226_v9 }
 0x5c6   : > { %v4881_v38 = vpop.f32.mrf.mxu2 }
 0x5c7   : > { %13002 = vst [vmem:[#allocation75_spill] sm:$0xff] %v11334_v0  ;;  %v4957_v61 = vadd.f32 %v4881_v38, %v13003_v25 }
 0x5c8   : > { %7675 = vmatmul.msk.bf16.gmra.mxu3 %vm2607_vm6, %v13004_v54  ;;  %v5159_v35 = vpop.f32.mrf.mxu0  ;;  %7658 = vmatmul.msk.bf16.gmra.mxu2 %vm2607_vm6, %v13006_v55  ;;  %v13011_v55 = vld [vmem:[#allocation65_spill] sm:$0xff] }
 0x5c9   : > { %v5087_v20 = vadd.f32 %v5011_v8, %v4957_v61 }
 0x5cb   : > { %v5014_v27 = vpop.f32.mrf.mxu3  ;;  %7693 = vmatmul.msk.bf16.gmra.mxu0 %vm2607_vm6, %v13007_v3  ;;  %v5227_v5 = vadd.f32 %v5151_v11, %v5087_v20  ;;  %v13013_v20 = vld [vmem:[#allocation64_spill] sm:$0xff]  ;;  %v13020_v3 = vld [vmem:[#allocation38_spill] sm:$0xff] }
 0x5cc   : > { %v5298_v51 = vpop.f32.mrf.mxu1 }
 0x5cd   : > { %v11345_v9 = vadd.f32 %v5288_v16, %v5227_v5  ;;  %v13014_v5 = vld [vmem:[#allocation58_spill] sm:$0xff] }
 0x5ce   : > { %v4884_v25 = vpop.f32.mrf.mxu2 }
 0x5cf   : > { %13008 = vst [vmem:[#allocation80_spill] sm:$0xff] %v11345_v9  ;;  %v4958_v44 = vadd.f32 %v4884_v25, %v13009_v53  ;;  %v13015_v25 = vld [vmem:[#allocation61_spill] sm:$0xff]  ;;  %v13017_v53 = vld [vmem:[#allocation70_spill] sm:$0xff] }
 0x5d0   : > { %v5161_v26 = vpop.f32.mrf.mxu0 }
 0x5d1   : > { %v5088_v38 = vadd.f32 %v5014_v27, %v4958_v44 }
 0x5d3   : > { %v5016_v0 = vpop.f32.mrf.mxu3  ;;  %v5228_v24 = vadd.f32 %v5154_v7, %v5088_v38 }
 0x5d4   : > { %v5301_v63 = vpop.f32.mrf.mxu1  ;;  %7711 = vmatmul.msk.bf16.gmra.mxu1 %vm2607_vm6, %v13013_v20 }
 0x5d5   : > { %v11348_v61 = vadd.f32 %v5291_v58, %v5228_v24 }
 0x5d6   : > { %v4886_v8 = vpop.f32.mrf.mxu2 }
 0x5d7   : > { %13010 = vst [vmem:[#allocation39_spill] sm:$0xff] %v11348_v61  ;;  %v4959_v54 = vadd.f32 %v4886_v8, %v13011_v55 }
 0x5d8   : > { %7676 = vmatmul.msk.bf16.gmra.mxu3 %vm2607_vm6, %v13012_v13  ;;  %v5164_v11 = vpop.f32.mrf.mxu0  ;;  %7659 = vmatmul.msk.bf16.gmra.mxu2 %vm2607_vm6, %v13014_v5  ;;  %v13019_v5 = vld [vmem:[#allocation73_spill] sm:$0xff] }
 0x5d9   : > { %v5089_v16 = vadd.f32 %v5016_v0, %v4959_v54 }
 0x5db   : > { %v5019_v27 = vpop.f32.mrf.mxu3  ;;  %7694 = vmatmul.msk.bf16.gmra.mxu0 %vm2607_vm6, %v13015_v25  ;;  %v5229_v58 = vadd.f32 %v5156_v2, %v5089_v16 }
 0x5dc   : > { %v5303_v7 = vpop.f32.mrf.mxu1 }
 0x5dd   : > { %v11359_v24 = vadd.f32 %v5293_v50, %v5229_v58  ;;  %v13021_v50 = vld [vmem:[#allocation68_spill] sm:$0xff] }
 0x5de   : > { %v4889_v55 = vpop.f32.mrf.mxu2  ;;  %v13022_v58 = vld [vmem:[#allocation60_spill] sm:$0xff] }
 0x5df   : > { %13016 = vst [vmem:[#allocation22_spill] sm:$0xff] %v11359_v24  ;;  %v4960_v44 = vadd.f32 %v4889_v55, %v13017_v53  ;;  %v13024_v55 = vld [vmem:[#allocation79_spill] sm:$0xff] }
 0x5e0   : > { %v5166_v38 = vpop.f32.mrf.mxu0 }
 0x5e1   : > { %v5090_v8 = vadd.f32 %v5019_v27, %v4960_v44 }
 0x5e3   : > { %v5021_v61 = vpop.f32.mrf.mxu3  ;;  %v5230_v9 = vadd.f32 %v5159_v35, %v5090_v8 }
 0x5e4   : > { %v11362_v20 = vpop.f32.mrf.mxu1  ;;  %7712 = vmatmul.msk.bf16.gmra.mxu1 %vm2607_vm6, %v13021_v50 }
 0x5e5   : > { %v11364_v54 = vadd.f32 %v5296_v56, %v5230_v9 }
 0x5e6   : > { %v4891_v0 = vpop.f32.mrf.mxu2 }
 0x5e7   : > { %13018 = vst [vmem:[#allocation30_spill] sm:$0xff] %v11364_v54  ;;  %v4961_v13 = vadd.f32 %v4891_v0, %v13019_v5 }
 0x5e8   : > { %7677 = vmatmul.msk.bf16.gmra.mxu3 %vm2607_vm6, %v13020_v3  ;;  %v5169_v2 = vpop.f32.mrf.mxu0  ;;  %7660 = vmatmul.msk.bf16.gmra.mxu2 %vm2607_vm6, %v13022_v58  ;;  %v13026_v58 = vld [vmem:[#allocation71_spill] sm:$0xff] }
 0x5e9   : > { %v5091_v16 = vadd.f32 %v5021_v61, %v4961_v13 }
 0x5eb   : > { %v5024_v27 = vpop.f32.mrf.mxu3  ;;  %7695 = vmatmul.msk.bf16.gmra.mxu0 %vm2607_vm6, %v12954_v31  ;;  %v5231_v56 = vadd.f32 %v5161_v26, %v5091_v16  ;;  %v11393_v26 = vld [vmem:[#allocation3 + $0x198] sm:$0xff]  ;;  %v11395_v16 = vld [vmem:[#allocation3 + $0x1a0] sm:$0xff] }
 0x5ec   : > { %v11375_v35 = vpop.f32.mrf.mxu1 }
 0x5ed   : > { %v11377_v9 = vadd.f32 %v5298_v51, %v5231_v56  ;;  %v13027_v56 = vld [vmem:[#allocation62_spill] sm:$0xff] }
 0x5ee   : > { %v4894_v5 = vpop.f32.mrf.mxu2 }
 0x5ef   : > { %13023 = vst [vmem:[#allocation88_spill] sm:$0xff] %v11377_v9  ;;  %v4962_v53 = vadd.f32 %v4894_v5, %v13024_v55  ;;  %v5530_v55 = vrot.slane %v11393_v26, 4 }
 0x5f0   : > { %v11380_v44 = vpop.f32.mrf.mxu0 }
 0x5f1   : > { %v5092_v8 = vadd.f32 %v5024_v27, %v4962_v53  ;;  %v2915_v27 = vld [vmem:[#allocation3 + $0x1a8] sm:$0xf]  ;;  %v5531_v53 = vrot.slane %v11395_v16, 4 }
 0x5f3   : > { %v5026_v0 = vpop.f32.mrf.mxu3  ;;  %v5232_v13 = vadd.f32 %v5164_v11, %v5092_v8  ;;  %v5533_v8 = vrot.slane %v2915_v27, 4  ;;  %v5532_v9 = vsel %vm1028_vm0, %v5530_v55, %v5531_v53 }
 0x5f4   : > { %v11382_v61 = vpop.f32.mrf.mxu1  ;;  %7713 = vmatmul.msk.bf16.gmra.mxu1 %vm2607_vm6, %v11137_v1 }
 0x5f5   : > { %v11384_v50 = vadd.f32 %v5301_v63, %v5232_v13  ;;  %v5259_v13 = vrot.slane %v2915_v27, 2 }
 0x5f6   : > { %v4896_v54 = vpop.f32.mrf.mxu2 }
 0x5f7   : > { %13025 = vst [vmem:[#allocation15_spill] sm:$0xff] %v11384_v50  ;;  %v4963_v31 = vadd.f32 %v4896_v54, %v13026_v58  ;;  %v5256_v54 = vrot.slane %v11393_v26, 2  ;;  %v5257_v58 = vrot.slane %v11395_v16, 2  ;;  %v5394_v50 = vrot.slane %v11395_v16, 3 }
 0x5f8   : > { %7678 = vmatmul.msk.bf16.gmra.mxu3 %vm2607_vm6, %v12955_v17  ;;  %v11389_v51 = vpop.f32.mrf.mxu0  ;;  %7661 = vmatmul.msk.bf16.gmra.mxu2 %vm2607_vm6, %v13027_v56 }
 0x5f9   : > { %v5093_v11 = vadd.f32 %v5026_v0, %v4963_v31  ;;  %v5393_v31 = vrot.slane %v11393_v26, 3  ;;  %v5258_v55 = vsel %vm1261_vm4, %v5256_v54, %v5257_v58 }
 0x5fb   : > { %v5029_v63 = vpop.f32.mrf.mxu3  ;;  %7696 = vmatmul.msk.bf16.gmra.mxu0 %vm2607_vm6, %v11164_v32  ;;  %v5233_v5 = vadd.f32 %v5166_v38, %v5093_v11  ;;  %v5396_v32 = vrot.slane %v2915_v27, 3  ;;  %v5534_v38 = vsel %vm1028_vm0, %v5531_v53, %v5533_v8  ;;  %v5395_v24 = vsel %vm3700_vm8, %v5393_v31, %v5394_v50 }
 0x5fc   : > { %v11406_v0 = vpop.f32.mrf.mxu1  ;;  %v11414_v17 = vpack.c.bf16 %v5534_v38, %v5532_v9  ;;  %v5260_v53 = vsel %vm1261_vm4, %v5257_v58, %v5259_v13  ;;  %v7800_v13 = vld [vmem:[%s12410_s3 + $0x24] sm:$0x3] }
 0x5fd   : > { %v11408_v1 = vadd.f32 %v5303_v7, %v5233_v5  ;;  %v5397_v3 = vsel %vm3700_vm8, %v5394_v50, %v5396_v32  ;;  %v5119_v7 = vrot.slane %v11393_v26, 1  ;;  %v5120_v5 = vrot.slane %v11395_v16, 1 }
 0x5fe   : > { %v4899_v56 = vpop.f32.mrf.mxu2  ;;  %v11420_v14 = vpack.c.bf16 %v5397_v3, %v5395_v24 }
 0x5ff   : > { %13028 = vst [vmem:[#allocation90_spill] sm:$0xff] %v11408_v1  ;;  %v4964_v11 = vadd.f32 %v4899_v56, %v11134_v28  ;;  %v5122_v1 = vrot.slane %v2915_v27, 1  ;;  %v11424_v56 = vpack.c.bf16 %v5260_v53, %v5258_v55  ;;  %v5121_v8 = vsel %vm849_vm3, %v5119_v7, %v5120_v5 }
 0x600   : > { %v5176_v25 = vpop.f32.mrf.mxu0  ;;  %v6088_v7 = vsel %vm3165_vm5, %v7800_v13, 0 }
 0x601   : > { %v5094_v29 = vadd.f32 %v5029_v63, %v4964_v11  ;;  %13029 = vst [vmem:[#allocation21_spill] sm:$0xff] %v11424_v56  ;;  %v5123_v32 = vsel %vm849_vm3, %v5120_v5, %v5122_v1  ;;  %6097 = vmatpush.bf16.msrb.mxu3 %v6088_v7 }
 0x602   : > { %v11432_v24 = vpack.c.bf16 %v5123_v32, %v5121_v8 }
 0x603   : > { %v5031_v28 = vpop.f32.mrf.mxu3  ;;  %v5234_v9 = vadd.f32 %v5169_v2, %v5094_v29  ;;  %v13031_v2 = vld [vmem:[#allocation66_spill] sm:$0xff] }
 0x604   : > { %v5316_v50 = vpop.f32.mrf.mxu1  ;;  %13030 = vst [vmem:[#allocation92_spill] sm:$0xff] %v11432_v24  ;;  %7714 = vmatmul.msk.bf16.gmra.mxu1 %vm2607_vm6, %v11424_v56 }
 0x605   : > { %v11429_v31 = vadd.f32 %v11362_v20, %v5234_v9  ;;  %v11458_v9 = vpack.c.bf16 %v11395_v16, %v11393_v26  ;;  %v7834_v16 = vld [vmem:[%s12410_s3 + $0x28] sm:$0x3] }
 0x606   : > { %v4901_v27 = vpop.f32.mrf.mxu2 }
 0x607   : > { %v4965_v3 = vadd.f32 %v4901_v27, %v11157_v10  ;;  %v7783_v10 = vld [vmem:[%s12410_s3 + $0x22] sm:$0x3]  ;;  %13032 = vst [vmem:[#allocation28_spill] sm:$0xff] %v11458_v9 }
 0x608   : > { %7679 = vmatmul.msk.bf16.gmra.mxu3 %vm2607_vm6, %v11176_v19  ;;  %v5179_v63 = vpop.f32.mrf.mxu0  ;;  %7662 = vmatmul.msk.bf16.gmra.mxu2 %vm2607_vm6, %v13031_v2  ;;  %v5951_v54 = vsel %vm3165_vm5, %v7783_v10, 0 }
 0x609   : > { %v5095_v29 = vadd.f32 %v5031_v28, %v4965_v3  ;;  %5960 = vmatpush.bf16.msrb.mxu2 %v5951_v54 }
 0x60b   : > { %v5034_v1 = vpop.f32.mrf.mxu3  ;;  %7697 = vmatmul.msk.bf16.gmra.mxu0 %vm2607_vm6, %v11432_v24  ;;  %v5235_v20 = vadd.f32 %v11380_v44, %v5095_v29  ;;  %v13033_v29 = vld [vmem:[#allocation72_spill] sm:$0xff] }
 0x60c   : > { %v5318_v58 = vpop.f32.mrf.mxu1 }
 0x60d   : > { %v11451_v38 = vadd.f32 %v11375_v35, %v5235_v20  ;;  %v7817_v35 = vld [vmem:[%s12410_s3 + $0x26] sm:$0x3] }
 0x60e   : > { %v4904_v11 = vpop.f32.mrf.mxu2 }
 0x60f   : > { %v4966_v5 = vadd.f32 %v4904_v11, %v11170_v48  ;;  %v6225_v48 = vsel %vm3165_vm5, %v7817_v35, 0 }
 0x610   : > { %v5181_v55 = vpop.f32.mrf.mxu0  ;;  %6234 = vmatpush.bf16.msrb.mxu0 %v6225_v48 }
 0x611   : > { %v5096_v53 = vadd.f32 %v5034_v1, %v4966_v5 }
 0x613   : > { %v5036_v44 = vpop.f32.mrf.mxu3  ;;  %v5236_v28 = vadd.f32 %v11389_v51, %v5096_v53 }
 0x614   : > { %v5321_v8 = vpop.f32.mrf.mxu1  ;;  %7767 = vmatmul.msk.bf16.vlgmr.msra.gmra.mxu1 %vm2607_vm6, %v12891_v39 }
 0x615   : > { %v11464_v32 = vadd.f32 %v11382_v61, %v5236_v28  ;;  %v6355_v61 = vsel %vm3165_vm5, %v7834_v16, 0 }
 0x616   : > { %v4906_v27 = vpop.f32.mrf.mxu2  ;;  %6364 = vmatpush.bf16.msrb.mxu1 %v6355_v61 }
 0x617   : > { %v4967_v3 = vadd.f32 %v4906_v27, %v11191_v36 }
 0x618   : > { %7680 = vmatmul.msk.bf16.gmra.mxu3 %vm2607_vm6, %v11458_v9  ;;  %v5184_v51 = vpop.f32.mrf.mxu0  ;;  %7663 = vmatmul.msk.bf16.gmra.mxu2 %vm2607_vm6, %v13033_v29 }
 0x619   : > { %v5097_v26 = vadd.f32 %v5036_v44, %v4967_v3 }
 0x61b   : > { %v5039_v1 = vpop.f32.mrf.mxu3  ;;  %7750 = vmatmul.msk.bf16.vlgmr.msra.gmra.mxu0 %vm2607_vm6, %v12822_v6  ;;  %v5237_v36 = vadd.f32 %v5176_v25, %v5097_v26 }
 0x61c   : > { %v5323_v10 = vpop.f32.mrf.mxu1 }
 0x61d   : > { %v11481_v20 = vadd.f32 %v11406_v0, %v5237_v36 }
 0x61e   : > { %v4909_v39 = vpop.f32.mrf.mxu2 }
 0x61f   : > { %v4968_v54 = vadd.f32 %v4909_v39, %v11194_v52  ;;  %v13034_v52 = vld [vmem:[#allocation77_spill] sm:$0xff] }
 0x620   : > { %v5186_v13 = vpop.f32.mrf.mxu0 }
 0x621   : > { %v5098_v11 = vadd.f32 %v5039_v1, %v4968_v54 }
 0x623   : > { %v5041_v7 = vpop.f32.mrf.mxu3  ;;  %v5238_v5 = vadd.f32 %v5179_v63, %v5098_v11 }
 0x624   : > { %v5326_v53 = vpop.f32.mrf.mxu1  ;;  %7768 = vmatmul.msk.bf16.gmra.mxu1 %vm2607_vm6, %v12892_v23 }
 0x625   : > { %v11484_v44 = vadd.f32 %v5316_v50, %v5238_v5 }
 0x626   : > { %v4911_v28 = vpop.f32.mrf.mxu2 }
 0x627   : > { %v4969_v35 = vadd.f32 %v4911_v28, %v11205_v62 }
 0x628   : > { %v5189_v6 = vpop.f32.mrf.mxu0  ;;  %7733 = vmatmul.msk.bf16.vlgmr.msra.gmra.mxu3 %vm2607_vm6, %v12960_v30  ;;  %7716 = vmatmul.msk.bf16.vlgmr.msra.gmra.mxu2 %vm2607_vm6, %v13034_v52 }
 0x629   : > { %v5099_v25 = vadd.f32 %v5041_v7, %v4969_v35 }
 0x62b   : > { %v5044_v0 = vpop.f32.mrf.mxu3  ;;  %7751 = vmatmul.msk.bf16.gmra.mxu0 %vm2607_vm6, %v12823_v37  ;;  %v5239_v50 = vadd.f32 %v5181_v55, %v5099_v25 }
 0x62c   : > { %v5328_v63 = vpop.f32.mrf.mxu1 }
 0x62d   : > { %v11495_v27 = vadd.f32 %v5318_v58, %v5239_v50 }
 0x62e   : > { %v4914_v62 = vpop.f32.mrf.mxu2 }
 0x62f   : > { %v4970_v48 = vadd.f32 %v4914_v62, %v11208_v40  ;;  %v13035_v40 = vld [vmem:[#allocation17_spill] sm:$0xff] }
 0x630   : > { %v5191_v3 = vpop.f32.mrf.mxu0 }
 0x631   : > { %v5100_v30 = vadd.f32 %v5044_v0, %v4970_v48 }
 0x633   : > { %v5046_v26 = vpop.f32.mrf.mxu3  ;;  %v5240_v16 = vadd.f32 %v5184_v51, %v5100_v30 }
 0x634   : > { %v5331_v61 = vpop.f32.mrf.mxu1  ;;  %7769 = vmatmul.msk.bf16.gmra.mxu1 %vm2607_vm6, %v12893_v57  ;;  %v13050_v57 = vld [vmem:[#allocation84_spill] sm:$0xff] }
 0x635   : > { %v11498_v1 = vadd.f32 %v5321_v8, %v5240_v16 }
 0x636   : > { %v4916_v36 = vpop.f32.mrf.mxu2 }
 0x637   : > { %v4971_v39 = vadd.f32 %v4916_v36, %v11219_v21 }
 0x638   : > { %v5194_v54 = vpop.f32.mrf.mxu0  ;;  %7734 = vmatmul.msk.bf16.gmra.mxu3 %vm2607_vm6, %v12961_v45  ;;  %7717 = vmatmul.msk.bf16.gmra.mxu2 %vm2607_vm6, %v13035_v40 }
 0x639   : > { %v5101_v58 = vadd.f32 %v5046_v26, %v4971_v39 }
 0x63b   : > { %v5049_v55 = vpop.f32.mrf.mxu3  ;;  %7752 = vmatmul.msk.bf16.gmra.mxu0 %vm2607_vm6, %v9592_v12  ;;  %v5241_v8 = vadd.f32 %v5186_v13, %v5101_v58 }
 0x63c   : > { %v5333_v51 = vpop.f32.mrf.mxu1 }
 0x63d   : > { %v11509_v11 = vadd.f32 %v5323_v10, %v5241_v8 }
 0x63e   : > { %v4919_v21 = vpop.f32.mrf.mxu2 }
 0x63f   : > { %v4972_v7 = vadd.f32 %v4919_v21, %v11222_v18  ;;  %v13036_v18 = vld [vmem:[#allocation49_spill] sm:$0xff] }
 0x640   : > { %v5196_v5 = vpop.f32.mrf.mxu0 }
 0x641   : > { %v5102_v28 = vadd.f32 %v5049_v55, %v4972_v7 }
 0x643   : > { %v5051_v35 = vpop.f32.mrf.mxu3  ;;  %v5242_v25 = vadd.f32 %v5189_v6, %v5102_v28 }
 0x644   : > { %v5336_v0 = vpop.f32.mrf.mxu1  ;;  %7770 = vmatmul.msk.bf16.gmra.mxu1 %vm2607_vm6, %v12894_v47 }
 0x645   : > { %v11512_v52 = vadd.f32 %v5326_v53, %v5242_v25 }
 0x646   : > { %v4921_v50 = vpop.f32.mrf.mxu2 }
 0x647   : > { %v4973_v62 = vadd.f32 %v4921_v50, %v11233_v33 }
 0x648   : > { %v5199_v48 = vpop.f32.mrf.mxu0  ;;  %7735 = vmatmul.msk.bf16.gmra.mxu3 %vm2607_vm6, %v12962_v46  ;;  %7718 = vmatmul.msk.bf16.gmra.mxu2 %vm2607_vm6, %v13036_v18 }
 0x649   : > { %v5103_v10 = vadd.f32 %v5051_v35, %v4973_v62 }
 0x64b   : > { %v5054_v13 = vpop.f32.mrf.mxu3  ;;  %7753 = vmatmul.msk.bf16.gmra.mxu0 %vm2607_vm6, %v9670_v42  ;;  %v5243_v53 = vadd.f32 %v5191_v3, %v5103_v10 }
 0x64c   : > { %v5338_v6 = vpop.f32.mrf.mxu1 }
 0x64d   : > { %v11523_v30 = vadd.f32 %v5328_v63, %v5243_v53 }
 0x64e   : > { %v4924_v33 = vpop.f32.mrf.mxu2 }
 0x64f   : > { %v4974_v26 = vadd.f32 %v4924_v33, %v11236_v49  ;;  %v13037_v49 = vld [vmem:[#allocation26_spill] sm:$0xff] }
 0x650   : > { %v5201_v16 = vpop.f32.mrf.mxu0 }
 0x651   : > { %v5104_v36 = vadd.f32 %v5054_v13, %v4974_v26 }
 0x653   : > { %v5056_v39 = vpop.f32.mrf.mxu3  ;;  %v5244_v58 = vadd.f32 %v5194_v54, %v5104_v36 }
 0x654   : > { %v5341_v55 = vpop.f32.mrf.mxu1  ;;  %7771 = vmatmul.msk.bf16.gmra.mxu1 %vm2607_vm6, %v12896_v41  ;;  %v13043_v41 = vld [vmem:[#allocation35_spill] sm:$0xff] }
 0x655   : > { %v11526_v8 = vadd.f32 %v5331_v61, %v5244_v58  ;;  %v13039_v58 = vld [vmem:[#allocation46_spill] sm:$0xff] }
 0x656   : > { %v4926_v21 = vpop.f32.mrf.mxu2 }
 0x657   : > { %v4975_v7 = vadd.f32 %v4926_v21, %v11247_v15 }
 0x658   : > { %v5204_v28 = vpop.f32.mrf.mxu0  ;;  %7736 = vmatmul.msk.bf16.gmra.mxu3 %vm2607_vm6, %v12963_v60  ;;  %7719 = vmatmul.msk.bf16.gmra.mxu2 %vm2607_vm6, %v13037_v49 }
 0x659   : > { %v5105_v63 = vadd.f32 %v5056_v39, %v4975_v7  ;;  %v13040_v7 = vld [vmem:[#allocation20_spill] sm:$0xff] }
 0x65b   : > { %v5059_v3 = vpop.f32.mrf.mxu3  ;;  %7754 = vmatmul.msk.bf16.gmra.mxu0 %vm2607_vm6, %v12830_v22  ;;  %v5245_v61 = vadd.f32 %v5196_v5, %v5105_v63 }
 0x65c   : > { %v5343_v54 = vpop.f32.mrf.mxu1 }
 0x65d   : > { %v11537_v35 = vadd.f32 %v5333_v51, %v5245_v61 }
 0x65e   : > { %v4929_v15 = vpop.f32.mrf.mxu2 }
 0x65f   : > { %v4976_v25 = vadd.f32 %v4929_v15, %v11250_v4  ;;  %v13038_v4 = vld [vmem:[#allocation27_spill] sm:$0xff] }
 0x660   : > { %v5206_v50 = vpop.f32.mrf.mxu0 }
 0x661   : > { %v5106_v62 = vadd.f32 %v5059_v3, %v4976_v25 }
 0x663   : > { %v5061_v10 = vpop.f32.mrf.mxu3  ;;  %v5246_v13 = vadd.f32 %v5199_v48, %v5106_v62 }
 0x664   : > { %v5346_v53 = vpop.f32.mrf.mxu1  ;;  %7772 = vmatmul.msk.bf16.gmra.mxu1 %vm2607_vm6, %v12967_v43 }
 0x665   : > { %v11540_v33 = vadd.f32 %v5336_v0, %v5246_v13 }
 0x666   : > { %v4931_v26 = vpop.f32.mrf.mxu2 }
 0x667   : > { %v4977_v36 = vadd.f32 %v4931_v26, %v11261_v34  ;;  %v13042_v26 = vld [vmem:[#allocation10_spill] sm:$0xff] }
 0x668   : > { %v5209_v39 = vpop.f32.mrf.mxu0  ;;  %7737 = vmatmul.msk.bf16.gmra.mxu3 %vm2607_vm6, %v12966_v59  ;;  %7720 = vmatmul.msk.bf16.gmra.mxu2 %vm2607_vm6, %v13038_v4 }
 0x669   : > { %v5107_v51 = vadd.f32 %v5061_v10, %v4977_v36 }
 0x66b   : > { %v5064_v5 = vpop.f32.mrf.mxu3  ;;  %7755 = vmatmul.msk.bf16.gmra.mxu0 %vm2607_vm6, %v13039_v58  ;;  %v5247_v0 = vadd.f32 %v5201_v16, %v5107_v51  ;;  %v13044_v16 = vld [vmem:[#allocation82_spill] sm:$0xff] }
 0x66c   : > { %v5348_v48 = vpop.f32.mrf.mxu1 }
 0x66d   : > { %v11551_v21 = vadd.f32 %v5338_v6, %v5247_v0  ;;  %v13045_v0 = vld [vmem:[#allocation32_spill] sm:$0xff] }
 0x66e   : > { %v4934_v34 = vpop.f32.mrf.mxu2 }
 0x66f   : > { %v4978_v63 = vadd.f32 %v4934_v34, %v13040_v7 }
 0x670   : > { %v5211_v3 = vpop.f32.mrf.mxu0 }
 0x671   : > { %v5108_v61 = vadd.f32 %v5064_v5, %v4978_v63  ;;  %v13046_v5 = vld [vmem:[#allocation50_spill] sm:$0xff]  ;;  %v13048_v63 = vld [vmem:[#allocation44_spill] sm:$0xff] }
 0x673   : > { %v5066_v15 = vpop.f32.mrf.mxu3  ;;  %v5248_v25 = vadd.f32 %v5204_v28, %v5108_v61 }
 0x674   : > { %v5351_v62 = vpop.f32.mrf.mxu1  ;;  %7773 = vmatmul.msk.bf16.gmra.mxu1 %vm2607_vm6, %v13044_v16 }
 0x675   : > { %v11554_v10 = vadd.f32 %v5341_v55, %v5248_v25 }
 0x676   : > { %v4936_v13 = vpop.f32.mrf.mxu2 }
 0x677   : > { %13041 = vst [vmem:[#allocation94_spill] sm:$0xff] %v11554_v10  ;;  %v4979_v36 = vadd.f32 %v4936_v13, %v13042_v26  ;;  %v13051_v10 = vld [vmem:[#allocation7_spill] sm:$0xff] }
 0x678   : > { %v5214_v43 = vpop.f32.mrf.mxu0  ;;  %7738 = vmatmul.msk.bf16.gmra.mxu3 %vm2607_vm6, %v13043_v41  ;;  %7721 = vmatmul.msk.bf16.gmra.mxu2 %vm2607_vm6, %v13045_v0 }
 0x679   : > { %v5109_v6 = vadd.f32 %v5066_v15, %v4979_v36 }
 0x67b   : > { %v5069_v51 = vpop.f32.mrf.mxu3  ;;  %7756 = vmatmul.msk.bf16.gmra.mxu0 %vm2607_vm6, %v13046_v5  ;;  %v5249_v55 = vadd.f32 %v5206_v50, %v5109_v6  ;;  %v13052_v50 = vld [vmem:[#allocation53_spill] sm:$0xff] }
 0x67c   : > { %v5353_v28 = vpop.f32.mrf.mxu1 }
 0x67d   : > { %v11565_v34 = vadd.f32 %v5343_v54, %v5249_v55  ;;  %v13053_v55 = vld [vmem:[#allocation47_spill] sm:$0xff] }
 0x67e   : > { %v4939_v7 = vpop.f32.mrf.mxu2 }
 0x67f   : > { %13047 = vst [vmem:[#allocation33_spill] sm:$0xff] %v11565_v34  ;;  %v4980_v61 = vadd.f32 %v4939_v7, %v13048_v63  ;;  %v13056_v7 = vld [vmem:[#allocation86_spill] sm:$0xff]  ;;  %v13058_v34 = vld [vmem:[#allocation8_spill] sm:$0xff] }
 0x680   : > { %v5216_v25 = vpop.f32.mrf.mxu0 }
 0x681   : > { %v5110_v13 = vadd.f32 %v5069_v51, %v4980_v61  ;;  %v13054_v51 = vld [vmem:[#allocation87_spill] sm:$0xff] }
 0x683   : > { %v5071_v26 = vpop.f32.mrf.mxu3  ;;  %v5250_v47 = vadd.f32 %v5209_v39, %v5110_v13 }
 0x684   : > { %v5356_v16 = vpop.f32.mrf.mxu1  ;;  %7774 = vmatmul.msk.bf16.gmra.mxu1 %vm2607_vm6, %v13052_v50 }
 0x685   : > { %v11568_v15 = vadd.f32 %v5346_v53, %v5250_v47 }
 0x686   : > { %v4941_v36 = vpop.f32.mrf.mxu2 }
 0x687   : > { %13049 = vst [vmem:[#allocation95_spill] sm:$0xff] %v11568_v15  ;;  %v4981_v23 = vadd.f32 %v4941_v36, %v13050_v57 }
 0x688   : > { %v5219_v56 = vpop.f32.mrf.mxu0  ;;  %7739 = vmatmul.msk.bf16.gmra.mxu3 %vm2607_vm6, %v13051_v10  ;;  %7722 = vmatmul.msk.bf16.gmra.mxu2 %vm2607_vm6, %v13053_v55  ;;  %v13059_v10 = vld [vmem:[#allocation51_spill] sm:$0xff] }
 0x689   : > { %v5111_v54 = vadd.f32 %v5071_v26, %v4981_v23 }
 0x68b   : > { %v5074_v6 = vpop.f32.mrf.mxu3  ;;  %7757 = vmatmul.msk.bf16.gmra.mxu0 %vm2607_vm6, %v13054_v51  ;;  %v5251_v47 = vadd.f32 %v5211_v3, %v5111_v54  ;;  %v13060_v54 = vld [vmem:[#allocation14_spill] sm:$0xff]  ;;  %v13067_v51 = vld [vmem:[#allocation89_spill] sm:$0xff] }
 0x68c   : > { %v5358_v53 = vpop.f32.mrf.mxu1 }
 0x68d   : > { %v11579_v39 = vadd.f32 %v5348_v48, %v5251_v47 }
 0x68e   : > { %v4944_v57 = vpop.f32.mrf.mxu2 }
 0x68f   : > { %13055 = vst [vmem:[#allocation37_spill] sm:$0xff] %v11579_v39  ;;  %v4982_v63 = vadd.f32 %v4944_v57, %v13056_v7  ;;  %v13061_v57 = vld [vmem:[#allocation13_spill] sm:$0xff]  ;;  %v13064_v7 = vld [vmem:[#allocation11_spill] sm:$0xff] }
 0x690   : > { %v5221_v61 = vpop.f32.mrf.mxu0 }
 0x691   : > { %v5112_v13 = vadd.f32 %v5074_v6, %v4982_v63  ;;  %v13062_v6 = vld [vmem:[#allocation55_spill] sm:$0xff] }
 0x693   : > { %v5076_v36 = vpop.f32.mrf.mxu3  ;;  %v5252_v15 = vadd.f32 %v5214_v43, %v5112_v13 }
 0x694   : > { %v5825_v50 = vpop.f32.mrf.mxu1  ;;  %7775 = vmatmul.msk.bf16.gmra.mxu1 %vm2607_vm6, %v13060_v54 }
 0x695   : > { %v11582_v23 = vadd.f32 %v5351_v62, %v5252_v15 }
 0x696   : > { %v4946_v26 = vpop.f32.mrf.mxu2 }
 0x697   : > { %13057 = vst [vmem:[#allocation97_spill] sm:$0xff] %v11582_v23  ;;  %v4983_v55 = vadd.f32 %v4946_v26, %v13058_v34 }
 0x698   : > { %7740 = vmatmul.msk.bf16.gmra.mxu3 %vm2607_vm6, %v13059_v10  ;;  %v5685_v3 = vpop.f32.mrf.mxu0  ;;  %7723 = vmatmul.msk.bf16.gmra.mxu2 %vm2607_vm6, %v13061_v57  ;;  %v13066_v10 = vld [vmem:[#allocation83_spill] sm:$0xff] }
 0x699   : > { %v5113_v48 = vadd.f32 %v5076_v36, %v4983_v55 }
 0x69b   : > { %v5079_v47 = vpop.f32.mrf.mxu3  ;;  %7758 = vmatmul.msk.bf16.gmra.mxu0 %vm2607_vm6, %v13062_v6  ;;  %v5253_v43 = vadd.f32 %v5216_v25, %v5113_v48  ;;  %v13068_v48 = vld [vmem:[#allocation57_spill] sm:$0xff]  ;;  %v13075_v6 = vld [vmem:[#allocation56_spill] sm:$0xff] }
 0x69c   : > { %v5827_v62 = vpop.f32.mrf.mxu1 }
 0x69d   : > { %v11593_v15 = vadd.f32 %v5353_v28, %v5253_v43  ;;  %v13069_v43 = vld [vmem:[#allocation54_spill] sm:$0xff] }
 0x69e   : > { %v4949_v34 = vpop.f32.mrf.mxu2 }
 0x69f   : > { %13063 = vst [vmem:[#allocation65_spill] sm:$0xff] %v11593_v15  ;;  %v4984_v63 = vadd.f32 %v4949_v34, %v13064_v7  ;;  %v13070_v34 = vld [vmem:[#allocation91_spill] sm:$0xff]  ;;  %v13072_v7 = vld [vmem:[#allocation85_spill] sm:$0xff] }
 0x6a0   : > { %v5687_v13 = vpop.f32.mrf.mxu0 }
 0x6a1   : > { %v5114_v26 = vadd.f32 %v5079_v47, %v4984_v63 }
 0x6a3   : > { %v5081_v23 = vpop.f32.mrf.mxu3  ;;  %v5254_v39 = vadd.f32 %v5219_v56, %v5114_v26 }
 0x6a4   : > { %v5830_v54 = vpop.f32.mrf.mxu1  ;;  %7776 = vmatmul.msk.bf16.gmra.mxu1 %vm2607_vm6, %v13068_v48 }
 0x6a5   : > { %v11596_v55 = vadd.f32 %v5356_v16, %v5254_v39 }
 0x6a6   : > { %v4951_v36 = vpop.f32.mrf.mxu2 }
 0x6a7   : > { %13065 = vst [vmem:[#allocation70_spill] sm:$0xff] %v11596_v55  ;;  %v4985_v57 = vadd.f32 %v4951_v36, %v13066_v10 }
 0x6a8   : > { %7741 = vmatmul.msk.bf16.gmra.mxu3 %vm2607_vm6, %v13067_v51  ;;  %v5690_v25 = vpop.f32.mrf.mxu0  ;;  %7724 = vmatmul.msk.bf16.gmra.mxu2 %vm2607_vm6, %v13069_v43  ;;  %v13074_v43 = vld [vmem:[#allocation69_spill] sm:$0xff] }
 0x6a9   : > { %v5115_v28 = vadd.f32 %v5081_v23, %v4985_v57 }
 0x6ab   : > { %v5555_v47 = vpop.f32.mrf.mxu3  ;;  %7759 = vmatmul.msk.bf16.gmra.mxu0 %vm2607_vm6, %v13070_v34  ;;  %v5255_v56 = vadd.f32 %v5221_v61, %v5115_v28  ;;  %v13076_v28 = vld [vmem:[#allocation59_spill] sm:$0xff]  ;;  %v13083_v34 = vld [vmem:[#allocation58_spill] sm:$0xff] }
 0x6ac   : > { %v5832_v16 = vpop.f32.mrf.mxu1 }
 0x6ad   : > { %v11607_v39 = vadd.f32 %v5358_v53, %v5255_v56  ;;  %v13077_v56 = vld [vmem:[#allocation24_spill] sm:$0xff] }
 0x6ae   : > { %v5418_v10 = vpop.f32.mrf.mxu2 }
 0x6af   : > { %13071 = vst [vmem:[#allocation73_spill] sm:$0xff] %v11607_v39  ;;  %v5498_v63 = vadd.f32 %v5418_v10, %v13072_v7  ;;  %v13078_v10 = vld [vmem:[#allocation93_spill] sm:$0xff]  ;;  %v13080_v7 = vld [vmem:[#allocation75_spill] sm:$0xff] }
 0x6b0   : > { %v5692_v26 = vpop.f32.mrf.mxu0 }
 0x6b1   : > { %v5635_v36 = vadd.f32 %v5555_v47, %v5498_v63 }
 0x6b3   : > { %v5557_v55 = vpop.f32.mrf.mxu3  ;;  %v5765_v15 = vadd.f32 %v5685_v3, %v5635_v36 }
 0x6b4   : > { %v5835_v48 = vpop.f32.mrf.mxu1  ;;  %7777 = vmatmul.msk.bf16.gmra.mxu1 %vm2607_vm6, %v13076_v28 }
 0x6b5   : > { %v11610_v23 = vadd.f32 %v5825_v50, %v5765_v15 }
 0x6b6   : > { %v5420_v57 = vpop.f32.mrf.mxu2 }
 0x6b7   : > { %13073 = vst [vmem:[#allocation79_spill] sm:$0xff] %v11610_v23  ;;  %v5499_v51 = vadd.f32 %v5420_v57, %v13074_v43 }
 0x6b8   : > { %7742 = vmatmul.msk.bf16.gmra.mxu3 %vm2607_vm6, %v13075_v6  ;;  %v5695_v61 = vpop.f32.mrf.mxu0  ;;  %7725 = vmatmul.msk.bf16.gmra.mxu2 %vm2607_vm6, %v13077_v56  ;;  %v13082_v56 = vld [vmem:[#allocation80_spill] sm:$0xff] }
 0x6b9   : > { %v5636_v53 = vadd.f32 %v5557_v55, %v5499_v51 }
 0x6bb   : > { %v5560_v47 = vpop.f32.mrf.mxu3  ;;  %7760 = vmatmul.msk.bf16.gmra.mxu0 %vm2607_vm6, %v13078_v10  ;;  %v5766_v50 = vadd.f32 %v5687_v13, %v5636_v53  ;;  %v13084_v53 = vld [vmem:[#allocation61_spill] sm:$0xff]  ;;  %v13091_v10 = vld [vmem:[#allocation60_spill] sm:$0xff] }
 0x6bc   : > { %v5837_v3 = vpop.f32.mrf.mxu1 }
 0x6bd   : > { %v11621_v15 = vadd.f32 %v5827_v62, %v5766_v50  ;;  %v13085_v50 = vld [vmem:[#allocation29_spill] sm:$0xff] }
 0x6be   : > { %v5423_v43 = vpop.f32.mrf.mxu2 }
 0x6bf   : > { %13079 = vst [vmem:[#allocation71_spill] sm:$0xff] %v11621_v15  ;;  %v5500_v63 = vadd.f32 %v5423_v43, %v13080_v7  ;;  %v13086_v43 = vld [vmem:[#allocation38_spill] sm:$0xff]  ;;  %v13088_v7 = vld [vmem:[#allocation39_spill] sm:$0xff] }
 0x6c0   : > { %v5697_v36 = vpop.f32.mrf.mxu0 }
 0x6c1   : > { %v5637_v57 = vadd.f32 %v5560_v47, %v5500_v63 }
 0x6c3   : > { %v5562_v23 = vpop.f32.mrf.mxu3  ;;  %v5767_v39 = vadd.f32 %v5690_v25, %v5637_v57 }
 0x6c4   : > { %v5840_v28 = vpop.f32.mrf.mxu1  ;;  %7778 = vmatmul.msk.bf16.gmra.mxu1 %vm2607_vm6, %v13084_v53 }
 0x6c5   : > { %v11624_v51 = vadd.f32 %v5830_v54, %v5767_v39 }
 0x6c6   : > { %v5425_v55 = vpop.f32.mrf.mxu2 }
 0x6c7   : > { %13081 = vst [vmem:[#allocation72_spill] sm:$0xff] %v11624_v51  ;;  %v5501_v6 = vadd.f32 %v5425_v55, %v13082_v56 }
 0x6c8   : > { %7743 = vmatmul.msk.bf16.gmra.mxu3 %vm2607_vm6, %v13083_v34  ;;  %v5700_v13 = vpop.f32.mrf.mxu0  ;;  %7726 = vmatmul.msk.bf16.gmra.mxu2 %vm2607_vm6, %v13085_v50  ;;  %v13090_v50 = vld [vmem:[#allocation22_spill] sm:$0xff] }
 0x6c9   : > { %v5638_v62 = vadd.f32 %v5562_v23, %v5501_v6 }
 0x6cb   : > { %v5565_v47 = vpop.f32.mrf.mxu3  ;;  %7761 = vmatmul.msk.bf16.gmra.mxu0 %vm2607_vm6, %v13086_v43  ;;  %v5768_v54 = vadd.f32 %v5692_v26, %v5638_v62  ;;  %v13092_v62 = vld [vmem:[#allocation96_spill] sm:$0xff]  ;;  %v13099_v43 = vld [vmem:[#allocation62_spill] sm:$0xff] }
 0x6cc   : > { %v5842_v25 = vpop.f32.mrf.mxu1 }
 0x6cd   : > { %v11635_v39 = vadd.f32 %v5832_v16, %v5768_v54  ;;  %v13093_v54 = vld [vmem:[#allocation36_spill] sm:$0xff] }
 0x6ce   : > { %v5428_v56 = vpop.f32.mrf.mxu2 }
 0x6cf   : > { %13087 = vst [vmem:[#allocation77_spill] sm:$0xff] %v11635_v39  ;;  %v5502_v63 = vadd.f32 %v5428_v56, %v13088_v7  ;;  %v13094_v56 = vld [vmem:[#allocation67_spill] sm:$0xff]  ;;  %v13096_v7 = vld [vmem:[#allocation30_spill] sm:$0xff] }
 0x6d0   : > { %v5702_v57 = vpop.f32.mrf.mxu0 }
 0x6d1   : > { %v5639_v55 = vadd.f32 %v5565_v47, %v5502_v63 }
 0x6d3   : > { %v5567_v51 = vpop.f32.mrf.mxu3  ;;  %v5769_v15 = vadd.f32 %v5695_v61, %v5639_v55 }
 0x6d4   : > { %v5845_v53 = vpop.f32.mrf.mxu1  ;;  %7779 = vmatmul.msk.bf16.gmra.mxu1 %vm2607_vm6, %v13092_v62 }
 0x6d5   : > { %v11638_v6 = vadd.f32 %v5835_v48, %v5769_v15 }
 0x6d6   : > { %v5430_v23 = vpop.f32.mrf.mxu2 }
 0x6d7   : > { %13089 = vst [vmem:[#allocation17_spill] sm:$0xff] %v11638_v6  ;;  %v5503_v34 = vadd.f32 %v5430_v23, %v13090_v50 }
 0x6d8   : > { %7744 = vmatmul.msk.bf16.gmra.mxu3 %vm2607_vm6, %v13091_v10  ;;  %v5705_v26 = vpop.f32.mrf.mxu0  ;;  %7727 = vmatmul.msk.bf16.gmra.mxu2 %vm2607_vm6, %v13093_v54  ;;  %v13098_v54 = vld [vmem:[#allocation88_spill] sm:$0xff] }
 0x6d9   : > { %v5640_v16 = vadd.f32 %v5567_v51, %v5503_v34 }
 0x6db   : > { %v5570_v47 = vpop.f32.mrf.mxu3  ;;  %7762 = vmatmul.msk.bf16.gmra.mxu0 %vm2607_vm6, %v13094_v56  ;;  %v5770_v48 = vadd.f32 %v5697_v36, %v5640_v16  ;;  %v13100_v16 = vld [vmem:[#allocation76_spill] sm:$0xff] }
 0x6dc   : > { %v5847_v61 = vpop.f32.mrf.mxu1 }
 0x6dd   : > { %v11649_v15 = vadd.f32 %v5837_v3, %v5770_v48  ;;  %v13101_v48 = vld [vmem:[#allocation63_spill] sm:$0xff] }
 0x6de   : > { %v5433_v50 = vpop.f32.mrf.mxu2 }
 0x6df   : > { %13095 = vst [vmem:[#allocation49_spill] sm:$0xff] %v11649_v15  ;;  %v5504_v63 = vadd.f32 %v5433_v50, %v13096_v7  ;;  %v13103_v50 = vld [vmem:[#allocation15_spill] sm:$0xff] }
 0x6e0   : > { %v5707_v55 = vpop.f32.mrf.mxu0 }
 0x6e1   : > { %v5641_v23 = vadd.f32 %v5570_v47, %v5504_v63 }
 0x6e3   : > { %v5572_v6 = vpop.f32.mrf.mxu3  ;;  %v5771_v39 = vadd.f32 %v5700_v13, %v5641_v23 }
 0x6e4   : > { %v5850_v62 = vpop.f32.mrf.mxu1  ;;  %7780 = vmatmul.msk.bf16.gmra.mxu1 %vm2607_vm6, %v13100_v16 }
 0x6e5   : > { %v11652_v34 = vadd.f32 %v5840_v28, %v5771_v39 }
 0x6e6   : > { %v5435_v51 = vpop.f32.mrf.mxu2 }
 0x6e7   : > { %13097 = vst [vmem:[#allocation26_spill] sm:$0xff] %v11652_v34  ;;  %v5505_v10 = vadd.f32 %v5435_v51, %v13098_v54 }
 0x6e8   : > { %7745 = vmatmul.msk.bf16.gmra.mxu3 %vm2607_vm6, %v13099_v43  ;;  %v5710_v36 = vpop.f32.mrf.mxu0  ;;  %7728 = vmatmul.msk.bf16.gmra.mxu2 %vm2607_vm6, %v13101_v48  ;;  %v13105_v48 = vld [vmem:[#allocation90_spill] sm:$0xff] }
 0x6e9   : > { %v5642_v3 = vadd.f32 %v5572_v6, %v5505_v10 }
 0x6eb   : > { %v5575_v47 = vpop.f32.mrf.mxu3  ;;  %7763 = vmatmul.msk.bf16.gmra.mxu0 %vm2607_vm6, %v11176_v19  ;;  %v5772_v28 = vadd.f32 %v5702_v57, %v5642_v3  ;;  %v11673_v3 = vld [vmem:[#allocation3 + $0x1b0] sm:$0xff] }
 0x6ec   : > { %v5852_v13 = vpop.f32.mrf.mxu1 }
 0x6ed   : > { %v11663_v39 = vadd.f32 %v5842_v25, %v5772_v28  ;;  %v11675_v28 = vld [vmem:[#allocation3 + $0x1b8] sm:$0xff] }
 0x6ee   : > { %v5438_v54 = vpop.f32.mrf.mxu2 }
 0x6ef   : > { %13102 = vst [vmem:[#allocation27_spill] sm:$0xff] %v11663_v39  ;;  %v5506_v7 = vadd.f32 %v5438_v54, %v13103_v50  ;;  %v5800_v54 = vrot.slane %v11673_v3, 1  ;;  %v5801_v50 = vrot.slane %v11675_v28, 1 }
 0x6f0   : > { %v5712_v63 = vpop.f32.mrf.mxu0 }
 0x6f1   : > { %v5643_v23 = vadd.f32 %v5575_v47, %v5506_v7  ;;  %v11677_v47 = vld [vmem:[#allocation3 + $0x1c0] sm:$0xf] }
 0x6f3   : > { %v5577_v51 = vpop.f32.mrf.mxu3  ;;  %v5773_v34 = vadd.f32 %v5705_v26, %v5643_v23  ;;  %v13106_v26 = vld [vmem:[#allocation98_spill] sm:$0xff] }
 0x6f4   : > { %v5855_v16 = vpop.f32.mrf.mxu1  ;;  %7781 = vmatmul.msk.bf16.gmra.mxu1 %vm2607_vm6, %v11432_v24 }
 0x6f5   : > { %v11666_v10 = vadd.f32 %v5845_v53, %v5773_v34 }
 0x6f6   : > { %v5440_v6 = vpop.f32.mrf.mxu2 }
 0x6f7   : > { %13104 = vst [vmem:[#allocation46_spill] sm:$0xff] %v11666_v10  ;;  %v5507_v15 = vadd.f32 %v5440_v6, %v13105_v48  ;;  %v5802_v10 = vsel %vm849_vm3, %v5800_v54, %v5801_v50 }
 0x6f8   : > { %7746 = vmatmul.msk.bf16.gmra.mxu3 %vm2607_vm6, %v13031_v2  ;;  %v5715_v57 = vpop.f32.mrf.mxu0  ;;  %7729 = vmatmul.msk.bf16.gmra.mxu2 %vm2607_vm6, %v13106_v26 }
 0x6f9   : > { %v5644_v25 = vadd.f32 %v5577_v51, %v5507_v15  ;;  %v5803_v15 = vrot.slane %v11677_v47, 1 }
 0x6fb   : > { %v5580_v53 = vpop.f32.mrf.mxu3  ;;  %7764 = vmatmul.msk.bf16.gmra.mxu0 %vm2607_vm6, %v11458_v9  ;;  %v5774_v34 = vadd.f32 %v5707_v55, %v5644_v25  ;;  %v5804_v26 = vsel %vm849_vm3, %v5801_v50, %v5803_v15 }
 0x6fc   : > { %v5857_v48 = vpop.f32.mrf.mxu1  ;;  %v11691_v25 = vpack.c.bf16 %v5804_v26, %v5802_v10 }
 0x6fd   : > { %v11686_v7 = vadd.f32 %v5847_v61, %v5774_v34  ;;  %v11698_v34 = vpack.c.bf16 %v11675_v28, %v11673_v3 }
 0x6fe   : > { %v5443_v23 = vpop.f32.mrf.mxu2  ;;  %13107 = vst [vmem:[#allocation20_spill] sm:$0xff] %v11691_v25 }
 0x6ff   : > { %v5508_v51 = vadd.f32 %v5443_v23, %v11429_v31 }
 0x700   : > { %v5717_v6 = vpop.f32.mrf.mxu0 }
 0x701   : > { %v5645_v24 = vadd.f32 %v5580_v53, %v5508_v51 }
 0x703   : > { %v5582_v9 = vpop.f32.mrf.mxu3  ;;  %v5775_v55 = vadd.f32 %v5710_v36, %v5645_v24  ;;  %v13108_v36 = vld [vmem:[#allocation74_spill] sm:$0xff] }
 0x704   : > { %v5860_v39 = vpop.f32.mrf.mxu1  ;;  %7782 = vmatmul.msk.bf16.gmra.mxu1 %vm2607_vm6, %v11691_v25 }
 0x705   : > { %v11693_v2 = vadd.f32 %v5850_v62, %v5775_v55 }
 0x706   : > { %v5445_v19 = vpop.f32.mrf.mxu2 }
 0x707   : > { %v5509_v61 = vadd.f32 %v5445_v19, %v11451_v38  ;;  %v7851_v19 = vld [vmem:[%s12410_s3 + $0x2a] sm:$0x3] }
 0x708   : > { %7747 = vmatmul.msk.bf16.gmra.mxu3 %vm2607_vm6, %v13033_v29  ;;  %v5720_v31 = vpop.f32.mrf.mxu0  ;;  %7730 = vmatmul.msk.bf16.gmra.mxu2 %vm2607_vm6, %v13108_v36  ;;  %v6495_v10 = vsel %vm3165_vm5, %v7851_v19, 0 }
 0x709   : > { %v5646_v24 = vadd.f32 %v5582_v9, %v5509_v61  ;;  %6504 = vmatpush.bf16.msra.mxu2 %v6495_v10  ;;  %v7868_v9 = vld [vmem:[%s12410_s3 + $0x2c] sm:$0x3] }
 0x70a   : > { %v6632_v50 = vsel %vm3165_vm5, %v7868_v9, 0 }
 0x70b   : > { %v5585_v62 = vpop.f32.mrf.mxu3  ;;  %7765 = vmatmul.msk.bf16.gmra.mxu0 %vm2607_vm6, %v11698_v34  ;;  %v5776_v38 = vadd.f32 %v5712_v63, %v5646_v24  ;;  %6641 = vmatpush.bf16.msra.mxu3 %v6632_v50  ;;  %v7885_v24 = vld [vmem:[%s12410_s3 + $0x2e] sm:$0x3] }
 0x70c   : > { %v5862_v26 = vpop.f32.mrf.mxu1 }
 0x70d   : > { %v11715_v53 = vadd.f32 %v5852_v13, %v5776_v38  ;;  %v6769_v13 = vsel %vm3165_vm5, %v7885_v24, 0 }
 0x70e   : > { %v5448_v54 = vpop.f32.mrf.mxu2  ;;  %6778 = vmatpush.bf16.msra.mxu0 %v6769_v13 }
 0x70f   : > { %v5510_v15 = vadd.f32 %v5448_v54, %v11464_v32 }
 0x710   : > { %v5722_v23 = vpop.f32.mrf.mxu0 }
 0x711   : > { %v5647_v51 = vadd.f32 %v5585_v62, %v5510_v15  ;;  %v7902_v62 = vld [vmem:[%s12410_s3 + $0x30] sm:$0x3] }
 0x713   : > { %v5587_v55 = vpop.f32.mrf.mxu3  ;;  %v5777_v63 = vadd.f32 %v5715_v57, %v5647_v51 }
 0x714   : > { %v5865_v61 = vpop.f32.mrf.mxu1  ;;  %7835 = vmatmul.msk.bf16.vlgmr.msrb.gmra.mxu1 %vm2607_vm6, %v12823_v37 }
 0x715   : > { %v11722_v19 = vadd.f32 %v5855_v16, %v5777_v63  ;;  %v6906_v16 = vsel %vm3165_vm5, %v7902_v62, 0 }
 0x716   : > { %v5450_v10 = vpop.f32.mrf.mxu2  ;;  %6915 = vmatpush.bf16.msra.mxu1 %v6906_v16 }
 0x717   : > { %v5511_v38 = vadd.f32 %v5450_v10, %v11481_v20 }
 0x718   : > { %7748 = vmatmul.msk.bf16.gmra.mxu3 %vm2607_vm6, %v11414_v17  ;;  %v5725_v32 = vpop.f32.mrf.mxu0  ;;  %7731 = vmatmul.msk.bf16.gmra.mxu2 %vm2607_vm6, %v11420_v14 }
 0x719   : > { %v5648_v57 = vadd.f32 %v5587_v55, %v5511_v38 }
 0x71b   : > { %v5590_v9 = vpop.f32.mrf.mxu3  ;;  %7818 = vmatmul.msk.bf16.vlgmr.msrb.gmra.mxu0 %vm2607_vm6, %v12961_v45  ;;  %v5778_v20 = vadd.f32 %v5717_v6, %v5648_v57 }
 0x71c   : > { %v5867_v54 = vpop.f32.mrf.mxu1 }
 0x71d   : > { %v11738_v50 = vadd.f32 %v5857_v48, %v5778_v20 }
 0x71e   : > { %v5453_v37 = vpop.f32.mrf.mxu2 }
 0x71f   : > { %v5512_v15 = vadd.f32 %v5453_v37, %v11484_v44  ;;  %v13109_v44 = vld [vmem:[#allocation52_spill] sm:$0xff] }
 0x720   : > { %v5727_v51 = vpop.f32.mrf.mxu0 }
 0x721   : > { %v5649_v55 = vadd.f32 %v5590_v9, %v5512_v15 }
 0x723   : > { %v5592_v63 = vpop.f32.mrf.mxu3  ;;  %v5779_v24 = vadd.f32 %v5720_v31, %v5649_v55 }
 0x724   : > { %v5870_v10 = vpop.f32.mrf.mxu1  ;;  %7836 = vmatmul.msk.bf16.gmra.mxu1 %vm2607_vm6, %v9592_v12 }
 0x725   : > { %v11741_v13 = vadd.f32 %v5860_v39, %v5779_v24 }
 0x726   : > { %v5455_v38 = vpop.f32.mrf.mxu2 }
 0x727   : > { %v5513_v62 = vadd.f32 %v5455_v38, %v11495_v27 }
 0x728   : > { %v5730_v25 = vpop.f32.mrf.mxu0  ;;  %7801 = vmatmul.msk.bf16.vlgmr.msrb.gmra.mxu3 %vm2607_vm6, %v13035_v40  ;;  %7784 = vmatmul.msk.bf16.vlgmr.msrb.gmra.mxu2 %vm2607_vm6, %v13109_v44 }
 0x729   : > { %v5650_v45 = vadd.f32 %v5592_v63, %v5513_v62 }
 0x72b   : > { %v5595_v48 = vpop.f32.mrf.mxu3  ;;  %7819 = vmatmul.msk.bf16.gmra.mxu0 %vm2607_vm6, %v12962_v46  ;;  %v5780_v39 = vadd.f32 %v5722_v23, %v5650_v45 }
 0x72c   : > { %v5872_v6 = vpop.f32.mrf.mxu1 }
 0x72d   : > { %v11752_v31 = vadd.f32 %v5862_v26, %v5780_v39 }
 0x72e   : > { %v5458_v27 = vpop.f32.mrf.mxu2 }
 0x72f   : > { %v5514_v57 = vadd.f32 %v5458_v27, %v11498_v1  ;;  %v13110_v1 = vld [vmem:[#allocation40_spill] sm:$0xff] }
 0x730   : > { %v5732_v16 = vpop.f32.mrf.mxu0 }
 0x731   : > { %v5651_v40 = vadd.f32 %v5595_v48, %v5514_v57 }
 0x733   : > { %v5597_v9 = vpop.f32.mrf.mxu3  ;;  %v5781_v20 = vadd.f32 %v5725_v32, %v5651_v40 }
 0x734   : > { %v5875_v12 = vpop.f32.mrf.mxu1  ;;  %7837 = vmatmul.msk.bf16.gmra.mxu1 %vm2607_vm6, %v9670_v42 }
 0x735   : > { %v11755_v37 = vadd.f32 %v5865_v61, %v5781_v20 }
 0x736   : > { %v5460_v15 = vpop.f32.mrf.mxu2 }
 0x737   : > { %v5515_v55 = vadd.f32 %v5460_v15, %v11509_v11 }
 0x738   : > { %v5735_v63 = vpop.f32.mrf.mxu0  ;;  %7802 = vmatmul.msk.bf16.gmra.mxu3 %vm2607_vm6, %v13036_v18  ;;  %7785 = vmatmul.msk.bf16.gmra.mxu2 %vm2607_vm6, %v13110_v1 }
 0x739   : > { %v5652_v26 = vadd.f32 %v5597_v9, %v5515_v55 }
 0x73b   : > { %v5600_v23 = vpop.f32.mrf.mxu3  ;;  %7820 = vmatmul.msk.bf16.gmra.mxu0 %vm2607_vm6, %v12963_v60  ;;  %v5782_v61 = vadd.f32 %v5727_v51, %v5652_v26 }
 0x73c   : > { %v5877_v32 = vpop.f32.mrf.mxu1 }
 0x73d   : > { %v11766_v24 = vadd.f32 %v5867_v54, %v5782_v61 }
 0x73e   : > { %v5463_v11 = vpop.f32.mrf.mxu2 }
 0x73f   : > { %v5516_v38 = vadd.f32 %v5463_v11, %v11512_v52  ;;  %v13111_v52 = vld [vmem:[#allocation41_spill] sm:$0xff] }
 0x740   : > { %v5737_v62 = vpop.f32.mrf.mxu0 }
 0x741   : > { %v5653_v45 = vadd.f32 %v5600_v23, %v5516_v38 }
 0x743   : > { %v5602_v48 = vpop.f32.mrf.mxu3  ;;  %v5783_v44 = vadd.f32 %v5730_v25, %v5653_v45 }
 0x744   : > { %v5880_v42 = vpop.f32.mrf.mxu1  ;;  %7838 = vmatmul.msk.bf16.gmra.mxu1 %vm2607_vm6, %v12830_v22 }
 0x745   : > { %v11769_v39 = vadd.f32 %v5870_v10, %v5783_v44 }
 0x746   : > { %v5465_v27 = vpop.f32.mrf.mxu2 }
 0x747   : > { %v5517_v57 = vadd.f32 %v5465_v27, %v11523_v30 }
 0x748   : > { %v5740_v40 = vpop.f32.mrf.mxu0  ;;  %7803 = vmatmul.msk.bf16.gmra.mxu3 %vm2607_vm6, %v13037_v49  ;;  %7786 = vmatmul.msk.bf16.gmra.mxu2 %vm2607_vm6, %v13111_v52 }
 0x749   : > { %v5654_v54 = vadd.f32 %v5602_v48, %v5517_v57 }
 0x74b   : > { %v5605_v51 = vpop.f32.mrf.mxu3  ;;  %7821 = vmatmul.msk.bf16.gmra.mxu0 %vm2607_vm6, %v12966_v59  ;;  %v5784_v25 = vadd.f32 %v5732_v16, %v5654_v54 }
 0x74c   : > { %v5882_v10 = vpop.f32.mrf.mxu1 }
 0x74d   : > { %v11780_v9 = vadd.f32 %v5872_v6, %v5784_v25 }
 0x74e   : > { %v5468_v30 = vpop.f32.mrf.mxu2 }
 0x74f   : > { %v5518_v20 = vadd.f32 %v5468_v30, %v11526_v8  ;;  %v13112_v8 = vld [vmem:[#allocation34_spill] sm:$0xff] }
 0x750   : > { %v5742_v15 = vpop.f32.mrf.mxu0 }
 0x751   : > { %v5655_v55 = vadd.f32 %v5605_v51, %v5518_v20 }
 0x753   : > { %v5607_v26 = vpop.f32.mrf.mxu3  ;;  %v5785_v23 = vadd.f32 %v5735_v63, %v5655_v55 }
 0x754   : > { %v5885_v22 = vpop.f32.mrf.mxu1  ;;  %7839 = vmatmul.msk.bf16.gmra.mxu1 %vm2607_vm6, %v13039_v58 }
 0x755   : > { %v11783_v61 = vadd.f32 %v5875_v12, %v5785_v23 }
 0x756   : > { %v5470_v11 = vpop.f32.mrf.mxu2 }
 0x757   : > { %v5519_v38 = vadd.f32 %v5470_v11, %v11537_v35  ;;  %v13117_v11 = vld [vmem:[#allocation94_spill] sm:$0xff] }
 0x758   : > { %v5745_v45 = vpop.f32.mrf.mxu0  ;;  %7804 = vmatmul.msk.bf16.gmra.mxu3 %vm2607_vm6, %v13038_v4  ;;  %7787 = vmatmul.msk.bf16.gmra.mxu2 %vm2607_vm6, %v13112_v8 }
 0x759   : > { %v5656_v6 = vadd.f32 %v5607_v26, %v5519_v38  ;;  %v13115_v26 = vld [vmem:[#allocation7_spill] sm:$0xff] }
 0x75b   : > { %v5610_v16 = vpop.f32.mrf.mxu3  ;;  %7822 = vmatmul.msk.bf16.gmra.mxu0 %vm2607_vm6, %v13043_v41  ;;  %v5786_v12 = vadd.f32 %v5737_v62, %v5656_v6 }
 0x75c   : > { %v5887_v63 = vpop.f32.mrf.mxu1 }
 0x75d   : > { %v11794_v48 = vadd.f32 %v5877_v32, %v5786_v12 }
 0x75e   : > { %v5473_v35 = vpop.f32.mrf.mxu2 }
 0x75f   : > { %v5520_v44 = vadd.f32 %v5473_v35, %v11540_v33  ;;  %v13114_v33 = vld [vmem:[#allocation9_spill] sm:$0xff] }
 0x760   : > { %v5747_v27 = vpop.f32.mrf.mxu0 }
 0x761   : > { %v5657_v57 = vadd.f32 %v5610_v16, %v5520_v44 }
 0x763   : > { %v5612_v54 = vpop.f32.mrf.mxu3  ;;  %v5787_v51 = vadd.f32 %v5740_v40, %v5657_v57 }
 0x764   : > { %v5890_v58 = vpop.f32.mrf.mxu1  ;;  %7840 = vmatmul.msk.bf16.gmra.mxu1 %vm2607_vm6, %v13046_v5 }
 0x765   : > { %v11797_v25 = vadd.f32 %v5880_v42, %v5787_v51 }
 0x766   : > { %v5475_v30 = vpop.f32.mrf.mxu2 }
 0x767   : > { %13113 = vst [vmem:[#allocation10_spill] sm:$0xff] %v11797_v25  ;;  %v5521_v20 = vadd.f32 %v5475_v30, %v11551_v21 }
 0x768   : > { %v5750_v55 = vpop.f32.mrf.mxu0  ;;  %7805 = vmatmul.msk.bf16.gmra.mxu3 %vm2607_vm6, %v13045_v0  ;;  %7788 = vmatmul.msk.bf16.gmra.mxu2 %vm2607_vm6, %v13114_v33 }
 0x769   : > { %v5658_v32 = vadd.f32 %v5612_v54, %v5521_v20  ;;  %v13119_v54 = vld [vmem:[#allocation33_spill] sm:$0xff]  ;;  %v13120_v20 = vld [vmem:[#allocation47_spill] sm:$0xff] }
 0x76b   : > { %v5615_v62 = vpop.f32.mrf.mxu3  ;;  %7823 = vmatmul.msk.bf16.gmra.mxu0 %vm2607_vm6, %v13115_v26  ;;  %v5788_v42 = vadd.f32 %v5742_v15, %v5658_v32  ;;  %v13121_v15 = vld [vmem:[#allocation87_spill] sm:$0xff] }
 0x76c   : > { %v5892_v40 = vpop.f32.mrf.mxu1 }
 0x76d   : > { %v11808_v23 = vadd.f32 %v5882_v10, %v5788_v42  ;;  %v13122_v42 = vld [vmem:[#allocation48_spill] sm:$0xff] }
 0x76e   : > { %v5478_v21 = vpop.f32.mrf.mxu2 }
 0x76f   : > { %13116 = vst [vmem:[#allocation35_spill] sm:$0xff] %v11808_v23  ;;  %v5522_v38 = vadd.f32 %v5478_v21, %v13117_v11  ;;  %v13127_v23 = vld [vmem:[#allocation37_spill] sm:$0xff] }
 0x770   : > { %v5752_v6 = vpop.f32.mrf.mxu0 }
 0x771   : > { %v5659_v16 = vadd.f32 %v5615_v62, %v5522_v38  ;;  %v13123_v62 = vld [vmem:[#allocation51_spill] sm:$0xff] }
 0x772   : > { %v13125_v38 = vld [vmem:[#allocation95_spill] sm:$0xff] }
 0x773   : > { %v5617_v12 = vpop.f32.mrf.mxu3  ;;  %v5789_v35 = vadd.f32 %v5745_v45, %v5659_v16 }
 0x774   : > { %v5895_v5 = vpop.f32.mrf.mxu1  ;;  %7841 = vmatmul.msk.bf16.gmra.mxu1 %vm2607_vm6, %v13121_v15 }
 0x775   : > { %v11811_v44 = vadd.f32 %v5885_v22, %v5789_v35 }
 0x776   : > { %v5480_v57 = vpop.f32.mrf.mxu2 }
 0x777   : > { %13118 = vst [vmem:[#allocation32_spill] sm:$0xff] %v11811_v44  ;;  %v5523_v51 = vadd.f32 %v5480_v57, %v13119_v54 }
 0x778   : > { %v5755_v30 = vpop.f32.mrf.mxu0  ;;  %7806 = vmatmul.msk.bf16.gmra.mxu3 %vm2607_vm6, %v13120_v20  ;;  %7789 = vmatmul.msk.bf16.gmra.mxu2 %vm2607_vm6, %v13122_v42  ;;  %v13128_v20 = vld [vmem:[#allocation13_spill] sm:$0xff] }
 0x779   : > { %v5660_v10 = vadd.f32 %v5617_v12, %v5523_v51 }
 0x77b   : > { %v5620_v32 = vpop.f32.mrf.mxu3  ;;  %7824 = vmatmul.msk.bf16.gmra.mxu0 %vm2607_vm6, %v13123_v62  ;;  %v5790_v22 = vadd.f32 %v5747_v27, %v5660_v10  ;;  %v13129_v27 = vld [vmem:[#allocation55_spill] sm:$0xff] }
 0x77c   : > { %v5897_v45 = vpop.f32.mrf.mxu1 }
 0x77d   : > { %v11822_v21 = vadd.f32 %v5887_v63, %v5790_v22  ;;  %v13130_v22 = vld [vmem:[#allocation12_spill] sm:$0xff] }
 0x77e   : > { %v5483_v11 = vpop.f32.mrf.mxu2 }
 0x77f   : > { %13124 = vst [vmem:[#allocation50_spill] sm:$0xff] %v11822_v21  ;;  %v5524_v16 = vadd.f32 %v5483_v11, %v13125_v38  ;;  %v13133_v11 = vld [vmem:[#allocation97_spill] sm:$0xff] }
 0x780   : > { %v5757_v35 = vpop.f32.mrf.mxu0  ;;  %v13135_v21 = vld [vmem:[#allocation65_spill] sm:$0xff] }
 0x781   : > { %v5661_v57 = vadd.f32 %v5620_v32, %v5524_v16  ;;  %v13131_v32 = vld [vmem:[#allocation89_spill] sm:$0xff] }
 0x783   : > { %v5622_v54 = vpop.f32.mrf.mxu3  ;;  %v5791_v44 = vadd.f32 %v5750_v55, %v5661_v57 }
 0x784   : > { %v5900_v15 = vpop.f32.mrf.mxu1  ;;  %7842 = vmatmul.msk.bf16.gmra.mxu1 %vm2607_vm6, %v13129_v27 }
 0x785   : > { %v11825_v12 = vadd.f32 %v5890_v58, %v5791_v44 }
 0x786   : > { %v5485_v51 = vpop.f32.mrf.mxu2 }
 0x787   : > { %13126 = vst [vmem:[#allocation44_spill] sm:$0xff] %v11825_v12  ;;  %v5525_v42 = vadd.f32 %v5485_v51, %v13127_v23 }
 0x788   : > { %v5760_v25 = vpop.f32.mrf.mxu0  ;;  %7807 = vmatmul.msk.bf16.gmra.mxu3 %vm2607_vm6, %v13128_v20  ;;  %7790 = vmatmul.msk.bf16.gmra.mxu2 %vm2607_vm6, %v13130_v22  ;;  %v13136_v20 = vld [vmem:[#allocation54_spill] sm:$0xff] }
 0x789   : > { %v5662_v63 = vadd.f32 %v5622_v54, %v5525_v42 }
 0x78b   : > { %v5625_v10 = vpop.f32.mrf.mxu3  ;;  %7825 = vmatmul.msk.bf16.gmra.mxu0 %vm2607_vm6, %v13131_v32  ;;  %v5792_v58 = vadd.f32 %v5752_v6, %v5662_v63  ;;  %v13137_v63 = vld [vmem:[#allocation91_spill] sm:$0xff]  ;;  %v13144_v32 = vld [vmem:[#allocation24_spill] sm:$0xff] }
 0x78c   : > { %v5902_v55 = vpop.f32.mrf.mxu1 }
 0x78d   : > { %v11836_v44 = vadd.f32 %v5892_v40, %v5792_v58 }
 0x78e   : > { %v5488_v23 = vpop.f32.mrf.mxu2 }
 0x78f   : > { %13132 = vst [vmem:[#allocation84_spill] sm:$0xff] %v11836_v44  ;;  %v5526_v38 = vadd.f32 %v5488_v23, %v13133_v11  ;;  %v13138_v23 = vld [vmem:[#allocation18_spill] sm:$0xff] }
 0x790   : > { %v5762_v16 = vpop.f32.mrf.mxu0  ;;  %v13141_v11 = vld [vmem:[#allocation70_spill] sm:$0xff] }
 0x791   : > { %v5663_v57 = vadd.f32 %v5625_v10, %v5526_v38  ;;  %v13139_v10 = vld [vmem:[#allocation56_spill] sm:$0xff] }
 0x793   : > { %v5627_v51 = vpop.f32.mrf.mxu3  ;;  %v5793_v12 = vadd.f32 %v5755_v30, %v5663_v57 }
 0x794   : > { %v6366_v27 = vpop.f32.mrf.mxu1  ;;  %7843 = vmatmul.msk.bf16.gmra.mxu1 %vm2607_vm6, %v13137_v63 }
 0x795   : > { %v11839_v42 = vadd.f32 %v5895_v5, %v5793_v12 }
 0x796   : > { %v5490_v54 = vpop.f32.mrf.mxu2 }
 0x797   : > { %13134 = vst [vmem:[#allocation86_spill] sm:$0xff] %v11839_v42  ;;  %v5527_v22 = vadd.f32 %v5490_v54, %v13135_v21 }
 0x798   : > { %7808 = vmatmul.msk.bf16.gmra.mxu3 %vm2607_vm6, %v13136_v20  ;;  %v6236_v6 = vpop.f32.mrf.mxu0  ;;  %7791 = vmatmul.msk.bf16.gmra.mxu2 %vm2607_vm6, %v13138_v23  ;;  %v13143_v20 = vld [vmem:[#allocation73_spill] sm:$0xff] }
 0x799   : > { %v5664_v40 = vadd.f32 %v5627_v51, %v5527_v22 }
 0x79b   : > { %v5630_v58 = vpop.f32.mrf.mxu3  ;;  %7826 = vmatmul.msk.bf16.gmra.mxu0 %vm2607_vm6, %v13139_v10  ;;  %v5794_v5 = vadd.f32 %v5757_v35, %v5664_v40  ;;  %v13145_v40 = vld [vmem:[#allocation93_spill] sm:$0xff] }
 0x79c   : > { %v6368_v30 = vpop.f32.mrf.mxu1  ;;  %v13152_v10 = vld [vmem:[#allocation29_spill] sm:$0xff] }
 0x79d   : > { %v11850_v12 = vadd.f32 %v5897_v45, %v5794_v5  ;;  %v13146_v5 = vld [vmem:[#allocation19_spill] sm:$0xff] }
 0x79e   : > { %v5493_v21 = vpop.f32.mrf.mxu2 }
 0x79f   : > { %13140 = vst [vmem:[#allocation8_spill] sm:$0xff] %v11850_v12  ;;  %v5528_v38 = vadd.f32 %v5493_v21, %v13141_v11  ;;  %v13147_v21 = vld [vmem:[#allocation58_spill] sm:$0xff]  ;;  %v13149_v11 = vld [vmem:[#allocation79_spill] sm:$0xff] }
 0x7a0   : > { %v6238_v57 = vpop.f32.mrf.mxu0 }
 0x7a1   : > { %v5665_v54 = vadd.f32 %v5630_v58, %v5528_v38 }
 0x7a3   : > { %v5632_v42 = vpop.f32.mrf.mxu3  ;;  %v5795_v44 = vadd.f32 %v5760_v25, %v5665_v54 }
 0x7a4   : > { %v6371_v63 = vpop.f32.mrf.mxu1  ;;  %7844 = vmatmul.msk.bf16.gmra.mxu1 %vm2607_vm6, %v13145_v40 }
 0x7a5   : > { %v11853_v22 = vadd.f32 %v5900_v15, %v5795_v44 }
 0x7a6   : > { %v5495_v51 = vpop.f32.mrf.mxu2 }
 0x7a7   : > { %13142 = vst [vmem:[#allocation11_spill] sm:$0xff] %v11853_v22  ;;  %v5529_v23 = vadd.f32 %v5495_v51, %v13143_v20 }
 0x7a8   : > { %7809 = vmatmul.msk.bf16.gmra.mxu3 %vm2607_vm6, %v13144_v32  ;;  %v6241_v35 = vpop.f32.mrf.mxu0  ;;  %7792 = vmatmul.msk.bf16.gmra.mxu2 %vm2607_vm6, %v13146_v5  ;;  %v13151_v5 = vld [vmem:[#allocation71_spill] sm:$0xff] }
 0x7a9   : > { %v5666_v45 = vadd.f32 %v5632_v42, %v5529_v23 }
 0x7ab   : > { %v6099_v58 = vpop.f32.mrf.mxu3  ;;  %7827 = vmatmul.msk.bf16.gmra.mxu0 %vm2607_vm6, %v13147_v21  ;;  %v5796_v25 = vadd.f32 %v5762_v16, %v5666_v45  ;;  %v13153_v45 = vld [vmem:[#allocation38_spill] sm:$0xff]  ;;  %v13160_v21 = vld [vmem:[#allocation36_spill] sm:$0xff] }
 0x7ac   : > { %v6373_v15 = vpop.f32.mrf.mxu1 }
 0x7ad   : > { %v11864_v44 = vadd.f32 %v5902_v55, %v5796_v25  ;;  %v13154_v25 = vld [vmem:[#allocation25_spill] sm:$0xff] }
 0x7ae   : > { %v5962_v20 = vpop.f32.mrf.mxu2 }
 0x7af   : > { %13148 = vst [vmem:[#allocation83_spill] sm:$0xff] %v11864_v44  ;;  %v6042_v38 = vadd.f32 %v5962_v20, %v13149_v11  ;;  %v13155_v20 = vld [vmem:[#allocation60_spill] sm:$0xff] }
 0x7b0   : > { %v6243_v54 = vpop.f32.mrf.mxu0  ;;  %v13157_v11 = vld [vmem:[#allocation72_spill] sm:$0xff] }
 0x7b1   : > { %v6179_v51 = vadd.f32 %v6099_v58, %v6042_v38 }
 0x7b3   : > { %v6101_v22 = vpop.f32.mrf.mxu3  ;;  %v6316_v12 = vadd.f32 %v6236_v6, %v6179_v51 }
 0x7b4   : > { %v6376_v40 = vpop.f32.mrf.mxu1  ;;  %7845 = vmatmul.msk.bf16.gmra.mxu1 %vm2607_vm6, %v13153_v45 }
 0x7b5   : > { %v11867_v42 = vadd.f32 %v6366_v27, %v6316_v12 }
 0x7b6   : > { %v5964_v23 = vpop.f32.mrf.mxu2 }
 0x7b7   : > { %13150 = vst [vmem:[#allocation85_spill] sm:$0xff] %v11867_v42  ;;  %v6043_v32 = vadd.f32 %v5964_v23, %v13151_v5 }
 0x7b8   : > { %7810 = vmatmul.msk.bf16.gmra.mxu3 %vm2607_vm6, %v13152_v10  ;;  %v6246_v16 = vpop.f32.mrf.mxu0  ;;  %7793 = vmatmul.msk.bf16.gmra.mxu2 %vm2607_vm6, %v13154_v25  ;;  %v13159_v25 = vld [vmem:[#allocation77_spill] sm:$0xff] }
 0x7b9   : > { %v6180_v55 = vadd.f32 %v6101_v22, %v6043_v32 }
 0x7bb   : > { %v6104_v58 = vpop.f32.mrf.mxu3  ;;  %7828 = vmatmul.msk.bf16.gmra.mxu0 %vm2607_vm6, %v13155_v20  ;;  %v6317_v27 = vadd.f32 %v6238_v57, %v6180_v55  ;;  %v13161_v55 = vld [vmem:[#allocation31_spill] sm:$0xff] }
 0x7bc   : > { %v6378_v6 = vpop.f32.mrf.mxu1 }
 0x7bd   : > { %v11878_v12 = vadd.f32 %v6368_v30, %v6317_v27  ;;  %v13163_v27 = vld [vmem:[#allocation17_spill] sm:$0xff] }
 0x7be   : > { %v5967_v5 = vpop.f32.mrf.mxu2 }
 0x7bf   : > { %13156 = vst [vmem:[#allocation69_spill] sm:$0xff] %v11878_v12  ;;  %v6044_v38 = vadd.f32 %v5967_v5, %v13157_v11  ;;  %v13166_v12 = vld [vmem:[#allocation63_spill] sm:$0xff] }
 0x7c0   : > { %v6248_v51 = vpop.f32.mrf.mxu0 }
 0x7c1   : > { %v6181_v23 = vadd.f32 %v6104_v58, %v6044_v38 }
 0x7c3   : > { %v6106_v42 = vpop.f32.mrf.mxu3  ;;  %v6318_v44 = vadd.f32 %v6241_v35, %v6181_v23 }
 0x7c4   : > { %v6381_v45 = vpop.f32.mrf.mxu1  ;;  %7846 = vmatmul.msk.bf16.gmra.mxu1 %vm2607_vm6, %v13094_v56 }
 0x7c5   : > { %v11881_v32 = vadd.f32 %v6371_v63, %v6318_v44 }
 0x7c6   : > { %v5969_v22 = vpop.f32.mrf.mxu2 }
 0x7c7   : > { %13158 = vst [vmem:[#allocation75_spill] sm:$0xff] %v11881_v32  ;;  %v6045_v10 = vadd.f32 %v5969_v22, %v13159_v25  ;;  %v13165_v32 = vld [vmem:[#allocation49_spill] sm:$0xff] }
 0x7c8   : > { %7811 = vmatmul.msk.bf16.gmra.mxu3 %vm2607_vm6, %v13160_v21  ;;  %v6251_v57 = vpop.f32.mrf.mxu0  ;;  %7794 = vmatmul.msk.bf16.gmra.mxu2 %vm2607_vm6, %v13161_v55 }
 0x7c9   : > { %v6182_v30 = vadd.f32 %v6106_v42, %v6045_v10 }
 0x7cb   : > { %v6109_v58 = vpop.f32.mrf.mxu3  ;;  %7829 = vmatmul.msk.bf16.gmra.mxu0 %vm2607_vm6, %v13099_v43  ;;  %v6319_v63 = vadd.f32 %v6243_v54, %v6182_v30  ;;  %v13167_v30 = vld [vmem:[#allocation81_spill] sm:$0xff]  ;;  %v13173_v43 = vld [vmem:[#allocation98_spill] sm:$0xff] }
 0x7cc   : > { %v6383_v35 = vpop.f32.mrf.mxu1 }
 0x7cd   : > { %v11892_v44 = vadd.f32 %v6373_v15, %v6319_v63  ;;  %v13168_v63 = vld [vmem:[#allocation64_spill] sm:$0xff] }
 0x7ce   : > { %v5972_v25 = vpop.f32.mrf.mxu2 }
 0x7cf   : > { %13162 = vst [vmem:[#allocation80_spill] sm:$0xff] %v11892_v44  ;;  %v6046_v5 = vadd.f32 %v5972_v25, %v13163_v27  ;;  %v13169_v25 = vld [vmem:[#allocation66_spill] sm:$0xff] }
 0x7d0   : > { %v6253_v11 = vpop.f32.mrf.mxu0 }
 0x7d1   : > { %v6183_v38 = vadd.f32 %v6109_v58, %v6046_v5  ;;  %v13170_v5 = vld [vmem:[#allocation26_spill] sm:$0xff] }
 0x7d3   : > { %v6111_v23 = vpop.f32.mrf.mxu3  ;;  %v6320_v22 = vadd.f32 %v6246_v16, %v6183_v38 }
 0x7d4   : > { %v6386_v56 = vpop.f32.mrf.mxu1  ;;  %7847 = vmatmul.msk.bf16.gmra.mxu1 %vm2607_vm6, %v13167_v30 }
 0x7d5   : > { %v11895_v10 = vadd.f32 %v6376_v40, %v6320_v22 }
 0x7d6   : > { %v5974_v42 = vpop.f32.mrf.mxu2 }
 0x7d7   : > { %13164 = vst [vmem:[#allocation39_spill] sm:$0xff] %v11895_v10  ;;  %v6047_v55 = vadd.f32 %v5974_v42, %v13165_v32 }
 0x7d8   : > { %7812 = vmatmul.msk.bf16.gmra.mxu3 %vm2607_vm6, %v13166_v12  ;;  %v6256_v54 = vpop.f32.mrf.mxu0  ;;  %7795 = vmatmul.msk.bf16.gmra.mxu2 %vm2607_vm6, %v13168_v63  ;;  %v13172_v63 = vld [vmem:[#allocation27_spill] sm:$0xff] }
 0x7d9   : > { %v6184_v15 = vadd.f32 %v6111_v23, %v6047_v55 }
 0x7db   : > { %v6114_v58 = vpop.f32.mrf.mxu3  ;;  %7830 = vmatmul.msk.bf16.gmra.mxu0 %vm2607_vm6, %v13169_v25  ;;  %v6321_v40 = vadd.f32 %v6248_v51, %v6184_v15  ;;  %v13174_v15 = vld [vmem:[#allocation28_spill] sm:$0xff] }
 0x7dc   : > { %v6388_v16 = vpop.f32.mrf.mxu1 }
 0x7dd   : > { %v11906_v27 = vadd.f32 %v6378_v6, %v6321_v40  ;;  %v13175_v40 = vld [vmem:[#allocation68_spill] sm:$0xff] }
 0x7de   : > { %v5977_v32 = vpop.f32.mrf.mxu2 }
 0x7df   : > { %v6048_v38 = vadd.f32 %v5977_v32, %v13170_v5  ;;  %v13176_v32 = vld [vmem:[#allocation46_spill] sm:$0xff] }
 0x7e0   : > { %v6258_v22 = vpop.f32.mrf.mxu0 }
 0x7e1   : > { %v6185_v42 = vadd.f32 %v6114_v58, %v6048_v38 }
 0x7e3   : > { %v6116_v10 = vpop.f32.mrf.mxu3  ;;  %v6322_v44 = vadd.f32 %v6251_v57, %v6185_v42 }
 0x7e4   : > { %v6391_v30 = vpop.f32.mrf.mxu1  ;;  %7848 = vmatmul.msk.bf16.gmra.mxu1 %vm2607_vm6, %v13174_v15 }
 0x7e5   : > { %v11909_v55 = vadd.f32 %v6381_v45, %v6322_v44 }
 0x7e6   : > { %v5979_v23 = vpop.f32.mrf.mxu2 }
 0x7e7   : > { %13171 = vst [vmem:[#allocation22_spill] sm:$0xff] %v11909_v55  ;;  %v6049_v12 = vadd.f32 %v5979_v23, %v13172_v63 }
 0x7e8   : > { %7813 = vmatmul.msk.bf16.gmra.mxu3 %vm2607_vm6, %v13173_v43  ;;  %v6261_v51 = vpop.f32.mrf.mxu0  ;;  %7796 = vmatmul.msk.bf16.gmra.mxu2 %vm2607_vm6, %v13175_v40 }
 0x7e9   : > { %v6186_v6 = vadd.f32 %v6116_v10, %v6049_v12 }
 0x7eb   : > { %v6119_v58 = vpop.f32.mrf.mxu3  ;;  %7831 = vmatmul.msk.bf16.gmra.mxu0 %vm2607_vm6, %v13033_v29  ;;  %v6323_v45 = vadd.f32 %v6253_v11, %v6186_v6  ;;  %v13178_v6 = vld [vmem:[#allocation78_spill] sm:$0xff] }
 0x7ec   : > { %v6393_v57 = vpop.f32.mrf.mxu1 }
 0x7ed   : > { %v11920_v44 = vadd.f32 %v6383_v35, %v6323_v45 }
 0x7ee   : > { %v5982_v63 = vpop.f32.mrf.mxu2 }
 0x7ef   : > { %v6050_v5 = vadd.f32 %v5982_v63, %v13176_v32  ;;  %v6211_v32 = vrot.slane %v11673_v3, 4 }
 0x7f0   : > { %v6263_v38 = vpop.f32.mrf.mxu0 }
 0x7f1   : > { %v6187_v42 = vadd.f32 %v6119_v58, %v6050_v5 }
 0x7f3   : > { %v6121_v23 = vpop.f32.mrf.mxu3  ;;  %v6324_v55 = vadd.f32 %v6256_v54, %v6187_v42  ;;  %v11940_v42 = vld [vmem:[#allocation3 + $0x1c8] sm:$0xff] }
 0x7f4   : > { %v6396_v15 = vpop.f32.mrf.mxu1  ;;  %7849 = vmatmul.msk.bf16.gmra.mxu1 %vm2607_vm6, %v11698_v34  ;;  %v6212_v34 = vrot.slane %v11675_v28, 4  ;;  %13180 = vst [vmem:[#allocation88_spill] sm:$0xff] %v11940_v42 }
 0x7f5   : > { %v11923_v12 = vadd.f32 %v6386_v56, %v6324_v55 }
 0x7f6   : > { %v5984_v10 = vpop.f32.mrf.mxu2 }
 0x7f7   : > { %13177 = vst [vmem:[#allocation67_spill] sm:$0xff] %v11923_v12  ;;  %v6051_v40 = vadd.f32 %v5984_v10, %v11686_v7 }
 0x7f8   : > { %7814 = vmatmul.msk.bf16.gmra.mxu3 %vm2607_vm6, %v13108_v36  ;;  %v6266_v11 = vpop.f32.mrf.mxu0  ;;  %7797 = vmatmul.msk.bf16.gmra.mxu2 %vm2607_vm6, %v13178_v6 }
 0x7f9   : > { %v6188_v35 = vadd.f32 %v6121_v23, %v6051_v40  ;;  %v6214_v40 = vrot.slane %v11677_v47, 4  ;;  %v11942_v23 = vld [vmem:[#allocation3 + $0x1d0] sm:$0xff] }
 0x7fa   : > { %13181 = vst [vmem:[#allocation15_spill] sm:$0xff] %v11942_v23 }
 0x7fb   : > { %v6124_v58 = vpop.f32.mrf.mxu3  ;;  %7832 = vmatmul.msk.bf16.gmra.mxu0 %vm2607_vm6, %v11414_v17  ;;  %v6325_v56 = vadd.f32 %v6258_v22, %v6188_v35  ;;  %v6213_v35 = vsel %vm1028_vm0, %v6211_v32, %v6212_v34 }
 0x7fc   : > { %v6398_v54 = vpop.f32.mrf.mxu1 }
 0x7fd   : > { %v11934_v55 = vadd.f32 %v6388_v16, %v6325_v56  ;;  %v6348_v16 = vpack.c.bf16 %v11942_v23, %v11940_v42 }
 0x7fe   : > { %v5987_v7 = vpop.f32.mrf.mxu2 }
 0x7ff   : > { %13179 = vst [vmem:[#allocation30_spill] sm:$0xff] %v11934_v55  ;;  %v6052_v45 = vadd.f32 %v5987_v7, %v11693_v2  ;;  %v6215_v2 = vsel %vm1028_vm0, %v6212_v34, %v6214_v40  ;;  %v6077_v40 = vrot.slane %v11677_v47, 3 }
 0x800   : > { %v6268_v63 = vpop.f32.mrf.mxu0 }
 0x801   : > { %v6189_v5 = vadd.f32 %v6124_v58, %v6052_v45  ;;  %v11951_v58 = vpack.c.bf16 %v6215_v2, %v6213_v35  ;;  %v5938_v2 = vrot.slane %v11675_v28, 2 }
 0x803   : > { %v6126_v10 = vpop.f32.mrf.mxu3  ;;  %v6326_v22 = vadd.f32 %v6261_v51, %v6189_v5  ;;  %13183 = vst [vmem:[#allocation74_spill] sm:$0xff] %v11951_v58  ;;  %v13184_v5 = vld [vmem:[#allocation21_spill] sm:$0xff] }
 0x804   : > { %v6401_v56 = vpop.f32.mrf.mxu1  ;;  %7850 = vmatmul.msk.bf16.gmra.mxu1 %vm2607_vm6, %v6348_v16  ;;  %v5937_v16 = vrot.slane %v11673_v3, 2 }
 0x805   : > { %v11948_v7 = vadd.f32 %v6391_v30, %v6326_v22 }
 0x806   : > { %v5989_v55 = vpop.f32.mrf.mxu2 }
 0x807   : > { %13182 = vst [vmem:[#allocation90_spill] sm:$0xff] %v11948_v7  ;;  %v6053_v12 = vadd.f32 %v5989_v55, %v11715_v53  ;;  %v6074_v53 = vrot.slane %v11673_v3, 3  ;;  %v6075_v55 = vrot.slane %v11675_v28, 3  ;;  %v5940_v7 = vrot.slane %v11677_v47, 2 }
 0x808   : > { %7815 = vmatmul.msk.bf16.gmra.mxu3 %vm2607_vm6, %v11420_v14  ;;  %v6271_v45 = vpop.f32.mrf.mxu0  ;;  %7798 = vmatmul.msk.bf16.gmra.mxu2 %vm2607_vm6, %v13184_v5 }
 0x809   : > { %v6190_v51 = vadd.f32 %v6126_v10, %v6053_v12  ;;  %v6078_v23 = vsel %vm3700_vm8, %v6075_v55, %v6077_v40 }
 0x80b   : > { %v6129_v32 = vpop.f32.mrf.mxu3  ;;  %7833 = vmatmul.msk.bf16.gmra.mxu0 %vm2607_vm6, %v11951_v58  ;;  %v6327_v30 = vadd.f32 %v6263_v38, %v6190_v51  ;;  %v6076_v51 = vsel %vm3700_vm8, %v6074_v53, %v6075_v55 }
 0x80c   : > { %v6403_v34 = vpop.f32.mrf.mxu1  ;;  %v11971_v5 = vpack.c.bf16 %v6078_v23, %v6076_v51 }
 0x80d   : > { %v11963_v22 = vadd.f32 %v6393_v57, %v6327_v30  ;;  %v5939_v57 = vsel %vm1261_vm4, %v5937_v16, %v5938_v2 }
 0x80e   : > { %v5992_v35 = vpop.f32.mrf.mxu2 }
 0x80f   : > { %v6054_v12 = vadd.f32 %v5992_v35, %v11722_v19  ;;  %v5941_v19 = vsel %vm1261_vm4, %v5938_v2, %v5940_v7 }
 0x810   : > { %v6273_v10 = vpop.f32.mrf.mxu0  ;;  %v11978_v47 = vpack.c.bf16 %v5941_v19, %v5939_v57 }
 0x811   : > { %v6191_v38 = vadd.f32 %v6129_v32, %v6054_v12 }
 0x813   : > { %v6131_v42 = vpop.f32.mrf.mxu3  ;;  %v6328_v58 = vadd.f32 %v6266_v11, %v6191_v38 }
 0x814   : > { %v6406_v30 = vpop.f32.mrf.mxu1  ;;  %7903 = vmatmul.msk.bf16.vlgmr.msra.gmra.mxu1 %vm2607_vm6, %v12962_v46 }
 0x815   : > { %v11975_v35 = vadd.f32 %v6396_v15, %v6328_v58 }
 0x816   : > { %v5994_v3 = vpop.f32.mrf.mxu2 }
 0x817   : > { %v6055_v28 = vadd.f32 %v5994_v3, %v11738_v50 }
 0x818   : > { %7816 = vmatmul.msk.bf16.gmra.mxu3 %vm2607_vm6, %v11971_v5  ;;  %v6276_v32 = vpop.f32.mrf.mxu0  ;;  %7799 = vmatmul.msk.bf16.gmra.mxu2 %vm2607_vm6, %v11978_v47 }
 0x819   : > { %v6192_v11 = vadd.f32 %v6131_v42, %v6055_v28 }
 0x81b   : > { %v6134_v23 = vpop.f32.mrf.mxu3  ;;  %7886 = vmatmul.msk.bf16.vlgmr.msra.gmra.mxu0 %vm2607_vm6, %v13036_v18  ;;  %v6329_v15 = vadd.f32 %v6268_v63, %v6192_v11 }
 0x81c   : > { %v6408_v7 = vpop.f32.mrf.mxu1 }
 0x81d   : > { %v11988_v50 = vadd.f32 %v6398_v54, %v6329_v15 }
 0x81e   : > { %v5997_v58 = vpop.f32.mrf.mxu2 }
 0x81f   : > { %v6056_v53 = vadd.f32 %v5997_v58, %v11741_v13  ;;  %v13185_v13 = vld [vmem:[#allocation16_spill] sm:$0xff] }
 0x820   : > { %v6278_v55 = vpop.f32.mrf.mxu0 }
 0x821   : > { %v6193_v40 = vadd.f32 %v6134_v23, %v6056_v53 }
 0x823   : > { %v6136_v12 = vpop.f32.mrf.mxu3  ;;  %v6330_v16 = vadd.f32 %v6271_v45, %v6193_v40 }
 0x824   : > { %v6411_v46 = vpop.f32.mrf.mxu1  ;;  %7904 = vmatmul.msk.bf16.gmra.mxu1 %vm2607_vm6, %v12963_v60 }
 0x825   : > { %v11991_v42 = vadd.f32 %v6401_v56, %v6330_v16 }
 0x826   : > { %v5999_v2 = vpop.f32.mrf.mxu2 }
 0x827   : > { %v6057_v38 = vadd.f32 %v5999_v2, %v11752_v31 }
 0x828   : > { %v6281_v51 = vpop.f32.mrf.mxu0  ;;  %7869 = vmatmul.msk.bf16.vlgmr.msra.gmra.mxu3 %vm2607_vm6, %v13110_v1  ;;  %7852 = vmatmul.msk.bf16.vlgmr.msra.gmra.mxu2 %vm2607_vm6, %v13185_v13 }
 0x829   : > { %v6194_v18 = vadd.f32 %v6136_v12, %v6057_v38 }
 0x82b   : > { %v6139_v54 = vpop.f32.mrf.mxu3  ;;  %7887 = vmatmul.msk.bf16.gmra.mxu0 %vm2607_vm6, %v13037_v49  ;;  %v6331_v63 = vadd.f32 %v6273_v10, %v6194_v18 }
 0x82c   : > { %v6413_v56 = vpop.f32.mrf.mxu1 }
 0x82d   : > { %v12002_v45 = vadd.f32 %v6403_v34, %v6331_v63 }
 0x82e   : > { %v6002_v31 = vpop.f32.mrf.mxu2 }
 0x82f   : > { %v6058_v57 = vadd.f32 %v6002_v31, %v11755_v37  ;;  %v13186_v37 = vld [vmem:[#allocation23_spill] sm:$0xff] }
 0x830   : > { %v6283_v19 = vpop.f32.mrf.mxu0 }
 0x831   : > { %v6195_v1 = vadd.f32 %v6139_v54, %v6058_v57 }
 0x833   : > { %v6141_v3 = vpop.f32.mrf.mxu3  ;;  %v6332_v28 = vadd.f32 %v6276_v32, %v6195_v1 }
 0x834   : > { %v6416_v60 = vpop.f32.mrf.mxu1  ;;  %7905 = vmatmul.msk.bf16.gmra.mxu1 %vm2607_vm6, %v12966_v59 }
 0x835   : > { %v12005_v11 = vadd.f32 %v6406_v30, %v6332_v28 }
 0x836   : > { %v6004_v23 = vpop.f32.mrf.mxu2 }
 0x837   : > { %v6059_v15 = vadd.f32 %v6004_v23, %v11766_v24 }
 0x838   : > { %v6286_v58 = vpop.f32.mrf.mxu0  ;;  %7870 = vmatmul.msk.bf16.gmra.mxu3 %vm2607_vm6, %v13111_v52  ;;  %7853 = vmatmul.msk.bf16.gmra.mxu2 %vm2607_vm6, %v13186_v37 }
 0x839   : > { %v6196_v49 = vadd.f32 %v6141_v3, %v6059_v15 }
 0x83b   : > { %v6144_v34 = vpop.f32.mrf.mxu3  ;;  %7888 = vmatmul.msk.bf16.gmra.mxu0 %vm2607_vm6, %v13038_v4  ;;  %v6333_v10 = vadd.f32 %v6278_v55, %v6196_v49  ;;  %v13190_v49 = vld [vmem:[#allocation10_spill] sm:$0xff] }
 0x83c   : > { %v6418_v30 = vpop.f32.mrf.mxu1 }
 0x83d   : > { %v12016_v32 = vadd.f32 %v6408_v7, %v6333_v10 }
 0x83e   : > { %v6007_v24 = vpop.f32.mrf.mxu2 }
 0x83f   : > { %v6060_v53 = vadd.f32 %v6007_v24, %v11769_v39  ;;  %v13187_v39 = vld [vmem:[#allocation42_spill] sm:$0xff] }
 0x840   : > { %v6288_v40 = vpop.f32.mrf.mxu0 }
 0x841   : > { %v6197_v52 = vadd.f32 %v6144_v34, %v6060_v53 }
 0x843   : > { %v6146_v12 = vpop.f32.mrf.mxu3  ;;  %v6334_v16 = vadd.f32 %v6281_v51, %v6197_v52 }
 0x844   : > { %v6421_v59 = vpop.f32.mrf.mxu1  ;;  %7906 = vmatmul.msk.bf16.gmra.mxu1 %vm2607_vm6, %v13043_v41 }
 0x845   : > { %v12019_v2 = vadd.f32 %v6411_v46, %v6334_v16 }
 0x846   : > { %v6009_v38 = vpop.f32.mrf.mxu2 }
 0x847   : > { %v6061_v18 = vadd.f32 %v6009_v38, %v11780_v9 }
 0x848   : > { %v6291_v54 = vpop.f32.mrf.mxu0  ;;  %7871 = vmatmul.msk.bf16.gmra.mxu3 %vm2607_vm6, %v13112_v8  ;;  %7854 = vmatmul.msk.bf16.gmra.mxu2 %vm2607_vm6, %v13187_v39 }
 0x849   : > { %v6198_v4 = vadd.f32 %v6146_v12, %v6061_v18  ;;  %v13191_v12 = vld [vmem:[#allocation35_spill] sm:$0xff]  ;;  %v13192_v18 = vld [vmem:[#allocation48_spill] sm:$0xff] }
 0x84b   : > { %v6149_v7 = vpop.f32.mrf.mxu3  ;;  %7889 = vmatmul.msk.bf16.gmra.mxu0 %vm2607_vm6, %v13045_v0  ;;  %v6335_v55 = vadd.f32 %v6283_v19, %v6198_v4  ;;  %v13189_v19 = vld [vmem:[#allocation47_spill] sm:$0xff]  ;;  %v13193_v4 = vld [vmem:[#allocation45_spill] sm:$0xff] }
 0x84c   : > { %v6423_v46 = vpop.f32.mrf.mxu1 }
 0x84d   : > { %v12030_v51 = vadd.f32 %v6413_v56, %v6335_v55 }
 0x84e   : > { %v6012_v9 = vpop.f32.mrf.mxu2 }
 0x84f   : > { %v6062_v13 = vadd.f32 %v6012_v9, %v11783_v61  ;;  %v13188_v61 = vld [vmem:[#allocation43_spill] sm:$0xff]  ;;  %v13195_v9 = vld [vmem:[#allocation32_spill] sm:$0xff] }
 0x850   : > { %v6293_v63 = vpop.f32.mrf.mxu0 }
 0x851   : > { %v6199_v8 = vadd.f32 %v6149_v7, %v6062_v13  ;;  %v13194_v7 = vld [vmem:[#allocation13_spill] sm:$0xff] }
 0x853   : > { %v6151_v31 = vpop.f32.mrf.mxu3  ;;  %v6336_v57 = vadd.f32 %v6286_v58, %v6199_v8 }
 0x854   : > { %v6426_v41 = vpop.f32.mrf.mxu1  ;;  %7907 = vmatmul.msk.bf16.gmra.mxu1 %vm2607_vm6, %v13115_v26 }
 0x855   : > { %v12033_v1 = vadd.f32 %v6416_v60, %v6336_v57 }
 0x856   : > { %v6014_v3 = vpop.f32.mrf.mxu2 }
 0x857   : > { %v6063_v28 = vadd.f32 %v6014_v3, %v11794_v48 }
 0x858   : > { %v6296_v23 = vpop.f32.mrf.mxu0  ;;  %7872 = vmatmul.msk.bf16.gmra.mxu3 %vm2607_vm6, %v13114_v33  ;;  %7855 = vmatmul.msk.bf16.gmra.mxu2 %vm2607_vm6, %v13188_v61 }
 0x859   : > { %v6200_v0 = vadd.f32 %v6151_v31, %v6063_v28 }
 0x85b   : > { %v6154_v56 = vpop.f32.mrf.mxu3  ;;  %7890 = vmatmul.msk.bf16.gmra.mxu0 %vm2607_vm6, %v13189_v19  ;;  %v6337_v60 = vadd.f32 %v6288_v40, %v6200_v0 }
 0x85c   : > { %v6428_v15 = vpop.f32.mrf.mxu1 }
 0x85d   : > { %v12044_v58 = vadd.f32 %v6418_v30, %v6337_v60  ;;  %v13197_v60 = vld [vmem:[#allocation12_spill] sm:$0xff] }
 0x85e   : > { %v6017_v48 = vpop.f32.mrf.mxu2 }
 0x85f   : > { %v6064_v34 = vadd.f32 %v6017_v48, %v13190_v49  ;;  %v13199_v49 = vld [vmem:[#allocation82_spill] sm:$0xff] }
 0x860   : > { %v6298_v37 = vpop.f32.mrf.mxu0 }
 0x861   : > { %v6201_v33 = vadd.f32 %v6154_v56, %v6064_v34  ;;  %v13196_v56 = vld [vmem:[#allocation50_spill] sm:$0xff] }
 0x862   : > { %v13200_v34 = vld [vmem:[#allocation54_spill] sm:$0xff] }
 0x863   : > { %v6156_v10 = vpop.f32.mrf.mxu3  ;;  %v6338_v24 = vadd.f32 %v6291_v54, %v6201_v33 }
 0x864   : > { %v6431_v26 = vpop.f32.mrf.mxu1  ;;  %7908 = vmatmul.msk.bf16.gmra.mxu1 %vm2607_vm6, %v13123_v62 }
 0x865   : > { %v12047_v53 = vadd.f32 %v6421_v59, %v6338_v24  ;;  %v13201_v24 = vld [vmem:[#allocation44_spill] sm:$0xff] }
 0x866   : > { %v6019_v52 = vpop.f32.mrf.mxu2 }
 0x867   : > { %v6065_v16 = vadd.f32 %v6019_v52, %v13191_v12 }
 0x868   : > { %v6301_v38 = vpop.f32.mrf.mxu0  ;;  %7873 = vmatmul.msk.bf16.gmra.mxu3 %vm2607_vm6, %v13192_v18  ;;  %7856 = vmatmul.msk.bf16.gmra.mxu2 %vm2607_vm6, %v13193_v4 }
 0x869   : > { %v6202_v30 = vadd.f32 %v6156_v10, %v6065_v16 }
 0x86b   : > { %v6159_v40 = vpop.f32.mrf.mxu3  ;;  %7891 = vmatmul.msk.bf16.gmra.mxu0 %vm2607_vm6, %v13194_v7  ;;  %v6339_v59 = vadd.f32 %v6293_v63, %v6202_v30  ;;  %v13198_v63 = vld [vmem:[#allocation89_spill] sm:$0xff] }
 0x86c   : > { %v6433_v54 = vpop.f32.mrf.mxu1 }
 0x86d   : > { %v12058_v39 = vadd.f32 %v6423_v46, %v6339_v59  ;;  %v13202_v59 = vld [vmem:[#allocation84_spill] sm:$0xff] }
 0x86e   : > { %v6022_v55 = vpop.f32.mrf.mxu2 }
 0x86f   : > { %v6066_v13 = vadd.f32 %v6022_v55, %v13195_v9 }
 0x870   : > { %v6303_v8 = vpop.f32.mrf.mxu0 }
 0x871   : > { %v6203_v31 = vadd.f32 %v6159_v40, %v6066_v13  ;;  %v13203_v13 = vld [vmem:[#allocation18_spill] sm:$0xff] }
 0x873   : > { %v6161_v57 = vpop.f32.mrf.mxu3  ;;  %v6340_v3 = vadd.f32 %v6296_v23, %v6203_v31 }
 0x874   : > { %v6436_v62 = vpop.f32.mrf.mxu1  ;;  %7909 = vmatmul.msk.bf16.gmra.mxu1 %vm2607_vm6, %v13198_v63 }
 0x875   : > { %v12061_v28 = vadd.f32 %v6426_v41, %v6340_v3  ;;  %v13206_v3 = vld [vmem:[#allocation24_spill] sm:$0xff] }
 0x876   : > { %v6024_v0 = vpop.f32.mrf.mxu2 }
 0x877   : > { %v6067_v61 = vadd.f32 %v6024_v0, %v13196_v56 }
 0x878   : > { %v6306_v19 = vpop.f32.mrf.mxu0  ;;  %7874 = vmatmul.msk.bf16.gmra.mxu3 %vm2607_vm6, %v13197_v60  ;;  %7857 = vmatmul.msk.bf16.gmra.mxu2 %vm2607_vm6, %v13199_v49 }
 0x879   : > { %v6204_v46 = vadd.f32 %v6161_v57, %v6067_v61  ;;  %v13205_v57 = vld [vmem:[#allocation53_spill] sm:$0xff]  ;;  %v13207_v61 = vld [vmem:[#allocation86_spill] sm:$0xff] }
 0x87b   : > { %v6164_v48 = vpop.f32.mrf.mxu3  ;;  %7892 = vmatmul.msk.bf16.gmra.mxu0 %vm2607_vm6, %v13200_v34  ;;  %v6341_v41 = vadd.f32 %v6298_v37, %v6204_v46  ;;  %v13204_v37 = vld [vmem:[#allocation56_spill] sm:$0xff] }
 0x87c   : > { %v6438_v23 = vpop.f32.mrf.mxu1 }
 0x87d   : > { %v12072_v33 = vadd.f32 %v6428_v15, %v6341_v41 }
 0x87e   : > { %v6027_v10 = vpop.f32.mrf.mxu2 }
 0x87f   : > { %v6068_v52 = vadd.f32 %v6027_v10, %v13201_v24  ;;  %v13208_v24 = vld [vmem:[#allocation8_spill] sm:$0xff] }
 0x880   : > { %v6308_v12 = vpop.f32.mrf.mxu0 }
 0x881   : > { %v6205_v16 = vadd.f32 %v6164_v48, %v6068_v52 }
 0x883   : > { %v6166_v18 = vpop.f32.mrf.mxu3  ;;  %v6342_v30 = vadd.f32 %v6301_v38, %v6205_v16  ;;  %v13209_v16 = vld [vmem:[#allocation19_spill] sm:$0xff] }
 0x884   : > { %v6441_v40 = vpop.f32.mrf.mxu1  ;;  %7910 = vmatmul.msk.bf16.gmra.mxu1 %vm2607_vm6, %v13204_v37  ;;  %v13213_v37 = vld [vmem:[#allocation11_spill] sm:$0xff] }
 0x885   : > { %v12075_v4 = vadd.f32 %v6431_v26, %v6342_v30 }
 0x886   : > { %v6029_v7 = vpop.f32.mrf.mxu2 }
 0x887   : > { %v6069_v55 = vadd.f32 %v6029_v7, %v13202_v59  ;;  %v13211_v7 = vld [vmem:[#allocation14_spill] sm:$0xff]  ;;  %v13212_v59 = vld [vmem:[#allocation29_spill] sm:$0xff] }
 0x888   : > { %v6311_v9 = vpop.f32.mrf.mxu0  ;;  %7875 = vmatmul.msk.bf16.gmra.mxu3 %vm2607_vm6, %v13203_v13  ;;  %7858 = vmatmul.msk.bf16.gmra.mxu2 %vm2607_vm6, %v13205_v57 }
 0x889   : > { %v6206_v15 = vadd.f32 %v6166_v18, %v6069_v55  ;;  %v13210_v18 = vld [vmem:[#allocation58_spill] sm:$0xff] }
 0x88b   : > { %v6169_v31 = vpop.f32.mrf.mxu3  ;;  %7893 = vmatmul.msk.bf16.gmra.mxu0 %vm2607_vm6, %v13206_v3  ;;  %v6343_v26 = vadd.f32 %v6303_v8, %v6206_v15 }
 0x88c   : > { %v6443_v38 = vpop.f32.mrf.mxu1 }
 0x88d   : > { %v12086_v0 = vadd.f32 %v6433_v54, %v6343_v26 }
 0x88e   : > { %v6032_v56 = vpop.f32.mrf.mxu2 }
 0x88f   : > { %v6070_v60 = vadd.f32 %v6032_v56, %v13207_v61 }
 0x890   : > { %v6313_v63 = vpop.f32.mrf.mxu0 }
 0x891   : > { %v6207_v46 = vadd.f32 %v6169_v31, %v6070_v60 }
 0x893   : > { %v6171_v48 = vpop.f32.mrf.mxu3  ;;  %v6344_v49 = vadd.f32 %v6306_v19, %v6207_v46  ;;  %v13214_v46 = vld [vmem:[#allocation83_spill] sm:$0xff] }
 0x894   : > { %v6917_v34 = vpop.f32.mrf.mxu1  ;;  %7911 = vmatmul.msk.bf16.gmra.mxu1 %vm2607_vm6, %v13210_v18  ;;  %v13217_v18 = vld [vmem:[#allocation85_spill] sm:$0xff] }
 0x895   : > { %v12089_v41 = vadd.f32 %v6436_v62, %v6344_v49  ;;  %v13215_v49 = vld [vmem:[#allocation25_spill] sm:$0xff] }
 0x896   : > { %v6034_v10 = vpop.f32.mrf.mxu2 }
 0x897   : > { %v6071_v52 = vadd.f32 %v6034_v10, %v13208_v24  ;;  %v13216_v10 = vld [vmem:[#allocation57_spill] sm:$0xff] }
 0x898   : > { %7876 = vmatmul.msk.bf16.gmra.mxu3 %vm2607_vm6, %v13209_v16  ;;  %v6780_v8 = vpop.f32.mrf.mxu0  ;;  %7859 = vmatmul.msk.bf16.gmra.mxu2 %vm2607_vm6, %v13211_v7 }
 0x899   : > { %v6208_v54 = vadd.f32 %v6171_v48, %v6071_v52 }
 0x89b   : > { %v6174_v30 = vpop.f32.mrf.mxu3  ;;  %7894 = vmatmul.msk.bf16.gmra.mxu0 %vm2607_vm6, %v13212_v59  ;;  %v6345_v62 = vadd.f32 %v6308_v12, %v6208_v54 }
 0x89c   : > { %v6919_v19 = vpop.f32.mrf.mxu1 }
 0x89d   : > { %v12100_v55 = vadd.f32 %v6438_v23, %v6345_v62 }
 0x89e   : > { %v6037_v13 = vpop.f32.mrf.mxu2 }
 0x89f   : > { %v6072_v15 = vadd.f32 %v6037_v13, %v13213_v37 }
 0x8a0   : > { %v6782_v31 = vpop.f32.mrf.mxu0 }
 0x8a1   : > { %v6209_v57 = vadd.f32 %v6174_v30, %v6072_v15 }
 0x8a3   : > { %v6176_v3 = vpop.f32.mrf.mxu3  ;;  %v6346_v26 = vadd.f32 %v6311_v9, %v6209_v57  ;;  %v13219_v57 = vld [vmem:[#allocation31_spill] sm:$0xff] }
 0x8a4   : > { %v6922_v56 = vpop.f32.mrf.mxu1  ;;  %7912 = vmatmul.msk.bf16.gmra.mxu1 %vm2607_vm6, %v13155_v20  ;;  %v12120_v20 = vld [vmem:[%s12411_s4] ss:$0 sm:$0xff] }
 0x8a5   : > { %v12103_v61 = vadd.f32 %v6441_v40, %v6346_v26  ;;  %v13220_v26 = vld [vmem:[#allocation62_spill] sm:$0xff] }
 0x8a6   : > { %v6039_v60 = vpop.f32.mrf.mxu2 }
 0x8a7   : > { %v6073_v48 = vadd.f32 %v6039_v60, %v13214_v46 }
 0x8a8   : > { %7877 = vmatmul.msk.bf16.gmra.mxu3 %vm2607_vm6, %v13215_v49  ;;  %v6785_v12 = vpop.f32.mrf.mxu0  ;;  %7860 = vmatmul.msk.bf16.gmra.mxu2 %vm2607_vm6, %v13216_v10 }
 0x8a9   : > { %v6210_v23 = vadd.f32 %v6176_v3, %v6073_v48  ;;  %v13221_v48 = vld [vmem:[#allocation59_spill] sm:$0xff] }
 0x8ab   : > { %v6643_v24 = vpop.f32.mrf.mxu3  ;;  %7895 = vmatmul.msk.bf16.gmra.mxu0 %vm2607_vm6, %v13160_v21  ;;  %v6347_v40 = vadd.f32 %v6313_v63, %v6210_v23  ;;  %v13218_v21 = vld [vmem:[#allocation69_spill] sm:$0xff] }
 0x8ac   : > { %v6924_v9 = vpop.f32.mrf.mxu1 }
 0x8ad   : > { %v12114_v52 = vadd.f32 %v6443_v38, %v6347_v40  ;;  %v13223_v40 = vld [vmem:[#allocation75_spill] sm:$0xff] }
 0x8ae   : > { %v6506_v16 = vpop.f32.mrf.mxu2 }
 0x8af   : > { %v6586_v54 = vadd.f32 %v6506_v16, %v13217_v18 }
 0x8b0   : > { %v6787_v30 = vpop.f32.mrf.mxu0 }
 0x8b1   : > { %v6723_v7 = vadd.f32 %v6643_v24, %v6586_v54 }
 0x8b3   : > { %v6860_v59 = vadd.f32 %v6780_v8, %v6723_v7  ;;  %v6645_v62 = vpop.f32.mrf.mxu3 }
 0x8b4   : > { %v6927_v13 = vpop.f32.mrf.mxu1  ;;  %7913 = vmatmul.msk.bf16.gmra.mxu1 %vm2607_vm6, %v13220_v26 }
 0x8b5   : > { %v6997_v37 = vadd.f32 %v6917_v34, %v6860_v59  ;;  %v13222_v34 = vld [vmem:[#allocation63_spill] sm:$0xff] }
 0x8b6   : > { %v6508_v15 = vpop.f32.mrf.mxu2 }
 0x8b7   : > { %v6587_v63 = vadd.f32 %v6508_v15, %v13218_v21  ;;  %v7033_v38 = vadd.f32 %v12120_v20, %v6997_v37 }
 0x8b8   : > { %7878 = vmatmul.msk.bf16.gmra.mxu3 %vm2607_vm6, %v13219_v57  ;;  %v6790_v3 = vpop.f32.mrf.mxu0  ;;  %7861 = vmatmul.msk.bf16.gmra.mxu2 %vm2607_vm6, %v13221_v48 }
 0x8b9   : > { %v6724_v8 = vadd.f32 %v6645_v62, %v6587_v63  ;;  %v7065_v60 = vmax.f32 %v7033_v38, 0.0  ;;  %v13224_v63 = vld [vmem:[#allocation80_spill] sm:$0xff] }
 0x8bb   : > { %v6861_v46 = vadd.f32 %v6782_v31, %v6724_v8  ;;  %v6648_v49 = vpop.f32.mrf.mxu3  ;;  %7896 = vmatmul.msk.bf16.gmra.mxu0 %vm2607_vm6, %v13222_v34  ;;  %7129 = vrot.lane.b32.xlu2 %v7065_v60, %s8053_s30 }
 0x8bc   : > { %v6929_v23 = vpop.f32.mrf.mxu1 }
 0x8bd   : > { %v6998_v10 = vadd.f32 %v6919_v19, %v6861_v46  ;;  %v13225_v19 = vld [vmem:[#allocation64_spill] sm:$0xff]  ;;  %v13226_v46 = vld [vmem:[#allocation61_spill] sm:$0xff] }
 0x8be   : > { %v6511_v24 = vpop.f32.mrf.mxu2 }
 0x8bf   : > { %v6588_v16 = vadd.f32 %v6511_v24, %v13223_v40  ;;  %v7034_v18 = vadd.f32 %v12120_v20, %v6998_v10  ;;  %v13227_v10 = vld [vmem:[#allocation39_spill] sm:$0xff] }
 0x8c0   : > { %v6792_v54 = vpop.f32.mrf.mxu0 }
 0x8c1   : > { %v6725_v7 = vadd.f32 %v6648_v49, %v6588_v16  ;;  %v7066_v31 = vmax.f32 %v7034_v18, 0.0 }
 0x8c3   : > { %v6862_v59 = vadd.f32 %v6785_v12, %v6725_v7  ;;  %v6650_v62 = vpop.f32.mrf.mxu3  ;;  %7131 = vrot.lane.b32.xlu0 %v7066_v31, %s8053_s30 }
 0x8c4   : > { %v6932_v37 = vpop.f32.mrf.mxu1  ;;  %7914 = vmatmul.msk.bf16.gmra.mxu1 %vm2607_vm6, %v13169_v25 }
 0x8c5   : > { %v6999_v15 = vadd.f32 %v6922_v56, %v6862_v59 }
 0x8c6   : > { %v6513_v21 = vpop.f32.mrf.mxu2 }
 0x8c7   : > { %v6589_v38 = vadd.f32 %v6513_v21, %v13224_v63  ;;  %v7035_v57 = vadd.f32 %v12120_v20, %v6999_v15 }
 0x8c8   : > { %7879 = vmatmul.msk.bf16.gmra.mxu3 %vm2607_vm6, %v13225_v19  ;;  %v6795_v26 = vpop.f32.mrf.mxu0  ;;  %7862 = vmatmul.msk.bf16.gmra.mxu2 %vm2607_vm6, %v13226_v46 }
 0x8c9   : > { %v6726_v8 = vadd.f32 %v6650_v62, %v6589_v38  ;;  %v7067_v60 = vmax.f32 %v7035_v57, 0.0  ;;  %v13229_v57 = vld [vmem:[#allocation96_spill] sm:$0xff] }
 0x8cb   : > { %v6863_v12 = vadd.f32 %v6787_v30, %v6726_v8  ;;  %v6653_v48 = vpop.f32.mrf.mxu3  ;;  %7897 = vmatmul.msk.bf16.gmra.mxu0 %vm2607_vm6, %v13173_v43  ;;  %7133 = vrot.lane.b32.xlu1 %v7067_v60, %s8053_s30  ;;  %v13230_v60 = vld [vmem:[#allocation22_spill] sm:$0xff] }
 0x8cc   : > { %v6934_v56 = vpop.f32.mrf.mxu1 }
 0x8cd   : > { %v7000_v49 = vadd.f32 %v6924_v9, %v6863_v12  ;;  %v13228_v9 = vld [vmem:[#allocation68_spill] sm:$0xff] }
 0x8ce   : > { %v6516_v34 = vpop.f32.mrf.mxu2 }
 0x8cf   : > { %v6590_v24 = vadd.f32 %v6516_v34, %v13227_v10  ;;  %v7036_v40 = vadd.f32 %v12120_v20, %v7000_v49 }
 0x8d0   : > { %v6797_v25 = vpop.f32.mrf.mxu0 }
 0x8d1   : > { %v6727_v16 = vadd.f32 %v6653_v48, %v6590_v24  ;;  %v7068_v18 = vmax.f32 %v7036_v40, 0.0 }
 0x8d3   : > { %v6864_v30 = vadd.f32 %v6790_v3, %v6727_v16  ;;  %v6655_v7 = vpop.f32.mrf.mxu3  ;;  %7135 = vrot.lane.b32.xlu2 %v7068_v18, %s8053_s30 }
 0x8d4   : > { %v6937_v31 = vpop.f32.mrf.mxu1  ;;  %7915 = vmatmul.msk.bf16.gmra.mxu1 %vm2607_vm6, %v13033_v29 }
 0x8d5   : > { %v7001_v59 = vadd.f32 %v6927_v13, %v6864_v30 }
 0x8d6   : > { %v6518_v62 = vpop.f32.mrf.mxu2 }
 0x8d7   : > { %v6591_v43 = vadd.f32 %v6518_v62, %v11906_v27  ;;  %v7037_v15 = vadd.f32 %v12120_v20, %v7001_v59  ;;  %v13232_v62 = vld [vmem:[#allocation67_spill] sm:$0xff] }
 0x8d8   : > { %7880 = vmatmul.msk.bf16.gmra.mxu3 %vm2607_vm6, %v13228_v9  ;;  %v6800_v21 = vpop.f32.mrf.mxu0  ;;  %7863 = vmatmul.msk.bf16.gmra.mxu2 %vm2607_vm6, %v13229_v57 }
 0x8d9   : > { %v6728_v63 = vadd.f32 %v6655_v7, %v6591_v43  ;;  %v7069_v38 = vmax.f32 %v7037_v15, 0.0  ;;  %v13231_v7 = vld [vmem:[#allocation76_spill] sm:$0xff] }
 0x8db   : > { %v6865_v3 = vadd.f32 %v6792_v54, %v6728_v63  ;;  %v6658_v19 = vpop.f32.mrf.mxu3  ;;  %7898 = vmatmul.msk.bf16.gmra.mxu0 %vm2607_vm6, %v13108_v36  ;;  %7137 = vrot.lane.b32.xlu0 %v7069_v38, %s8053_s30 }
 0x8dc   : > { %v6939_v27 = vpop.f32.mrf.mxu1 }
 0x8dd   : > { %v7002_v13 = vadd.f32 %v6929_v23, %v6865_v3 }
 0x8de   : > { %v6521_v8 = vpop.f32.mrf.mxu2 }
 0x8df   : > { %v6592_v12 = vadd.f32 %v6521_v8, %v13230_v60  ;;  %v7038_v46 = vadd.f32 %v12120_v20, %v7002_v13  ;;  %v13234_v8 = vld [vmem:[#allocation21_spill] sm:$0xff] }
 0x8e0   : > { %v6802_v29 = vpop.f32.mrf.mxu0 }
 0x8e1   : > { %v6729_v48 = vadd.f32 %v6658_v19, %v6592_v12  ;;  %v7070_v49 = vmax.f32 %v7038_v46, 0.0  ;;  %v13233_v19 = vld [vmem:[#allocation30_spill] sm:$0xff] }
 0x8e2   : > { %v13235_v12 = vld [vmem:[#allocation74_spill] sm:$0xff] }
 0x8e3   : > { %v6866_v54 = vadd.f32 %v6795_v26, %v6729_v48  ;;  %v6660_v34 = vpop.f32.mrf.mxu3  ;;  %7139 = vrot.lane.b32.xlu1 %v7070_v49, %s8053_s30  ;;  %v13236_v49 = vld [vmem:[#allocation92_spill] sm:$0xff] }
 0x8e4   : > { %v12164_v10 = vpop.f32.mrf.mxu1  ;;  %7916 = vmatmul.msk.bf16.gmra.mxu1 %vm2607_vm6, %v11414_v17 }
 0x8e5   : > { %v7003_v24 = vadd.f32 %v6932_v37, %v6866_v54  ;;  %v12197_v54 = vld [vmem:[#allocation3 + $0x1d8] sm:$0xf] }
 0x8e6   : > { %v6523_v36 = vpop.f32.mrf.mxu2 }
 0x8e7   : > { %v6593_v40 = vadd.f32 %v6523_v36, %v11920_v44  ;;  %v7039_v23 = vadd.f32 %v12120_v20, %v7003_v24  ;;  %v13237_v36 = vld [vmem:[#allocation88_spill] sm:$0xff] }
 0x8e8   : > { %7881 = vmatmul.msk.bf16.gmra.mxu3 %vm2607_vm6, %v13178_v6  ;;  %v6805_v16 = vpop.f32.mrf.mxu0  ;;  %7864 = vmatmul.msk.bf16.gmra.mxu2 %vm2607_vm6, %v13231_v7 }
 0x8e9   : > { %v6730_v18 = vadd.f32 %v6660_v34, %v6593_v40  ;;  %v7071_v26 = vmax.f32 %v7039_v23, 0.0  ;;  %v6892_v40 = vrot.slane %v13237_v36, 4  ;;  %v13238_v23 = vld [vmem:[#allocation15_spill] sm:$0xff] }
 0x8eb   : > { %v6867_v30 = vadd.f32 %v6797_v25, %v6730_v18  ;;  %v6663_v59 = vpop.f32.mrf.mxu3  ;;  %7899 = vmatmul.msk.bf16.gmra.mxu0 %vm2607_vm6, %v11420_v14  ;;  %7141 = vrot.lane.b32.xlu2 %v7071_v26, %s8053_s30  ;;  %v6893_v18 = vrot.slane %v13238_v23, 4 }
 0x8ec   : > { %v12177_v44 = vpop.f32.mrf.mxu1 }
 0x8ed   : > { %v7004_v37 = vadd.f32 %v6934_v56, %v6867_v30  ;;  %v13239_v30 = vld [vmem:[#allocation90_spill] sm:$0xff] }
 0x8ee   : > { %v6526_v6 = vpop.f32.mrf.mxu2 }
 0x8ef   : > { %v6594_v43 = vadd.f32 %v6526_v6, %v13232_v62  ;;  %v7040_v17 = vadd.f32 %v12120_v20, %v7004_v37  ;;  %v6756_v6 = vrot.slane %v13238_v23, 3  ;;  %v6758_v62 = vrot.slane %v12197_v54, 3 }
 0x8f0   : > { %v6807_v15 = vpop.f32.mrf.mxu0 }
 0x8f1   : > { %v6731_v9 = vadd.f32 %v6663_v59, %v6594_v43  ;;  %v7072_v25 = vmax.f32 %v7040_v17, 0.0  ;;  %v6894_v17 = vsel %vm1028_vm0, %v6892_v40, %v6893_v18  ;;  %v6621_v40 = vrot.slane %v12197_v54, 2 }
 0x8f3   : > { %v6868_v63 = vadd.f32 %v6800_v21, %v6731_v9  ;;  %v6665_v38 = vpop.f32.mrf.mxu3  ;;  %7143 = vrot.lane.b32.xlu0 %v7072_v25, %s8053_s30 }
 0x8f4   : > { %v12182_v3 = vpop.f32.mrf.mxu1  ;;  %7917 = vmatmul.msk.bf16.gmra.mxu1 %vm2607_vm6, %v13235_v12 }
 0x8f5   : > { %v7005_v14 = vadd.f32 %v6937_v31, %v6868_v63 }
 0x8f6   : > { %v6528_v57 = vpop.f32.mrf.mxu2 }
 0x8f7   : > { %v6595_v13 = vadd.f32 %v6528_v57, %v13233_v19  ;;  %v7041_v56 = vadd.f32 %v12120_v20, %v7005_v14 }
 0x8f8   : > { %7882 = vmatmul.msk.bf16.gmra.mxu3 %vm2607_vm6, %v13234_v8  ;;  %v12188_v60 = vpop.f32.mrf.mxu0  ;;  %7865 = vmatmul.msk.bf16.gmra.mxu2 %vm2607_vm6, %v13236_v49 }
 0x8f9   : > { %v6732_v21 = vadd.f32 %v6665_v38, %v6595_v13  ;;  %v7073_v46 = vmax.f32 %v7041_v56, 0.0  ;;  %v6759_v13 = vsel %vm3700_vm8, %v6756_v6, %v6758_v62 }
 0x8fb   : > { %v6869_v48 = vadd.f32 %v6802_v29, %v6732_v21  ;;  %v6668_v31 = vpop.f32.mrf.mxu3  ;;  %7145 = vrot.lane.b32.xlu1 %v7073_v46, %s8053_s30  ;;  %7900 = vmatmul.msk.bf16.gmra.mxu0 %vm2607_vm6, %v11971_v5  ;;  %v6895_v29 = vrot.slane %v12197_v54, 4  ;;  %v6755_v5 = vrot.slane %v13237_v36, 3 }
 0x8fc   : > { %v12199_v34 = vpop.f32.mrf.mxu1 }
 0x8fd   : > { %v7006_v24 = vadd.f32 %v6939_v27, %v6869_v48  ;;  %v6896_v9 = vsel %vm1028_vm0, %v6893_v18, %v6895_v29  ;;  %v6757_v19 = vsel %vm3700_vm8, %v6755_v5, %v6756_v6 }
 0x8fe   : > { %v6531_v26 = vpop.f32.mrf.mxu2  ;;  %v6899_v38 = vpack.c.bf16 %v6896_v9, %v6894_v17  ;;  %v6762_v21 = vpack.c.bf16 %v6759_v13, %v6757_v19 }
 0x8ff   : > { %v6596_v7 = vadd.f32 %v6531_v26, %v13239_v30  ;;  %v7042_v59 = vadd.f32 %v12120_v20, %v7006_v24  ;;  %v6618_v24 = vrot.slane %v13237_v36, 2 }
 0x900   : > { %v12206_v37 = vpop.f32.mrf.mxu0 }
 0x901   : > { %v6733_v27 = vadd.f32 %v6668_v31, %v6596_v7  ;;  %v7074_v43 = vmax.f32 %v7042_v59, 0.0  ;;  %v6481_v7 = vrot.slane %v13237_v36, 1  ;;  %v6482_v59 = vrot.slane %v13238_v23, 1 }
 0x903   : > { %v6870_v25 = vadd.f32 %v6805_v16, %v6733_v27  ;;  %v6670_v63 = vpop.f32.mrf.mxu3  ;;  %7147 = vrot.lane.b32.xlu2 %v7074_v43, %s8053_s30  ;;  %v6483_v36 = vsel %vm849_vm3, %v6481_v7, %v6482_v59 }
 0x904   : > { %v12214_v14 = vpop.f32.mrf.mxu1  ;;  %7918 = vmatmul.msk.bf16.gmra.mxu1 %vm2607_vm6, %v6899_v38 }
 0x905   : > { %v7007_v57 = vadd.f32 %v12164_v10, %v6870_v25  ;;  %v13240_v10 = vld [vmem:[#allocation20_spill] sm:$0xff] }
 0x906   : > { %v6533_v56 = vpop.f32.mrf.mxu2 }
 0x907   : > { %v6597_v8 = vadd.f32 %v6533_v56, %v11963_v22  ;;  %v7043_v12 = vadd.f32 %v12120_v20, %v7007_v57 }
 0x908   : > { %7883 = vmatmul.msk.bf16.gmra.mxu3 %vm2607_vm6, %v11978_v47  ;;  %v6815_v16 = vpop.f32.mrf.mxu0  ;;  %7866 = vmatmul.msk.bf16.gmra.mxu2 %vm2607_vm6, %v13240_v10  ;;  %v6619_v47 = vrot.slane %v13238_v23, 2 }
 0x909   : > { %v6734_v46 = vadd.f32 %v6670_v63, %v6597_v8  ;;  %v7075_v48 = vmax.f32 %v7043_v12, 0.0 }
 0x90a   : > { %v6620_v62 = vsel %vm1261_vm4, %v6618_v24, %v6619_v47  ;;  %v6622_v27 = vsel %vm1261_vm4, %v6619_v47, %v6621_v40 }
 0x90b   : > { %v6871_v49 = vadd.f32 %v6807_v15, %v6734_v46  ;;  %v6673_v31 = vpop.f32.mrf.mxu3  ;;  %7149 = vrot.lane.b32.xlu0 %v7075_v48, %s8053_s30  ;;  %7901 = vmatmul.msk.bf16.gmra.mxu0 %vm2607_vm6, %v6762_v21 }
 0x90c   : > { %v6954_v18 = vpop.f32.mrf.mxu1 }
 0x90d   : > { %v7008_v22 = vadd.f32 %v12177_v44, %v6871_v49  ;;  %v6484_v44 = vrot.slane %v12197_v54, 1 }
 0x90e   : > { %v6536_v29 = vpop.f32.mrf.mxu2 }
 0x90f   : > { %v6598_v15 = vadd.f32 %v6536_v29, %v11975_v35  ;;  %v7044_v26 = vadd.f32 %v12120_v20, %v7008_v22  ;;  %v6625_v35 = vpack.c.bf16 %v6622_v27, %v6620_v62  ;;  %v6485_v23 = vsel %vm849_vm3, %v6482_v59, %v6484_v44 }
 0x910   : > { %v6817_v30 = vpop.f32.mrf.mxu0  ;;  %v6488_v38 = vpack.c.bf16 %v6485_v23, %v6483_v36 }
 0x911   : > { %v6735_v5 = vadd.f32 %v6673_v31, %v6598_v15  ;;  %v7076_v6 = vmax.f32 %v7044_v26, 0.0 }
 0x913   : > { %v6872_v43 = vadd.f32 %v12188_v60, %v6735_v5  ;;  %v6675_v17 = vpop.f32.mrf.mxu3  ;;  %7151 = vrot.lane.b32.xlu1 %v7076_v6, %s8053_s30 }
 0x914   : > { %v6957_v57 = vpop.f32.mrf.mxu1 }
 0x915   : > { %v7009_v9 = vadd.f32 %v12182_v3, %v6872_v43  ;;  %v7130_v54 = vpop.permute.xlu2 %7129 }
 0x916   : > { %v6538_v25 = vpop.f32.mrf.mxu2  ;;  %7226 = vst.msk [vmem:[%s9843_s14] sm:$0xff] %vm7225_vm11, %v7130_v54 }
 0x917   : > { %v6599_v63 = vadd.f32 %v6538_v25, %v11988_v50  ;;  %v7045_v60 = vadd.f32 %v12120_v20, %v7009_v9 }
 0x918   : > { %7884 = vmatmul.msk.bf16.gmra.mxu3 %vm2607_vm6, %v6625_v35  ;;  %v6820_v19 = vpop.f32.mrf.mxu0  ;;  %7867 = vmatmul.msk.bf16.gmra.mxu2 %vm2607_vm6, %v6488_v38 }
 0x919   : > { %v6736_v13 = vadd.f32 %v6675_v17, %v6599_v63  ;;  %v7077_v56 = vmax.f32 %v7045_v60, 0.0 }
 0x91b   : > { %v6873_v8 = vadd.f32 %v12206_v37, %v6736_v13  ;;  %v6678_v3 = vpop.f32.mrf.mxu3  ;;  %7153 = vrot.lane.b32.xlu2 %v7077_v56, %s8053_s30 }
 0x91c   : > { %v6959_v31 = vpop.f32.mrf.mxu1 }
 0x91d   : > { %v7010_v12 = vadd.f32 %v12199_v34, %v6873_v8 }
 0x91e   : > { %v6541_v21 = vpop.f32.mrf.mxu2 }
 0x91f   : > { %v6600_v50 = vadd.f32 %v6541_v21, %v11991_v42  ;;  %v7046_v46 = vadd.f32 %v12120_v20, %v7010_v12 }
 0x920   : > { %v6822_v48 = vpop.f32.mrf.mxu0 }
 0x921   : > { %v6737_v49 = vadd.f32 %v6678_v3, %v6600_v50  ;;  %v7078_v10 = vmax.f32 %v7046_v46, 0.0 }
 0x923   : > { %v6874_v22 = vadd.f32 %v6815_v16, %v6737_v49  ;;  %v6680_v24 = vpop.f32.mrf.mxu3  ;;  %7155 = vrot.lane.b32.xlu0 %v7078_v10, %s8053_s30 }
 0x924   : > { %v6962_v59 = vpop.f32.mrf.mxu1 }
 0x925   : > { %v7011_v37 = vadd.f32 %v12214_v14, %v6874_v22 }
 0x926   : > { %v6543_v47 = vpop.f32.mrf.mxu2 }
 0x927   : > { %v6601_v40 = vadd.f32 %v6543_v47, %v12002_v45  ;;  %v7047_v34 = vadd.f32 %v12120_v20, %v7011_v37 }
 0x928   : > { %v6825_v42 = vpop.f32.mrf.mxu0 }
 0x929   : > { %v6738_v29 = vadd.f32 %v6680_v24, %v6601_v40  ;;  %v7079_v15 = vmax.f32 %v7047_v34, 0.0 }
 0x92b   : > { %v6875_v26 = vadd.f32 %v6817_v30, %v6738_v29  ;;  %v6683_v7 = vpop.f32.mrf.mxu3  ;;  %7157 = vrot.lane.b32.xlu1 %v7079_v15, %s8053_s30 }
 0x92c   : > { %v6964_v36 = vpop.f32.mrf.mxu1 }
 0x92d   : > { %v7136_v16 = vpop.permute.xlu2 %7135  ;;  %v7012_v44 = vadd.f32 %v6954_v18, %v6875_v26 }
 0x92e   : > { %7229 = vst.msk [vmem:[%s9843_s14 + $0x18] sm:$0xff] %vm7225_vm11, %v7136_v16  ;;  %v6546_v5 = vpop.f32.mrf.mxu2 }
 0x92f   : > { %v6602_v14 = vadd.f32 %v6546_v5, %v12005_v11  ;;  %v7048_v45 = vadd.f32 %v12120_v20, %v7012_v44 }
 0x930   : > { %v6827_v43 = vpop.f32.mrf.mxu0 }
 0x931   : > { %v6739_v6 = vadd.f32 %v6683_v7, %v6602_v14  ;;  %v7080_v62 = vmax.f32 %v7048_v45, 0.0 }
 0x933   : > { %v6876_v27 = vadd.f32 %v6820_v19, %v6739_v6  ;;  %v6685_v17 = vpop.f32.mrf.mxu3  ;;  %7159 = vrot.lane.b32.xlu2 %v7080_v62, %s8053_s30 }
 0x935   : > { %v7132_v30 = vpop.permute.xlu0 %7131  ;;  %v7013_v35 = vadd.f32 %v6957_v57, %v6876_v27 }
 0x936   : > { %7227 = vst.msk [vmem:[%s9843_s14 + $0x8] sm:$0xff] %vm7225_vm11, %v7132_v30  ;;  %v6548_v18 = vpop.f32.mrf.mxu2 }
 0x937   : > { %v6603_v23 = vadd.f32 %v6548_v18, %v12016_v32  ;;  %v7049_v11 = vadd.f32 %v12120_v20, %v7013_v35  ;;  %v6967_v32 = vpop.f32.mrf.mxu1 }
 0x938   : > { %v6830_v38 = vpop.f32.mrf.mxu0 }
 0x939   : > { %v6740_v9 = vadd.f32 %v6685_v17, %v6603_v23  ;;  %v7081_v54 = vmax.f32 %v7049_v11, 0.0 }
 0x93b   : > { %v6877_v25 = vadd.f32 %v6822_v48, %v6740_v9  ;;  %v6688_v63 = vpop.f32.mrf.mxu3  ;;  %7161 = vrot.lane.b32.xlu0 %v7081_v54, %s8053_s30 }
 0x93d   : > { %v7014_v60 = vadd.f32 %v6959_v31, %v6877_v25  ;;  %v7134_v19 = vpop.permute.xlu1 %7133 }
 0x93e   : > { %v6551_v13 = vpop.f32.mrf.mxu2  ;;  %7228 = vst.msk [vmem:[%s9843_s14 + $0x10] sm:$0xff] %vm7225_vm11, %v7134_v19 }
 0x93f   : > { %v6604_v57 = vadd.f32 %v6551_v13, %v12019_v2  ;;  %v7050_v56 = vadd.f32 %v12120_v20, %v7014_v60  ;;  %v6969_v24 = vpop.f32.mrf.mxu1 }
 0x940   : > { %v6832_v2 = vpop.f32.mrf.mxu0 }
 0x941   : > { %v6741_v8 = vadd.f32 %v6688_v63, %v6604_v57  ;;  %v7082_v3 = vmax.f32 %v7050_v56, 0.0 }
 0x943   : > { %v6878_v12 = vadd.f32 %v6825_v42, %v6741_v8  ;;  %v6690_v21 = vpop.f32.mrf.mxu3  ;;  %7163 = vrot.lane.b32.xlu1 %v7082_v3, %s8053_s30 }
 0x945   : > { %v7015_v50 = vadd.f32 %v6962_v59, %v6878_v12  ;;  %v7142_v46 = vpop.permute.xlu2 %7141 }
 0x946   : > { %v6553_v48 = vpop.f32.mrf.mxu2  ;;  %7232 = vst.msk [vmem:[%s9843_s14 + $0x30] sm:$0xff] %vm7225_vm11, %v7142_v46 }
 0x947   : > { %v6605_v49 = vadd.f32 %v6553_v48, %v12030_v51  ;;  %v7051_v10 = vadd.f32 %v12120_v20, %v7015_v50  ;;  %v6972_v44 = vpop.f32.mrf.mxu1 }
 0x948   : > { %v6835_v7 = vpop.f32.mrf.mxu0 }
 0x949   : > { %v6742_v31 = vadd.f32 %v6690_v21, %v6605_v49  ;;  %v7083_v22 = vmax.f32 %v7051_v10, 0.0 }
 0x94b   : > { %v6879_v37 = vadd.f32 %v6827_v43, %v6742_v31  ;;  %v6693_v47 = vpop.f32.mrf.mxu3  ;;  %7165 = vrot.lane.b32.xlu2 %v7083_v22, %s8053_s30 }
 0x94d   : > { %v7016_v40 = vadd.f32 %v6964_v36, %v6879_v37  ;;  %v7138_v34 = vpop.permute.xlu0 %7137 }
 0x94e   : > { %v6556_v29 = vpop.f32.mrf.mxu2  ;;  %7230 = vst.msk [vmem:[%s9843_s14 + $0x20] sm:$0xff] %vm7225_vm11, %v7138_v34 }
 0x94f   : > { %v6606_v42 = vadd.f32 %v6556_v29, %v12033_v1  ;;  %v7052_v51 = vadd.f32 %v12120_v20, %v7016_v40  ;;  %v6974_v18 = vpop.f32.mrf.mxu1 }
 0x950   : > { %v6837_v30 = vpop.f32.mrf.mxu0 }
 0x951   : > { %v6743_v15 = vadd.f32 %v6693_v47, %v6606_v42  ;;  %v7084_v26 = vmax.f32 %v7052_v51, 0.0 }
 0x953   : > { %v6880_v59 = vadd.f32 %v6830_v38, %v6743_v15  ;;  %v6695_v16 = vpop.f32.mrf.mxu3  ;;  %7167 = vrot.lane.b32.xlu0 %v7084_v26, %s8053_s30 }
 0x955   : > { %v7017_v5 = vadd.f32 %v6967_v32, %v6880_v59  ;;  %v7140_v14 = vpop.permute.xlu1 %7139 }
 0x956   : > { %7231 = vst.msk [vmem:[%s9843_s14 + $0x28] sm:$0xff] %vm7225_vm11, %v7140_v14  ;;  %v6558_v45 = vpop.f32.mrf.mxu2 }
 0x957   : > { %v6607_v6 = vadd.f32 %v6558_v45, %v12044_v58  ;;  %v7053_v1 = vadd.f32 %v12120_v20, %v7017_v5 }
 0x958   : > { %v6840_v19 = vpop.f32.mrf.mxu0 }
 0x959   : > { %v6744_v62 = vadd.f32 %v6695_v16, %v6607_v6  ;;  %v7085_v27 = vmax.f32 %v7053_v1, 0.0 }
 0x95b   : > { %v6881_v43 = vadd.f32 %v6832_v2, %v6744_v62  ;;  %v6698_v17 = vpop.f32.mrf.mxu3  ;;  %7169 = vrot.lane.b32.xlu1 %v7085_v27, %s8053_s30 }
 0x95d   : > { %v7018_v35 = vadd.f32 %v6969_v24, %v6881_v43  ;;  %v7148_v36 = vpop.permute.xlu2 %7147 }
 0x95e   : > { %7235 = vst.msk [vmem:[%s9843_s14 + $0x48] sm:$0xff] %vm7225_vm11, %v7148_v36  ;;  %v6561_v23 = vpop.f32.mrf.mxu2 }
 0x95f   : > { %v6608_v11 = vadd.f32 %v6561_v23, %v12047_v53  ;;  %v7054_v58 = vadd.f32 %v12120_v20, %v7018_v35  ;;  %v6977_v53 = vpop.f32.mrf.mxu1 }
 0x961   : > { %v6745_v9 = vadd.f32 %v6698_v17, %v6608_v11  ;;  %v7086_v54 = vmax.f32 %v7054_v58, 0.0 }
 0x963   : > { %v6882_v25 = vadd.f32 %v6835_v7, %v6745_v9  ;;  %v6700_v63 = vpop.f32.mrf.mxu3  ;;  %7171 = vrot.lane.b32.xlu2 %v7086_v54, %s8053_s30 }
 0x965   : > { %v7019_v38 = vadd.f32 %v6972_v44, %v6882_v25  ;;  %v7144_v60 = vpop.permute.xlu0 %7143 }
 0x966   : > { %7233 = vst.msk [vmem:[%s9843_s14 + $0x38] sm:$0xff] %vm7225_vm11, %v7144_v60  ;;  %v6563_v13 = vpop.f32.mrf.mxu2 }
 0x967   : > { %v6609_v57 = vadd.f32 %v6563_v13, %v12058_v39  ;;  %v7055_v56 = vadd.f32 %v12120_v20, %v7019_v38  ;;  %v6842_v39 = vpop.f32.mrf.mxu0  ;;  %v6979_v31 = vpop.f32.mrf.mxu1 }
 0x969   : > { %v6746_v32 = vadd.f32 %v6700_v63, %v6609_v57  ;;  %v7087_v8 = vmax.f32 %v7055_v56, 0.0 }
 0x96b   : > { %v6883_v3 = vadd.f32 %v6837_v30, %v6746_v32  ;;  %v6703_v12 = vpop.f32.mrf.mxu3  ;;  %7173 = vrot.lane.b32.xlu0 %v7087_v8, %s8053_s30 }
 0x96d   : > { %v7020_v21 = vadd.f32 %v6974_v18, %v6883_v3  ;;  %v7146_v50 = vpop.permute.xlu1 %7145 }
 0x96e   : > { %7234 = vst.msk [vmem:[%s9843_s14 + $0x40] sm:$0xff] %vm7225_vm11, %v7146_v50  ;;  %v6566_v46 = vpop.f32.mrf.mxu2 }
 0x96f   : > { %v6610_v48 = vadd.f32 %v6566_v46, %v12061_v28  ;;  %v7056_v49 = vadd.f32 %v12120_v20, %v7020_v21  ;;  %v6845_v51 = vpop.f32.mrf.mxu0  ;;  %v6982_v7 = vpop.f32.mrf.mxu1 }
 0x971   : > { %v6747_v10 = vadd.f32 %v6703_v12, %v6610_v48  ;;  %v7088_v2 = vmax.f32 %v7056_v49, 0.0 }
 0x973   : > { %v6884_v22 = vadd.f32 %v6840_v19, %v6747_v10  ;;  %v6705_v24 = vpop.f32.mrf.mxu3  ;;  %7175 = vrot.lane.b32.xlu1 %v7088_v2, %s8053_s30 }
 0x975   : > { %v7021_v37 = vadd.f32 %v6977_v53, %v6884_v22  ;;  %v7154_v47 = vpop.permute.xlu2 %7153 }
 0x976   : > { %7238 = vst.msk [vmem:[%s9843_s14 + $0x60] sm:$0xff] %vm7225_vm11, %v7154_v47  ;;  %v6568_v40 = vpop.f32.mrf.mxu2 }
 0x977   : > { %v6611_v34 = vadd.f32 %v6568_v40, %v12072_v33  ;;  %v7057_v28 = vadd.f32 %v12120_v20, %v7021_v37  ;;  %v6847_v62 = vpop.f32.mrf.mxu0  ;;  %v6984_v17 = vpop.f32.mrf.mxu1 }
 0x979   : > { %v6748_v29 = vadd.f32 %v6705_v24, %v6611_v34  ;;  %v7089_v42 = vmax.f32 %v7057_v28, 0.0 }
 0x97b   : > { %v6885_v15 = vadd.f32 %v6842_v39, %v6748_v29  ;;  %v6708_v26 = vpop.f32.mrf.mxu3  ;;  %7177 = vrot.lane.b32.xlu2 %v7089_v42, %s8053_s30 }
 0x97d   : > { %v7022_v59 = vadd.f32 %v6979_v31, %v6885_v15  ;;  %v7150_v16 = vpop.permute.xlu0 %7149 }
 0x97e   : > { %7236 = vst.msk [vmem:[%s9843_s14 + $0x50] sm:$0xff] %vm7225_vm11, %v7150_v16  ;;  %v6571_v44 = vpop.f32.mrf.mxu2 }
 0x97f   : > { %v6612_v5 = vadd.f32 %v6571_v44, %v12075_v4  ;;  %v7058_v33 = vadd.f32 %v12120_v20, %v7022_v59  ;;  %v6850_v58 = vpop.f32.mrf.mxu0  ;;  %v6987_v25 = vpop.f32.mrf.mxu1 }
 0x981   : > { %v6749_v14 = vadd.f32 %v6708_v26, %v6612_v5  ;;  %v7090_v45 = vmax.f32 %v7058_v33, 0.0 }
 0x983   : > { %v6886_v6 = vadd.f32 %v6845_v51, %v6749_v14  ;;  %v6710_v1 = vpop.f32.mrf.mxu3  ;;  %7179 = vrot.lane.b32.xlu0 %v7090_v45, %s8053_s30 }
 0x985   : > { %v7023_v27 = vadd.f32 %v6982_v7, %v6886_v6  ;;  %v7152_v43 = vpop.permute.xlu1 %7151 }
 0x986   : > { %7237 = vst.msk [vmem:[%s9843_s14 + $0x58] sm:$0xff] %vm7225_vm11, %v7152_v43  ;;  %v6573_v30 = vpop.f32.mrf.mxu2 }
 0x987   : > { %v6613_v35 = vadd.f32 %v6573_v30, %v12086_v0  ;;  %v7059_v4 = vadd.f32 %v12120_v20, %v7023_v27  ;;  %v6852_v32 = vpop.f32.mrf.mxu0 }
 0x989   : > { %v6750_v36 = vadd.f32 %v6710_v1, %v6613_v35  ;;  %v7091_v18 = vmax.f32 %v7059_v4, 0.0 }
 0x98b   : > { %v6887_v23 = vadd.f32 %v6847_v62, %v6750_v36  ;;  %v6713_v11 = vpop.f32.mrf.mxu3  ;;  %7181 = vrot.lane.b32.xlu1 %v7091_v18, %s8053_s30 }
 0x98d   : > { %v7024_v9 = vadd.f32 %v6984_v17, %v6887_v23  ;;  %v7160_v54 = vpop.permute.xlu2 %7159 }
 0x98e   : > { %7241 = vst.msk [vmem:[%s9843_s14 + $0x78] sm:$0xff] %vm7225_vm11, %v7160_v54  ;;  %v6576_v63 = vpop.f32.mrf.mxu2 }
 0x98f   : > { %v6614_v38 = vadd.f32 %v6576_v63, %v12089_v41  ;;  %v7060_v0 = vadd.f32 %v12120_v20, %v7024_v9  ;;  %v6989_v41 = vpop.f32.mrf.mxu1 }
 0x991   : > { %v6751_v60 = vadd.f32 %v6713_v11, %v6614_v38  ;;  %v7092_v19 = vmax.f32 %v7060_v0, 0.0 }
 0x993   : > { %v6888_v13 = vadd.f32 %v6850_v58, %v6751_v60  ;;  %7183 = vrot.lane.b32.xlu2 %v7092_v19, %s8053_s30  ;;  %v6715_v57 = vpop.f32.mrf.mxu3 }
 0x995   : > { %v7025_v56 = vadd.f32 %v6987_v25, %v6888_v13  ;;  %v7156_v53 = vpop.permute.xlu0 %7155 }
 0x996   : > { %7239 = vst.msk [vmem:[%s9843_s14 + $0x68] sm:$0xff] %vm7225_vm11, %v7156_v53  ;;  %v6578_v8 = vpop.f32.mrf.mxu2 }
 0x997   : > { %v6615_v3 = vadd.f32 %v6578_v8, %v12100_v55  ;;  %v7061_v12 = vadd.f32 %v12120_v20, %v7025_v56  ;;  %v6855_v55 = vpop.f32.mrf.mxu0  ;;  %v6992_v37 = vpop.f32.mrf.mxu1 }
 0x999   : > { %v6752_v21 = vadd.f32 %v6715_v57, %v6615_v3  ;;  %v7093_v50 = vmax.f32 %v7061_v12, 0.0 }
 0x99b   : > { %v6889_v46 = vadd.f32 %v6852_v32, %v6752_v21  ;;  %7185 = vrot.lane.b32.xlu0 %v7093_v50, %s8053_s30  ;;  %v6718_v39 = vpop.f32.mrf.mxu3 }
 0x99d   : > { %v7026_v48 = vadd.f32 %v6989_v41, %v6889_v46  ;;  %v7158_v49 = vpop.permute.xlu1 %7157 }
 0x99e   : > { %7240 = vst.msk [vmem:[%s9843_s14 + $0x70] sm:$0xff] %vm7225_vm11, %v7158_v49  ;;  %v6581_v10 = vpop.f32.mrf.mxu2 }
 0x99f   : > { %v6616_v2 = vadd.f32 %v6581_v10, %v12103_v61  ;;  %v7062_v31 = vadd.f32 %v12120_v20, %v7026_v48  ;;  %v6857_v26 = vpop.f32.mrf.mxu0  ;;  %v6994_v59 = vpop.f32.mrf.mxu1 }
 0x9a1   : > { %v6753_v22 = vadd.f32 %v6718_v39, %v6616_v2  ;;  %v7094_v24 = vmax.f32 %v7062_v31, 0.0 }
 0x9a3   : > { %v6890_v47 = vadd.f32 %v6855_v55, %v6753_v22  ;;  %7187 = vrot.lane.b32.xlu1 %v7094_v24, %s8053_s30  ;;  %v6720_v42 = vpop.f32.mrf.mxu3 }
 0x9a5   : > { %v7027_v40 = vadd.f32 %v6992_v37, %v6890_v47  ;;  %v7166_v34 = vpop.permute.xlu2 %7165 }
 0x9a6   : > { %7244 = vst.msk [vmem:[%s9843_s14 + $0x90] sm:$0xff] %vm7225_vm11, %v7166_v34  ;;  %v6583_v28 = vpop.f32.mrf.mxu2 }
 0x9a7   : > { %v6617_v29 = vadd.f32 %v6583_v28, %v12114_v52  ;;  %v7063_v61 = vadd.f32 %v12120_v20, %v7027_v40 }
 0x9a9   : > { %v6754_v51 = vadd.f32 %v6720_v42, %v6617_v29  ;;  %v7095_v15 = vmax.f32 %v7063_v61, 0.0 }
 0x9ab   : > { %v6891_v7 = vadd.f32 %v6857_v26, %v6754_v51  ;;  %7189 = vrot.lane.b32.xlu2 %v7095_v15, %s8053_s30 }
 0x9ad   : > { %v7028_v16 = vadd.f32 %v6994_v59, %v6891_v7  ;;  %v7162_v44 = vpop.permute.xlu0 %7161 }
 0x9ae   : > { %7242 = vst.msk [vmem:[%s9843_s14 + $0x80] sm:$0xff] %vm7225_vm11, %v7162_v44 }
 0x9af   : > { %v7064_v52 = vadd.f32 %v12120_v20, %v7028_v16 }
 0x9b1   : > { %v7096_v5 = vmax.f32 %v7064_v52, 0.0 }
 0x9b3   : > { %7191 = vrot.lane.b32.xlu0 %v7096_v5, %s8053_s30 }
 0x9b5   : > { %v7164_v33 = vpop.permute.xlu1 %7163 }
 0x9b6   : > { %7243 = vst.msk [vmem:[%s9843_s14 + $0x88] sm:$0xff] %vm7225_vm11, %v7164_v33 }
 0x9bd   : > { %v7172_v14 = vpop.permute.xlu2 %7171 }
 0x9be   : > { %7247 = vst.msk [vmem:[%s9843_s14 + $0xa8] sm:$0xff] %vm7225_vm11, %v7172_v14 }
 0x9c5   : > { %v7168_v45 = vpop.permute.xlu0 %7167 }
 0x9c6   : > { %7245 = vst.msk [vmem:[%s9843_s14 + $0x98] sm:$0xff] %vm7225_vm11, %v7168_v45 }
 0x9cd   : > { %v7170_v6 = vpop.permute.xlu1 %7169 }
 0x9ce   : > { %7246 = vst.msk [vmem:[%s9843_s14 + $0xa0] sm:$0xff] %vm7225_vm11, %v7170_v6 }
 0x9d5   : > { %v7178_v20 = vpop.permute.xlu2 %7177 }
 0x9d6   : > { %7250 = vst.msk [vmem:[%s9843_s14 + $0xc0] sm:$0xff] %vm7225_vm11, %v7178_v20 }
 0x9dd   : > { %v7174_v1 = vpop.permute.xlu0 %7173 }
 0x9de   : > { %7248 = vst.msk [vmem:[%s9843_s14 + $0xb0] sm:$0xff] %vm7225_vm11, %v7174_v1 }
 0x9e5   : > { %v7176_v62 = vpop.permute.xlu1 %7175 }
 0x9e6   : > { %7249 = vst.msk [vmem:[%s9843_s14 + $0xb8] sm:$0xff] %vm7225_vm11, %v7176_v62 }
 0x9ed   : > { %v7184_v27 = vpop.permute.xlu2 %7183 }
 0x9ee   : > { %7253 = vst.msk [vmem:[%s9843_s14 + $0xd8] sm:$0xff] %vm7225_vm11, %v7184_v27 }
 0x9f5   : > { %v7180_v43 = vpop.permute.xlu0 %7179 }
 0x9f6   : > { %7251 = vst.msk [vmem:[%s9843_s14 + $0xc8] sm:$0xff] %vm7225_vm11, %v7180_v43 }
 0x9fd   : > { %v7182_v17 = vpop.permute.xlu1 %7181 }
 0x9fe   : > { %7252 = vst.msk [vmem:[%s9843_s14 + $0xd0] sm:$0xff] %vm7225_vm11, %v7182_v17 }
 0xa05   : > { %v7190_v30 = vpop.permute.xlu2 %7189 }
 0xa06   : > { %7256 = vst.msk [vmem:[%s9843_s14 + $0xf0] sm:$0xff] %vm7225_vm11, %v7190_v30 }
 0xa0d   : > { %v7186_v35 = vpop.permute.xlu0 %7185 }
 0xa0e   : > { %7254 = vst.msk [vmem:[%s9843_s14 + $0xe0] sm:$0xff] %vm7225_vm11, %v7186_v35 }
 0xa15   : > { %v7188_v4 = vpop.permute.xlu1 %7187 }
 0xa16   : > { %7255 = vst.msk [vmem:[%s9843_s14 + $0xe8] sm:$0xff] %vm7225_vm11, %v7188_v4 }
 0xa25   : > { %v7192_v36 = vpop.permute.xlu0 %7191 }
 0xa26   : > { %7257 = vst.msk [vmem:[%s9843_s14 + $0xf8] sm:$0xff] %vm7225_vm11, %v7192_v36 }
 0xa27   : > { %8011 = shalt.err (!%p8008_p3)
}
 0xa28   : > { %s8054_s12 = smov 128  }
 0xa29   : > { %7928 = dma.vmem_to_hbm [thread:$0]  (%p8123_p5), %s7272_s13, 4096, %s7274_s15, %s7259_s16, %s8054_s12, %s8054_s12, %s8052_s10  }
 0xa2a PF: > { %p7934_p4 = scmp.ge.s32.totalorder %s8046_s21, 2  ;;  %s7288_s14 = sand.u32 1, %s8034_s18  }
 0xa2b   : > { %s7289_s6 = scalar_lea.sflag [#allocation5], %s7288_s14 }
 0xa2c   : > { %p7931_p7 = pnand %p7934_p4, %p8127_p6 }
 0xa2e   : > { %p7932_p8 = pneg %p7931_p7 }
 0xa30   : > { %8029 = dma.done.wait (%p7932_p8), %s7289_s6, 4096  }
 0xa31   : > { %8031 = vsyncadd (%p7932_p8), %s7289_s6, 4294963200  ;;  %p15_p9 = scmp.ge.s32.totalorder %s8110_s24, 4   ;;  %s13241_s18 = smov %s8038_s19 }
 0xa32   : > { %s13242_s19 = smov %s8042_s20  ;;  %s13243_s20 = smov %s8121_s27 }
 0xa33   : > { %s13244_s21 = smov %s8110_s24  ;;  %17 = sbr.rel (!%p15_p9) target bundleno = 3 (0x3), region = 109 }
 0xa38   :  { %7295 = vsyncpa [#allocation5], 1 }
 0xa39   :  { %7297 = vsyncpa [#allocation5 + $0x1], 1 }

</bundles_post_ra>
